<compile_context>
chip_gen: v6e
topology: v6e:2x2x1
jax: 0.10.0
libtpu: 0.0.40
codegen_flags: <defaults>
</compile_context>

<pallas_src>
import jax
import jax.numpy as jnp
from jax import lax
from jax.experimental import pallas as pl
from jax.experimental.pallas import tpu as pltpu

INPUT_SIZE = 24
HIDDEN1 = 2048
HIDDEN2 = 1024
HIDDEN3 = 256
LN_EPS = 1e-5


def _round_up(x, m):
    return ((x + m - 1) // m) * m


def _choose_tiling(batch):
    """Pick (tile_b, padded_b): minimize padding waste, keep >=2 grid steps
    when the batch allows (v7x megacore), otherwise prefer larger tiles."""
    padded8 = _round_up(max(batch, 1), 8)
    if padded8 <= 256:
        return padded8, padded8
    best_key, best = None, None
    for t in (512, 256, 128, 64):
        p = _round_up(padded8, t)
        nt = p // t
        key = (p - padded8, 0 if nt >= 2 else 1, -t)
        if best_key is None or key < best_key:
            best_key, best = key, (t, p)
    return best


# ----------------------------------------------------------------------------
# Pallas kernel: forward pass for one (TILE_B, INPUT_SIZE) batch tile.
# All parameters are VMEM-resident across grid steps (constant index_map,
# single-buffered).
# ----------------------------------------------------------------------------
def _critic_kernel(
    x_ref,
    w1_ref, b1_ref, g1_ref, be1_ref,
    w2_ref, b2_ref, g2_ref, be2_ref,
    w3_ref, b3_ref,
    c3_ref, sumc3_ref, k3_ref,
    out_ref,
):
    def row_stats(y, h_dim):
        # Fused single-pass LayerNorm statistics (f32): sum and sum-of-squares.
        inv_h = jnp.float32(1.0 / h_dim)
        s1 = jnp.sum(y, axis=-1, keepdims=True)
        s2 = jnp.sum(y * y, axis=-1, keepdims=True)
        mean = s1 * inv_h
        var = s2 * inv_h - mean * mean
        return mean, lax.rsqrt(var + LN_EPS)

    def dense_relu_ln(h_bf16, w_ref, b_ref, g_ref, be_ref):
        # Linear on the MXU: bf16 inputs, f32 accumulation.
        y = jnp.dot(h_bf16, w_ref[...], preferred_element_type=jnp.float32)
        y = jnp.maximum(y + b_ref[...], 0.0)           # bias + ReLU (VPU, f32)
        mean, rstd = row_stats(y, w_ref.shape[1])
        # Normalize + affine in f32, emit bf16 activations for the next matmul.
        return ((y - mean) * rstd * g_ref[...] + be_ref[...]).astype(jnp.bfloat16)

    h = dense_relu_ln(x_ref[...].astype(jnp.bfloat16), w1_ref, b1_ref, g1_ref, be1_ref)
    h = dense_relu_ln(h, w2_ref, b2_ref, g2_ref, be2_ref)

    # Layer 3 with LN3's affine and the critic head folded together:
    #   head(LN3(y)) = rstd3 * (sum(c*y) - mean3 * sum(c)) + k
    # where c = w4 * g3 and k = sum(w4 * be3) + b4 (precomputed on the host).
    y = jnp.dot(h, w3_ref[...], preferred_element_type=jnp.float32)
    y = jnp.maximum(y + b3_ref[...], 0.0)
    mean, rstd = row_stats(y, w3_ref.shape[1])
    sc = jnp.sum(y * c3_ref[...], axis=-1, keepdims=True)
    out = rstd * (sc - mean * sumc3_ref[...]) + k3_ref[...]
    out_ref[...] = out.astype(out_ref.dtype)


def critic_net_pallas(x, params):
    """x: (B, INPUT_SIZE) f32; params: dict (weights bf16, already spectral-normalized)."""
    batch = x.shape[0]
    tile_b, padded_b = _choose_tiling(batch)
    if padded_b != batch:
        x = jnp.pad(x, ((0, padded_b - batch), (0, 0)))
    num_tiles = padded_b // tile_b

    # Fold LayerNorm-3 affine + critic head (host-side, tiny).
    c3 = (params["w4"] * params["g3"]).astype(jnp.float32)              # (1, H3)
    sum_c3 = jnp.sum(c3).reshape(1, 1)
    k3 = (jnp.sum(params["w4"] * params["be3"]) + params["b4"]).reshape(1, 1)

    operands = (
        x,
        params["w1"], params["b1"], params["g1"], params["be1"],
        params["w2"], params["b2"], params["g2"], params["be2"],
        params["w3"], params["b3"],
        c3, sum_c3, k3,
    )

    def resident_spec(a):
        # Whole array as one block with a constant index_map: DMA'd once and
        # kept VMEM-resident.  Single-buffered (Buffered(1)) so the default
        # second pipeline buffer (dead for constant index_maps) is not allocated.
        return pl.BlockSpec(a.shape, lambda i: (0, 0),
                            pipeline_mode=pl.Buffered(1))

    in_specs = [pl.BlockSpec((tile_b, INPUT_SIZE), lambda i: (i, 0))]
    in_specs += [resident_spec(a) for a in operands[1:]]
    # Output block stays (tile_b, 1): writeback is ~1 KiB/step, negligible next
    # to the per-step matmul work, so no lane-dense relayout is attempted.
    out_specs = pl.BlockSpec((tile_b, 1), lambda i: (i, 0))

    param_bytes = sum(int(a.size) * a.dtype.itemsize for a in operands[1:])
    flops = 2 * padded_b * (
        INPUT_SIZE * HIDDEN1 + HIDDEN1 * HIDDEN2 + HIDDEN2 * HIDDEN3 + HIDDEN3
    )
    cost = pl.CostEstimate(
        flops=int(flops),
        transcendentals=int(3 * padded_b),   # one rsqrt per row per LayerNorm
        bytes_accessed=int(param_bytes + x.size * x.dtype.itemsize + padded_b * 4),
    )

    out = pl.pallas_call(
        _critic_kernel,
        out_shape=jax.ShapeDtypeStruct((padded_b, 1), jnp.float32),
        grid=(num_tiles,),
        in_specs=in_specs,
        out_specs=out_specs,
        compiler_params=pltpu.CompilerParams(
            dimension_semantics=("parallel",),
            vmem_limit_bytes=32 * 1024 * 1024,
        ),
        cost_estimate=cost,
    )(*operands)

    return out[:batch]


# ----------------------------------------------------------------------------
# Plain-JAX glue: parameter init + spectral normalization (power iteration),
# matching torch.nn.utils.spectral_norm semantics (W_eff = W / sigma_max(W)).
# ----------------------------------------------------------------------------
def _linear_init(key, fan_in, fan_out):
    kw, kb = jax.random.split(key)
    bound = 1.0 / jnp.sqrt(fan_in)
    # PyTorch stores weight as (out, in); transposed later for the kernel.
    w = jax.random.uniform(kw, (fan_out, fan_in), jnp.float32, -bound, bound)
    b = jax.random.uniform(kb, (fan_out,), jnp.float32, -bound, bound)
    return w, b


def _spectral_normalize(w, key, n_iter=30, eps=1e-12):
    # w: (out, in).  Power iteration for the largest singular value.
    u = jax.random.normal(key, (w.shape[0],), jnp.float32)
    u = u / (jnp.linalg.norm(u) + eps)
    v = jnp.zeros((w.shape[1],), jnp.float32)
    for _ in range(n_iter):
        v = w.T @ u
        v = v / (jnp.linalg.norm(v) + eps)
        u = w @ v
        u = u / (jnp.linalg.norm(u) + eps)
    sigma = u @ (w @ v)
    return w / sigma


def make_params(key):
    keys = jax.random.split(key, 8)
    w1, b1 = _linear_init(keys[0], INPUT_SIZE, HIDDEN1)
    w2, b2 = _linear_init(keys[1], HIDDEN1, HIDDEN2)
    w3, b3 = _linear_init(keys[2], HIDDEN2, HIDDEN3)
    w4, b4 = _linear_init(keys[3], HIDDEN3, 1)

    # spectral_norm wraps the three shared Linear layers (not the critic head)
    w1 = _spectral_normalize(w1, keys[4])
    w2 = _spectral_normalize(w2, keys[5])
    w3 = _spectral_normalize(w3, keys[6])

    params = {
        # kernel-layout weights: (in, out), big matmul weights in bf16
        "w1": w1.T.astype(jnp.bfloat16), "b1": b1.reshape(1, HIDDEN1),
        "g1": jnp.ones((1, HIDDEN1), jnp.float32), "be1": jnp.zeros((1, HIDDEN1), jnp.float32),
        "w2": w2.T.astype(jnp.bfloat16), "b2": b2.reshape(1, HIDDEN2),
        "g2": jnp.ones((1, HIDDEN2), jnp.float32), "be2": jnp.zeros((1, HIDDEN2), jnp.float32),
        "w3": w3.T.astype(jnp.bfloat16), "b3": b3.reshape(1, HIDDEN3),
        "g3": jnp.ones((1, HIDDEN3), jnp.float32), "be3": jnp.zeros((1, HIDDEN3), jnp.float32),
        # head weight kept f32 as a (1, HIDDEN3) row (folded with g3/be3 at call time)
        "w4": w4.reshape(1, HIDDEN3).astype(jnp.float32), "b4": b4.reshape(1, 1),
    }
    return params


def critic_net_reference(x, params):
    """Pure-JAX reference mirroring the kernel numerics (bf16 matmuls, f32 LN)."""
    def block(h, w_bf16, b, g, be):
        y = jnp.dot(h.astype(jnp.bfloat16), w_bf16,
                    preferred_element_type=jnp.float32) + b
        y = jnp.maximum(y, 0.0)
        mean = jnp.mean(y, axis=-1, keepdims=True)
        var = jnp.mean((y - mean) ** 2, axis=-1, keepdims=True)
        y = (y - mean) / jnp.sqrt(var + LN_EPS)
        return y * g + be

    h = block(x, params["w1"], params["b1"], params["g1"], params["be1"])
    h = block(h, params["w2"], params["b2"], params["g2"], params["be2"])
    h = block(h, params["w3"], params["b3"], params["g3"], params["be3"])
    return jnp.sum(h * params["w4"], axis=-1, keepdims=True) + params["b4"]


if __name__ == "__main__":
    key = jax.random.PRNGKey(0)
    k_params, k_x = jax.random.split(key)

    params = make_params(k_params)
    batch = 8
    x = jax.random.normal(k_x, (batch, INPUT_SIZE), jnp.float32)

    value = critic_net_pallas(x, params)
    value = jax.block_until_ready(value)

    ref = critic_net_reference(x, params)
    assert value.shape == (batch, 1)
    assert jnp.allclose(value, ref, atol=1e-2, rtol=1e-2), (value, ref)

    print("KERNEL_OK")
</pallas_src>

<mosaic_0001>
module attributes {stable_mosaic.version = 11 : i64} {
  func.func @_critic_kernel(%arg0: i32, %arg1: memref<8x24xf32, #tpu.memory_space<vmem>>, %arg2: memref<24x2048xbf16, #tpu.memory_space<vmem>>, %arg3: memref<1x2048xf32, #tpu.memory_space<vmem>>, %arg4: memref<1x2048xf32, #tpu.memory_space<vmem>>, %arg5: memref<1x2048xf32, #tpu.memory_space<vmem>>, %arg6: memref<2048x1024xbf16, #tpu.memory_space<vmem>>, %arg7: memref<1x1024xf32, #tpu.memory_space<vmem>>, %arg8: memref<1x1024xf32, #tpu.memory_space<vmem>>, %arg9: memref<1x1024xf32, #tpu.memory_space<vmem>>, %arg10: memref<1024x256xbf16, #tpu.memory_space<vmem>>, %arg11: memref<1x256xf32, #tpu.memory_space<vmem>>, %arg12: memref<1x256xf32, #tpu.memory_space<vmem>>, %arg13: memref<1x1xf32, #tpu.memory_space<vmem>>, %arg14: memref<1x1xf32, #tpu.memory_space<vmem>>, %arg15: memref<8x1xf32, #tpu.memory_space<vmem>>) attributes {dimension_semantics = [#tpu.dimension_semantics<parallel>], iteration_bounds = array<i64: 1>, scalar_prefetch = 0 : i64, scratch_operands = 0 : i64, tpu.core_type = #tpu.core_type<tc>, window_params = [{transform_indices = @transform_0, window_bounds = array<i64: 8, 24>}, {pipeline_mode = #tpu.pipeline_mode<synchronous>, transform_indices = @transform_1, window_bounds = array<i64: 24, 2048>}, {pipeline_mode = #tpu.pipeline_mode<synchronous>, transform_indices = @transform_2, window_bounds = array<i64: 1, 2048>}, {pipeline_mode = #tpu.pipeline_mode<synchronous>, transform_indices = @transform_3, window_bounds = array<i64: 1, 2048>}, {pipeline_mode = #tpu.pipeline_mode<synchronous>, transform_indices = @transform_4, window_bounds = array<i64: 1, 2048>}, {pipeline_mode = #tpu.pipeline_mode<synchronous>, transform_indices = @transform_5, window_bounds = array<i64: 2048, 1024>}, {pipeline_mode = #tpu.pipeline_mode<synchronous>, transform_indices = @transform_6, window_bounds = array<i64: 1, 1024>}, {pipeline_mode = #tpu.pipeline_mode<synchronous>, transform_indices = @transform_7, window_bounds = array<i64: 1, 1024>}, {pipeline_mode = #tpu.pipeline_mode<synchronous>, transform_indices = @transform_8, window_bounds = array<i64: 1, 1024>}, {pipeline_mode = #tpu.pipeline_mode<synchronous>, transform_indices = @transform_9, window_bounds = array<i64: 1024, 256>}, {pipeline_mode = #tpu.pipeline_mode<synchronous>, transform_indices = @transform_10, window_bounds = array<i64: 1, 256>}, {pipeline_mode = #tpu.pipeline_mode<synchronous>, transform_indices = @transform_11, window_bounds = array<i64: 1, 256>}, {pipeline_mode = #tpu.pipeline_mode<synchronous>, transform_indices = @transform_12, window_bounds = array<i64: 1, 1>}, {pipeline_mode = #tpu.pipeline_mode<synchronous>, transform_indices = @transform_13, window_bounds = array<i64: 1, 1>}, {transform_indices = @transform_14, window_bounds = array<i64: 8, 1>}]} {
    %c0 = arith.constant 0 : index
    %c0_0 = arith.constant 0 : index
    %0 = vector.load %arg1[%c0, %c0_0] : memref<8x24xf32, #tpu.memory_space<vmem>>, vector<8x24xf32>
    %1 = arith.truncf %0 : vector<8x24xf32> to vector<8x24xbf16>
    %c0_1 = arith.constant 0 : index
    %c0_2 = arith.constant 0 : index
    %2 = vector.load %arg2[%c0_1, %c0_2] : memref<24x2048xbf16, #tpu.memory_space<vmem>>, vector<24x2048xbf16>
    %cst = arith.constant dense<0.000000e+00> : vector<8x2048xf32>
    %3 = tpu.matmul %1, %2, %cst {dimension_numbers = #tpu.dot_dimension_numbers<[1], [0], [0], [1], [0, 0, 1, 1], [], []>} : vector<8x24xbf16>, vector<24x2048xbf16>, vector<8x2048xf32> -> vector<8x2048xf32>
    %c0_3 = arith.constant 0 : index
    %c0_4 = arith.constant 0 : index
    %4 = vector.load %arg3[%c0_3, %c0_4] : memref<1x2048xf32, #tpu.memory_space<vmem>>, vector<1x2048xf32>
    %5 = vector.broadcast %4 : vector<1x2048xf32> to vector<8x2048xf32>
    %6 = arith.addf %3, %5 : vector<8x2048xf32>
    %cst_5 = arith.constant 0.000000e+00 : f32
    %7 = vector.broadcast %cst_5 : f32 to vector<8x2048xf32>
    %8 = arith.maximumf %6, %7 : vector<8x2048xf32>
    %cst_6 = arith.constant dense<0.000000e+00> : vector<8xf32>
    %9 = vector.multi_reduction <add>, %8, %cst_6 [1] : vector<8x2048xf32> to vector<8xf32>
    %10 = vector.shape_cast %9 : vector<8xf32> to vector<8x1xf32>
    %11 = arith.mulf %8, %8 : vector<8x2048xf32>
    %cst_7 = arith.constant dense<0.000000e+00> : vector<8xf32>
    %12 = vector.multi_reduction <add>, %11, %cst_7 [1] : vector<8x2048xf32> to vector<8xf32>
    %13 = vector.shape_cast %12 : vector<8xf32> to vector<8x1xf32>
    %cst_8 = arith.constant 4.8828125E-4 : f32
    %14 = vector.broadcast %cst_8 : f32 to vector<8x1xf32>
    %15 = arith.mulf %10, %14 : vector<8x1xf32>
    %cst_9 = arith.constant 4.8828125E-4 : f32
    %16 = vector.broadcast %cst_9 : f32 to vector<8x1xf32>
    %17 = arith.mulf %13, %16 : vector<8x1xf32>
    %18 = arith.mulf %15, %15 : vector<8x1xf32>
    %19 = arith.subf %17, %18 : vector<8x1xf32>
    %cst_10 = arith.constant 9.99999974E-6 : f32
    %20 = vector.broadcast %cst_10 : f32 to vector<8x1xf32>
    %21 = arith.addf %19, %20 : vector<8x1xf32>
    %22 = math.rsqrt %21 : vector<8x1xf32>
    %23 = vector.broadcast %15 : vector<8x1xf32> to vector<8x2048xf32>
    %24 = arith.subf %8, %23 : vector<8x2048xf32>
    %25 = vector.broadcast %22 : vector<8x1xf32> to vector<8x2048xf32>
    %26 = arith.mulf %24, %25 : vector<8x2048xf32>
    %c0_11 = arith.constant 0 : index
    %c0_12 = arith.constant 0 : index
    %27 = vector.load %arg4[%c0_11, %c0_12] : memref<1x2048xf32, #tpu.memory_space<vmem>>, vector<1x2048xf32>
    %28 = vector.broadcast %27 : vector<1x2048xf32> to vector<8x2048xf32>
    %29 = arith.mulf %26, %28 : vector<8x2048xf32>
    %c0_13 = arith.constant 0 : index
    %c0_14 = arith.constant 0 : index
    %30 = vector.load %arg5[%c0_13, %c0_14] : memref<1x2048xf32, #tpu.memory_space<vmem>>, vector<1x2048xf32>
    %31 = vector.broadcast %30 : vector<1x2048xf32> to vector<8x2048xf32>
    %32 = arith.addf %29, %31 : vector<8x2048xf32>
    %33 = arith.truncf %32 : vector<8x2048xf32> to vector<8x2048xbf16>
    %c0_15 = arith.constant 0 : index
    %c0_16 = arith.constant 0 : index
    %34 = vector.load %arg6[%c0_15, %c0_16] : memref<2048x1024xbf16, #tpu.memory_space<vmem>>, vector<2048x1024xbf16>
    %cst_17 = arith.constant dense<0.000000e+00> : vector<8x1024xf32>
    %35 = tpu.matmul %33, %34, %cst_17 {dimension_numbers = #tpu.dot_dimension_numbers<[1], [0], [0], [1], [0, 0, 1, 1], [], []>} : vector<8x2048xbf16>, vector<2048x1024xbf16>, vector<8x1024xf32> -> vector<8x1024xf32>
    %c0_18 = arith.constant 0 : index
    %c0_19 = arith.constant 0 : index
    %36 = vector.load %arg7[%c0_18, %c0_19] : memref<1x1024xf32, #tpu.memory_space<vmem>>, vector<1x1024xf32>
    %37 = vector.broadcast %36 : vector<1x1024xf32> to vector<8x1024xf32>
    %38 = arith.addf %35, %37 : vector<8x1024xf32>
    %cst_20 = arith.constant 0.000000e+00 : f32
    %39 = vector.broadcast %cst_20 : f32 to vector<8x1024xf32>
    %40 = arith.maximumf %38, %39 : vector<8x1024xf32>
    %cst_21 = arith.constant dense<0.000000e+00> : vector<8xf32>
    %41 = vector.multi_reduction <add>, %40, %cst_21 [1] : vector<8x1024xf32> to vector<8xf32>
    %42 = vector.shape_cast %41 : vector<8xf32> to vector<8x1xf32>
    %43 = arith.mulf %40, %40 : vector<8x1024xf32>
    %cst_22 = arith.constant dense<0.000000e+00> : vector<8xf32>
    %44 = vector.multi_reduction <add>, %43, %cst_22 [1] : vector<8x1024xf32> to vector<8xf32>
    %45 = vector.shape_cast %44 : vector<8xf32> to vector<8x1xf32>
    %cst_23 = arith.constant 9.765625E-4 : f32
    %46 = vector.broadcast %cst_23 : f32 to vector<8x1xf32>
    %47 = arith.mulf %42, %46 : vector<8x1xf32>
    %cst_24 = arith.constant 9.765625E-4 : f32
    %48 = vector.broadcast %cst_24 : f32 to vector<8x1xf32>
    %49 = arith.mulf %45, %48 : vector<8x1xf32>
    %50 = arith.mulf %47, %47 : vector<8x1xf32>
    %51 = arith.subf %49, %50 : vector<8x1xf32>
    %cst_25 = arith.constant 9.99999974E-6 : f32
    %52 = vector.broadcast %cst_25 : f32 to vector<8x1xf32>
    %53 = arith.addf %51, %52 : vector<8x1xf32>
    %54 = math.rsqrt %53 : vector<8x1xf32>
    %55 = vector.broadcast %47 : vector<8x1xf32> to vector<8x1024xf32>
    %56 = arith.subf %40, %55 : vector<8x1024xf32>
    %57 = vector.broadcast %54 : vector<8x1xf32> to vector<8x1024xf32>
    %58 = arith.mulf %56, %57 : vector<8x1024xf32>
    %c0_26 = arith.constant 0 : index
    %c0_27 = arith.constant 0 : index
    %59 = vector.load %arg8[%c0_26, %c0_27] : memref<1x1024xf32, #tpu.memory_space<vmem>>, vector<1x1024xf32>
    %60 = vector.broadcast %59 : vector<1x1024xf32> to vector<8x1024xf32>
    %61 = arith.mulf %58, %60 : vector<8x1024xf32>
    %c0_28 = arith.constant 0 : index
    %c0_29 = arith.constant 0 : index
    %62 = vector.load %arg9[%c0_28, %c0_29] : memref<1x1024xf32, #tpu.memory_space<vmem>>, vector<1x1024xf32>
    %63 = vector.broadcast %62 : vector<1x1024xf32> to vector<8x1024xf32>
    %64 = arith.addf %61, %63 : vector<8x1024xf32>
    %65 = arith.truncf %64 : vector<8x1024xf32> to vector<8x1024xbf16>
    %c0_30 = arith.constant 0 : index
    %c0_31 = arith.constant 0 : index
    %66 = vector.load %arg10[%c0_30, %c0_31] : memref<1024x256xbf16, #tpu.memory_space<vmem>>, vector<1024x256xbf16>
    %cst_32 = arith.constant dense<0.000000e+00> : vector<8x256xf32>
    %67 = tpu.matmul %65, %66, %cst_32 {dimension_numbers = #tpu.dot_dimension_numbers<[1], [0], [0], [1], [0, 0, 1, 1], [], []>} : vector<8x1024xbf16>, vector<1024x256xbf16>, vector<8x256xf32> -> vector<8x256xf32>
    %c0_33 = arith.constant 0 : index
    %c0_34 = arith.constant 0 : index
    %68 = vector.load %arg11[%c0_33, %c0_34] : memref<1x256xf32, #tpu.memory_space<vmem>>, vector<1x256xf32>
    %69 = vector.broadcast %68 : vector<1x256xf32> to vector<8x256xf32>
    %70 = arith.addf %67, %69 : vector<8x256xf32>
    %cst_35 = arith.constant 0.000000e+00 : f32
    %71 = vector.broadcast %cst_35 : f32 to vector<8x256xf32>
    %72 = arith.maximumf %70, %71 : vector<8x256xf32>
    %cst_36 = arith.constant dense<0.000000e+00> : vector<8xf32>
    %73 = vector.multi_reduction <add>, %72, %cst_36 [1] : vector<8x256xf32> to vector<8xf32>
    %74 = vector.shape_cast %73 : vector<8xf32> to vector<8x1xf32>
    %75 = arith.mulf %72, %72 : vector<8x256xf32>
    %cst_37 = arith.constant dense<0.000000e+00> : vector<8xf32>
    %76 = vector.multi_reduction <add>, %75, %cst_37 [1] : vector<8x256xf32> to vector<8xf32>
    %77 = vector.shape_cast %76 : vector<8xf32> to vector<8x1xf32>
    %cst_38 = arith.constant 3.906250e-03 : f32
    %78 = vector.broadcast %cst_38 : f32 to vector<8x1xf32>
    %79 = arith.mulf %74, %78 : vector<8x1xf32>
    %cst_39 = arith.constant 3.906250e-03 : f32
    %80 = vector.broadcast %cst_39 : f32 to vector<8x1xf32>
    %81 = arith.mulf %77, %80 : vector<8x1xf32>
    %82 = arith.mulf %79, %79 : vector<8x1xf32>
    %83 = arith.subf %81, %82 : vector<8x1xf32>
    %cst_40 = arith.constant 9.99999974E-6 : f32
    %84 = vector.broadcast %cst_40 : f32 to vector<8x1xf32>
    %85 = arith.addf %83, %84 : vector<8x1xf32>
    %86 = math.rsqrt %85 : vector<8x1xf32>
    %c0_41 = arith.constant 0 : index
    %c0_42 = arith.constant 0 : index
    %87 = vector.load %arg12[%c0_41, %c0_42] : memref<1x256xf32, #tpu.memory_space<vmem>>, vector<1x256xf32>
    %88 = vector.broadcast %87 : vector<1x256xf32> to vector<8x256xf32>
    %89 = arith.mulf %72, %88 : vector<8x256xf32>
    %cst_43 = arith.constant dense<0.000000e+00> : vector<8xf32>
    %90 = vector.multi_reduction <add>, %89, %cst_43 [1] : vector<8x256xf32> to vector<8xf32>
    %91 = vector.shape_cast %90 : vector<8xf32> to vector<8x1xf32>
    %c0_44 = arith.constant 0 : index
    %c0_45 = arith.constant 0 : index
    %92 = vector.load %arg13[%c0_44, %c0_45] : memref<1x1xf32, #tpu.memory_space<vmem>>, vector<1x1xf32>
    %93 = vector.broadcast %92 : vector<1x1xf32> to vector<8x1xf32>
    %94 = arith.mulf %79, %93 : vector<8x1xf32>
    %95 = arith.subf %91, %94 : vector<8x1xf32>
    %96 = arith.mulf %86, %95 : vector<8x1xf32>
    %c0_46 = arith.constant 0 : index
    %c0_47 = arith.constant 0 : index
    %97 = vector.load %arg14[%c0_46, %c0_47] : memref<1x1xf32, #tpu.memory_space<vmem>>, vector<1x1xf32>
    %98 = vector.broadcast %97 : vector<1x1xf32> to vector<8x1xf32>
    %99 = arith.addf %96, %98 : vector<8x1xf32>
    %c0_48 = arith.constant 0 : index
    %c0_49 = arith.constant 0 : index
    %100 = vector.load %arg15[%c0_48, %c0_49] : memref<8x1xf32, #tpu.memory_space<vmem>>, vector<8x1xf32>
    tpu.vector_store %arg15[%c0_48, %c0_49], %99 {strides = array<i32>} : memref<8x1xf32, #tpu.memory_space<vmem>>, vector<8x1xf32>,
    return
  }
  func.func @transform_0(%arg0: i32) -> (i32, i32) {
    %c0_i32 = arith.constant 0 : i32
    %c0_i32_0 = arith.constant 0 : i32
    return %arg0, %c0_i32 : i32, i32
  }
  func.func @transform_1(%arg0: i32) -> (i32, i32) {
    %c0_i32 = arith.constant 0 : i32
    %c0_i32_0 = arith.constant 0 : i32
    %c0_i32_1 = arith.constant 0 : i32
    return %c0_i32, %c0_i32_0 : i32, i32
  }
  func.func @transform_2(%arg0: i32) -> (i32, i32) {
    %c0_i32 = arith.constant 0 : i32
    %c0_i32_0 = arith.constant 0 : i32
    %c0_i32_1 = arith.constant 0 : i32
    return %c0_i32, %c0_i32_0 : i32, i32
  }
  func.func @transform_3(%arg0: i32) -> (i32, i32) {
    %c0_i32 = arith.constant 0 : i32
    %c0_i32_0 = arith.constant 0 : i32
    %c0_i32_1 = arith.constant 0 : i32
    return %c0_i32, %c0_i32_0 : i32, i32
  }
  func.func @transform_4(%arg0: i32) -> (i32, i32) {
    %c0_i32 = arith.constant 0 : i32
    %c0_i32_0 = arith.constant 0 : i32
    %c0_i32_1 = arith.constant 0 : i32
    return %c0_i32, %c0_i32_0 : i32, i32
  }
  func.func @transform_5(%arg0: i32) -> (i32, i32) {
    %c0_i32 = arith.constant 0 : i32
    %c0_i32_0 = arith.constant 0 : i32
    %c0_i32_1 = arith.constant 0 : i32
    return %c0_i32, %c0_i32_0 : i32, i32
  }
  func.func @transform_6(%arg0: i32) -> (i32, i32) {
    %c0_i32 = arith.constant 0 : i32
    %c0_i32_0 = arith.constant 0 : i32
    %c0_i32_1 = arith.constant 0 : i32
    return %c0_i32, %c0_i32_0 : i32, i32
  }
  func.func @transform_7(%arg0: i32) -> (i32, i32) {
    %c0_i32 = arith.constant 0 : i32
    %c0_i32_0 = arith.constant 0 : i32
    %c0_i32_1 = arith.constant 0 : i32
    return %c0_i32, %c0_i32_0 : i32, i32
  }
  func.func @transform_8(%arg0: i32) -> (i32, i32) {
    %c0_i32 = arith.constant 0 : i32
    %c0_i32_0 = arith.constant 0 : i32
    %c0_i32_1 = arith.constant 0 : i32
    return %c0_i32, %c0_i32_0 : i32, i32
  }
  func.func @transform_9(%arg0: i32) -> (i32, i32) {
    %c0_i32 = arith.constant 0 : i32
    %c0_i32_0 = arith.constant 0 : i32
    %c0_i32_1 = arith.constant 0 : i32
    return %c0_i32, %c0_i32_0 : i32, i32
  }
  func.func @transform_10(%arg0: i32) -> (i32, i32) {
    %c0_i32 = arith.constant 0 : i32
    %c0_i32_0 = arith.constant 0 : i32
    %c0_i32_1 = arith.constant 0 : i32
    return %c0_i32, %c0_i32_0 : i32, i32
  }
  func.func @transform_11(%arg0: i32) -> (i32, i32) {
    %c0_i32 = arith.constant 0 : i32
    %c0_i32_0 = arith.constant 0 : i32
    %c0_i32_1 = arith.constant 0 : i32
    return %c0_i32, %c0_i32_0 : i32, i32
  }
  func.func @transform_12(%arg0: i32) -> (i32, i32) {
    %c0_i32 = arith.constant 0 : i32
    %c0_i32_0 = arith.constant 0 : i32
    %c0_i32_1 = arith.constant 0 : i32
    return %c0_i32, %c0_i32_0 : i32, i32
  }
  func.func @transform_13(%arg0: i32) -> (i32, i32) {
    %c0_i32 = arith.constant 0 : i32
    %c0_i32_0 = arith.constant 0 : i32
    %c0_i32_1 = arith.constant 0 : i32
    return %c0_i32, %c0_i32_0 : i32, i32
  }
  func.func @transform_14(%arg0: i32) -> (i32, i32) {
    %c0_i32 = arith.constant 0 : i32
    %c0_i32_0 = arith.constant 0 : i32
    return %arg0, %c0_i32 : i32, i32
  }
}

</mosaic_0001>

<bundles_post_ra>
// kernel: tpu_custom_call.1
= control target key start
LH: loop header
LB: loop body
LE: loop exit
PB: predicated region body
PF: predicated region fallthrough
CT: control target
= control target key end

     0   :  { %s12216_s0 = inlined_call_operand.hbm [shape: f32[8,24], index: 0, kind: input, shape index: {}]   ;;  %s12217_s1 = inlined_call_operand.hbm [shape: bf16[24,2048], index: 1, kind: input, shape index: {}]   ;;  %s12218_s2 = inlined_call_operand.hbm [shape: f32[1,2048], index: 2, kind: input, shape index: {}]   ;;  %s12219_s3 = inlined_call_operand.hbm [shape: f32[1,2048], index: 3, kind: input, shape index: {}]   ;;  %s12220_s4 = inlined_call_operand.hbm [shape: f32[1,2048], index: 4, kind: input, shape index: {}]   ;;  %s12221_s5 = inlined_call_operand.hbm [shape: bf16[2048,1024], index: 5, kind: input, shape index: {}]   ;;  %s12222_s6 = inlined_call_operand.hbm [shape: f32[1,1024], index: 6, kind: input, shape index: {}]   ;;  %s12223_s7 = inlined_call_operand.hbm [shape: f32[1,1024], index: 7, kind: input, shape index: {}]   ;;  %s12224_s8 = inlined_call_operand.hbm [shape: f32[1,1024], index: 8, kind: input, shape index: {}]   ;;  %s12225_s9 = inlined_call_operand.hbm [shape: bf16[1024,256], index: 9, kind: input, shape index: {}]   ;;  %s12226_s10 = inlined_call_operand.hbm [shape: f32[1,256], index: 10, kind: input, shape index: {}]   ;;  %s12227_s11 = inlined_call_operand.hbm [shape: f32[1,256], index: 11, kind: input, shape index: {}]   ;;  %s12228_s12 = inlined_call_operand.<no memory space> [shape: f32[1,1], index: 12, kind: input, shape index: {}]   ;;  %s12229_s14 = inlined_call_operand.vmem [shape: f32[8,1], index: 14, kind: output, shape index: {}]   ;;  %s12230_s13 = inlined_call_operand.<no memory space> [shape: f32[1,1], index: 13, kind: input, shape index: {}]  }
   0x1   :  { %v19_v0 = vstv %s12228_s12  ;;  %v21_v1 = vstv %s12230_s13 }
   0x2   :  { %20 = vst [vmem:[#allocation2] sm:$0x1] %v19_v0  ;;  %22 = vst [vmem:[#allocation3] sm:$0x1] %v21_v1 }
   0x3   :  { %23 = vsyncpa [#allocation5], 0 }
   0x4   :  { %24 = vsyncpa [#allocation7], 0 }
   0x5   :  { %25 = vsyncpa [#allocation10], 0 }
   0x6   :  { %26 = vsyncpa [#allocation13], 0 }
   0x7   :  { %27 = vsyncpa [#allocation16], 0 }
   0x8   :  { %28 = vsyncpa [#allocation19], 0 }
   0x9   :  { %29 = vsyncpa [#allocation22], 0  ;;  %s11490_s17 = smov [#allocation6]  }
   0xa   :  { %s45_s18 = sshll.u32 %s11490_s17, 4  ;;  %s46_s18 = int_to_ptr.vmem [resolvable:$true] %s45_s18 }
   0xb   :  { %s11244_s19 = scalar_lea.vmem %s46_s18, 3072  ;;  %p11249_p1 = scmp.lt.s32.totalorder %s46_s18, %s46_s18 }
   0xc   :  { %p11245_p0 = scmp.ne.s32.totalorder %s46_s18, %s11244_s19  ;;  %p11250_p2 = scmp.lt.s32.totalorder %s11244_s19, %s11244_s19 }
   0xe   :  { %p11251_p3 = por %p11250_p2, %p11249_p1 }
  0x10   :  { %p11252_p4 = pnand %p11251_p3, %p11245_p0 }
  0x12   :  { %11255 = shalt.err (!%p11252_p4)
}
  0x13   :  { %s11491_s12 = smov 1024   ;;  %s11492_s13 = smov 64  }
  0x14   :  { %51 = dma.hbm_to_vmem [thread:$0]  %s12217_s1, 3072, %s46_s18, [#allocation7], %s11491_s12, %s11491_s12, %s11492_s13  }
  0x15   :  { %s11493_s22 = smov [#allocation9]   ;;  %s11494_s24 = smov [#allocation12]  }
  0x16   :  { %s68_s23 = sshll.u32 %s11493_s22, 4  ;;  %s87_s25 = sshll.u32 %s11494_s24, 4  ;;  %s69_s23 = int_to_ptr.vmem [resolvable:$true] %s68_s23  ;;  %s88_s25 = int_to_ptr.vmem [resolvable:$true] %s87_s25 }
  0x17   :  { %s11264_s26 = scalar_lea.vmem %s69_s23, 256  ;;  %p11269_p6 = scmp.lt.s32.totalorder %s69_s23, %s69_s23 }
  0x18   :  { %p11265_p5 = scmp.ne.s32.totalorder %s69_s23, %s11264_s26  ;;  %p11270_p7 = scmp.lt.s32.totalorder %s11264_s26, %s11264_s26 }
  0x1a   :  { %p11271_p8 = por %p11270_p7, %p11269_p6 }
  0x1c   :  { %p11272_p9 = pnand %p11271_p8, %p11265_p5 }
  0x1e   :  { %11275 = shalt.err (!%p11272_p9)
}
  0x1f   :  { %71 = dma.hbm_to_vmem [thread:$0]  %s12219_s3, 256, %s69_s23, [#allocation10]  }
  0x20   :  { %s11284_s29 = scalar_lea.vmem %s88_s25, 131072  ;;  %p11289_p11 = scmp.lt.s32.totalorder %s88_s25, %s88_s25 }
  0x21   :  { %p11285_p10 = scmp.ne.s32.totalorder %s88_s25, %s11284_s29  ;;  %p11290_p12 = scmp.lt.s32.totalorder %s11284_s29, %s11284_s29 }
  0x23   :  { %p11291_p13 = por %p11290_p12, %p11289_p11 }
  0x25   :  { %p11292_p0 = pnand %p11291_p13, %p11285_p10 }
  0x27   :  { %11295 = shalt.err (!%p11292_p0)
}
  0x28   :  { %s11495_s1 = smov 512   ;;  %s11496_s30 = smov 32  }
  0x29   :  { %93 = dma.hbm_to_vmem [thread:$0]  %s12221_s5, 131072, %s88_s25, [#allocation13], %s11495_s1, %s11495_s1, %s11496_s30  }
  0x2a   :  { %s11497_s17 = smov [#allocation15]   ;;  %s11498_s19 = smov [#allocation18]  }
  0x2b   :  { %s110_s18 = sshll.u32 %s11497_s17, 4  ;;  %s129_s12 = sshll.u32 %s11498_s19, 4  ;;  %s111_s18 = int_to_ptr.vmem [resolvable:$true] %s110_s18  ;;  %s130_s12 = int_to_ptr.vmem [resolvable:$true] %s129_s12 }
  0x2c   :  { %s11304_s3 = scalar_lea.vmem %s111_s18, 128  ;;  %p11309_p2 = scmp.lt.s32.totalorder %s111_s18, %s111_s18 }
  0x2d   :  { %p11305_p1 = scmp.ne.s32.totalorder %s111_s18, %s11304_s3  ;;  %p11310_p3 = scmp.lt.s32.totalorder %s11304_s3, %s11304_s3 }
  0x2f   :  { %p11311_p4 = por %p11310_p3, %p11309_p2 }
  0x31   :  { %p11312_p5 = pnand %p11311_p4, %p11305_p1 }
  0x33   :  { %11315 = shalt.err (!%p11312_p5)
}
  0x34   :  { %113 = dma.hbm_to_vmem [thread:$0]  %s12223_s7, 128, %s111_s18, [#allocation16]  }
  0x35   :  { %s11324_s21 = scalar_lea.vmem %s130_s12, 16384  ;;  %p11329_p7 = scmp.lt.s32.totalorder %s130_s12, %s130_s12 }
  0x36   :  { %p11325_p6 = scmp.ne.s32.totalorder %s130_s12, %s11324_s21  ;;  %p11330_p8 = scmp.lt.s32.totalorder %s11324_s21, %s11324_s21 }
  0x38   :  { %p11331_p9 = por %p11330_p8, %p11329_p7 }
  0x3a   :  { %p11332_p10 = pnand %p11331_p9, %p11325_p6 }
  0x3c   :  { %11335 = shalt.err (!%p11332_p10)
}
  0x3d   :  { %s11499_s5 = smov 128   ;;  %s11500_s22 = smov 8  }
  0x3e   :  { %135 = dma.hbm_to_vmem [thread:$0]  %s12225_s9, 16384, %s130_s12, [#allocation19], %s11499_s5, %s11499_s5, %s11500_s22  }
  0x3f   :  { %s11501_s25 = smov [#allocation4]   ;;  %s11502_s27 = smov [#allocation8]  }
  0x40   :  { %s36_s26 = sshll.u32 %s11501_s25, 4  ;;  %s58_s28 = sshll.u32 %s11502_s27, 4  ;;  %s37_s26 = int_to_ptr.vmem [resolvable:$true] %s36_s26  ;;  %s59_s28 = int_to_ptr.vmem [resolvable:$true] %s58_s28 }
  0x41   :  { %s11344_s7 = scalar_lea.vmem %s37_s26, 128  ;;  %p11349_p12 = scmp.lt.s32.totalorder %s37_s26, %s37_s26 }
  0x42   :  { %p11345_p11 = scmp.ne.s32.totalorder %s37_s26, %s11344_s7  ;;  %p11350_p13 = scmp.lt.s32.totalorder %s11344_s7, %s11344_s7 }
  0x44   :  { %p11351_p0 = por %p11350_p13, %p11349_p12 }
  0x46   :  { %p11352_p1 = pnand %p11351_p0, %p11345_p11 }
  0x48   :  { %11355 = shalt.err (!%p11352_p1)
}
  0x49   :  { %39 = dma.hbm_to_vmem [thread:$0]  %s12216_s0, 128, %s37_s26, [#allocation5]  }
  0x4a   :  { %s11364_s30 = scalar_lea.vmem %s59_s28, 256  ;;  %p11369_p3 = scmp.lt.s32.totalorder %s59_s28, %s59_s28 }
  0x4b   :  { %p11365_p2 = scmp.ne.s32.totalorder %s59_s28, %s11364_s30  ;;  %p11370_p4 = scmp.lt.s32.totalorder %s11364_s30, %s11364_s30 }
  0x4d   :  { %p11371_p5 = por %p11370_p4, %p11369_p3 }
  0x4f   :  { %p11372_p6 = pnand %p11371_p5, %p11365_p2 }
  0x51   :  { %11375 = shalt.err (!%p11372_p6)
}
  0x52   :  { %61 = dma.hbm_to_vmem [thread:$0]  %s12218_s2, 256, %s59_s28, [#allocation7]  }
  0x53   :  { %s11503_s16 = smov [#allocation11]   ;;  %s11504_s18 = smov [#allocation14]  }
  0x54   :  { %s78_s17 = sshll.u32 %s11503_s16, 4  ;;  %s100_s19 = sshll.u32 %s11504_s18, 4  ;;  %s79_s17 = int_to_ptr.vmem [resolvable:$true] %s78_s17  ;;  %s101_s19 = int_to_ptr.vmem [resolvable:$true] %s100_s19 }
  0x55   :  { %s11384_s12 = scalar_lea.vmem %s79_s17, 256  ;;  %p11389_p8 = scmp.lt.s32.totalorder %s79_s17, %s79_s17 }
  0x56   :  { %p11385_p7 = scmp.ne.s32.totalorder %s79_s17, %s11384_s12  ;;  %p11390_p9 = scmp.lt.s32.totalorder %s11384_s12, %s11384_s12 }
  0x58   :  { %p11391_p10 = por %p11390_p9, %p11389_p8 }
  0x5a   :  { %p11392_p11 = pnand %p11391_p10, %p11385_p7 }
  0x5c   :  { %11395 = shalt.err (!%p11392_p11)
}
  0x5d   :  { %81 = dma.hbm_to_vmem [thread:$0]  %s12220_s4, 256, %s79_s17, [#allocation10]  }
  0x5e   :  { %s11404_s13 = scalar_lea.vmem %s101_s19, 128  ;;  %p11409_p13 = scmp.lt.s32.totalorder %s101_s19, %s101_s19 }
  0x5f   :  { %p11405_p12 = scmp.ne.s32.totalorder %s101_s19, %s11404_s13  ;;  %p11410_p0 = scmp.lt.s32.totalorder %s11404_s13, %s11404_s13 }
  0x61   :  { %p11411_p1 = por %p11410_p0, %p11409_p13 }
  0x63   :  { %p11412_p2 = pnand %p11411_p1, %p11405_p12 }
  0x65   :  { %11415 = shalt.err (!%p11412_p2)
}
  0x66   :  { %103 = dma.hbm_to_vmem [thread:$0]  %s12222_s6, 128, %s101_s19, [#allocation13]  }
  0x67   :  { %s11505_s21 = smov [#allocation17]   ;;  %s11506_s22 = smov [#allocation20]  }
  0x68   :  { %s120_s5 = sshll.u32 %s11505_s21, 4  ;;  %s142_s23 = sshll.u32 %s11506_s22, 4  ;;  %s121_s5 = int_to_ptr.vmem [resolvable:$true] %s120_s5  ;;  %s143_s23 = int_to_ptr.vmem [resolvable:$true] %s142_s23 }
  0x69   :  { %s11424_s24 = scalar_lea.vmem %s121_s5, 128  ;;  %p11429_p4 = scmp.lt.s32.totalorder %s121_s5, %s121_s5 }
  0x6a   :  { %p11425_p3 = scmp.ne.s32.totalorder %s121_s5, %s11424_s24  ;;  %p11430_p5 = scmp.lt.s32.totalorder %s11424_s24, %s11424_s24 }
  0x6c   :  { %p11431_p6 = por %p11430_p5, %p11429_p4 }
  0x6e   :  { %p11432_p7 = pnand %p11431_p6, %p11425_p3 }
  0x70   :  { %11435 = shalt.err (!%p11432_p7)
}
  0x71   :  { %123 = dma.hbm_to_vmem [thread:$0]  %s12224_s8, 128, %s121_s5, [#allocation16]  }
  0x72   :  { %s11444_s26 = scalar_lea.vmem %s143_s23, 32  ;;  %p11449_p9 = scmp.lt.s32.totalorder %s143_s23, %s143_s23 }
  0x73   :  { %p11445_p8 = scmp.ne.s32.totalorder %s143_s23, %s11444_s26  ;;  %p11450_p10 = scmp.lt.s32.totalorder %s11444_s26, %s11444_s26 }
  0x75   :  { %p11451_p11 = por %p11450_p10, %p11449_p9 }
  0x77   :  { %p11452_p12 = pnand %p11451_p11, %p11445_p8 }
  0x79   :  { %11455 = shalt.err (!%p11452_p12)
}
  0x7a   :  { %145 = dma.hbm_to_vmem [thread:$0]  %s12226_s10, 32, %s143_s23, [#allocation19]  }
  0x7b   :  { %s11507_s28 = smov [#allocation21]  }
  0x7c   :  { %s152_s7 = sshll.u32 %s11507_s28, 4  ;;  %s153_s7 = int_to_ptr.vmem [resolvable:$true] %s152_s7 }
  0x7d   :  { %s11464_s29 = scalar_lea.vmem %s153_s7, 32  ;;  %p11469_p0 = scmp.lt.s32.totalorder %s153_s7, %s153_s7 }
  0x7e   :  { %p11465_p13 = scmp.ne.s32.totalorder %s153_s7, %s11464_s29  ;;  %p11470_p1 = scmp.lt.s32.totalorder %s11464_s29, %s11464_s29 }
  0x80   :  { %p11471_p2 = por %p11470_p1, %p11469_p0 }
  0x82   :  { %p11472_p3 = pnand %p11471_p2, %p11465_p13 }
  0x84   :  { %11475 = shalt.err (!%p11472_p3)
}
  0x85   :  { %155 = dma.hbm_to_vmem [thread:$0]  %s12227_s11, 32, %s153_s7, [#allocation22]  }
  0x86   :  { %11476 = dma.done.wait [#allocation5], 128  }
  0x87   :  { %11477 = vsyncadd [#allocation5], 4294967168 }
  0x88   :  { %11478 = dma.done.wait [#allocation7], 3328  }
  0x89   :  { %11479 = vsyncadd [#allocation7], 4294963968 }
  0x8a   :  { %11480 = dma.done.wait [#allocation10], 512  }
  0x8b   :  { %11481 = vsyncadd [#allocation10], 4294966784 }
  0x8c   :  { %11482 = dma.done.wait [#allocation13], 131200  }
  0x8d   :  { %11483 = vsyncadd [#allocation13], 4294836096 }
  0x8e   :  { %11484 = dma.done.wait [#allocation16], 256  }
  0x8f   :  { %11485 = vsyncadd [#allocation16], 4294967040 }
  0x90   :  { %11486 = dma.done.wait [#allocation19], 16416  }
  0x91   :  { %11487 = vsyncadd [#allocation19], 4294950880 }
  0x92   :  { %11488 = dma.done.wait [#allocation22], 32  }
  0x93   :  { %11489 = vsyncadd [#allocation22], 4294967264  ;;  %v11508_v2 = vmov 0   ;;  %v215_v3 = vld [vmem:[#allocation6 + $0x80] sm:$0xff]  ;;  %vm431_vm0 = vcmask 1043456   ;;  %v216_v4 = vld [vmem:[#allocation6 + $0x88] sm:$0xff] }
  0x94   :  { %512 = vmatprep.mubr.bf16.mxu0 %v11508_v2  ;;  %553 = vmatprep.mubr.bf16.mxu1 %v11508_v2  ;;  %v199_v5 = vld [vmem:[#allocation6] sm:$0xff]  ;;  %v9815_v6 = vcombine.high %v215_v3, %v215_v3  ;;  %v9817_v7 = vcombine.high %v216_v4, %v216_v4  ;;  %v9814_v8 = vcombine.low %v215_v3, %v215_v3  ;;  %v200_v11 = vld [vmem:[#allocation6 + $0x8] sm:$0xff]  ;;  %v217_v15 = vld [vmem:[#allocation6 + $0x90] sm:$0xff]  ;;  %vm427_vm1 = vcmask 195584  }
  0x95   :  { %v9816_v9 = vcombine.low %v216_v4, %v216_v4  ;;  %v207_v10 = vld [vmem:[#allocation6 + $0x40] sm:$0xff]  ;;  %v208_v12 = vld [vmem:[#allocation6 + $0x48] sm:$0xff]  ;;  %v218_v16 = vld [vmem:[#allocation6 + $0x98] sm:$0xff]  ;;  %v9819_v22 = vcombine.high %v217_v15, %v217_v15  ;;  %v9818_v24 = vcombine.low %v217_v15, %v217_v15  ;;  %vm9785_vm2 = vcmask 7168  }
  0x96   :  { %v9799_v13 = vcombine.high %v199_v5, %v207_v10  ;;  %v9801_v14 = vcombine.high %v200_v11, %v208_v12  ;;  %9830 = vmatprep.subr.msk.bf16.mxu0 %vm431_vm0, %v9815_v6  ;;  %9832 = vmatprep.subr.msk.bf16.mxu1 %vm431_vm0, %v9817_v7  ;;  %v433_v17 = vsel %vm431_vm0, %v9814_v8, 0  ;;  %v9798_v19 = vcombine.low %v199_v5, %v207_v10  ;;  %v197_v21 = vld [vmem:[#allocation4] sm:$0xff]  ;;  %v201_v26 = vld [vmem:[#allocation6 + $0x10] sm:$0xff]  ;;  %v219_v31 = vld [vmem:[#allocation6 + $0xa0] sm:$0xff] }
  0x97   :  { %v439_v18 = vsel %vm431_vm0, %v9816_v9, 0  ;;  %493 = vmatpush1.bf16.msra.mxu0 %v433_v17  ;;  %v9800_v20 = vcombine.low %v200_v11, %v208_v12  ;;  %v9821_v23 = vcombine.high %v218_v16, %v218_v16  ;;  %v9820_v25 = vcombine.low %v218_v16, %v218_v16  ;;  %v209_v27 = vld [vmem:[#allocation6 + $0x50] sm:$0xff]  ;;  %v202_v28 = vld [vmem:[#allocation6 + $0x18] sm:$0xff]  ;;  %v220_v32 = vld [vmem:[#allocation6 + $0xa8] sm:$0xff] }
  0x98   :  { %534 = vmatpush1.bf16.msra.mxu1 %v439_v18  ;;  %494 = vmatprep.subr.bf16.mxu0 %v9799_v13  ;;  %v210_v29 = vld [vmem:[#allocation6 + $0x58] sm:$0xff]  ;;  %v11632_v30 = vpack.c.bf16 %v197_v21, %v197_v21  ;;  %v445_v33 = vsel %vm431_vm0, %v9818_v24, 0  ;;  %v9803_v35 = vcombine.high %v201_v26, %v209_v27  ;;  %v9802_v37 = vcombine.low %v201_v26, %v209_v27  ;;  %v203_v40 = vld [vmem:[#allocation6 + $0x20] sm:$0xff]  ;;  %v204_v42 = vld [vmem:[#allocation6 + $0x28] sm:$0xff] }
  0x99   :  { %535 = vmatprep.subr.bf16.mxu1 %v9801_v14  ;;  %v451_v34 = vsel %vm431_vm0, %v9820_v25, 0  ;;  %v9805_v36 = vcombine.high %v202_v28, %v210_v29  ;;  %v9804_v38 = vcombine.low %v202_v28, %v210_v29  ;;  %v9823_v39 = vcombine.high %v219_v31, %v219_v31  ;;  %v211_v41 = vld [vmem:[#allocation6 + $0x60] sm:$0xff]  ;;  %v212_v43 = vld [vmem:[#allocation6 + $0x68] sm:$0xff]  ;;  %v221_v47 = vld [vmem:[#allocation6 + $0xb0] sm:$0xff] }
  0x9a   :  { %v9825_v44 = vcombine.high %v220_v32, %v220_v32  ;;  %v9822_v45 = vcombine.low %v219_v31, %v219_v31  ;;  %v9824_v46 = vcombine.low %v220_v32, %v220_v32  ;;  %v222_v48 = vld [vmem:[#allocation6 + $0xb8] sm:$0xff]  ;;  %v9807_v51 = vcombine.high %v203_v40, %v211_v41  ;;  %v205_v56 = vld [vmem:[#allocation6 + $0x30] sm:$0xff] }
  0x9b   :  { %495 = vmatpush1.bf16.msra.mxu0 %v9798_v19  ;;  %v9809_v52 = vcombine.high %v204_v42, %v212_v43  ;;  %v9806_v53 = vcombine.low %v203_v40, %v211_v41  ;;  %v9808_v54 = vcombine.low %v204_v42, %v212_v43  ;;  %v9827_v55 = vcombine.high %v221_v47, %v221_v47  ;;  %v213_v57 = vld [vmem:[#allocation6 + $0x70] sm:$0xff]  ;;  %v206_v58 = vld [vmem:[#allocation6 + $0x38] sm:$0xff] }
  0x9c   :  { %536 = vmatpush1.bf16.msra.mxu1 %v9800_v20  ;;  %9834 = vmatprep.subr.msk.bf16.mxu0 %vm431_vm0, %v9819_v22  ;;  %v457_v49 = vsel %vm431_vm0, %v9822_v45, 0  ;;  %v463_v50 = vsel %vm431_vm0, %v9824_v46, 0  ;;  %v214_v59 = vld [vmem:[#allocation6 + $0x78] sm:$0xff]  ;;  %v9829_v60 = vcombine.high %v222_v48, %v222_v48  ;;  %v9826_v61 = vcombine.low %v221_v47, %v221_v47  ;;  %v1184_v6 = vld [vmem:[#allocation12 + $0x1c0] sm:$0xff] }
  0x9d   :  { %9836 = vmatprep.subr.msk.bf16.mxu1 %vm431_vm0, %v9821_v23  ;;  %v9828_v62 = vcombine.low %v222_v48, %v222_v48  ;;  %v9811_v1 = vcombine.high %v205_v56, %v213_v57  ;;  %v9813_v3 = vcombine.high %v206_v58, %v214_v59  ;;  %v9810_v4 = vcombine.low %v205_v56, %v213_v57  ;;  %v1188_v7 = vld [vmem:[#allocation12 + $0x1e0] sm:$0xff] }
  0x9e   :  { %9831 = vmatmul.mubr.msk.bf16.vlgmr.msra.gmra.mxu0 %vm427_vm1, %v11632_v30  ;;  %v469_v63 = vsel %vm431_vm0, %v9826_v61, 0  ;;  %v9812_v5 = vcombine.low %v206_v58, %v214_v59  ;;  %v1312_v8 = vld [vmem:[#allocation12 + $0x5c0] sm:$0xff]  ;;  %v9902_v9 = vcombine.low %v1184_v6, %v1188_v7  ;;  %v9903_v10 = vcombine.high %v1184_v6, %v1188_v7 }
  0x9f   :  { %9833 = vmatmul.mubr.msk.bf16.vlgmr.msra.gmra.mxu1 %vm427_vm1, %v11632_v30  ;;  %575 = vmatpush1.bf16.msra.mxu0 %v445_v33  ;;  %v475_v0 = vsel %vm431_vm0, %v9828_v62, 0  ;;  %v1316_v11 = vld [vmem:[#allocation12 + $0x5e0] sm:$0xff]  ;;  %v227_v6 = vlaneseq }
  0xa0   :  { %616 = vmatpush1.bf16.msra.mxu1 %v451_v34  ;;  %576 = vmatprep.subr.bf16.mxu0 %v9803_v35  ;;  %v1176_v12 = vld [vmem:[#allocation12 + $0x180] sm:$0xff]  ;;  %v10030_v14 = vcombine.low %v1312_v8, %v1316_v11  ;;  %v10031_v15 = vcombine.high %v1312_v8, %v1316_v11 }
  0xa1   :  { %617 = vmatprep.subr.bf16.mxu1 %v9805_v36  ;;  %594 = vmatprep.mubr.bf16.mxu0 %v11508_v2  ;;  %v1180_v13 = vld [vmem:[#allocation12 + $0x1a0] sm:$0xff]  ;;  %v228_v7 = vshrl.u32 %v227_v6, 7 }
  0xa2   :  { %635 = vmatprep.mubr.bf16.mxu1 %v11508_v2  ;;  %v9895_v16 = vcombine.high %v1176_v12, %v1180_v13  ;;  %v1308_v17 = vld [vmem:[#allocation12 + $0x5a0] sm:$0xff]  ;;  %v9894_v23 = vcombine.low %v1176_v12, %v1180_v13 }
  0xa3   :  { %577 = vmatpush1.bf16.msra.mxu0 %v9802_v37  ;;  %v1168_v18 = vld [vmem:[#allocation12 + $0x140] sm:$0xff]  ;;  %v11668_v8 = vsub.s32 0, %v228_v7  ;;  %v11672_v11 = vsub.s32 1, %v228_v7  ;;  %v11674_v12 = vsub.s32 3, %v228_v7 }
  0xa4   :  { %618 = vmatpush1.bf16.msra.mxu1 %v9804_v38  ;;  %9838 = vmatprep.subr.msk.bf16.mxu0 %vm431_vm0, %v9823_v39  ;;  %v1172_v20 = vld [vmem:[#allocation12 + $0x160] sm:$0xff] }
  0xa5   :  { %9840 = vmatprep.subr.msk.bf16.mxu1 %vm431_vm0, %v9825_v44  ;;  %v1296_v21 = vld [vmem:[#allocation12 + $0x540] sm:$0xff]  ;;  %v9887_v25 = vcombine.high %v1168_v18, %v1172_v20  ;;  %v9886_v31 = vcombine.low %v1168_v18, %v1172_v20  ;;  %12235 = vst [vmem:[#allocation30_spill] sm:$0xff] %v11668_v8  ;;  %12236 = vst [vmem:[#allocation31_spill] sm:$0xff] %v11674_v12  ;;  %v11680_v20 = vsub.s32 4, %v228_v7 }
  0xa6   :  { %9835 = vmatmul.mubr.msk.bf16.vlgmr.msra.gmra.mxu0 %vm427_vm1, %v11632_v30  ;;  %v1300_v22 = vld [vmem:[#allocation12 + $0x560] sm:$0xff] }
  0xa7   :  { %9837 = vmatmul.mubr.msk.bf16.vlgmr.msra.gmra.mxu1 %vm427_vm1, %v11632_v30  ;;  %657 = vmatpush1.bf16.msra.mxu0 %v457_v49  ;;  %v10015_v26 = vcombine.high %v1296_v21, %v1300_v22  ;;  %v1160_v27 = vld [vmem:[#allocation12 + $0x100] sm:$0xff]  ;;  %v10014_v32 = vcombine.low %v1296_v21, %v1300_v22  ;;  %v11682_v21 = vsub.s32 6, %v228_v7 }
  0xa8   :  { %698 = vmatpush1.bf16.msra.mxu1 %v463_v50  ;;  %658 = vmatprep.subr.bf16.mxu0 %v9807_v51  ;;  %v1164_v28 = vld [vmem:[#allocation12 + $0x120] sm:$0xff] }
  0xa9   :  { %699 = vmatprep.subr.bf16.mxu1 %v9809_v52  ;;  %676 = vmatprep.mubr.bf16.mxu0 %v11508_v2  ;;  %v1288_v29 = vld [vmem:[#allocation12 + $0x500] sm:$0xff]  ;;  %v9879_v33 = vcombine.high %v1160_v27, %v1164_v28  ;;  %v9878_v39 = vcombine.low %v1160_v27, %v1164_v28 }
  0xaa   :  { %717 = vmatprep.mubr.bf16.mxu1 %v11508_v2  ;;  %v1152_v35 = vld [vmem:[#allocation12 + $0xc0] sm:$0xff] }
  0xab   :  { %659 = vmatpush1.bf16.msra.mxu0 %v9806_v53  ;;  %v1156_v36 = vld [vmem:[#allocation12 + $0xe0] sm:$0xff] }
  0xac   :  { %700 = vmatpush1.bf16.msra.mxu1 %v9808_v54  ;;  %9842 = vmatprep.subr.msk.bf16.mxu0 %vm431_vm0, %v9827_v55  ;;  %v1280_v37 = vld [vmem:[#allocation12 + $0x4c0] sm:$0xff]  ;;  %v9871_v41 = vcombine.high %v1152_v35, %v1156_v36  ;;  %v9870_v47 = vcombine.low %v1152_v35, %v1156_v36 }
  0xad   :  { %9844 = vmatprep.subr.msk.bf16.mxu1 %vm431_vm0, %v9829_v60  ;;  %v1284_v38 = vld [vmem:[#allocation12 + $0x4e0] sm:$0xff] }
  0xae   :  { %9839 = vmatmul.mubr.msk.bf16.vlgmr.msra.gmra.mxu0 %vm427_vm1, %v11632_v30  ;;  %v9999_v42 = vcombine.high %v1280_v37, %v1284_v38  ;;  %v1144_v43 = vld [vmem:[#allocation12 + $0x80] sm:$0xff]  ;;  %v9998_v48 = vcombine.low %v1280_v37, %v1284_v38 }
  0xaf   :  { %9841 = vmatmul.mubr.msk.bf16.vlgmr.msra.gmra.mxu1 %vm427_vm1, %v11632_v30  ;;  %739 = vmatpush1.bf16.msra.mxu0 %v469_v63  ;;  %v1148_v44 = vld [vmem:[#allocation12 + $0xa0] sm:$0xff] }
  0xb0   :  { %780 = vmatpush1.bf16.msra.mxu1 %v475_v0  ;;  %740 = vmatprep.subr.bf16.mxu0 %v9811_v1  ;;  %v1272_v45 = vld [vmem:[#allocation12 + $0x480] sm:$0xff]  ;;  %v9863_v49 = vcombine.high %v1144_v43, %v1148_v44  ;;  %v9862_v55 = vcombine.low %v1144_v43, %v1148_v44 }
  0xb1   :  { %781 = vmatprep.subr.bf16.mxu1 %v9813_v3  ;;  %758 = vmatprep.mubr.bf16.mxu0 %v11508_v2  ;;  %v1276_v46 = vld [vmem:[#allocation12 + $0x4a0] sm:$0xff] }
  0xb2   :  { %799 = vmatprep.mubr.bf16.mxu1 %v11508_v2  ;;  %v1304_v2 = vld [vmem:[#allocation12 + $0x580] sm:$0xff]  ;;  %v9991_v50 = vcombine.high %v1272_v45, %v1276_v46  ;;  %v9990_v56 = vcombine.low %v1272_v45, %v1276_v46 }
  0xb3   :  { %741 = vmatpush1.bf16.msra.mxu0 %v9810_v4  ;;  %v10023_v19 = vcombine.high %v1304_v2, %v1308_v17  ;;  %v10022_v24 = vcombine.low %v1304_v2, %v1308_v17  ;;  %v1136_v51 = vld [vmem:[#allocation12 + $0x40] sm:$0xff] }
  0xb4   :  { %782 = vmatpush1.bf16.msra.mxu1 %v9812_v5  ;;  %7314 = vmatprep.subr.bf16.mxu0 %v9903_v10  ;;  %v1140_v52 = vld [vmem:[#allocation12 + $0x60] sm:$0xff]  ;;  %v223_v10 = vld [vmem:[#allocation8] sm:$0xff] }
  0xb5   :  { %7355 = vmatprep.subr.bf16.mxu1 %v10031_v15  ;;  %v1264_v53 = vld [vmem:[#allocation12 + $0x440] sm:$0xff]  ;;  %v9855_v57 = vcombine.high %v1136_v51, %v1140_v52  ;;  %v9854_v63 = vcombine.low %v1136_v51, %v1140_v52  ;;  %v230_v13 = vrot.slane %v223_v10, %v11668_v8  ;;  %v234_v15 = vrot.slane %v223_v10, %v11672_v11 }
  0xb6   :  { %9843 = vmatmul.mubr.msk.bf16.vlgmr.msra.gmra.mxu0 %vm427_vm1, %v11632_v30  ;;  %v1268_v54 = vld [vmem:[#allocation12 + $0x460] sm:$0xff] }
  0xb7   :  { %9845 = vmatmul.mubr.msk.bf16.vlgmr.msra.gmra.mxu1 %vm427_vm1, %v11632_v30  ;;  %7315 = vmatpush1.bf16.msra.mxu0 %v9902_v9  ;;  %v1292_v30 = vld [vmem:[#allocation12 + $0x520] sm:$0xff]  ;;  %v9983_v58 = vcombine.high %v1264_v53, %v1268_v54  ;;  %v9982_v0 = vcombine.low %v1264_v53, %v1268_v54  ;;  %v11670_v9 = vsub.s32 2, %v228_v7 }
  0xb8   :  { %7356 = vmatpush1.bf16.msra.mxu1 %v10030_v14  ;;  %7316 = vmatprep.subr.bf16.mxu0 %v9895_v16  ;;  %v10007_v34 = vcombine.high %v1288_v29, %v1292_v30  ;;  %v10006_v40 = vcombine.low %v1288_v29, %v1292_v30  ;;  %v1128_v59 = vld [vmem:[#allocation12] sm:$0xff]  ;;  %v242_v16 = vrot.slane %v223_v10, %v11674_v12  ;;  %v11688_v30 = vsub.s32 5, %v228_v7 }
  0xb9   :  { %7357 = vmatprep.subr.bf16.mxu1 %v10023_v19  ;;  %v1132_v60 = vld [vmem:[#allocation12 + $0x20] sm:$0xff]  ;;  %v238_v14 = vrot.slane %v223_v10, %v11670_v9 }
  0xba   :  { %v1256_v61 = vld [vmem:[#allocation12 + $0x400] sm:$0xff]  ;;  %v9847_v1 = vcombine.high %v1128_v59, %v1132_v60  ;;  %v9846_v4 = vcombine.low %v1128_v59, %v1132_v60  ;;  %v250_v44 = vrot.slane %v223_v10, %v11688_v30 }
  0xbb   :  { %7317 = vmatpush1.bf16.msra.mxu0 %v9894_v23  ;;  %v1260_v62 = vld [vmem:[#allocation12 + $0x420] sm:$0xff] }
  0xbc   :  { %7358 = vmatpush1.bf16.msra.mxu1 %v10022_v24  ;;  %7318 = vmatprep.subr.bf16.mxu0 %v9887_v25  ;;  %v9975_v3 = vcombine.high %v1256_v61, %v1260_v62  ;;  %v9974_v5 = vcombine.low %v1256_v61, %v1260_v62 }
  0xbd   :  { %7359 = vmatprep.subr.bf16.mxu1 %v10015_v26 }
  0xbf   :  { %7319 = vmatpush1.bf16.msra.mxu0 %v9886_v31  ;;  %v11690_v31 = vsub.s32 7, %v228_v7 }
  0xc0   :  { %7360 = vmatpush1.bf16.msra.mxu1 %v10014_v32  ;;  %7320 = vmatprep.subr.bf16.mxu0 %v9879_v33  ;;  %v246_v33 = vrot.slane %v223_v10, %v11680_v20 }
  0xc1   :  { %7361 = vmatprep.subr.bf16.mxu1 %v10007_v34  ;;  %v254_v34 = vrot.slane %v223_v10, %v11682_v21  ;;  %v258_v45 = vrot.slane %v223_v10, %v11690_v31 }
  0xc3   :  { %7321 = vmatpush1.bf16.msra.mxu0 %v9878_v39 }
  0xc4   :  { %7362 = vmatpush1.bf16.msra.mxu1 %v10006_v40  ;;  %7322 = vmatprep.subr.bf16.mxu0 %v9871_v41 }
  0xc5   :  { %7363 = vmatprep.subr.bf16.mxu1 %v9999_v42 }
  0xc7   :  { %7323 = vmatpush1.bf16.msra.mxu0 %v9870_v47 }
  0xc8   :  { %7364 = vmatpush1.bf16.msra.mxu1 %v9998_v48  ;;  %7324 = vmatprep.subr.bf16.mxu0 %v9863_v49 }
  0xc9   :  { %7365 = vmatprep.subr.bf16.mxu1 %v9991_v50  ;;  %v11709_v50 = vld [vmem:[#allocation8 + $0x8] sm:$0xff] }
  0xca   :  { %v262_v62 = vrot.slane %v11709_v50, %v11668_v8 }
  0xcb   :  { %7325 = vmatpush1.bf16.msra.mxu0 %v9862_v55 }
  0xcc   :  { %7366 = vmatpush1.bf16.msra.mxu1 %v9990_v56  ;;  %7326 = vmatprep.subr.bf16.mxu0 %v9855_v57 }
  0xcd   :  { %7367 = vmatprep.subr.bf16.mxu1 %v9983_v58 }
  0xcf   :  { %7327 = vmatpush1.bf16.msra.mxu0 %v9854_v63 }
  0xd0   :  { %7368 = vmatpush1.bf16.msra.mxu1 %v9982_v0  ;;  %7328 = vmatprep.subr.bf16.mxu0 %v9847_v1 }
  0xd1   :  { %7369 = vmatprep.subr.bf16.mxu1 %v9975_v3  ;;  %v270_v3 = vrot.slane %v11709_v50, %v11670_v9 }
  0xd3   :  { %7329 = vmatpush1.bf16.msra.mxu0 %v9846_v4 }
  0xd4   :  { %7370 = vmatpush1.bf16.msra.mxu1 %v9974_v5 }
 0x15e   :  { %v514_v2 = vpop.f32.mrf.mxu0 }
 0x15f   :  { %v555_v17 = vpop.f32.mrf.mxu1  ;;  %v515_v18 = vadd.f32 %v514_v2, %v230_v13  ;;  %v266_v13 = vrot.slane %v11709_v50, %v11672_v11 }
 0x160   :  { %v556_v19 = vadd.f32 %v555_v17, %v238_v14  ;;  %v516_v22 = vpop.f32.mrf.mxu0 }
 0x161   :  { %v557_v23 = vpop.f32.mrf.mxu1  ;;  %v11684_v24 = vmax.f32 %v515_v18, 0.0  ;;  %v517_v26 = vadd.f32 %v516_v22, %v234_v15  ;;  %v274_v18 = vrot.slane %v11709_v50, %v11674_v12 }
 0x162   :  { %v11686_v25 = vmax.f32 %v556_v19, 0.0  ;;  %v558_v27 = vadd.f32 %v557_v23, %v242_v16  ;;  %v518_v28 = vpop.f32.mrf.mxu0 }
 0x163   :  { %v559_v29 = vpop.f32.mrf.mxu1  ;;  %v11692_v32 = vmax.f32 %v517_v26, 0.0  ;;  %v841_v35 = vmul.f32 %v11684_v24, %v11684_v24 }
 0x164   :  { %v519_v36 = vpop.f32.mrf.mxu0  ;;  %v843_v38 = vmul.f32 %v11686_v25, %v11686_v25  ;;  %v11704_v41 = vmax.f32 %v558_v27, 0.0 }
 0x165   :  { %v560_v37 = vpop.f32.mrf.mxu1  ;;  %v824_v39 = vadd.f32 %v11692_v32, %v11684_v24  ;;  %v842_v40 = vmul.f32 %v11692_v32, %v11692_v32 }
 0x166   :  { %v596_v42 = vpop.f32.mrf.mxu0  ;;  %v844_v54 = vmul.f32 %v11704_v41, %v11704_v41 }
 0x167   :  { %v637_v43 = vpop.f32.mrf.mxu1  ;;  %v857_v46 = vadd.f32 %v842_v40, %v841_v35  ;;  %v825_v47 = vadd.f32 %v824_v39, %v11686_v25  ;;  %v597_v48 = vadd.f32 %v596_v42, %v246_v33 }
 0x168   :  { %v638_v49 = vadd.f32 %v637_v43, %v254_v34  ;;  %v598_v51 = vpop.f32.mrf.mxu0 }
 0x169   :  { %v639_v52 = vpop.f32.mrf.mxu1  ;;  %v826_v53 = vadd.f32 %v825_v47, %v11704_v41  ;;  %v858_v55 = vadd.f32 %v857_v46, %v843_v38  ;;  %v11714_v56 = vmax.f32 %v597_v48, 0.0  ;;  %v599_v58 = vadd.f32 %v598_v51, %v250_v44 }
 0x16a   :  { %v11716_v57 = vmax.f32 %v638_v49, 0.0  ;;  %v640_v59 = vadd.f32 %v639_v52, %v258_v45  ;;  %v600_v60 = vpop.f32.mrf.mxu0  ;;  %v278_v44 = vrot.slane %v11709_v50, %v11680_v20  ;;  %v286_v45 = vrot.slane %v11709_v50, %v11682_v21 }
 0x16b   :  { %v641_v61 = vpop.f32.mrf.mxu1  ;;  %v859_v63 = vadd.f32 %v858_v55, %v844_v54  ;;  %v827_v0 = vadd.f32 %v826_v53, %v11714_v56  ;;  %v845_v1 = vmul.f32 %v11714_v56, %v11714_v56  ;;  %v11725_v4 = vmax.f32 %v599_v58, 0.0 }
 0x16c   :  { %v601_v5 = vpop.f32.mrf.mxu0  ;;  %v11727_v10 = vmax.f32 %v640_v59, 0.0  ;;  %v847_v14 = vmul.f32 %v11716_v57, %v11716_v57  ;;  %v282_v52 = vrot.slane %v11709_v50, %v11688_v30 }
 0x16d   :  { %v642_v6 = vpop.f32.mrf.mxu1  ;;  %v860_v7 = vadd.f32 %v859_v63, %v845_v1  ;;  %v828_v15 = vadd.f32 %v827_v0, %v11725_v4  ;;  %v846_v16 = vmul.f32 %v11725_v4, %v11725_v4 }
 0x16e   :  { %v678_v2 = vpop.f32.mrf.mxu0  ;;  %v848_v29 = vmul.f32 %v11727_v10, %v11727_v10 }
 0x16f   :  { %v719_v17 = vpop.f32.mrf.mxu1  ;;  %v679_v19 = vadd.f32 %v678_v2, %v262_v62  ;;  %v861_v23 = vadd.f32 %v860_v7, %v846_v16  ;;  %v829_v26 = vadd.f32 %v828_v15, %v11716_v57 }
 0x170   :  { %v720_v22 = vadd.f32 %v719_v17, %v270_v3  ;;  %v680_v27 = vpop.f32.mrf.mxu0  ;;  %v290_v3 = vrot.slane %v11709_v50, %v11690_v31 }
 0x171   :  { %v721_v28 = vpop.f32.mrf.mxu1  ;;  %v11741_v33 = vmax.f32 %v679_v19, 0.0  ;;  %v681_v34 = vadd.f32 %v680_v27, %v266_v13  ;;  %v830_v35 = vadd.f32 %v829_v26, %v11727_v10  ;;  %v862_v36 = vadd.f32 %v861_v23, %v847_v14 }
 0x172   :  { %v11744_v37 = vmax.f32 %v720_v22, 0.0  ;;  %v722_v38 = vadd.f32 %v721_v28, %v274_v18  ;;  %v682_v39 = vpop.f32.mrf.mxu0 }
 0x173   :  { %v723_v40 = vpop.f32.mrf.mxu1  ;;  %v849_v42 = vmul.f32 %v11741_v33, %v11741_v33  ;;  %v11748_v43 = vmax.f32 %v681_v34, 0.0  ;;  %v863_v46 = vadd.f32 %v862_v36, %v848_v29  ;;  %v831_v47 = vadd.f32 %v830_v35, %v11741_v33 }
 0x174   :  { %v683_v48 = vpop.f32.mrf.mxu0  ;;  %v851_v54 = vmul.f32 %v11744_v37, %v11744_v37  ;;  %v11762_v58 = vmax.f32 %v722_v38, 0.0 }
 0x175   :  { %v724_v49 = vpop.f32.mrf.mxu1  ;;  %v850_v51 = vmul.f32 %v11748_v43, %v11748_v43  ;;  %v864_v53 = vadd.f32 %v863_v46, %v849_v42  ;;  %v832_v55 = vadd.f32 %v831_v47, %v11748_v43  ;;  %v1248_v46 = vld [vmem:[#allocation12 + $0x3c0] sm:$0xff] }
 0x176   :  { %v760_v59 = vpop.f32.mrf.mxu0  ;;  %v852_v14 = vmul.f32 %v11762_v58, %v11762_v58  ;;  %v1252_v47 = vld [vmem:[#allocation12 + $0x3e0] sm:$0xff] }
 0x177   :  { %v801_v60 = vpop.f32.mrf.mxu1  ;;  %v761_v61 = vadd.f32 %v760_v59, %v278_v44  ;;  %v865_v63 = vadd.f32 %v864_v53, %v850_v51  ;;  %v833_v0 = vadd.f32 %v832_v55, %v11744_v37  ;;  %v1376_v48 = vld [vmem:[#allocation12 + $0x7c0] sm:$0xff]  ;;  %v9967_v49 = vcombine.high %v1248_v46, %v1252_v47 }
 0x178   :  { %v802_v62 = vadd.f32 %v801_v60, %v286_v45  ;;  %v762_v1 = vpop.f32.mrf.mxu0  ;;  %v1380_v51 = vld [vmem:[#allocation12 + $0x7e0] sm:$0xff] }
 0x179   :  { %v803_v5 = vpop.f32.mrf.mxu1  ;;  %v11767_v6 = vmax.f32 %v761_v61, 0.0  ;;  %v763_v7 = vadd.f32 %v762_v1, %v282_v52  ;;  %v834_v13 = vadd.f32 %v833_v0, %v11762_v58  ;;  %v866_v15 = vadd.f32 %v865_v63, %v851_v54  ;;  %7330 = vmatprep.subr.bf16.mxu0 %v9967_v49  ;;  %v1240_v55 = vld [vmem:[#allocation12 + $0x380] sm:$0xff] }
 0x17a   :  { %v11772_v16 = vmax.f32 %v802_v62, 0.0  ;;  %v764_v2 = vpop.f32.mrf.mxu0  ;;  %v804_v23 = vadd.f32 %v803_v5, %v290_v3  ;;  %v9966_v52 = vcombine.low %v1248_v46, %v1252_v47  ;;  %v10094_v53 = vcombine.low %v1376_v48, %v1380_v51  ;;  %v1244_v59 = vld [vmem:[#allocation12 + $0x3a0] sm:$0xff] }
 0x17b   :  { %v805_v17 = vpop.f32.mrf.mxu1  ;;  %v853_v18 = vmul.f32 %v11767_v6, %v11767_v6  ;;  %v11776_v19 = vmax.f32 %v763_v7, 0.0  ;;  %v867_v50 = vadd.f32 %v866_v15, %v852_v14  ;;  %v835_v22 = vadd.f32 %v834_v13, %v11767_v6  ;;  %v1368_v60 = vld [vmem:[#allocation12 + $0x780] sm:$0xff] }
 0x17c   :  { %v765_v26 = vpop.f32.mrf.mxu0  ;;  %v855_v34 = vmul.f32 %v11772_v16, %v11772_v16  ;;  %v11784_v36 = vmax.f32 %v804_v23, 0.0  ;;  %v10095_v54 = vcombine.high %v1376_v48, %v1380_v51  ;;  %7331 = vmatpush2.bf16.msra.mxu0 %v9966_v52  ;;  %v9959_v61 = vcombine.high %v1240_v55, %v1244_v59  ;;  %v1372_v62 = vld [vmem:[#allocation12 + $0x7a0] sm:$0xff] }
 0x17d   :  { %v806_v27 = vpop.f32.mrf.mxu1  ;;  %v854_v28 = vmul.f32 %v11776_v19, %v11776_v19  ;;  %v836_v29 = vadd.f32 %v835_v22, %v11776_v19  ;;  %v868_v35 = vadd.f32 %v867_v50, %v853_v18  ;;  %v9958_v63 = vcombine.low %v1240_v55, %v1244_v59  ;;  %v1232_v3 = vld [vmem:[#allocation12 + $0x340] sm:$0xff] }
 0x17e   :  { %v856_v44 = vmul.f32 %v11784_v36, %v11784_v36  ;;  %7371 = vmatprep.subr.bf16.mxu1 %v10095_v54  ;;  %v10086_v0 = vcombine.low %v1368_v60, %v1372_v62  ;;  %v10087_v1 = vcombine.high %v1368_v60, %v1372_v62  ;;  %7332 = vmatprep.subr.bf16.mxu0 %v9959_v61  ;;  %v1236_v5 = vld [vmem:[#allocation12 + $0x360] sm:$0xff] }
 0x17f   :  { %v837_v38 = vadd.f32 %v836_v29, %v11772_v16  ;;  %v869_v39 = vadd.f32 %v868_v35, %v854_v28  ;;  %7372 = vmatpush2.bf16.msra.mxu1 %v10094_v53  ;;  %v1360_v7 = vld [vmem:[#allocation12 + $0x740] sm:$0xff]  ;;  %v9951_v13 = vcombine.high %v1232_v3, %v1236_v5  ;;  %v9950_v15 = vcombine.low %v1232_v3, %v1236_v5 }
 0x180   :  { %7373 = vmatprep.subr.bf16.mxu1 %v10087_v1  ;;  %7333 = vmatpush2.bf16.msra.mxu0 %v9958_v63  ;;  %v1364_v14 = vld [vmem:[#allocation12 + $0x760] sm:$0xff] }
 0x181   :  { %v838_v40 = vadd.f32 %v837_v38, %v11784_v36  ;;  %v870_v42 = vadd.f32 %v869_v39, %v855_v34  ;;  %v10078_v2 = vcombine.low %v1360_v7, %v1364_v14  ;;  %v10079_v17 = vcombine.high %v1360_v7, %v1364_v14  ;;  %7334 = vmatprep.subr.bf16.mxu0 %v9951_v13  ;;  %v1224_v18 = vld [vmem:[#allocation12 + $0x300] sm:$0xff] }
 0x182   :  { %v1228_v50 = vld [vmem:[#allocation12 + $0x320] sm:$0xff] }
 0x183   :  { %839 = vadd.xlane.f32.xlu0 %v838_v40  ;;  %v871_v45 = vadd.f32 %v870_v42, %v856_v44  ;;  %7374 = vmatpush2.bf16.msra.mxu1 %v10086_v0  ;;  %v1352_v22 = vld [vmem:[#allocation12 + $0x700] sm:$0xff]  ;;  %v9942_v23 = vcombine.low %v1224_v18, %v1228_v50  ;;  %v9943_v26 = vcombine.high %v1224_v18, %v1228_v50 }
 0x184   :  { %7375 = vmatprep.subr.bf16.mxu1 %v10079_v17  ;;  %7335 = vmatpush2.bf16.msra.mxu0 %v9950_v15  ;;  %v1356_v27 = vld [vmem:[#allocation12 + $0x720] sm:$0xff] }
 0x185   :  { %v1216_v28 = vld [vmem:[#allocation12 + $0x2c0] sm:$0xff]  ;;  %v10070_v34 = vcombine.low %v1352_v22, %v1356_v27  ;;  %v10071_v35 = vcombine.high %v1352_v22, %v1356_v27  ;;  %7336 = vmatprep.subr.bf16.mxu0 %v9943_v26 }
 0x186   :  { %v1220_v29 = vld [vmem:[#allocation12 + $0x2e0] sm:$0xff] }
 0x187   :  { %872 = vadd.xlane.f32.xlu0 %v871_v45  ;;  %7376 = vmatpush2.bf16.msra.mxu1 %v10078_v2  ;;  %v9935_v38 = vcombine.high %v1216_v28, %v1220_v29  ;;  %v1344_v39 = vld [vmem:[#allocation12 + $0x6c0] sm:$0xff]  ;;  %v9934_v48 = vcombine.low %v1216_v28, %v1220_v29 }
 0x188   :  { %v1348_v40 = vld [vmem:[#allocation12 + $0x6e0] sm:$0xff]  ;;  %7377 = vmatprep.subr.bf16.mxu1 %v10071_v35  ;;  %7337 = vmatpush2.bf16.msra.mxu0 %v9942_v23 }
 0x189   :  { %v1208_v42 = vld [vmem:[#allocation12 + $0x280] sm:$0xff]  ;;  %v10063_v44 = vcombine.high %v1344_v39, %v1348_v40  ;;  %7338 = vmatprep.subr.bf16.mxu0 %v9935_v38  ;;  %v10062_v49 = vcombine.low %v1344_v39, %v1348_v40 }
 0x18a   :  { %v1212_v45 = vld [vmem:[#allocation12 + $0x2a0] sm:$0xff] }
 0x18b   :  { %v1336_v46 = vld [vmem:[#allocation12 + $0x680] sm:$0xff]  ;;  %7378 = vmatpush2.bf16.msra.mxu1 %v10070_v34  ;;  %v9927_v51 = vcombine.high %v1208_v42, %v1212_v45  ;;  %v9926_v60 = vcombine.low %v1208_v42, %v1212_v45 }
 0x18c   :  { %v1340_v47 = vld [vmem:[#allocation12 + $0x6a0] sm:$0xff]  ;;  %7379 = vmatprep.subr.bf16.mxu1 %v10063_v44  ;;  %7339 = vmatpush2.bf16.msra.mxu0 %v9934_v48 }
 0x18d   :  { %v10055_v52 = vcombine.high %v1336_v46, %v1340_v47  ;;  %v1200_v53 = vld [vmem:[#allocation12 + $0x240] sm:$0xff]  ;;  %7340 = vmatprep.subr.bf16.mxu0 %v9927_v51  ;;  %v10054_v61 = vcombine.low %v1336_v46, %v1340_v47  ;;  %v1012_v46 = vld [vmem:[#allocation11] sm:$0xff] }
 0x18e   :  { %v1204_v54 = vld [vmem:[#allocation12 + $0x260] sm:$0xff] }
 0x18f   :  { %v1328_v55 = vld [vmem:[#allocation12 + $0x640] sm:$0xff]  ;;  %7380 = vmatpush2.bf16.msra.mxu1 %v10062_v49  ;;  %v9919_v62 = vcombine.high %v1200_v53, %v1204_v54  ;;  %v9918_v7 = vcombine.low %v1200_v53, %v1204_v54  ;;  %v1023_v54 = vrot.slane %v1012_v46, %v11672_v11 }
 0x190   :  { %v1332_v59 = vld [vmem:[#allocation12 + $0x660] sm:$0xff]  ;;  %7381 = vmatprep.subr.bf16.mxu1 %v10055_v52  ;;  %7341 = vmatpush2.bf16.msra.mxu0 %v9926_v60 }
 0x191   :  { %v10047_v63 = vcombine.high %v1328_v55, %v1332_v59  ;;  %v1192_v0 = vld [vmem:[#allocation12 + $0x200] sm:$0xff]  ;;  %7342 = vmatprep.subr.bf16.mxu0 %v9919_v62  ;;  %v10046_v13 = vcombine.low %v1328_v55, %v1332_v59  ;;  %v1031_v55 = vrot.slane %v1012_v46, %v11674_v12  ;;  %v1019_v59 = vrot.slane %v1012_v46, %v11668_v8 }
 0x192   :  { %v1196_v1 = vld [vmem:[#allocation12 + $0x220] sm:$0xff]  ;;  %v1039_v62 = vrot.slane %v1012_v46, %v11688_v30 }
 0x193   :  { %v1320_v3 = vld [vmem:[#allocation12 + $0x600] sm:$0xff]  ;;  %7382 = vmatpush2.bf16.msra.mxu1 %v10054_v61  ;;  %v9911_v14 = vcombine.high %v1192_v0, %v1196_v1  ;;  %v9910_v2 = vcombine.low %v1192_v0, %v1196_v1  ;;  %v1027_v61 = vrot.slane %v1012_v46, %v11670_v9  ;;  %v1035_v0 = vrot.slane %v1012_v46, %v11680_v20 }
 0x194   :  { %v1324_v5 = vld [vmem:[#allocation12 + $0x620] sm:$0xff]  ;;  %7383 = vmatprep.subr.bf16.mxu1 %v10047_v63  ;;  %7343 = vmatpush2.bf16.msra.mxu0 %v9918_v7  ;;  %v1047_v63 = vrot.slane %v1012_v46, %v11690_v31  ;;  %v1043_v7 = vrot.slane %v1012_v46, %v11682_v21 }
 0x195   :  { %v10039_v15 = vcombine.high %v1320_v3, %v1324_v5  ;;  %7344 = vmatprep.subr.bf16.mxu0 %v9911_v14  ;;  %v10038_v17 = vcombine.low %v1320_v3, %v1324_v5  ;;  %v11790_v18 = vld [vmem:[#allocation12 + $0x9c0] sm:$0xff] }
 0x196   :  { %v11792_v50 = vld [vmem:[#allocation12 + $0x9e0] sm:$0xff] }
 0x197   :  { %7384 = vmatpush2.bf16.msra.mxu1 %v10046_v13  ;;  %v11794_v22 = vld [vmem:[#allocation12 + $0xdc0] sm:$0xff]  ;;  %v10159_v23 = vcombine.high %v11790_v18, %v11792_v50 }
 0x198   :  { %7385 = vmatprep.subr.bf16.mxu1 %v10039_v15  ;;  %7345 = vmatpush2.bf16.msra.mxu0 %v9910_v2  ;;  %v11798_v26 = vld [vmem:[#allocation12 + $0xde0] sm:$0xff] }
 0x199   :  { %v10287_v29 = vcombine.high %v11794_v22, %v11798_v26  ;;  %7396 = vmatprep.subr.bf16.mxu0 %v10159_v23  ;;  %v912_v45 = vld [vmem:[#allocation9] sm:$0xff] }
 0x19a   :  { %v923_v47 = vrot.slane %v912_v45, %v11672_v11  ;;  %v931_v48 = vrot.slane %v912_v45, %v11674_v12  ;;  %v919_v49 = vrot.slane %v912_v45, %v11668_v8  ;;  %v927_v51 = vrot.slane %v912_v45, %v11670_v9  ;;  %v1432_v28 = vld [vmem:[#allocation12 + $0x980] sm:$0xff] }
 0x19b   :  { %7386 = vmatpush2.bf16.msra.mxu1 %v10038_v17  ;;  %v939_v52 = vrot.slane %v912_v45, %v11688_v30  ;;  %v947_v53 = vrot.slane %v912_v45, %v11690_v31  ;;  %v935_v60 = vrot.slane %v912_v45, %v11680_v20  ;;  %v943_v5 = vrot.slane %v912_v45, %v11682_v21  ;;  %v1560_v8 = vld [vmem:[#allocation12 + $0xd80] sm:$0xff] }
 0x19c   :  { %7437 = vmatprep.subr.bf16.mxu1 %v10287_v29 }
 0x20c   :  { %v840_v34 = vpop.xlane.xlu0 %839 }
 0x20d   :  { %v11806_v35 = vmul.f32 0.00048828125, %v840_v34 }
 0x20f   :  { %v876_v39 = vmul.f32 %v11806_v35, %v11806_v35  ;;  %v881_v1 = vsub.f32 %v11692_v32, %v11806_v35  ;;  %v883_v3 = vsub.f32 %v11704_v41, %v11806_v35  ;;  %v880_v13 = vsub.f32 %v11684_v24, %v11806_v35 }
 0x210   :  { %v873_v38 = vpop.xlane.xlu0 %872  ;;  %v882_v14 = vsub.f32 %v11686_v25, %v11806_v35  ;;  %v885_v15 = vsub.f32 %v11725_v4, %v11806_v35  ;;  %v887_v2 = vsub.f32 %v11727_v10, %v11806_v35  ;;  %v884_v41 = vsub.f32 %v11714_v56, %v11806_v35 }
 0x211   :  { %v875_v40 = vmul.f32 0.00048828125, %v873_v38  ;;  %v886_v17 = vsub.f32 %v11716_v57, %v11806_v35  ;;  %v889_v24 = vsub.f32 %v11748_v43, %v11806_v35  ;;  %v891_v25 = vsub.f32 %v11762_v58, %v11806_v35 }
 0x213   :  { %v877_v42 = vsub.f32 %v875_v40, %v876_v39 }
 0x215   :  { %v878_v44 = vadd.f32 1e-05, %v877_v42 }
 0x217   :  { %11227 = vrsqrt.f32 %v878_v44 }
 0x224   :  { %v11838_v32 = vpop.eup %11227 }
 0x225   :  { %v897_v23 = vmul.f32 %v11838_v32, %v881_v1  ;;  %v899_v4 = vmul.f32 %v11838_v32, %v883_v3  ;;  %v896_v10 = vmul.f32 %v11838_v32, %v880_v13  ;;  %v898_v29 = vmul.f32 %v11838_v32, %v882_v14 }
 0x226   :  { %v901_v34 = vmul.f32 %v11838_v32, %v885_v15  ;;  %v903_v56 = vmul.f32 %v11838_v32, %v887_v2  ;;  %v900_v57 = vmul.f32 %v11838_v32, %v884_v41  ;;  %v902_v38 = vmul.f32 %v11838_v32, %v886_v17  ;;  %v1436_v15 = vld [vmem:[#allocation12 + $0x9a0] sm:$0xff] }
 0x227   :  { %v997_v43 = vmul.f32 %v923_v47, %v897_v23  ;;  %v999_v39 = vmul.f32 %v931_v48, %v899_v4  ;;  %v996_v40 = vmul.f32 %v919_v49, %v896_v10  ;;  %v998_v58 = vmul.f32 %v927_v51, %v898_v29  ;;  %v1564_v41 = vld [vmem:[#allocation12 + $0xda0] sm:$0xff]  ;;  %v11884_v23 = vld [vmem:[#allocation11 + $0x8] sm:$0xff] }
 0x228   :  { %v1001_v42 = vmul.f32 %v939_v52, %v901_v34  ;;  %v1003_v44 = vmul.f32 %v947_v53, %v903_v56  ;;  %v1000_v45 = vmul.f32 %v935_v60, %v900_v57  ;;  %v1002_v46 = vmul.f32 %v943_v5, %v902_v38  ;;  %v11868_v60 = vld [vmem:[#allocation9 + $0x8] sm:$0xff]  ;;  %v1416_v34 = vld [vmem:[#allocation12 + $0x900] sm:$0xff] }
 0x229   :  { %v1097_v1 = vadd.f32 %v1023_v54, %v997_v43  ;;  %v1099_v3 = vadd.f32 %v1031_v55, %v999_v39  ;;  %v1096_v13 = vadd.f32 %v1019_v59, %v996_v40  ;;  %v1098_v14 = vadd.f32 %v1027_v61, %v998_v58  ;;  %v1424_v55 = vld [vmem:[#allocation12 + $0x940] sm:$0xff] }
 0x22a   :  { %v1101_v27 = vadd.f32 %v1039_v62, %v1001_v42  ;;  %v1103_v2 = vadd.f32 %v1047_v63, %v1003_v44  ;;  %v11856_v12 = vadd.f32 %v1035_v0, %v1000_v45  ;;  %v11858_v47 = vadd.f32 %v1043_v7, %v1002_v46  ;;  %v1428_v59 = vld [vmem:[#allocation12 + $0x960] sm:$0xff] }
 0x22b   :  { %v11860_v48 = vpack.c.bf16 %v1097_v1, %v1097_v1  ;;  %v11862_v49 = vpack.c.bf16 %v1099_v3, %v1099_v3  ;;  %v11864_v51 = vpack.c.bf16 %v1096_v13, %v1096_v13  ;;  %v11866_v52 = vpack.c.bf16 %v1098_v14, %v1098_v14  ;;  %v1552_v62 = vld [vmem:[#allocation12 + $0xd40] sm:$0xff] }
 0x22c   :  { %v10150_v53 = vcombine.low %v1432_v28, %v1436_v15  ;;  %v10151_v54 = vcombine.high %v1432_v28, %v1436_v15  ;;  %v10279_v61 = vcombine.high %v1560_v8, %v1564_v41  ;;  %v1556_v63 = vld [vmem:[#allocation12 + $0xd60] sm:$0xff]  ;;  %v11873_v0 = vmul.f32 %v11838_v32, %v889_v24 }
 0x22d   :  { %7346 = vmatprep.mubr.bf16.mxu0 %v11860_v48  ;;  %7387 = vmatprep.mubr.bf16.mxu1 %v11862_v49  ;;  %v11876_v5 = vmul.f32 %v11838_v32, %v891_v25  ;;  %v11880_v28 = vpack.c.bf16 %v1101_v27, %v1101_v27  ;;  %v11882_v7 = vpack.c.bf16 %v1103_v2, %v1103_v2  ;;  %v1408_v45 = vld [vmem:[#allocation12 + $0x8c0] sm:$0xff] }
 0x22e   :  { %7347 = vmatmul.mubr.bf16.vlgmr.msra.gmra.mxu0 %v11864_v51  ;;  %7388 = vmatmul.mubr.bf16.vlgmr.msra.gmra.mxu1 %v11866_v52  ;;  %v10278_v17 = vcombine.low %v1560_v8, %v1564_v41  ;;  %v12237_v4 = vcombine.low %v11790_v18, %v11792_v50  ;;  %v12238_v24 = vcombine.low %v11794_v22, %v11798_v26  ;;  %v1420_v18 = vld [vmem:[#allocation12 + $0x920] sm:$0xff] }
 0x22f   :  { %v10142_v25 = vcombine.low %v1424_v55, %v1428_v59  ;;  %v888_v10 = vsub.f32 %v11741_v33, %v11806_v35  ;;  %v959_v27 = vrot.slane %v11868_v60, %v11670_v9  ;;  %7428 = vmatprep.mubr.bf16.mxu0 %v11880_v28  ;;  %7469 = vmatprep.mubr.bf16.mxu1 %v11882_v7  ;;  %v1544_v22 = vld [vmem:[#allocation12 + $0xd00] sm:$0xff] }
 0x230   :  { %7397 = vmatpush1.bf16.msra.mxu0 %v12237_v4  ;;  %7438 = vmatpush1.bf16.msra.mxu1 %v12238_v24  ;;  %v10143_v8 = vcombine.high %v1424_v55, %v1428_v59  ;;  %v10271_v29 = vcombine.high %v1552_v62, %v1556_v63  ;;  %v890_v50 = vsub.f32 %v11744_v37, %v11806_v35  ;;  %v1548_v26 = vld [vmem:[#allocation12 + $0xd20] sm:$0xff] }
 0x231   :  { %7398 = vmatprep.subr.bf16.mxu0 %v10151_v54  ;;  %7439 = vmatprep.subr.bf16.mxu1 %v10279_v61  ;;  %v11901_v33 = vmul.f32 %v11838_v32, %v888_v10  ;;  %v1059_v56 = vrot.slane %v11884_v23, %v11670_v9  ;;  %v971_v57 = vrot.slane %v11868_v60, %v11688_v30  ;;  %v1536_v3 = vld [vmem:[#allocation12 + $0xcc0] sm:$0xff] }
 0x232   :  { %v10270_v38 = vcombine.low %v1552_v62, %v1556_v63  ;;  %v906_v43 = vmul.f32 %v11838_v32, %v890_v50  ;;  %v893_v39 = vsub.f32 %v11776_v19, %v11806_v35  ;;  %v979_v37 = vrot.slane %v11868_v60, %v11690_v31  ;;  %v1412_v19 = vld [vmem:[#allocation12 + $0x8e0] sm:$0xff] }
 0x233   :  { %v10135_v40 = vcombine.high %v1416_v34, %v1420_v18  ;;  %v1071_v58 = vrot.slane %v11884_v23, %v11688_v30  ;;  %v895_v42 = vsub.f32 %v11784_v36, %v11806_v35  ;;  %v10263_v44 = vcombine.high %v1544_v22, %v1548_v26  ;;  %v1540_v13 = vld [vmem:[#allocation12 + $0xce0] sm:$0xff] }
 0x234   :  { %7399 = vmatpush1.bf16.msra.mxu0 %v10150_v53  ;;  %7440 = vmatpush1.bf16.msra.mxu1 %v10278_v17  ;;  %v1006_v46 = vmul.f32 %v959_v27, %v906_v43  ;;  %v909_v1 = vmul.f32 %v11838_v32, %v893_v39  ;;  %v1079_v15 = vrot.slane %v11884_v23, %v11690_v31  ;;  %v1400_v62 = vld [vmem:[#allocation12 + $0x880] sm:$0xff] }
 0x235   :  { %7400 = vmatprep.subr.bf16.mxu0 %v10143_v8  ;;  %7441 = vmatprep.subr.bf16.mxu1 %v10271_v29  ;;  %v911_v14 = vmul.f32 %v11838_v32, %v895_v42  ;;  %v10134_v2 = vcombine.low %v1416_v34, %v1420_v18  ;;  %v10262_v36 = vcombine.low %v1544_v22, %v1548_v26  ;;  %v1404_v17 = vld [vmem:[#allocation12 + $0x8a0] sm:$0xff] }
 0x236   :  { %v11920_v41 = vadd.f32 %v1059_v56, %v1006_v46  ;;  %v1009_v53 = vmul.f32 %v971_v57, %v909_v1  ;;  %v967_v55 = vrot.slane %v11868_v60, %v11680_v20  ;;  %v10127_v59 = vcombine.high %v1408_v45, %v1412_v19  ;;  %v1528_v4 = vld [vmem:[#allocation12 + $0xc80] sm:$0xff] }
 0x237   :  { %v1011_v54 = vmul.f32 %v979_v37, %v911_v14  ;;  %v10255_v61 = vcombine.high %v1536_v3, %v1540_v13  ;;  %v1532_v24 = vld [vmem:[#allocation12 + $0xca0] sm:$0xff]  ;;  %v894_v27 = vsub.f32 %v11772_v16, %v11806_v35  ;;  %v975_v8 = vrot.slane %v11868_v60, %v11682_v21 }
 0x238   :  { %7401 = vmatpush1.bf16.msra.mxu0 %v10142_v25  ;;  %7442 = vmatpush1.bf16.msra.mxu1 %v10270_v38  ;;  %v11924_v63 = vadd.f32 %v1071_v58, %v1009_v53  ;;  %v892_v25 = vsub.f32 %v11767_v6, %v11806_v35  ;;  %v10126_v29 = vcombine.low %v1408_v45, %v1412_v19  ;;  %v1392_v26 = vld [vmem:[#allocation12 + $0x840] sm:$0xff] }
 0x239   :  { %7402 = vmatprep.subr.bf16.mxu0 %v10135_v40  ;;  %7443 = vmatprep.subr.bf16.mxu1 %v10263_v44  ;;  %v11926_v10 = vadd.f32 %v1079_v15, %v1011_v54  ;;  %v10254_v34 = vcombine.low %v1536_v3, %v1540_v13  ;;  %v1067_v18 = vrot.slane %v11884_v23, %v11680_v20  ;;  %v1396_v56 = vld [vmem:[#allocation12 + $0x860] sm:$0xff] }
 0x23a   :  { %v908_v50 = vmul.f32 %v11838_v32, %v892_v25  ;;  %v910_v22 = vmul.f32 %v11838_v32, %v894_v27  ;;  %v1075_v6 = vrot.slane %v11884_v23, %v11682_v21  ;;  %v10119_v16 = vcombine.high %v1400_v62, %v1404_v17  ;;  %v1520_v57 = vld [vmem:[#allocation12 + $0xc40] sm:$0xff] }
 0x23b   :  { %v10247_v35 = vcombine.high %v1528_v4, %v1532_v24  ;;  %v1524_v38 = vld [vmem:[#allocation12 + $0xc60] sm:$0xff]  ;;  %v10118_v37 = vcombine.low %v1400_v62, %v1404_v17  ;;  %v10246_v40 = vcombine.low %v1528_v4, %v1532_v24  ;;  %v10111_v42 = vcombine.high %v1392_v26, %v1396_v56 }
 0x23c   :  { %7403 = vmatpush1.bf16.msra.mxu0 %v10134_v2  ;;  %7444 = vmatpush1.bf16.msra.mxu1 %v10262_v36  ;;  %v1008_v43 = vmul.f32 %v967_v55, %v908_v50  ;;  %v1010_v39 = vmul.f32 %v975_v8, %v910_v22  ;;  %v10239_v44 = vcombine.high %v1520_v57, %v1524_v38  ;;  %v1384_v45 = vld [vmem:[#allocation12 + $0x800] sm:$0xff] }
 0x23d   :  { %7404 = vmatprep.subr.bf16.mxu0 %v10127_v59  ;;  %7445 = vmatprep.subr.bf16.mxu1 %v10255_v61  ;;  %v1388_v46 = vld [vmem:[#allocation12 + $0x820] sm:$0xff]  ;;  %v10110_v3 = vcombine.low %v1392_v26, %v1396_v56  ;;  %v10238_v13 = vcombine.low %v1520_v57, %v1524_v38 }
 0x23e   :  { %v11940_v58 = vadd.f32 %v1067_v18, %v1008_v43  ;;  %v11942_v32 = vadd.f32 %v1075_v6, %v1010_v39  ;;  %v1512_v1 = vld [vmem:[#allocation12 + $0xc00] sm:$0xff]  ;;  %v10103_v14 = vcombine.high %v1384_v45, %v1388_v46  ;;  %v10102_v55 = vcombine.low %v1384_v45, %v1388_v46 }
 0x23f   :  { %v1516_v19 = vld [vmem:[#allocation12 + $0xc20] sm:$0xff] }
 0x240   :  { %7405 = vmatpush1.bf16.msra.mxu0 %v10126_v29  ;;  %7446 = vmatpush1.bf16.msra.mxu1 %v10254_v34  ;;  %v10231_v15 = vcombine.high %v1512_v1, %v1516_v19  ;;  %v1504_v2 = vld [vmem:[#allocation12 + $0xbc0] sm:$0xff]  ;;  %v10230_v59 = vcombine.low %v1512_v1, %v1516_v19 }
 0x241   :  { %7406 = vmatprep.subr.bf16.mxu0 %v10119_v16  ;;  %7447 = vmatprep.subr.bf16.mxu1 %v10247_v35  ;;  %v1508_v53 = vld [vmem:[#allocation12 + $0xbe0] sm:$0xff] }
 0x242   :  { %v1632_v36 = vld [vmem:[#allocation12 + $0xfc0] sm:$0xff]  ;;  %v10223_v61 = vcombine.high %v1504_v2, %v1508_v53  ;;  %v10222_v27 = vcombine.low %v1504_v2, %v1508_v53 }
 0x243   :  { %v1636_v54 = vld [vmem:[#allocation12 + $0xfe0] sm:$0xff] }
 0x244   :  { %7407 = vmatpush1.bf16.msra.mxu0 %v10118_v37  ;;  %7448 = vmatpush1.bf16.msra.mxu1 %v10246_v40  ;;  %v10351_v62 = vcombine.high %v1632_v36, %v1636_v54  ;;  %v1496_v17 = vld [vmem:[#allocation12 + $0xb80] sm:$0xff]  ;;  %v10350_v8 = vcombine.low %v1632_v36, %v1636_v54 }
 0x245   :  { %7408 = vmatprep.subr.bf16.mxu0 %v10111_v42  ;;  %7449 = vmatprep.subr.bf16.mxu1 %v10239_v44  ;;  %v1500_v4 = vld [vmem:[#allocation12 + $0xba0] sm:$0xff] }
 0x246   :  { %v1624_v24 = vld [vmem:[#allocation12 + $0xf80] sm:$0xff]  ;;  %v10215_v29 = vcombine.high %v1496_v17, %v1500_v4  ;;  %v10214_v16 = vcombine.low %v1496_v17, %v1500_v4 }
 0x247   :  { %v1628_v25 = vld [vmem:[#allocation12 + $0xfa0] sm:$0xff] }
 0x248   :  { %7409 = vmatpush1.bf16.msra.mxu0 %v10110_v3  ;;  %7450 = vmatpush1.bf16.msra.mxu1 %v10238_v13  ;;  %v10343_v34 = vcombine.high %v1624_v24, %v1628_v25  ;;  %v1488_v18 = vld [vmem:[#allocation12 + $0xb40] sm:$0xff]  ;;  %v10342_v35 = vcombine.low %v1624_v24, %v1628_v25 }
 0x249   :  { %7410 = vmatprep.subr.bf16.mxu0 %v10103_v14  ;;  %7451 = vmatprep.subr.bf16.mxu1 %v10231_v15  ;;  %v1492_v50 = vld [vmem:[#allocation12 + $0xb60] sm:$0xff] }
 0x24a   :  { %v1616_v22 = vld [vmem:[#allocation12 + $0xf40] sm:$0xff]  ;;  %v10207_v26 = vcombine.high %v1488_v18, %v1492_v50  ;;  %v10206_v37 = vcombine.low %v1488_v18, %v1492_v50 }
 0x24b   :  { %v1620_v6 = vld [vmem:[#allocation12 + $0xf60] sm:$0xff] }
 0x24c   :  { %7411 = vmatpush1.bf16.msra.mxu0 %v10102_v55  ;;  %7452 = vmatpush1.bf16.msra.mxu1 %v10230_v59  ;;  %v10335_v56 = vcombine.high %v1616_v22, %v1620_v6  ;;  %v1480_v57 = vld [vmem:[#allocation12 + $0xb00] sm:$0xff]  ;;  %v10334_v40 = vcombine.low %v1616_v22, %v1620_v6 }
 0x24d   :  { %7412 = vmatprep.subr.bf16.mxu0 %v10223_v61  ;;  %7453 = vmatprep.subr.bf16.mxu1 %v10351_v62  ;;  %v1484_v38 = vld [vmem:[#allocation12 + $0xb20] sm:$0xff] }
 0x24e   :  { %v1608_v43 = vld [vmem:[#allocation12 + $0xf00] sm:$0xff]  ;;  %v10199_v42 = vcombine.high %v1480_v57, %v1484_v38  ;;  %v10198_v3 = vcombine.low %v1480_v57, %v1484_v38 }
 0x24f   :  { %v1612_v39 = vld [vmem:[#allocation12 + $0xf20] sm:$0xff] }
 0x250   :  { %7413 = vmatpush2.bf16.msra.mxu0 %v10222_v27  ;;  %7454 = vmatpush2.bf16.msra.mxu1 %v10350_v8  ;;  %v10327_v44 = vcombine.high %v1608_v43, %v1612_v39  ;;  %v1472_v45 = vld [vmem:[#allocation12 + $0xac0] sm:$0xff]  ;;  %v10326_v13 = vcombine.low %v1608_v43, %v1612_v39 }
 0x251   :  { %7414 = vmatprep.subr.bf16.mxu0 %v10215_v29  ;;  %7455 = vmatprep.subr.bf16.mxu1 %v10343_v34  ;;  %v1476_v46 = vld [vmem:[#allocation12 + $0xae0] sm:$0xff] }
 0x252   :  { %v1600_v1 = vld [vmem:[#allocation12 + $0xec0] sm:$0xff]  ;;  %v10191_v14 = vcombine.high %v1472_v45, %v1476_v46  ;;  %v10190_v55 = vcombine.low %v1472_v45, %v1476_v46  ;;  %v1055_v45 = vrot.slane %v11884_v23, %v11672_v11 }
 0x253   :  { %v1604_v19 = vld [vmem:[#allocation12 + $0xee0] sm:$0xff] }
 0x254   :  { %7415 = vmatpush2.bf16.msra.mxu0 %v10214_v16  ;;  %7456 = vmatpush2.bf16.msra.mxu1 %v10342_v35  ;;  %v10319_v15 = vcombine.high %v1600_v1, %v1604_v19  ;;  %v1464_v2 = vld [vmem:[#allocation12 + $0xa80] sm:$0xff]  ;;  %v10318_v59 = vcombine.low %v1600_v1, %v1604_v19  ;;  %v955_v16 = vrot.slane %v11868_v60, %v11672_v11 }
 0x255   :  { %7416 = vmatprep.subr.bf16.mxu0 %v10207_v26  ;;  %7457 = vmatprep.subr.bf16.mxu1 %v10335_v56  ;;  %v1468_v53 = vld [vmem:[#allocation12 + $0xaa0] sm:$0xff] }
 0x256   :  { %v1592_v36 = vld [vmem:[#allocation12 + $0xe80] sm:$0xff]  ;;  %v10183_v61 = vcombine.high %v1464_v2, %v1468_v53  ;;  %v10182_v27 = vcombine.low %v1464_v2, %v1468_v53 }
 0x257   :  { %v1596_v54 = vld [vmem:[#allocation12 + $0xea0] sm:$0xff] }
 0x258   :  { %7417 = vmatpush2.bf16.msra.mxu0 %v10206_v37  ;;  %7458 = vmatpush2.bf16.msra.mxu1 %v10334_v40  ;;  %v10311_v62 = vcombine.high %v1592_v36, %v1596_v54  ;;  %v1456_v17 = vld [vmem:[#allocation12 + $0xa40] sm:$0xff]  ;;  %v10310_v8 = vcombine.low %v1592_v36, %v1596_v54 }
 0x259   :  { %7418 = vmatprep.subr.bf16.mxu0 %v10199_v42  ;;  %7459 = vmatprep.subr.bf16.mxu1 %v10327_v44  ;;  %v1460_v4 = vld [vmem:[#allocation12 + $0xa60] sm:$0xff]  ;;  %v1005_v44 = vmul.f32 %v955_v16, %v11873_v0 }
 0x25a   :  { %v1584_v24 = vld [vmem:[#allocation12 + $0xe40] sm:$0xff]  ;;  %v10175_v29 = vcombine.high %v1456_v17, %v1460_v4  ;;  %v10174_v56 = vcombine.low %v1456_v17, %v1460_v4 }
 0x25b   :  { %v1588_v25 = vld [vmem:[#allocation12 + $0xe60] sm:$0xff] }
 0x25c   :  { %7419 = vmatpush2.bf16.msra.mxu0 %v10198_v3  ;;  %7460 = vmatpush2.bf16.msra.mxu1 %v10326_v13  ;;  %v10303_v34 = vcombine.high %v1584_v24, %v1588_v25  ;;  %v1448_v18 = vld [vmem:[#allocation12 + $0xa00] sm:$0xff]  ;;  %v10302_v57 = vcombine.low %v1584_v24, %v1588_v25 }
 0x25d   :  { %7420 = vmatprep.subr.bf16.mxu0 %v10191_v14  ;;  %7461 = vmatprep.subr.bf16.mxu1 %v10319_v15  ;;  %v1452_v50 = vld [vmem:[#allocation12 + $0xa20] sm:$0xff]  ;;  %v1105_v15 = vadd.f32 %v1055_v45, %v1005_v44 }
 0x25e   :  { %v1576_v22 = vld [vmem:[#allocation12 + $0xe00] sm:$0xff]  ;;  %v10167_v38 = vcombine.high %v1448_v18, %v1452_v50  ;;  %v10166_v19 = vcombine.low %v1448_v18, %v1452_v50 }
 0x25f   :  { %v1580_v6 = vld [vmem:[#allocation12 + $0xe20] sm:$0xff] }
 0x260   :  { %7421 = vmatpush2.bf16.msra.mxu0 %v10190_v55  ;;  %7462 = vmatpush2.bf16.msra.mxu1 %v10318_v59  ;;  %v12239_v35 = vld [vmem:[#allocation31_spill] sm:$0xff]  ;;  %v10295_v43 = vcombine.high %v1576_v22, %v1580_v6  ;;  %v10294_v3 = vcombine.low %v1576_v22, %v1580_v6  ;;  %v11956_v55 = vpack.c.bf16 %v11856_v12, %v11856_v12 }
 0x261   :  { %7422 = vmatprep.subr.bf16.mxu0 %v10183_v61  ;;  %7463 = vmatprep.subr.bf16.mxu1 %v10311_v62  ;;  %v963_v26 = vrot.slane %v11868_v60, %v12239_v35  ;;  %v1696_v39 = vld [vmem:[#allocation12 + $0x11c0] sm:$0xff]  ;;  %v1063_v1 = vrot.slane %v11884_v23, %v12239_v35  ;;  %v11960_v59 = vpack.c.bf16 %v11858_v47, %v11858_v47 }
 0x262   :  { %v1700_v37 = vld [vmem:[#allocation12 + $0x11e0] sm:$0xff]  ;;  %v11962_v62 = vpack.c.bf16 %v1105_v15, %v1105_v15 }
 0x263   :  { %v1824_v40 = vld [vmem:[#allocation12 + $0x15c0] sm:$0xff]  ;;  %v1007_v46 = vmul.f32 %v963_v26, %v11876_v5  ;;  %v10415_v13 = vcombine.high %v1696_v39, %v1700_v37  ;;  %v10414_v5 = vcombine.low %v1696_v39, %v1700_v37 }
 0x264   :  { %7423 = vmatpush2.bf16.msra.mxu0 %v10182_v27  ;;  %7464 = vmatpush2.bf16.msra.mxu1 %v10310_v8  ;;  %v1828_v42 = vld [vmem:[#allocation12 + $0x15e0] sm:$0xff] }
 0x265   :  { %7424 = vmatprep.subr.bf16.mxu0 %v10175_v29  ;;  %7465 = vmatprep.subr.bf16.mxu1 %v10303_v34  ;;  %v10543_v14 = vcombine.high %v1824_v40, %v1828_v42  ;;  %v1688_v2 = vld [vmem:[#allocation12 + $0x1180] sm:$0xff]  ;;  %v1107_v53 = vadd.f32 %v1063_v1, %v1007_v46  ;;  %v10542_v61 = vcombine.low %v1824_v40, %v1828_v42 }
 0x266   :  { %v1692_v0 = vld [vmem:[#allocation12 + $0x11a0] sm:$0xff] }
 0x267   :  { %v1816_v36 = vld [vmem:[#allocation12 + $0x1580] sm:$0xff]  ;;  %v10407_v17 = vcombine.high %v1688_v2, %v1692_v0  ;;  %v11966_v27 = vpack.c.bf16 %v1107_v53, %v1107_v53  ;;  %v10406_v47 = vcombine.low %v1688_v2, %v1692_v0 }
 0x268   :  { %7425 = vmatpush2.bf16.msra.mxu0 %v10174_v56  ;;  %7466 = vmatpush2.bf16.msra.mxu1 %v10302_v57  ;;  %v1820_v54 = vld [vmem:[#allocation12 + $0x15a0] sm:$0xff] }
 0x269   :  { %7426 = vmatprep.subr.bf16.mxu0 %v10167_v38  ;;  %7467 = vmatprep.subr.bf16.mxu1 %v10295_v43  ;;  %v10535_v4 = vcombine.high %v1816_v36, %v1820_v54  ;;  %v1680_v24 = vld [vmem:[#allocation12 + $0x1140] sm:$0xff]  ;;  %v10534_v29 = vcombine.low %v1816_v36, %v1820_v54 }
 0x26a   :  { %v1684_v25 = vld [vmem:[#allocation12 + $0x1160] sm:$0xff] }
 0x26b   :  { %v1808_v12 = vld [vmem:[#allocation12 + $0x1540] sm:$0xff]  ;;  %v10399_v34 = vcombine.high %v1680_v24, %v1684_v25  ;;  %v10398_v26 = vcombine.low %v1680_v24, %v1684_v25 }
 0x26c   :  { %7427 = vmatpush2.bf16.msra.mxu0 %v10166_v19  ;;  %7468 = vmatpush2.bf16.msra.mxu1 %v10294_v3  ;;  %v1812_v8 = vld [vmem:[#allocation12 + $0x1560] sm:$0xff] }
 0x26d   :  { %7478 = vmatprep.subr.bf16.mxu0 %v10415_v13  ;;  %7519 = vmatprep.subr.bf16.mxu1 %v10543_v14  ;;  %v10527_v18 = vcombine.high %v1808_v12, %v1812_v8  ;;  %v1672_v50 = vld [vmem:[#allocation12 + $0x1100] sm:$0xff]  ;;  %v10526_v56 = vcombine.low %v1808_v12, %v1812_v8 }
 0x26e   :  { %v1676_v22 = vld [vmem:[#allocation12 + $0x1120] sm:$0xff] }
 0x26f   :  { %7429 = vmatmul.mubr.bf16.vlgmr.msra.gmra.mxu0 %v11956_v55  ;;  %7470 = vmatmul.mubr.bf16.vlgmr.msra.gmra.mxu1 %v11960_v59  ;;  %v1800_v6 = vld [vmem:[#allocation12 + $0x1500] sm:$0xff]  ;;  %v10391_v57 = vcombine.high %v1672_v50, %v1676_v22  ;;  %v10390_v42 = vcombine.low %v1672_v50, %v1676_v22 }
 0x270   :  { %7479 = vmatpush1.bf16.msra.mxu0 %v10414_v5  ;;  %7510 = vmatprep.mubr.bf16.mxu0 %v11962_v62  ;;  %v1804_v16 = vld [vmem:[#allocation12 + $0x1520] sm:$0xff] }
 0x271   :  { %7520 = vmatpush1.bf16.msra.mxu1 %v10542_v61  ;;  %7551 = vmatprep.mubr.bf16.mxu1 %v11966_v27  ;;  %v10519_v38 = vcombine.high %v1800_v6, %v1804_v16  ;;  %v1664_v43 = vld [vmem:[#allocation12 + $0x10c0] sm:$0xff]  ;;  %v10518_v44 = vcombine.low %v1800_v6, %v1804_v16 }
 0x272   :  { %7480 = vmatprep.subr.bf16.mxu0 %v10407_v17  ;;  %7521 = vmatprep.subr.bf16.mxu1 %v10535_v4  ;;  %v1668_v39 = vld [vmem:[#allocation12 + $0x10e0] sm:$0xff] }
 0x273   :  { %v1792_v37 = vld [vmem:[#allocation12 + $0x14c0] sm:$0xff]  ;;  %v10383_v45 = vcombine.high %v1664_v43, %v1668_v39  ;;  %v10382_v14 = vcombine.low %v1664_v43, %v1668_v39 }
 0x274   :  { %7481 = vmatpush1.bf16.msra.mxu0 %v10406_v47  ;;  %v1796_v40 = vld [vmem:[#allocation12 + $0x14e0] sm:$0xff] }
 0x275   :  { %7522 = vmatpush1.bf16.msra.mxu1 %v10534_v29  ;;  %7482 = vmatprep.subr.bf16.mxu0 %v10399_v34  ;;  %v10511_v46 = vcombine.high %v1792_v37, %v1796_v40  ;;  %v1656_v1 = vld [vmem:[#allocation12 + $0x1080] sm:$0xff]  ;;  %v10510_v15 = vcombine.low %v1792_v37, %v1796_v40 }
 0x276   :  { %7523 = vmatprep.subr.bf16.mxu1 %v10527_v18  ;;  %v1660_v19 = vld [vmem:[#allocation12 + $0x10a0] sm:$0xff] }
 0x277   :  { %v1784_v3 = vld [vmem:[#allocation12 + $0x1480] sm:$0xff]  ;;  %v10375_v2 = vcombine.high %v1656_v1, %v1660_v19  ;;  %v10374_v61 = vcombine.low %v1656_v1, %v1660_v19 }
 0x278   :  { %7483 = vmatpush1.bf16.msra.mxu0 %v10398_v26  ;;  %v1788_v13 = vld [vmem:[#allocation12 + $0x14a0] sm:$0xff] }
 0x279   :  { %7524 = vmatpush1.bf16.msra.mxu1 %v10526_v56  ;;  %7484 = vmatprep.subr.bf16.mxu0 %v10391_v57  ;;  %v10503_v53 = vcombine.high %v1784_v3, %v1788_v13  ;;  %v1648_v0 = vld [vmem:[#allocation12 + $0x1040] sm:$0xff]  ;;  %v10502_v17 = vcombine.low %v1784_v3, %v1788_v13 }
 0x27a   :  { %7525 = vmatprep.subr.bf16.mxu1 %v10519_v38  ;;  %v1652_v36 = vld [vmem:[#allocation12 + $0x1060] sm:$0xff] }
 0x27b   :  { %v1776_v54 = vld [vmem:[#allocation12 + $0x1440] sm:$0xff]  ;;  %v10367_v4 = vcombine.high %v1648_v0, %v1652_v36  ;;  %v10366_v29 = vcombine.low %v1648_v0, %v1652_v36 }
 0x27c   :  { %7485 = vmatpush1.bf16.msra.mxu0 %v10390_v42  ;;  %v1780_v5 = vld [vmem:[#allocation12 + $0x1460] sm:$0xff] }
 0x27d   :  { %7526 = vmatpush1.bf16.msra.mxu1 %v10518_v44  ;;  %7486 = vmatprep.subr.bf16.mxu0 %v10383_v45  ;;  %v10495_v24 = vcombine.high %v1776_v54, %v1780_v5  ;;  %v1640_v25 = vld [vmem:[#allocation12 + $0x1000] sm:$0xff]  ;;  %v10494_v34 = vcombine.low %v1776_v54, %v1780_v5 }
 0x27e   :  { %7527 = vmatprep.subr.bf16.mxu1 %v10511_v46  ;;  %v1644_v12 = vld [vmem:[#allocation12 + $0x1020] sm:$0xff] }
 0x27f   :  { %v1768_v8 = vld [vmem:[#allocation12 + $0x1400] sm:$0xff]  ;;  %v10359_v18 = vcombine.high %v1640_v25, %v1644_v12  ;;  %v10358_v56 = vcombine.low %v1640_v25, %v1644_v12 }
 0x280   :  { %7487 = vmatpush1.bf16.msra.mxu0 %v10382_v14  ;;  %v1772_v47 = vld [vmem:[#allocation12 + $0x1420] sm:$0xff] }
 0x281   :  { %7528 = vmatpush1.bf16.msra.mxu1 %v10510_v15  ;;  %7488 = vmatprep.subr.bf16.mxu0 %v10375_v2  ;;  %v10487_v50 = vcombine.high %v1768_v8, %v1772_v47  ;;  %v1760_v22 = vld [vmem:[#allocation12 + $0x13c0] sm:$0xff]  ;;  %v10486_v57 = vcombine.low %v1768_v8, %v1772_v47 }
 0x282   :  { %7529 = vmatprep.subr.bf16.mxu1 %v10503_v53  ;;  %v1764_v6 = vld [vmem:[#allocation12 + $0x13e0] sm:$0xff] }
 0x283   :  { %v1888_v16 = vld [vmem:[#allocation12 + $0x17c0] sm:$0xff]  ;;  %v10479_v38 = vcombine.high %v1760_v22, %v1764_v6  ;;  %v10478_v44 = vcombine.low %v1760_v22, %v1764_v6 }
 0x284   :  { %7489 = vmatpush1.bf16.msra.mxu0 %v10374_v61  ;;  %v1892_v26 = vld [vmem:[#allocation12 + $0x17e0] sm:$0xff] }
 0x285   :  { %7530 = vmatpush1.bf16.msra.mxu1 %v10502_v17  ;;  %7490 = vmatprep.subr.bf16.mxu0 %v10367_v4  ;;  %v10607_v43 = vcombine.high %v1888_v16, %v1892_v26  ;;  %v1752_v39 = vld [vmem:[#allocation12 + $0x1380] sm:$0xff]  ;;  %v10606_v45 = vcombine.low %v1888_v16, %v1892_v26 }
 0x286   :  { %7531 = vmatprep.subr.bf16.mxu1 %v10495_v24  ;;  %v1756_v37 = vld [vmem:[#allocation12 + $0x13a0] sm:$0xff] }
 0x287   :  { %v1880_v40 = vld [vmem:[#allocation12 + $0x1780] sm:$0xff]  ;;  %v10471_v46 = vcombine.high %v1752_v39, %v1756_v37  ;;  %v10470_v15 = vcombine.low %v1752_v39, %v1756_v37 }
 0x288   :  { %7491 = vmatpush1.bf16.msra.mxu0 %v10366_v29  ;;  %v1884_v42 = vld [vmem:[#allocation12 + $0x17a0] sm:$0xff] }
 0x289   :  { %7532 = vmatpush1.bf16.msra.mxu1 %v10494_v34  ;;  %7492 = vmatprep.subr.bf16.mxu0 %v10359_v18  ;;  %v10599_v1 = vcombine.high %v1880_v40, %v1884_v42  ;;  %v1744_v19 = vld [vmem:[#allocation12 + $0x1340] sm:$0xff]  ;;  %v10598_v2 = vcombine.low %v1880_v40, %v1884_v42 }
 0x28a   :  { %7533 = vmatprep.subr.bf16.mxu1 %v10487_v50  ;;  %v1748_v3 = vld [vmem:[#allocation12 + $0x1360] sm:$0xff] }
 0x28b   :  { %v1872_v13 = vld [vmem:[#allocation12 + $0x1740] sm:$0xff]  ;;  %v10463_v53 = vcombine.high %v1744_v19, %v1748_v3  ;;  %v10462_v17 = vcombine.low %v1744_v19, %v1748_v3 }
 0x28c   :  { %7493 = vmatpush1.bf16.msra.mxu0 %v10358_v56  ;;  %v1876_v14 = vld [vmem:[#allocation12 + $0x1760] sm:$0xff] }
 0x28d   :  { %7534 = vmatpush1.bf16.msra.mxu1 %v10486_v57  ;;  %7494 = vmatprep.subr.bf16.mxu0 %v10479_v38  ;;  %v10591_v0 = vcombine.high %v1872_v13, %v1876_v14  ;;  %v1736_v36 = vld [vmem:[#allocation12 + $0x1300] sm:$0xff]  ;;  %v10590_v4 = vcombine.low %v1872_v13, %v1876_v14 }
 0x28e   :  { %7535 = vmatprep.subr.bf16.mxu1 %v10607_v43  ;;  %v1740_v54 = vld [vmem:[#allocation12 + $0x1320] sm:$0xff] }
 0x28f   :  { %v1864_v5 = vld [vmem:[#allocation12 + $0x1700] sm:$0xff]  ;;  %v10455_v24 = vcombine.high %v1736_v36, %v1740_v54  ;;  %v10454_v34 = vcombine.low %v1736_v36, %v1740_v54 }
 0x290   :  { %7495 = vmatpush2.bf16.msra.mxu0 %v10478_v44  ;;  %v1868_v61 = vld [vmem:[#allocation12 + $0x1720] sm:$0xff] }
 0x291   :  { %7536 = vmatpush2.bf16.msra.mxu1 %v10606_v45  ;;  %7496 = vmatprep.subr.bf16.mxu0 %v10471_v46  ;;  %v10583_v25 = vcombine.high %v1864_v5, %v1868_v61  ;;  %v1728_v12 = vld [vmem:[#allocation12 + $0x12c0] sm:$0xff]  ;;  %v10582_v18 = vcombine.low %v1864_v5, %v1868_v61 }
 0x292   :  { %7537 = vmatprep.subr.bf16.mxu1 %v10599_v1  ;;  %v1732_v8 = vld [vmem:[#allocation12 + $0x12e0] sm:$0xff] }
 0x293   :  { %v1856_v47 = vld [vmem:[#allocation12 + $0x16c0] sm:$0xff]  ;;  %v10447_v50 = vcombine.high %v1728_v12, %v1732_v8  ;;  %v10446_v57 = vcombine.low %v1728_v12, %v1732_v8 }
 0x294   :  { %7497 = vmatpush2.bf16.msra.mxu0 %v10470_v15  ;;  %v1860_v29 = vld [vmem:[#allocation12 + $0x16e0] sm:$0xff] }
 0x295   :  { %7538 = vmatpush2.bf16.msra.mxu1 %v10598_v2  ;;  %7498 = vmatprep.subr.bf16.mxu0 %v10463_v53  ;;  %v10575_v22 = vcombine.high %v1856_v47, %v1860_v29  ;;  %v1720_v6 = vld [vmem:[#allocation12 + $0x1280] sm:$0xff]  ;;  %v10574_v38 = vcombine.low %v1856_v47, %v1860_v29 }
 0x296   :  { %7539 = vmatprep.subr.bf16.mxu1 %v10591_v0  ;;  %v1724_v16 = vld [vmem:[#allocation12 + $0x12a0] sm:$0xff] }
 0x297   :  { %v1848_v26 = vld [vmem:[#allocation12 + $0x1680] sm:$0xff]  ;;  %v10439_v43 = vcombine.high %v1720_v6, %v1724_v16  ;;  %v10438_v45 = vcombine.low %v1720_v6, %v1724_v16 }
 0x298   :  { %7499 = vmatpush2.bf16.msra.mxu0 %v10462_v17  ;;  %v1852_v56 = vld [vmem:[#allocation12 + $0x16a0] sm:$0xff] }
 0x299   :  { %7540 = vmatpush2.bf16.msra.mxu1 %v10590_v4  ;;  %7500 = vmatprep.subr.bf16.mxu0 %v10455_v24  ;;  %v10567_v39 = vcombine.high %v1848_v26, %v1852_v56  ;;  %v1712_v37 = vld [vmem:[#allocation12 + $0x1240] sm:$0xff]  ;;  %v10566_v46 = vcombine.low %v1848_v26, %v1852_v56  ;;  %v11979_v26 = vpack.c.bf16 %v11920_v41, %v11920_v41 }
 0x29a   :  { %7541 = vmatprep.subr.bf16.mxu1 %v10583_v25  ;;  %v1716_v40 = vld [vmem:[#allocation12 + $0x1260] sm:$0xff]  ;;  %v11989_v41 = vpack.c.bf16 %v11926_v10, %v11926_v10 }
 0x29b   :  { %v1840_v42 = vld [vmem:[#allocation12 + $0x1640] sm:$0xff]  ;;  %v10431_v1 = vcombine.high %v1712_v37, %v1716_v40  ;;  %v10430_v0 = vcombine.low %v1712_v37, %v1716_v40 }
 0x29c   :  { %7501 = vmatpush2.bf16.msra.mxu0 %v10454_v34  ;;  %v1844_v44 = vld [vmem:[#allocation12 + $0x1660] sm:$0xff] }
 0x29d   :  { %7542 = vmatpush2.bf16.msra.mxu1 %v10582_v18  ;;  %7502 = vmatprep.subr.bf16.mxu0 %v10447_v50  ;;  %v12240_v19 = vld [vmem:[#allocation30_spill] sm:$0xff]  ;;  %v10559_v13 = vcombine.high %v1840_v42, %v1844_v44  ;;  %v10558_v54 = vcombine.low %v1840_v42, %v1844_v44 }
 0x29e   :  { %7543 = vmatprep.subr.bf16.mxu1 %v10575_v22  ;;  %v951_v3 = vrot.slane %v11868_v60, %v12240_v19  ;;  %v1704_v14 = vld [vmem:[#allocation12 + $0x1200] sm:$0xff]  ;;  %v1051_v36 = vrot.slane %v11884_v23, %v12240_v19 }
 0x29f   :  { %v1708_v15 = vld [vmem:[#allocation12 + $0x1220] sm:$0xff] }
 0x2a0   :  { %7503 = vmatpush2.bf16.msra.mxu0 %v10446_v57  ;;  %v1832_v2 = vld [vmem:[#allocation12 + $0x1600] sm:$0xff]  ;;  %v10423_v5 = vcombine.high %v1704_v14, %v1708_v15  ;;  %v1004_v61 = vmul.f32 %v951_v3, %v11901_v33  ;;  %v10422_v12 = vcombine.low %v1704_v14, %v1708_v15 }
 0x2a1   :  { %7544 = vmatpush2.bf16.msra.mxu1 %v10574_v38  ;;  %7504 = vmatprep.subr.bf16.mxu0 %v10439_v43  ;;  %v1836_v53 = vld [vmem:[#allocation12 + $0x1620] sm:$0xff]  ;;  %v11984_v43 = vpack.c.bf16 %v11924_v63, %v11924_v63 }
 0x2a2   :  { %7545 = vmatprep.subr.bf16.mxu1 %v10567_v39  ;;  %v10551_v17 = vcombine.high %v1832_v2, %v1836_v53  ;;  %v1952_v60 = vld [vmem:[#allocation12 + $0x19c0] sm:$0xff]  ;;  %v10550_v8 = vcombine.low %v1832_v2, %v1836_v53  ;;  %v1104_v47 = vadd.f32 %v1051_v36, %v1004_v61 }
 0x2a3   :  { %v1956_v4 = vld [vmem:[#allocation12 + $0x19e0] sm:$0xff] }
 0x2a4   :  { %7505 = vmatpush2.bf16.msra.mxu0 %v10438_v45  ;;  %v2080_v24 = vld [vmem:[#allocation12 + $0x1dc0] sm:$0xff]  ;;  %v10671_v29 = vcombine.high %v1952_v60, %v1956_v4  ;;  %v10670_v50 = vcombine.low %v1952_v60, %v1956_v4  ;;  %v11975_v6 = vpack.c.bf16 %v1104_v47, %v1104_v47 }
 0x2a5   :  { %7546 = vmatpush2.bf16.msra.mxu1 %v10566_v46  ;;  %7506 = vmatprep.subr.bf16.mxu0 %v10431_v1  ;;  %v2084_v25 = vld [vmem:[#allocation12 + $0x1de0] sm:$0xff] }
 0x2a6   :  { %7547 = vmatprep.subr.bf16.mxu1 %v10559_v13  ;;  %v10799_v23 = vcombine.high %v2080_v24, %v2084_v25  ;;  %v1944_v34 = vld [vmem:[#allocation12 + $0x1980] sm:$0xff]  ;;  %v10798_v16 = vcombine.low %v2080_v24, %v2084_v25 }
 0x2a7   :  { %v1948_v18 = vld [vmem:[#allocation12 + $0x19a0] sm:$0xff] }
 0x2a8   :  { %7507 = vmatpush2.bf16.msra.mxu0 %v10430_v0  ;;  %v2072_v33 = vld [vmem:[#allocation12 + $0x1d80] sm:$0xff]  ;;  %v10663_v56 = vcombine.high %v1944_v34, %v1948_v18  ;;  %v10662_v42 = vcombine.low %v1944_v34, %v1948_v18 }
 0x2a9   :  { %7548 = vmatpush2.bf16.msra.mxu1 %v10558_v54  ;;  %7508 = vmatprep.subr.bf16.mxu0 %v10423_v5  ;;  %v2076_v22 = vld [vmem:[#allocation12 + $0x1da0] sm:$0xff] }
 0x2aa   :  { %7549 = vmatprep.subr.bf16.mxu1 %v10551_v17  ;;  %v1936_v57 = vld [vmem:[#allocation12 + $0x1940] sm:$0xff]  ;;  %v10791_v39 = vcombine.high %v2072_v33, %v2076_v22  ;;  %v10790_v44 = vcombine.low %v2072_v33, %v2076_v22 }
 0x2ab   :  { %v1940_v38 = vld [vmem:[#allocation12 + $0x1960] sm:$0xff] }
 0x2ac   :  { %7509 = vmatpush2.bf16.msra.mxu0 %v10422_v12  ;;  %v2064_v37 = vld [vmem:[#allocation12 + $0x1d40] sm:$0xff]  ;;  %v10655_v45 = vcombine.high %v1936_v57, %v1940_v38  ;;  %v10654_v14 = vcombine.low %v1936_v57, %v1940_v38 }
 0x2ad   :  { %7550 = vmatpush2.bf16.msra.mxu1 %v10550_v8  ;;  %7560 = vmatprep.subr.bf16.mxu0 %v10671_v29  ;;  %v2068_v40 = vld [vmem:[#allocation12 + $0x1d60] sm:$0xff] }
 0x2ae   :  { %7601 = vmatprep.subr.bf16.mxu1 %v10799_v23  ;;  %v10783_v63 = vcombine.high %v2064_v37, %v2068_v40  ;;  %v1928_v46 = vld [vmem:[#allocation12 + $0x1900] sm:$0xff]  ;;  %v10782_v10 = vcombine.low %v2064_v37, %v2068_v40 }
 0x2af   :  { %7511 = vmatmul.mubr.bf16.vlgmr.msra.gmra.mxu0 %v11975_v6  ;;  %v1932_v1 = vld [vmem:[#allocation12 + $0x1920] sm:$0xff] }
 0x2b0   :  { %7552 = vmatmul.mubr.bf16.vlgmr.msra.gmra.mxu1 %v11979_v26  ;;  %7561 = vmatpush1.bf16.msra.mxu0 %v10670_v50  ;;  %v2056_v3 = vld [vmem:[#allocation12 + $0x1d00] sm:$0xff]  ;;  %v10647_v15 = vcombine.high %v1928_v46, %v1932_v1  ;;  %v10646_v5 = vcombine.low %v1928_v46, %v1932_v1 }
 0x2b1   :  { %7592 = vmatprep.mubr.bf16.mxu0 %v11984_v43  ;;  %7602 = vmatpush1.bf16.msra.mxu1 %v10798_v16  ;;  %v2060_v13 = vld [vmem:[#allocation12 + $0x1d20] sm:$0xff] }
 0x2b2   :  { %7633 = vmatprep.mubr.bf16.mxu1 %v11989_v41  ;;  %7562 = vmatprep.subr.bf16.mxu0 %v10663_v56  ;;  %v10775_v2 = vcombine.high %v2056_v3, %v2060_v13  ;;  %v1920_v53 = vld [vmem:[#allocation12 + $0x18c0] sm:$0xff]  ;;  %v10774_v61 = vcombine.low %v2056_v3, %v2060_v13 }
 0x2b3   :  { %7603 = vmatprep.subr.bf16.mxu1 %v10791_v39  ;;  %v1924_v0 = vld [vmem:[#allocation12 + $0x18e0] sm:$0xff] }
 0x2b4   :  { %7563 = vmatpush1.bf16.msra.mxu0 %v10662_v42  ;;  %v2048_v36 = vld [vmem:[#allocation12 + $0x1cc0] sm:$0xff]  ;;  %v10639_v17 = vcombine.high %v1920_v53, %v1924_v0  ;;  %v10638_v8 = vcombine.low %v1920_v53, %v1924_v0 }
 0x2b5   :  { %7604 = vmatpush1.bf16.msra.mxu1 %v10790_v44  ;;  %7564 = vmatprep.subr.bf16.mxu0 %v10655_v45  ;;  %v2052_v54 = vld [vmem:[#allocation12 + $0x1ce0] sm:$0xff] }
 0x2b6   :  { %7605 = vmatprep.subr.bf16.mxu1 %v10783_v63  ;;  %v10767_v60 = vcombine.high %v2048_v36, %v2052_v54  ;;  %v1912_v4 = vld [vmem:[#allocation12 + $0x1880] sm:$0xff]  ;;  %v10766_v47 = vcombine.low %v2048_v36, %v2052_v54 }
 0x2b7   :  { %v1916_v24 = vld [vmem:[#allocation12 + $0x18a0] sm:$0xff] }
 0x2b8   :  { %7565 = vmatpush1.bf16.msra.mxu0 %v10654_v14  ;;  %v2040_v25 = vld [vmem:[#allocation12 + $0x1c80] sm:$0xff]  ;;  %v10631_v29 = vcombine.high %v1912_v4, %v1916_v24  ;;  %v10630_v22 = vcombine.low %v1912_v4, %v1916_v24 }
 0x2b9   :  { %7606 = vmatpush1.bf16.msra.mxu1 %v10782_v10  ;;  %7566 = vmatprep.subr.bf16.mxu0 %v10647_v15  ;;  %v2044_v12 = vld [vmem:[#allocation12 + $0x1ca0] sm:$0xff] }
 0x2ba   :  { %7607 = vmatprep.subr.bf16.mxu1 %v10775_v2  ;;  %v10759_v23 = vcombine.high %v2040_v25, %v2044_v12  ;;  %v1904_v34 = vld [vmem:[#allocation12 + $0x1840] sm:$0xff]  ;;  %v10758_v16 = vcombine.low %v2040_v25, %v2044_v12 }
 0x2bb   :  { %v1908_v18 = vld [vmem:[#allocation12 + $0x1860] sm:$0xff] }
 0x2bc   :  { %7567 = vmatpush1.bf16.msra.mxu0 %v10646_v5  ;;  %v2032_v50 = vld [vmem:[#allocation12 + $0x1c40] sm:$0xff]  ;;  %v10623_v56 = vcombine.high %v1904_v34, %v1908_v18  ;;  %v10622_v42 = vcombine.low %v1904_v34, %v1908_v18 }
 0x2bd   :  { %7608 = vmatpush1.bf16.msra.mxu1 %v10774_v61  ;;  %7568 = vmatprep.subr.bf16.mxu0 %v10639_v17  ;;  %v2036_v33 = vld [vmem:[#allocation12 + $0x1c60] sm:$0xff] }
 0x2be   :  { %7609 = vmatprep.subr.bf16.mxu1 %v10767_v60  ;;  %v10751_v57 = vcombine.high %v2032_v50, %v2036_v33  ;;  %v1896_v38 = vld [vmem:[#allocation12 + $0x1800] sm:$0xff]  ;;  %v10750_v44 = vcombine.low %v2032_v50, %v2036_v33 }
 0x2bf   :  { %v1900_v39 = vld [vmem:[#allocation12 + $0x1820] sm:$0xff] }
 0x2c0   :  { %7569 = vmatpush1.bf16.msra.mxu0 %v10638_v8  ;;  %v2024_v37 = vld [vmem:[#allocation12 + $0x1c00] sm:$0xff]  ;;  %v10615_v45 = vcombine.high %v1896_v38, %v1900_v39  ;;  %v10614_v14 = vcombine.low %v1896_v38, %v1900_v39 }
 0x2c1   :  { %7610 = vmatpush1.bf16.msra.mxu1 %v10766_v47  ;;  %7570 = vmatprep.subr.bf16.mxu0 %v10631_v29  ;;  %v2028_v40 = vld [vmem:[#allocation12 + $0x1c20] sm:$0xff] }
 0x2c2   :  { %7611 = vmatprep.subr.bf16.mxu1 %v10759_v23  ;;  %v10743_v63 = vcombine.high %v2024_v37, %v2028_v40  ;;  %v2016_v46 = vld [vmem:[#allocation12 + $0x1bc0] sm:$0xff]  ;;  %v10742_v10 = vcombine.low %v2024_v37, %v2028_v40 }
 0x2c3   :  { %v2020_v1 = vld [vmem:[#allocation12 + $0x1be0] sm:$0xff] }
 0x2c4   :  { %7571 = vmatpush1.bf16.msra.mxu0 %v10630_v22  ;;  %v2144_v3 = vld [vmem:[#allocation12 + $0x1fc0] sm:$0xff]  ;;  %v10735_v15 = vcombine.high %v2016_v46, %v2020_v1  ;;  %v10734_v5 = vcombine.low %v2016_v46, %v2020_v1 }
 0x2c5   :  { %7612 = vmatpush1.bf16.msra.mxu1 %v10758_v16  ;;  %7572 = vmatprep.subr.bf16.mxu0 %v10623_v56  ;;  %v2148_v13 = vld [vmem:[#allocation12 + $0x1fe0] sm:$0xff] }
 0x2c6   :  { %7613 = vmatprep.subr.bf16.mxu1 %v10751_v57  ;;  %v10863_v2 = vcombine.high %v2144_v3, %v2148_v13  ;;  %v2008_v53 = vld [vmem:[#allocation12 + $0x1b80] sm:$0xff]  ;;  %v10862_v61 = vcombine.low %v2144_v3, %v2148_v13 }
 0x2c7   :  { %v2012_v0 = vld [vmem:[#allocation12 + $0x1ba0] sm:$0xff] }
 0x2c8   :  { %7573 = vmatpush1.bf16.msra.mxu0 %v10622_v42  ;;  %v2136_v36 = vld [vmem:[#allocation12 + $0x1f80] sm:$0xff]  ;;  %v10727_v17 = vcombine.high %v2008_v53, %v2012_v0  ;;  %v10726_v8 = vcombine.low %v2008_v53, %v2012_v0 }
 0x2c9   :  { %7614 = vmatpush1.bf16.msra.mxu1 %v10750_v44  ;;  %7574 = vmatprep.subr.bf16.mxu0 %v10615_v45  ;;  %v2140_v54 = vld [vmem:[#allocation12 + $0x1fa0] sm:$0xff] }
 0x2ca   :  { %7615 = vmatprep.subr.bf16.mxu1 %v10743_v63  ;;  %v10855_v60 = vcombine.high %v2136_v36, %v2140_v54  ;;  %v2000_v4 = vld [vmem:[#allocation12 + $0x1b40] sm:$0xff]  ;;  %v10854_v47 = vcombine.low %v2136_v36, %v2140_v54 }
 0x2cb   :  { %v2004_v24 = vld [vmem:[#allocation12 + $0x1b60] sm:$0xff] }
 0x2cc   :  { %7575 = vmatpush1.bf16.msra.mxu0 %v10614_v14  ;;  %v2128_v25 = vld [vmem:[#allocation12 + $0x1f40] sm:$0xff]  ;;  %v10719_v29 = vcombine.high %v2000_v4, %v2004_v24  ;;  %v10718_v22 = vcombine.low %v2000_v4, %v2004_v24 }
 0x2cd   :  { %7616 = vmatpush1.bf16.msra.mxu1 %v10742_v10  ;;  %7576 = vmatprep.subr.bf16.mxu0 %v10735_v15  ;;  %v2132_v12 = vld [vmem:[#allocation12 + $0x1f60] sm:$0xff] }
 0x2ce   :  { %7617 = vmatprep.subr.bf16.mxu1 %v10863_v2  ;;  %v10847_v23 = vcombine.high %v2128_v25, %v2132_v12  ;;  %v1992_v34 = vld [vmem:[#allocation12 + $0x1b00] sm:$0xff]  ;;  %v10846_v16 = vcombine.low %v2128_v25, %v2132_v12 }
 0x2cf   :  { %v1996_v18 = vld [vmem:[#allocation12 + $0x1b20] sm:$0xff] }
 0x2d0   :  { %7577 = vmatpush2.bf16.msra.mxu0 %v10734_v5  ;;  %v2120_v50 = vld [vmem:[#allocation12 + $0x1f00] sm:$0xff]  ;;  %v10711_v56 = vcombine.high %v1992_v34, %v1996_v18  ;;  %v10710_v42 = vcombine.low %v1992_v34, %v1996_v18  ;;  %v1185_v34 = vld [vmem:[#allocation12 + $0x1c8] sm:$0xff] }
 0x2d1   :  { %7618 = vmatpush2.bf16.msra.mxu1 %v10862_v61  ;;  %7578 = vmatprep.subr.bf16.mxu0 %v10727_v17  ;;  %v2124_v33 = vld [vmem:[#allocation12 + $0x1f20] sm:$0xff]  ;;  %v1189_v18 = vld [vmem:[#allocation12 + $0x1e8] sm:$0xff] }
 0x2d2   :  { %7619 = vmatprep.subr.bf16.mxu1 %v10855_v60  ;;  %v10839_v57 = vcombine.high %v2120_v50, %v2124_v33  ;;  %v1984_v38 = vld [vmem:[#allocation12 + $0x1ac0] sm:$0xff]  ;;  %v10838_v44 = vcombine.low %v2120_v50, %v2124_v33  ;;  %v1313_v50 = vld [vmem:[#allocation12 + $0x5c8] sm:$0xff] }
 0x2d3   :  { %v1988_v39 = vld [vmem:[#allocation12 + $0x1ae0] sm:$0xff]  ;;  %v1317_v33 = vld [vmem:[#allocation12 + $0x5e8] sm:$0xff] }
 0x2d4   :  { %7579 = vmatpush2.bf16.msra.mxu0 %v10726_v8  ;;  %v2112_v37 = vld [vmem:[#allocation12 + $0x1ec0] sm:$0xff]  ;;  %v10703_v45 = vcombine.high %v1984_v38, %v1988_v39  ;;  %v10702_v14 = vcombine.low %v1984_v38, %v1988_v39  ;;  %v10033_v38 = vcombine.high %v1313_v50, %v1317_v33  ;;  %v1177_v39 = vld [vmem:[#allocation12 + $0x188] sm:$0xff] }
 0x2d5   :  { %7620 = vmatpush2.bf16.msra.mxu1 %v10854_v47  ;;  %7580 = vmatprep.subr.bf16.mxu0 %v10719_v29  ;;  %v2116_v40 = vld [vmem:[#allocation12 + $0x1ee0] sm:$0xff] }
 0x2d6   :  { %7621 = vmatprep.subr.bf16.mxu1 %v10847_v23  ;;  %v10831_v63 = vcombine.high %v2112_v37, %v2116_v40  ;;  %v1976_v46 = vld [vmem:[#allocation12 + $0x1a80] sm:$0xff]  ;;  %v10830_v10 = vcombine.low %v2112_v37, %v2116_v40  ;;  %v1181_v37 = vld [vmem:[#allocation12 + $0x1a8] sm:$0xff]  ;;  %v9904_v40 = vcombine.low %v1185_v34, %v1189_v18 }
 0x2d7   :  { %v1980_v1 = vld [vmem:[#allocation12 + $0x1aa0] sm:$0xff] }
 0x2d8   :  { %7581 = vmatpush2.bf16.msra.mxu0 %v10718_v22  ;;  %v2104_v3 = vld [vmem:[#allocation12 + $0x1e80] sm:$0xff]  ;;  %v10695_v15 = vcombine.high %v1976_v46, %v1980_v1  ;;  %v10694_v5 = vcombine.low %v1976_v46, %v1980_v1  ;;  %v10032_v46 = vcombine.low %v1313_v50, %v1317_v33  ;;  %v12000_v1 = vpack.c.bf16 %v11942_v32, %v11942_v32 }
 0x2d9   :  { %7622 = vmatpush2.bf16.msra.mxu1 %v10846_v16  ;;  %7582 = vmatprep.subr.bf16.mxu0 %v10711_v56  ;;  %v2108_v13 = vld [vmem:[#allocation12 + $0x1ea0] sm:$0xff]  ;;  %v9905_v56 = vcombine.high %v1185_v34, %v1189_v18 }
 0x2da   :  { %7623 = vmatprep.subr.bf16.mxu1 %v10839_v57  ;;  %v10823_v2 = vcombine.high %v2104_v3, %v2108_v13  ;;  %v1968_v53 = vld [vmem:[#allocation12 + $0x1a40] sm:$0xff]  ;;  %v10822_v61 = vcombine.low %v2104_v3, %v2108_v13  ;;  %v9897_v13 = vcombine.high %v1177_v39, %v1181_v37 }
 0x2db   :  { %v1972_v0 = vld [vmem:[#allocation12 + $0x1a60] sm:$0xff] }
 0x2dc   :  { %7583 = vmatpush2.bf16.msra.mxu0 %v10710_v42  ;;  %v2096_v36 = vld [vmem:[#allocation12 + $0x1e40] sm:$0xff]  ;;  %v10687_v17 = vcombine.high %v1968_v53, %v1972_v0  ;;  %v10686_v8 = vcombine.low %v1968_v53, %v1972_v0  ;;  %v1297_v0 = vld [vmem:[#allocation12 + $0x548] sm:$0xff] }
 0x2dd   :  { %7624 = vmatpush2.bf16.msra.mxu1 %v10838_v44  ;;  %7584 = vmatprep.subr.bf16.mxu0 %v10703_v45  ;;  %v2100_v54 = vld [vmem:[#allocation12 + $0x1e60] sm:$0xff]  ;;  %v1305_v44 = vld [vmem:[#allocation12 + $0x588] sm:$0xff] }
 0x2de   :  { %7625 = vmatprep.subr.bf16.mxu1 %v10831_v63  ;;  %v10815_v60 = vcombine.high %v2096_v36, %v2100_v54  ;;  %v1960_v4 = vld [vmem:[#allocation12 + $0x1a00] sm:$0xff]  ;;  %v10814_v47 = vcombine.low %v2096_v36, %v2100_v54  ;;  %v1309_v45 = vld [vmem:[#allocation12 + $0x5a8] sm:$0xff]  ;;  %v11996_v63 = vpack.c.bf16 %v11940_v58, %v11940_v58  ;;  %v9896_v54 = vcombine.low %v1177_v39, %v1181_v37 }
 0x2df   :  { %v1964_v24 = vld [vmem:[#allocation12 + $0x1a20] sm:$0xff]  ;;  %v10025_v53 = vcombine.high %v1305_v44, %v1309_v45  ;;  %v1301_v58 = vld [vmem:[#allocation12 + $0x568] sm:$0xff] }
 0x2e0   :  { %7585 = vmatpush2.bf16.msra.mxu0 %v10702_v14  ;;  %v2088_v25 = vld [vmem:[#allocation12 + $0x1e00] sm:$0xff]  ;;  %v10679_v29 = vcombine.high %v1960_v4, %v1964_v24  ;;  %v10678_v22 = vcombine.low %v1960_v4, %v1964_v24  ;;  %v1169_v14 = vld [vmem:[#allocation12 + $0x148] sm:$0xff]  ;;  %v10017_v24 = vcombine.high %v1297_v0, %v1301_v58 }
 0x2e1   :  { %7626 = vmatpush2.bf16.msra.mxu1 %v10830_v10  ;;  %7586 = vmatprep.subr.bf16.mxu0 %v10695_v15  ;;  %v2092_v12 = vld [vmem:[#allocation12 + $0x1e20] sm:$0xff]  ;;  %v1173_v10 = vld [vmem:[#allocation12 + $0x168] sm:$0xff] }
 0x2e2   :  { %7627 = vmatprep.subr.bf16.mxu1 %v10823_v2  ;;  %v10807_v23 = vcombine.high %v2088_v25, %v2092_v12  ;;  %v10806_v16 = vcombine.low %v2088_v25, %v2092_v12  ;;  %v2152_v57 = vld [vmem:[#allocation14] sm:$0xff]  ;;  %v1161_v25 = vld [vmem:[#allocation12 + $0x108] sm:$0xff]  ;;  %v9888_v18 = vcombine.low %v1169_v14, %v1173_v10 }
 0x2e3   :  { %v2157_v42 = vrot.slane %v2152_v57, %v12240_v19  ;;  %v2161_v3 = vrot.slane %v2152_v57, %v11672_v11  ;;  %v1165_v12 = vld [vmem:[#allocation12 + $0x128] sm:$0xff] }
 0x2e4   :  { %7587 = vmatpush2.bf16.msra.mxu0 %v10694_v5  ;;  %v1153_v57 = vld [vmem:[#allocation12 + $0xc8] sm:$0xff] }
 0x2e5   :  { %7628 = vmatpush2.bf16.msra.mxu1 %v10822_v61  ;;  %7588 = vmatprep.subr.bf16.mxu0 %v10687_v17  ;;  %v10024_v61 = vcombine.low %v1305_v44, %v1309_v45  ;;  %v9889_v17 = vcombine.high %v1169_v14, %v1173_v10  ;;  %v1281_v39 = vld [vmem:[#allocation12 + $0x4c8] sm:$0xff] }
 0x2e6   :  { %7629 = vmatprep.subr.bf16.mxu1 %v10815_v60  ;;  %v1285_v37 = vld [vmem:[#allocation12 + $0x4e8] sm:$0xff] }
 0x2e7   :  { %v10001_v45 = vcombine.high %v1281_v39, %v1285_v37  ;;  %v1277_v14 = vld [vmem:[#allocation12 + $0x4a8] sm:$0xff] }
 0x2e8   :  { %7589 = vmatpush2.bf16.msra.mxu0 %v10686_v8 }
 0x2e9   :  { %7630 = vmatpush2.bf16.msra.mxu1 %v10814_v47  ;;  %7590 = vmatprep.subr.bf16.mxu0 %v10679_v29  ;;  %v1289_v29 = vld [vmem:[#allocation12 + $0x508] sm:$0xff] }
 0x2ea   :  { %7631 = vmatprep.subr.bf16.mxu1 %v10807_v23  ;;  %v1293_v23 = vld [vmem:[#allocation12 + $0x528] sm:$0xff] }
 0x2ec   :  { %7591 = vmatpush2.bf16.msra.mxu0 %v10678_v22  ;;  %v10016_v22 = vcombine.low %v1297_v0, %v1301_v58  ;;  %v1137_v0 = vld [vmem:[#allocation12 + $0x48] sm:$0xff] }
 0x2ed   :  { %7632 = vmatpush2.bf16.msra.mxu1 %v10806_v16  ;;  %7642 = vmatprep.subr.bf16.mxu0 %v9905_v56  ;;  %v9881_v16 = vcombine.high %v1161_v25, %v1165_v12  ;;  %v10009_v56 = vcombine.high %v1289_v29, %v1293_v23  ;;  %v1141_v58 = vld [vmem:[#allocation12 + $0x68] sm:$0xff] }
 0x2ee   :  { %7683 = vmatprep.subr.bf16.mxu1 %v10033_v38  ;;  %v7348_v15 = vpop.f32.mrf.mxu0  ;;  %v7389_v2 = vpop.f32.mrf.mxu1  ;;  %v1157_v38 = vld [vmem:[#allocation12 + $0xe8] sm:$0xff] }
 0x2ef   :  { %7593 = vmatmul.mubr.bf16.vlgmr.msra.gmra.mxu0 %v11996_v63  ;;  %v7349_v36 = vadd.f32 %v7348_v15, %v2157_v42  ;;  %v10008_v42 = vcombine.low %v1289_v29, %v1293_v23  ;;  %v9873_v44 = vcombine.high %v1153_v57, %v1157_v38  ;;  %v9872_v10 = vcombine.low %v1153_v57, %v1157_v38 }
 0x2f0   :  { %7634 = vmatmul.mubr.bf16.vlgmr.msra.gmra.mxu1 %v12000_v1  ;;  %7643 = vmatpush1.bf16.msra.mxu0 %v9904_v40  ;;  %v7350_v32 = vpop.f32.mrf.mxu0  ;;  %v7391_v5 = vpop.f32.mrf.mxu1  ;;  %v9880_v40 = vcombine.low %v1161_v25, %v1165_v12  ;;  %v10000_v15 = vcombine.low %v1281_v39, %v1285_v37  ;;  %v1257_v25 = vld [vmem:[#allocation12 + $0x408] sm:$0xff] }
 0x2f1   :  { %7674 = vmatprep.mubr.bf16.mxu0 %v11860_v48  ;;  %7684 = vmatpush1.bf16.msra.mxu1 %v10032_v46  ;;  %v12006_v60 = vadd.f32 %v7389_v2, %v7349_v36  ;;  %v7351_v4 = vadd.f32 %v7350_v32, %v2161_v3  ;;  %v1145_v46 = vld [vmem:[#allocation12 + $0x88] sm:$0xff] }
 0x2f2   :  { %7715 = vmatprep.mubr.bf16.mxu1 %v11862_v49  ;;  %7644 = vmatprep.subr.bf16.mxu0 %v9897_v13  ;;  %v7352_v8 = vpop.f32.mrf.mxu0  ;;  %v7393_v47 = vpop.f32.mrf.mxu1  ;;  %v1149_v3 = vld [vmem:[#allocation12 + $0xa8] sm:$0xff] }
 0x2f3   :  { %7685 = vmatprep.subr.bf16.mxu1 %v10025_v53  ;;  %v12009_v34 = vadd.f32 %v7391_v5, %v7351_v4  ;;  %v1273_v13 = vld [vmem:[#allocation12 + $0x488] sm:$0xff]  ;;  %v9865_v2 = vcombine.high %v1145_v46, %v1149_v3  ;;  %v9864_v32 = vcombine.low %v1145_v46, %v1149_v3  ;;  %v9856_v8 = vcombine.low %v1137_v0, %v1141_v58 }
 0x2f4   :  { %7645 = vmatpush1.bf16.msra.mxu0 %v9896_v54  ;;  %v7353_v50 = vpop.f32.mrf.mxu0  ;;  %v7394_v33 = vpop.f32.mrf.mxu1  ;;  %v9993_v53 = vcombine.high %v1273_v13, %v1277_v14  ;;  %v1265_v36 = vld [vmem:[#allocation12 + $0x448] sm:$0xff]  ;;  %v9992_v5 = vcombine.low %v1273_v13, %v1277_v14 }
 0x2f5   :  { %7686 = vmatpush1.bf16.msra.mxu1 %v10024_v61  ;;  %7646 = vmatprep.subr.bf16.mxu0 %v9889_v17  ;;  %v1269_v54 = vld [vmem:[#allocation12 + $0x468] sm:$0xff]  ;;  %v9857_v61 = vcombine.high %v1137_v0, %v1141_v58 }
 0x2f6   :  { %7687 = vmatprep.subr.bf16.mxu1 %v10017_v24  ;;  %v9985_v17 = vcombine.high %v1265_v36, %v1269_v54  ;;  %v1129_v4 = vld [vmem:[#allocation12 + $0x8] sm:$0xff]  ;;  %v9984_v47 = vcombine.low %v1265_v36, %v1269_v54 }
 0x2f7   :  { %v1133_v24 = vld [vmem:[#allocation12 + $0x28] sm:$0xff] }
 0x2f8   :  { %7647 = vmatpush1.bf16.msra.mxu0 %v9888_v18  ;;  %v1261_v12 = vld [vmem:[#allocation12 + $0x428] sm:$0xff]  ;;  %v9849_v29 = vcombine.high %v1129_v4, %v1133_v24 }
 0x2f9   :  { %7688 = vmatpush1.bf16.msra.mxu1 %v10016_v22  ;;  %7648 = vmatprep.subr.bf16.mxu0 %v9881_v16  ;;  %v9977_v23 = vcombine.high %v1257_v25, %v1261_v12  ;;  %v1249_v18 = vld [vmem:[#allocation12 + $0x3c8] sm:$0xff]  ;;  %v9848_v16 = vcombine.low %v1129_v4, %v1133_v24 }
 0x2fa   :  { %7689 = vmatprep.subr.bf16.mxu1 %v10009_v56  ;;  %v1253_v50 = vld [vmem:[#allocation12 + $0x3e8] sm:$0xff]  ;;  %v9976_v56 = vcombine.low %v1257_v25, %v1261_v12 }
 0x2fb   :  { %v1377_v33 = vld [vmem:[#allocation12 + $0x7c8] sm:$0xff]  ;;  %v9969_v57 = vcombine.high %v1249_v18, %v1253_v50 }
 0x2fc   :  { %7649 = vmatpush1.bf16.msra.mxu0 %v9880_v40  ;;  %v1381_v22 = vld [vmem:[#allocation12 + $0x7e8] sm:$0xff] }
 0x2fd   :  { %7690 = vmatpush1.bf16.msra.mxu1 %v10008_v42  ;;  %7650 = vmatprep.subr.bf16.mxu0 %v9873_v44  ;;  %v10097_v38 = vcombine.high %v1377_v33, %v1381_v22  ;;  %v1241_v39 = vld [vmem:[#allocation12 + $0x388] sm:$0xff]  ;;  %v9968_v44 = vcombine.low %v1249_v18, %v1253_v50 }
 0x2fe   :  { %7691 = vmatprep.subr.bf16.mxu1 %v10001_v45  ;;  %v1245_v37 = vld [vmem:[#allocation12 + $0x3a8] sm:$0xff]  ;;  %v10096_v45 = vcombine.low %v1377_v33, %v1381_v22 }
 0x2ff   :  { %v1369_v40 = vld [vmem:[#allocation12 + $0x788] sm:$0xff]  ;;  %v9961_v46 = vcombine.high %v1241_v39, %v1245_v37 }
 0x300   :  { %7651 = vmatpush1.bf16.msra.mxu0 %v9872_v10  ;;  %v1373_v42 = vld [vmem:[#allocation12 + $0x7a8] sm:$0xff] }
 0x301   :  { %7692 = vmatpush1.bf16.msra.mxu1 %v10000_v15  ;;  %7652 = vmatprep.subr.bf16.mxu0 %v9865_v2  ;;  %v10089_v3 = vcombine.high %v1369_v40, %v1373_v42  ;;  %v1233_v13 = vld [vmem:[#allocation12 + $0x348] sm:$0xff]  ;;  %v9960_v2 = vcombine.low %v1241_v39, %v1245_v37 }
 0x302   :  { %7693 = vmatprep.subr.bf16.mxu1 %v9993_v53  ;;  %v1237_v14 = vld [vmem:[#allocation12 + $0x368] sm:$0xff]  ;;  %v10088_v53 = vcombine.low %v1369_v40, %v1373_v42 }
 0x303   :  { %v1361_v10 = vld [vmem:[#allocation12 + $0x748] sm:$0xff]  ;;  %v9953_v0 = vcombine.high %v1233_v13, %v1237_v14 }
 0x304   :  { %7653 = vmatpush1.bf16.msra.mxu0 %v9864_v32  ;;  %v1365_v15 = vld [vmem:[#allocation12 + $0x768] sm:$0xff] }
 0x305   :  { %7694 = vmatpush1.bf16.msra.mxu1 %v9992_v5  ;;  %7654 = vmatprep.subr.bf16.mxu0 %v9857_v61  ;;  %v10081_v58 = vcombine.high %v1361_v10, %v1365_v15  ;;  %v1225_v36 = vld [vmem:[#allocation12 + $0x308] sm:$0xff]  ;;  %v9952_v61 = vcombine.low %v1233_v13, %v1237_v14 }
 0x306   :  { %7695 = vmatprep.subr.bf16.mxu1 %v9985_v17  ;;  %v1229_v54 = vld [vmem:[#allocation12 + $0x328] sm:$0xff]  ;;  %v10080_v17 = vcombine.low %v1361_v10, %v1365_v15 }
 0x307   :  { %v1353_v32 = vld [vmem:[#allocation12 + $0x708] sm:$0xff]  ;;  %v9945_v4 = vcombine.high %v1225_v36, %v1229_v54 }
 0x308   :  { %7655 = vmatpush1.bf16.msra.mxu0 %v9856_v8  ;;  %v1357_v5 = vld [vmem:[#allocation12 + $0x728] sm:$0xff] }
 0x309   :  { %7696 = vmatpush1.bf16.msra.mxu1 %v9984_v47  ;;  %7656 = vmatprep.subr.bf16.mxu0 %v9849_v29  ;;  %v10073_v24 = vcombine.high %v1353_v32, %v1357_v5  ;;  %v1217_v25 = vld [vmem:[#allocation12 + $0x2c8] sm:$0xff]  ;;  %v9944_v29 = vcombine.low %v1225_v36, %v1229_v54 }
 0x30a   :  { %7697 = vmatprep.subr.bf16.mxu1 %v9977_v23  ;;  %v1221_v12 = vld [vmem:[#allocation12 + $0x2e8] sm:$0xff]  ;;  %v10072_v23 = vcombine.low %v1353_v32, %v1357_v5 }
 0x30b   :  { %v1345_v8 = vld [vmem:[#allocation12 + $0x6c8] sm:$0xff]  ;;  %v9937_v18 = vcombine.high %v1217_v25, %v1221_v12 }
 0x30c   :  { %7657 = vmatpush1.bf16.msra.mxu0 %v9848_v16  ;;  %v1349_v47 = vld [vmem:[#allocation12 + $0x6e8] sm:$0xff] }
 0x30d   :  { %7698 = vmatpush1.bf16.msra.mxu1 %v9976_v56  ;;  %7658 = vmatprep.subr.bf16.mxu0 %v9969_v57  ;;  %v10065_v50 = vcombine.high %v1345_v8, %v1349_v47  ;;  %v1209_v33 = vld [vmem:[#allocation12 + $0x288] sm:$0xff]  ;;  %v9936_v57 = vcombine.low %v1217_v25, %v1221_v12 }
 0x30e   :  { %7699 = vmatprep.subr.bf16.mxu1 %v10097_v38  ;;  %v1213_v22 = vld [vmem:[#allocation12 + $0x2a8] sm:$0xff]  ;;  %v10064_v38 = vcombine.low %v1345_v8, %v1349_v47 }
 0x30f   :  { %v1337_v16 = vld [vmem:[#allocation12 + $0x688] sm:$0xff]  ;;  %v9929_v39 = vcombine.high %v1209_v33, %v1213_v22 }
 0x310   :  { %7659 = vmatpush2.bf16.msra.mxu0 %v9968_v44  ;;  %v1341_v56 = vld [vmem:[#allocation12 + $0x6a8] sm:$0xff] }
 0x311   :  { %7700 = vmatpush2.bf16.msra.mxu1 %v10096_v45  ;;  %7660 = vmatprep.subr.bf16.mxu0 %v9961_v46  ;;  %v10057_v37 = vcombine.high %v1337_v16, %v1341_v56  ;;  %v1201_v40 = vld [vmem:[#allocation12 + $0x248] sm:$0xff]  ;;  %v9928_v46 = vcombine.low %v1209_v33, %v1213_v22 }
 0x312   :  { %7701 = vmatprep.subr.bf16.mxu1 %v10089_v3  ;;  %v1205_v42 = vld [vmem:[#allocation12 + $0x268] sm:$0xff]  ;;  %v10056_v3 = vcombine.low %v1337_v16, %v1341_v56 }
 0x313   :  { %v1329_v44 = vld [vmem:[#allocation12 + $0x648] sm:$0xff]  ;;  %v9921_v13 = vcombine.high %v1201_v40, %v1205_v42 }
 0x314   :  { %7661 = vmatpush2.bf16.msra.mxu0 %v9960_v2  ;;  %v1333_v45 = vld [vmem:[#allocation12 + $0x668] sm:$0xff] }
 0x315   :  { %7702 = vmatpush2.bf16.msra.mxu1 %v10088_v53  ;;  %7662 = vmatprep.subr.bf16.mxu0 %v9953_v0  ;;  %v10049_v14 = vcombine.high %v1329_v44, %v1333_v45  ;;  %v1193_v10 = vld [vmem:[#allocation12 + $0x208] sm:$0xff]  ;;  %v9920_v0 = vcombine.low %v1201_v40, %v1205_v42 }
 0x316   :  { %7703 = vmatprep.subr.bf16.mxu1 %v10081_v58  ;;  %v1197_v15 = vld [vmem:[#allocation12 + $0x228] sm:$0xff]  ;;  %v10048_v58 = vcombine.low %v1329_v44, %v1333_v45 }
 0x317   :  { %v1321_v2 = vld [vmem:[#allocation12 + $0x608] sm:$0xff]  ;;  %v9913_v36 = vcombine.high %v1193_v10, %v1197_v15 }
 0x318   :  { %7663 = vmatpush2.bf16.msra.mxu0 %v9952_v61  ;;  %v1325_v53 = vld [vmem:[#allocation12 + $0x628] sm:$0xff] }
 0x319   :  { %7704 = vmatpush2.bf16.msra.mxu1 %v10080_v17  ;;  %7664 = vmatprep.subr.bf16.mxu0 %v9945_v4  ;;  %v10041_v54 = vcombine.high %v1321_v2, %v1325_v53  ;;  %v1441_v32 = vld [vmem:[#allocation12 + $0x9c8] sm:$0xff]  ;;  %v9912_v4 = vcombine.low %v1193_v10, %v1197_v15 }
 0x31a   :  { %7705 = vmatprep.subr.bf16.mxu1 %v10073_v24  ;;  %v1445_v5 = vld [vmem:[#allocation12 + $0x9e8] sm:$0xff]  ;;  %v10040_v24 = vcombine.low %v1321_v2, %v1325_v53 }
 0x31b   :  { %v1569_v61 = vld [vmem:[#allocation12 + $0xdc8] sm:$0xff]  ;;  %v10161_v25 = vcombine.high %v1441_v32, %v1445_v5 }
 0x31c   :  { %7665 = vmatpush2.bf16.msra.mxu0 %v9944_v29  ;;  %v1573_v17 = vld [vmem:[#allocation12 + $0xde8] sm:$0xff]  ;;  %v10160_v29 = vcombine.low %v1441_v32, %v1445_v5 }
 0x31d   :  { %7706 = vmatpush2.bf16.msra.mxu1 %v10072_v23  ;;  %7666 = vmatprep.subr.bf16.mxu0 %v9937_v18  ;;  %v10289_v12 = vcombine.high %v1569_v61, %v1573_v17  ;;  %v1433_v8 = vld [vmem:[#allocation12 + $0x988] sm:$0xff] }
 0x31e   :  { %7707 = vmatprep.subr.bf16.mxu1 %v10065_v50  ;;  %v1437_v47 = vld [vmem:[#allocation12 + $0x9a8] sm:$0xff]  ;;  %v10288_v50 = vcombine.low %v1569_v61, %v1573_v17 }
 0x31f   :  { %v1561_v23 = vld [vmem:[#allocation12 + $0xd88] sm:$0xff]  ;;  %v10153_v33 = vcombine.high %v1433_v8, %v1437_v47  ;;  %v10152_v42 = vcombine.low %v1433_v8, %v1437_v47 }
 0x320   :  { %7667 = vmatpush2.bf16.msra.mxu0 %v9936_v57  ;;  %v1565_v18 = vld [vmem:[#allocation12 + $0xda8] sm:$0xff] }
 0x321   :  { %7708 = vmatpush2.bf16.msra.mxu1 %v10064_v38  ;;  %7668 = vmatprep.subr.bf16.mxu0 %v9929_v39  ;;  %v1425_v22 = vld [vmem:[#allocation12 + $0x948] sm:$0xff]  ;;  %v10281_v38 = vcombine.high %v1561_v23, %v1565_v18 }
 0x322   :  { %7709 = vmatprep.subr.bf16.mxu1 %v10057_v37  ;;  %v1429_v16 = vld [vmem:[#allocation12 + $0x968] sm:$0xff] }
 0x323   :  { %v1553_v39 = vld [vmem:[#allocation12 + $0xd48] sm:$0xff] }
 0x324   :  { %7669 = vmatpush2.bf16.msra.mxu0 %v9928_v46  ;;  %v1557_v37 = vld [vmem:[#allocation12 + $0xd68] sm:$0xff]  ;;  %v10280_v46 = vcombine.low %v1561_v23, %v1565_v18 }
 0x325   :  { %7710 = vmatpush2.bf16.msra.mxu1 %v10056_v3  ;;  %7670 = vmatprep.subr.bf16.mxu0 %v9921_v13  ;;  %v10145_v3 = vcombine.high %v1425_v22, %v1429_v16  ;;  %v10273_v10 = vcombine.high %v1553_v39, %v1557_v37  ;;  %v1421_v15 = vld [vmem:[#allocation12 + $0x928] sm:$0xff]  ;;  %v10272_v61 = vcombine.low %v1553_v39, %v1557_v37 }
 0x326   :  { %7711 = vmatprep.subr.bf16.mxu1 %v10049_v14  ;;  %v1401_v18 = vld [vmem:[#allocation12 + $0x888] sm:$0xff] }
 0x327   :  { %v1393_v39 = vld [vmem:[#allocation12 + $0x848] sm:$0xff] }
 0x328   :  { %7671 = vmatpush2.bf16.msra.mxu0 %v9920_v0  ;;  %v1545_v0 = vld [vmem:[#allocation12 + $0xd08] sm:$0xff] }
 0x329   :  { %7712 = vmatpush2.bf16.msra.mxu1 %v10048_v58  ;;  %7672 = vmatprep.subr.bf16.mxu0 %v9913_v36  ;;  %v1549_v58 = vld [vmem:[#allocation12 + $0xd28] sm:$0xff] }
 0x32a   :  { %7713 = vmatprep.subr.bf16.mxu1 %v10041_v54  ;;  %v10144_v54 = vcombine.low %v1425_v22, %v1429_v16  ;;  %v10264_v47 = vcombine.low %v1545_v0, %v1549_v58  ;;  %v1533_v22 = vld [vmem:[#allocation12 + $0xca8] sm:$0xff] }
 0x32b   :  { %v1397_v37 = vld [vmem:[#allocation12 + $0x868] sm:$0xff] }
 0x32c   :  { %7673 = vmatpush2.bf16.msra.mxu0 %v9912_v4  ;;  %v1409_v4 = vld [vmem:[#allocation12 + $0x8c8] sm:$0xff] }
 0x32d   :  { %7714 = vmatpush2.bf16.msra.mxu1 %v10040_v24  ;;  %7724 = vmatprep.subr.bf16.mxu0 %v10161_v25  ;;  %v1413_v24 = vld [vmem:[#allocation12 + $0x8e8] sm:$0xff] }
 0x32e   :  { %7765 = vmatprep.subr.bf16.mxu1 %v10289_v12  ;;  %v1537_v25 = vld [vmem:[#allocation12 + $0xcc8] sm:$0xff]  ;;  %v10128_v16 = vcombine.low %v1409_v4, %v1413_v24 }
 0x32f   :  { %v7430_v56 = vpop.f32.mrf.mxu0  ;;  %v7471_v57 = vpop.f32.mrf.mxu1  ;;  %7675 = vmatmul.mubr.bf16.vlgmr.msra.gmra.mxu0 %v11864_v51  ;;  %v1541_v12 = vld [vmem:[#allocation12 + $0xce8] sm:$0xff] }
 0x330   :  { %v7431_v40 = vadd.f32 %v7430_v56, %v12006_v60  ;;  %7716 = vmatmul.mubr.bf16.vlgmr.msra.gmra.mxu1 %v11866_v52  ;;  %7725 = vmatpush1.bf16.msra.mxu0 %v10160_v29  ;;  %v1417_v60 = vld [vmem:[#allocation12 + $0x908] sm:$0xff]  ;;  %v10129_v29 = vcombine.high %v1409_v4, %v1413_v24  ;;  %v10257_v23 = vcombine.high %v1537_v25, %v1541_v12 }
 0x331   :  { %7756 = vmatprep.mubr.bf16.mxu0 %v11880_v28  ;;  %7766 = vmatpush1.bf16.msra.mxu1 %v10288_v50  ;;  %v7432_v44 = vpop.f32.mrf.mxu0  ;;  %v7473_v45 = vpop.f32.mrf.mxu1  ;;  %v10137_v17 = vcombine.high %v1417_v60, %v1421_v15  ;;  %v10136_v8 = vcombine.low %v1417_v60, %v1421_v15  ;;  %v1405_v50 = vld [vmem:[#allocation12 + $0x8a8] sm:$0xff]  ;;  %v10256_v56 = vcombine.low %v1537_v25, %v1541_v12 }
 0x332   :  { %v12015_v13 = vadd.f32 %v7471_v57, %v7431_v40  ;;  %7797 = vmatprep.mubr.bf16.mxu1 %v11882_v7  ;;  %v7433_v14 = vadd.f32 %v7432_v44, %v12009_v34  ;;  %7726 = vmatprep.subr.bf16.mxu0 %v10153_v33  ;;  %v10265_v34 = vcombine.high %v1545_v0, %v1549_v58  ;;  %v1529_v33 = vld [vmem:[#allocation12 + $0xc88] sm:$0xff] }
 0x333   :  { %v7434_v2 = vpop.f32.mrf.mxu0  ;;  %v7475_v53 = vpop.f32.mrf.mxu1  ;;  %7767 = vmatprep.subr.bf16.mxu1 %v10281_v38  ;;  %v10121_v57 = vcombine.high %v1401_v18, %v1405_v50  ;;  %v10249_v38 = vcombine.high %v1529_v33, %v1533_v22  ;;  %v1521_v40 = vld [vmem:[#allocation12 + $0xc48] sm:$0xff]  ;;  %v10120_v44 = vcombine.low %v1401_v18, %v1405_v50 }
 0x334   :  { %v12019_v36 = vadd.f32 %v7473_v45, %v7433_v14  ;;  %7727 = vmatpush1.bf16.msra.mxu0 %v10152_v42  ;;  %v1525_v42 = vld [vmem:[#allocation12 + $0xc68] sm:$0xff]  ;;  %v10248_v45 = vcombine.low %v1529_v33, %v1533_v22  ;;  %v10112_v2 = vcombine.low %v1393_v39, %v1397_v37 }
 0x335   :  { %7768 = vmatpush1.bf16.msra.mxu1 %v10280_v46  ;;  %v7435_v32 = vpop.f32.mrf.mxu0  ;;  %v7476_v5 = vpop.f32.mrf.mxu1  ;;  %7728 = vmatprep.subr.bf16.mxu0 %v10145_v3  ;;  %v10113_v46 = vcombine.high %v1393_v39, %v1397_v37  ;;  %v10241_v3 = vcombine.high %v1521_v40, %v1525_v42  ;;  %v1385_v14 = vld [vmem:[#allocation12 + $0x808] sm:$0xff]  ;;  %v10240_v53 = vcombine.low %v1521_v40, %v1525_v42 }
 0x336   :  { %7769 = vmatprep.subr.bf16.mxu1 %v10273_v10  ;;  %v1389_v10 = vld [vmem:[#allocation12 + $0x828] sm:$0xff] }
 0x337   :  { %v1513_v60 = vld [vmem:[#allocation12 + $0xc08] sm:$0xff]  ;;  %v10105_v0 = vcombine.high %v1385_v14, %v1389_v10 }
 0x338   :  { %7729 = vmatpush1.bf16.msra.mxu0 %v10144_v54  ;;  %v1517_v15 = vld [vmem:[#allocation12 + $0xc28] sm:$0xff] }
 0x339   :  { %7770 = vmatpush1.bf16.msra.mxu1 %v10272_v61  ;;  %7730 = vmatprep.subr.bf16.mxu0 %v10137_v17  ;;  %v10233_v58 = vcombine.high %v1513_v60, %v1517_v15  ;;  %v1505_v54 = vld [vmem:[#allocation12 + $0xbc8] sm:$0xff]  ;;  %v10104_v17 = vcombine.low %v1385_v14, %v1389_v10 }
 0x33a   :  { %7771 = vmatprep.subr.bf16.mxu1 %v10265_v34  ;;  %v1509_v32 = vld [vmem:[#allocation12 + $0xbe8] sm:$0xff]  ;;  %v10232_v34 = vcombine.low %v1513_v60, %v1517_v15 }
 0x33b   :  { %v1633_v5 = vld [vmem:[#allocation12 + $0xfc8] sm:$0xff]  ;;  %v10225_v4 = vcombine.high %v1505_v54, %v1509_v32 }
 0x33c   :  { %7731 = vmatpush1.bf16.msra.mxu0 %v10136_v8  ;;  %v1637_v61 = vld [vmem:[#allocation12 + $0xfe8] sm:$0xff] }
 0x33d   :  { %7772 = vmatpush1.bf16.msra.mxu1 %v10264_v47  ;;  %7732 = vmatprep.subr.bf16.mxu0 %v10129_v29  ;;  %v10353_v24 = vcombine.high %v1633_v5, %v1637_v61  ;;  %v1497_v25 = vld [vmem:[#allocation12 + $0xb88] sm:$0xff]  ;;  %v10224_v29 = vcombine.low %v1505_v54, %v1509_v32 }
 0x33e   :  { %7773 = vmatprep.subr.bf16.mxu1 %v10257_v23  ;;  %v1501_v12 = vld [vmem:[#allocation12 + $0xba8] sm:$0xff]  ;;  %v10352_v23 = vcombine.low %v1633_v5, %v1637_v61 }
 0x33f   :  { %v1625_v8 = vld [vmem:[#allocation12 + $0xf88] sm:$0xff]  ;;  %v10217_v18 = vcombine.high %v1497_v25, %v1501_v12 }
 0x340   :  { %7733 = vmatpush1.bf16.msra.mxu0 %v10128_v16  ;;  %v1629_v47 = vld [vmem:[#allocation12 + $0xfa8] sm:$0xff] }
 0x341   :  { %7774 = vmatpush1.bf16.msra.mxu1 %v10256_v56  ;;  %7734 = vmatprep.subr.bf16.mxu0 %v10121_v57  ;;  %v10345_v50 = vcombine.high %v1625_v8, %v1629_v47  ;;  %v1489_v33 = vld [vmem:[#allocation12 + $0xb48] sm:$0xff]  ;;  %v10216_v57 = vcombine.low %v1497_v25, %v1501_v12 }
 0x342   :  { %7775 = vmatprep.subr.bf16.mxu1 %v10249_v38  ;;  %v1493_v22 = vld [vmem:[#allocation12 + $0xb68] sm:$0xff]  ;;  %v10344_v38 = vcombine.low %v1625_v8, %v1629_v47 }
 0x343   :  { %v1617_v16 = vld [vmem:[#allocation12 + $0xf48] sm:$0xff]  ;;  %v10209_v39 = vcombine.high %v1489_v33, %v1493_v22 }
 0x344   :  { %7735 = vmatpush1.bf16.msra.mxu0 %v10120_v44  ;;  %v1621_v56 = vld [vmem:[#allocation12 + $0xf68] sm:$0xff] }
 0x345   :  { %7776 = vmatpush1.bf16.msra.mxu1 %v10248_v45  ;;  %7736 = vmatprep.subr.bf16.mxu0 %v10113_v46  ;;  %v10337_v37 = vcombine.high %v1617_v16, %v1621_v56  ;;  %v1481_v40 = vld [vmem:[#allocation12 + $0xb08] sm:$0xff]  ;;  %v10208_v46 = vcombine.low %v1489_v33, %v1493_v22 }
 0x346   :  { %7777 = vmatprep.subr.bf16.mxu1 %v10241_v3  ;;  %v1485_v42 = vld [vmem:[#allocation12 + $0xb28] sm:$0xff]  ;;  %v10336_v3 = vcombine.low %v1617_v16, %v1621_v56 }
 0x347   :  { %v1609_v44 = vld [vmem:[#allocation12 + $0xf08] sm:$0xff]  ;;  %v10201_v14 = vcombine.high %v1481_v40, %v1485_v42 }
 0x348   :  { %7737 = vmatpush1.bf16.msra.mxu0 %v10112_v2  ;;  %v1613_v45 = vld [vmem:[#allocation12 + $0xf28] sm:$0xff] }
 0x349   :  { %7778 = vmatpush1.bf16.msra.mxu1 %v10240_v53  ;;  %7738 = vmatprep.subr.bf16.mxu0 %v10105_v0  ;;  %v10329_v10 = vcombine.high %v1609_v44, %v1613_v45  ;;  %v1473_v60 = vld [vmem:[#allocation12 + $0xac8] sm:$0xff]  ;;  %v10200_v0 = vcombine.low %v1481_v40, %v1485_v42 }
 0x34a   :  { %7779 = vmatprep.subr.bf16.mxu1 %v10233_v58  ;;  %v1477_v15 = vld [vmem:[#allocation12 + $0xae8] sm:$0xff]  ;;  %v10328_v58 = vcombine.low %v1609_v44, %v1613_v45 }
 0x34b   :  { %v1601_v2 = vld [vmem:[#allocation12 + $0xec8] sm:$0xff]  ;;  %v10193_v54 = vcombine.high %v1473_v60, %v1477_v15 }
 0x34c   :  { %7739 = vmatpush1.bf16.msra.mxu0 %v10104_v17  ;;  %v1605_v53 = vld [vmem:[#allocation12 + $0xee8] sm:$0xff] }
 0x34d   :  { %7780 = vmatpush1.bf16.msra.mxu1 %v10232_v34  ;;  %7740 = vmatprep.subr.bf16.mxu0 %v10225_v4  ;;  %v10321_v32 = vcombine.high %v1601_v2, %v1605_v53  ;;  %v1465_v5 = vld [vmem:[#allocation12 + $0xa88] sm:$0xff]  ;;  %v10192_v4 = vcombine.low %v1473_v60, %v1477_v15 }
 0x34e   :  { %7781 = vmatprep.subr.bf16.mxu1 %v10353_v24  ;;  %v1469_v61 = vld [vmem:[#allocation12 + $0xaa8] sm:$0xff]  ;;  %v10320_v24 = vcombine.low %v1601_v2, %v1605_v53 }
 0x34f   :  { %v1593_v17 = vld [vmem:[#allocation12 + $0xe88] sm:$0xff]  ;;  %v10185_v25 = vcombine.high %v1465_v5, %v1469_v61 }
 0x350   :  { %7741 = vmatpush2.bf16.msra.mxu0 %v10224_v29  ;;  %v1597_v34 = vld [vmem:[#allocation12 + $0xea8] sm:$0xff] }
 0x351   :  { %7782 = vmatpush2.bf16.msra.mxu1 %v10352_v23  ;;  %7742 = vmatprep.subr.bf16.mxu0 %v10217_v18  ;;  %v10313_v12 = vcombine.high %v1593_v17, %v1597_v34  ;;  %v1457_v8 = vld [vmem:[#allocation12 + $0xa48] sm:$0xff]  ;;  %v10184_v18 = vcombine.low %v1465_v5, %v1469_v61 }
 0x352   :  { %7783 = vmatprep.subr.bf16.mxu1 %v10345_v50  ;;  %v1461_v47 = vld [vmem:[#allocation12 + $0xa68] sm:$0xff]  ;;  %v10312_v50 = vcombine.low %v1593_v17, %v1597_v34 }
 0x353   :  { %v1585_v29 = vld [vmem:[#allocation12 + $0xe48] sm:$0xff]  ;;  %v10177_v33 = vcombine.high %v1457_v8, %v1461_v47 }
 0x354   :  { %7743 = vmatpush2.bf16.msra.mxu0 %v10216_v57  ;;  %v1589_v23 = vld [vmem:[#allocation12 + $0xe68] sm:$0xff] }
 0x355   :  { %7784 = vmatpush2.bf16.msra.mxu1 %v10344_v38  ;;  %7744 = vmatprep.subr.bf16.mxu0 %v10209_v39  ;;  %v10305_v22 = vcombine.high %v1585_v29, %v1589_v23  ;;  %v1449_v16 = vld [vmem:[#allocation12 + $0xa08] sm:$0xff]  ;;  %v10176_v39 = vcombine.low %v1457_v8, %v1461_v47 }
 0x356   :  { %7785 = vmatprep.subr.bf16.mxu1 %v10337_v37  ;;  %v1453_v56 = vld [vmem:[#allocation12 + $0xa28] sm:$0xff]  ;;  %v10304_v37 = vcombine.low %v1585_v29, %v1589_v23 }
 0x357   :  { %v1577_v57 = vld [vmem:[#allocation12 + $0xe08] sm:$0xff]  ;;  %v10169_v40 = vcombine.high %v1449_v16, %v1453_v56 }
 0x358   :  { %7745 = vmatpush2.bf16.msra.mxu0 %v10208_v46  ;;  %v1581_v38 = vld [vmem:[#allocation12 + $0xe28] sm:$0xff] }
 0x359   :  { %7786 = vmatpush2.bf16.msra.mxu1 %v10336_v3  ;;  %7746 = vmatprep.subr.bf16.mxu0 %v10201_v14  ;;  %v10297_v42 = vcombine.high %v1577_v57, %v1581_v38  ;;  %v1697_v44 = vld [vmem:[#allocation12 + $0x11c8] sm:$0xff]  ;;  %v10168_v14 = vcombine.low %v1449_v16, %v1453_v56 }
 0x35a   :  { %7787 = vmatprep.subr.bf16.mxu1 %v10329_v10  ;;  %v1701_v45 = vld [vmem:[#allocation12 + $0x11e8] sm:$0xff]  ;;  %v10296_v10 = vcombine.low %v1577_v57, %v1581_v38 }
 0x35b   :  { %v1825_v46 = vld [vmem:[#allocation12 + $0x15c8] sm:$0xff]  ;;  %v10417_v60 = vcombine.high %v1697_v44, %v1701_v45 }
 0x35c   :  { %7747 = vmatpush2.bf16.msra.mxu0 %v10200_v0  ;;  %v1829_v3 = vld [vmem:[#allocation12 + $0x15e8] sm:$0xff]  ;;  %v10416_v0 = vcombine.low %v1697_v44, %v1701_v45 }
 0x35d   :  { %7788 = vmatpush2.bf16.msra.mxu1 %v10328_v58  ;;  %7748 = vmatprep.subr.bf16.mxu0 %v10193_v54  ;;  %v10545_v15 = vcombine.high %v1825_v46, %v1829_v3  ;;  %v1689_v2 = vld [vmem:[#allocation12 + $0x1188] sm:$0xff] }
 0x35e   :  { %7789 = vmatprep.subr.bf16.mxu1 %v10321_v32  ;;  %v1693_v53 = vld [vmem:[#allocation12 + $0x11a8] sm:$0xff]  ;;  %v10544_v32 = vcombine.low %v1825_v46, %v1829_v3 }
 0x35f   :  { %v1817_v58 = vld [vmem:[#allocation12 + $0x1588] sm:$0xff]  ;;  %v10409_v5 = vcombine.high %v1689_v2, %v1693_v53  ;;  %v10408_v47 = vcombine.low %v1689_v2, %v1693_v53 }
 0x360   :  { %7749 = vmatpush2.bf16.msra.mxu0 %v10192_v4  ;;  %v1821_v54 = vld [vmem:[#allocation12 + $0x15a8] sm:$0xff] }
 0x361   :  { %7790 = vmatpush2.bf16.msra.mxu1 %v10320_v24  ;;  %7750 = vmatprep.subr.bf16.mxu0 %v10185_v25  ;;  %v1681_v61 = vld [vmem:[#allocation12 + $0x1148] sm:$0xff]  ;;  %v10537_v4 = vcombine.high %v1817_v58, %v1821_v54  ;;  %v10536_v23 = vcombine.low %v1817_v58, %v1821_v54 }
 0x362   :  { %7791 = vmatprep.subr.bf16.mxu1 %v10313_v12  ;;  %v1685_v17 = vld [vmem:[#allocation12 + $0x1168] sm:$0xff] }
 0x363   :  { %v1809_v24 = vld [vmem:[#allocation12 + $0x1548] sm:$0xff] }
 0x364   :  { %7751 = vmatpush2.bf16.msra.mxu0 %v10184_v18  ;;  %v1813_v25 = vld [vmem:[#allocation12 + $0x1568] sm:$0xff]  ;;  %v10401_v18 = vcombine.high %v1681_v61, %v1685_v17 }
 0x365   :  { %7792 = vmatpush2.bf16.msra.mxu1 %v10312_v50  ;;  %7752 = vmatprep.subr.bf16.mxu0 %v10177_v33  ;;  %v1673_v16 = vld [vmem:[#allocation12 + $0x1108] sm:$0xff]  ;;  %v10528_v45 = vcombine.low %v1809_v24, %v1813_v25 }
 0x366   :  { %7793 = vmatprep.subr.bf16.mxu1 %v10305_v22  ;;  %v1677_v56 = vld [vmem:[#allocation12 + $0x1128] sm:$0xff] }
 0x367   :  { %v1801_v38 = vld [vmem:[#allocation12 + $0x1508] sm:$0xff]  ;;  %v10393_v46 = vcombine.high %v1673_v16, %v1677_v56  ;;  %v10392_v2 = vcombine.low %v1673_v16, %v1677_v56 }
 0x368   :  { %7753 = vmatpush2.bf16.msra.mxu0 %v10176_v39  ;;  %v1805_v39 = vld [vmem:[#allocation12 + $0x1528] sm:$0xff] }
 0x369   :  { %7794 = vmatpush2.bf16.msra.mxu1 %v10304_v37  ;;  %7754 = vmatprep.subr.bf16.mxu0 %v10169_v40  ;;  %v10521_v3 = vcombine.high %v1801_v38, %v1805_v39  ;;  %v10520_v53 = vcombine.low %v1801_v38, %v1805_v39  ;;  %v1657_v54 = vld [vmem:[#allocation12 + $0x1088] sm:$0xff] }
 0x36a   :  { %7795 = vmatprep.subr.bf16.mxu1 %v10297_v42  ;;  %v10400_v42 = vcombine.low %v1681_v61, %v1685_v17  ;;  %v1789_v61 = vld [vmem:[#allocation12 + $0x14a8] sm:$0xff] }
 0x36b   :  { %v1769_v16 = vld [vmem:[#allocation12 + $0x1408] sm:$0xff] }
 0x36c   :  { %7755 = vmatpush2.bf16.msra.mxu0 %v10168_v14  ;;  %v1665_v14 = vld [vmem:[#allocation12 + $0x10c8] sm:$0xff] }
 0x36d   :  { %7796 = vmatpush2.bf16.msra.mxu1 %v10296_v10  ;;  %7806 = vmatprep.subr.bf16.mxu0 %v10417_v60  ;;  %v1669_v10 = vld [vmem:[#allocation12 + $0x10e8] sm:$0xff] }
 0x36e   :  { %7847 = vmatprep.subr.bf16.mxu1 %v10545_v15  ;;  %v1793_v60 = vld [vmem:[#allocation12 + $0x14c8] sm:$0xff]  ;;  %v10384_v17 = vcombine.low %v1665_v14, %v1669_v10 }
 0x36f   :  { %v7512_v34 = vpop.f32.mrf.mxu0  ;;  %7757 = vmatmul.mubr.bf16.vlgmr.msra.gmra.mxu0 %v11956_v55  ;;  %v1797_v15 = vld [vmem:[#allocation12 + $0x14e8] sm:$0xff] }
 0x370   :  { %v7513_v12 = vadd.f32 %v7512_v34, %v12015_v13  ;;  %v7553_v8 = vpop.f32.mrf.mxu1  ;;  %7798 = vmatmul.mubr.bf16.vlgmr.msra.gmra.mxu1 %v11960_v59  ;;  %7807 = vmatpush1.bf16.msra.mxu0 %v10416_v0  ;;  %v10529_v13 = vcombine.high %v1809_v24, %v1813_v25  ;;  %v10385_v0 = vcombine.high %v1665_v14, %v1669_v10  ;;  %v1649_v25 = vld [vmem:[#allocation12 + $0x1048] sm:$0xff] }
 0x371   :  { %7838 = vmatprep.mubr.bf16.mxu0 %v11962_v62  ;;  %7848 = vmatpush1.bf16.msra.mxu1 %v10544_v32  ;;  %v7514_v29 = vpop.f32.mrf.mxu0  ;;  %v10513_v58 = vcombine.high %v1793_v60, %v1797_v15  ;;  %v1661_v32 = vld [vmem:[#allocation12 + $0x10a8] sm:$0xff]  ;;  %v10512_v34 = vcombine.low %v1793_v60, %v1797_v15 }
 0x372   :  { %v12025_v50 = vadd.f32 %v7553_v8, %v7513_v12  ;;  %7879 = vmatprep.mubr.bf16.mxu1 %v11966_v27  ;;  %v7515_v33 = vadd.f32 %v7514_v29, %v12019_v36  ;;  %v7555_v22 = vpop.f32.mrf.mxu1  ;;  %7808 = vmatprep.subr.bf16.mxu0 %v10409_v5  ;;  %v1785_v5 = vld [vmem:[#allocation12 + $0x1488] sm:$0xff]  ;;  %v10376_v29 = vcombine.low %v1657_v54, %v1661_v32 }
 0x373   :  { %v7516_v57 = vpop.f32.mrf.mxu0  ;;  %7849 = vmatprep.subr.bf16.mxu1 %v10537_v4  ;;  %v10377_v4 = vcombine.high %v1657_v54, %v1661_v32  ;;  %v10505_v24 = vcombine.high %v1785_v5, %v1789_v61  ;;  %v1653_v12 = vld [vmem:[#allocation12 + $0x1068] sm:$0xff] }
 0x374   :  { %v12029_v37 = vadd.f32 %v7555_v22, %v7515_v33  ;;  %v7557_v40 = vpop.f32.mrf.mxu1  ;;  %7809 = vmatpush1.bf16.msra.mxu0 %v10408_v47  ;;  %v1777_v8 = vld [vmem:[#allocation12 + $0x1448] sm:$0xff]  ;;  %v10368_v57 = vcombine.low %v1649_v25, %v1653_v12 }
 0x375   :  { %7850 = vmatpush1.bf16.msra.mxu1 %v10536_v23  ;;  %v7517_v44 = vpop.f32.mrf.mxu0  ;;  %7810 = vmatprep.subr.bf16.mxu0 %v10401_v18  ;;  %v1781_v47 = vld [vmem:[#allocation12 + $0x1468] sm:$0xff]  ;;  %v10504_v23 = vcombine.low %v1785_v5, %v1789_v61  ;;  %v10369_v18 = vcombine.high %v1649_v25, %v1653_v12 }
 0x376   :  { %v7558_v36 = vpop.f32.mrf.mxu1  ;;  %7851 = vmatprep.subr.bf16.mxu1 %v10529_v13  ;;  %v10497_v33 = vcombine.high %v1777_v8, %v1781_v47  ;;  %v1641_v22 = vld [vmem:[#allocation12 + $0x1008] sm:$0xff]  ;;  %v10496_v38 = vcombine.low %v1777_v8, %v1781_v47 }
 0x377   :  { %v1645_v13 = vld [vmem:[#allocation12 + $0x1028] sm:$0xff] }
 0x378   :  { %7811 = vmatpush1.bf16.msra.mxu0 %v10400_v42  ;;  %v1773_v56 = vld [vmem:[#allocation12 + $0x1428] sm:$0xff]  ;;  %v10361_v39 = vcombine.high %v1641_v22, %v1645_v13  ;;  %v10360_v36 = vcombine.low %v1641_v22, %v1645_v13 }
 0x379   :  { %7852 = vmatpush1.bf16.msra.mxu1 %v10528_v45  ;;  %7812 = vmatprep.subr.bf16.mxu0 %v10393_v46  ;;  %v10489_v40 = vcombine.high %v1769_v16, %v1773_v56  ;;  %v1761_v42 = vld [vmem:[#allocation12 + $0x13c8] sm:$0xff] }
 0x37a   :  { %7853 = vmatprep.subr.bf16.mxu1 %v10521_v3  ;;  %v1765_v44 = vld [vmem:[#allocation12 + $0x13e8] sm:$0xff]  ;;  %v10488_v3 = vcombine.low %v1769_v16, %v1773_v56 }
 0x37b   :  { %v1889_v45 = vld [vmem:[#allocation12 + $0x17c8] sm:$0xff]  ;;  %v10481_v14 = vcombine.high %v1761_v42, %v1765_v44 }
 0x37c   :  { %7813 = vmatpush1.bf16.msra.mxu0 %v10392_v2  ;;  %v1893_v46 = vld [vmem:[#allocation12 + $0x17e8] sm:$0xff] }
 0x37d   :  { %7854 = vmatpush1.bf16.msra.mxu1 %v10520_v53  ;;  %7814 = vmatprep.subr.bf16.mxu0 %v10385_v0  ;;  %v10609_v10 = vcombine.high %v1889_v45, %v1893_v46  ;;  %v1753_v60 = vld [vmem:[#allocation12 + $0x1388] sm:$0xff]  ;;  %v10480_v0 = vcombine.low %v1761_v42, %v1765_v44 }
 0x37e   :  { %7855 = vmatprep.subr.bf16.mxu1 %v10513_v58  ;;  %v1757_v15 = vld [vmem:[#allocation12 + $0x13a8] sm:$0xff]  ;;  %v10608_v58 = vcombine.low %v1889_v45, %v1893_v46 }
 0x37f   :  { %v1881_v2 = vld [vmem:[#allocation12 + $0x1788] sm:$0xff]  ;;  %v10473_v54 = vcombine.high %v1753_v60, %v1757_v15 }
 0x380   :  { %7815 = vmatpush1.bf16.msra.mxu0 %v10384_v17  ;;  %v1885_v53 = vld [vmem:[#allocation12 + $0x17a8] sm:$0xff] }
 0x381   :  { %7856 = vmatpush1.bf16.msra.mxu1 %v10512_v34  ;;  %7816 = vmatprep.subr.bf16.mxu0 %v10377_v4  ;;  %v10601_v32 = vcombine.high %v1881_v2, %v1885_v53  ;;  %v1745_v5 = vld [vmem:[#allocation12 + $0x1348] sm:$0xff]  ;;  %v10472_v4 = vcombine.low %v1753_v60, %v1757_v15 }
 0x382   :  { %7857 = vmatprep.subr.bf16.mxu1 %v10505_v24  ;;  %v1749_v61 = vld [vmem:[#allocation12 + $0x1368] sm:$0xff]  ;;  %v10600_v24 = vcombine.low %v1881_v2, %v1885_v53 }
 0x383   :  { %v1873_v17 = vld [vmem:[#allocation12 + $0x1748] sm:$0xff]  ;;  %v10465_v25 = vcombine.high %v1745_v5, %v1749_v61 }
 0x384   :  { %7817 = vmatpush1.bf16.msra.mxu0 %v10376_v29  ;;  %v1877_v34 = vld [vmem:[#allocation12 + $0x1768] sm:$0xff] }
 0x385   :  { %7858 = vmatpush1.bf16.msra.mxu1 %v10504_v23  ;;  %7818 = vmatprep.subr.bf16.mxu0 %v10369_v18  ;;  %v10593_v12 = vcombine.high %v1873_v17, %v1877_v34  ;;  %v1737_v8 = vld [vmem:[#allocation12 + $0x1308] sm:$0xff]  ;;  %v10464_v18 = vcombine.low %v1745_v5, %v1749_v61 }
 0x386   :  { %7859 = vmatprep.subr.bf16.mxu1 %v10497_v33  ;;  %v1741_v47 = vld [vmem:[#allocation12 + $0x1328] sm:$0xff]  ;;  %v10592_v33 = vcombine.low %v1873_v17, %v1877_v34 }
 0x387   :  { %v1865_v29 = vld [vmem:[#allocation12 + $0x1708] sm:$0xff]  ;;  %v10457_v22 = vcombine.high %v1737_v8, %v1741_v47 }
 0x388   :  { %7819 = vmatpush1.bf16.msra.mxu0 %v10368_v57  ;;  %v1869_v23 = vld [vmem:[#allocation12 + $0x1728] sm:$0xff] }
 0x389   :  { %7860 = vmatpush1.bf16.msra.mxu1 %v10496_v38  ;;  %7820 = vmatprep.subr.bf16.mxu0 %v10361_v39  ;;  %v10585_v13 = vcombine.high %v1865_v29, %v1869_v23  ;;  %v1729_v16 = vld [vmem:[#allocation12 + $0x12c8] sm:$0xff]  ;;  %v10456_v39 = vcombine.low %v1737_v8, %v1741_v47 }
 0x38a   :  { %7861 = vmatprep.subr.bf16.mxu1 %v10489_v40  ;;  %v1733_v56 = vld [vmem:[#allocation12 + $0x12e8] sm:$0xff]  ;;  %v10584_v40 = vcombine.low %v1865_v29, %v1869_v23 }
 0x38b   :  { %v1857_v57 = vld [vmem:[#allocation12 + $0x16c8] sm:$0xff]  ;;  %v10449_v42 = vcombine.high %v1729_v16, %v1733_v56 }
 0x38c   :  { %7821 = vmatpush1.bf16.msra.mxu0 %v10360_v36  ;;  %v1861_v38 = vld [vmem:[#allocation12 + $0x16e8] sm:$0xff] }
 0x38d   :  { %7862 = vmatpush1.bf16.msra.mxu1 %v10488_v3  ;;  %7822 = vmatprep.subr.bf16.mxu0 %v10481_v14  ;;  %v10577_v44 = vcombine.high %v1857_v57, %v1861_v38  ;;  %v1721_v45 = vld [vmem:[#allocation12 + $0x1288] sm:$0xff]  ;;  %v10448_v14 = vcombine.low %v1729_v16, %v1733_v56 }
 0x38e   :  { %7863 = vmatprep.subr.bf16.mxu1 %v10609_v10  ;;  %v1725_v46 = vld [vmem:[#allocation12 + $0x12a8] sm:$0xff]  ;;  %v10576_v10 = vcombine.low %v1857_v57, %v1861_v38 }
 0x38f   :  { %v1849_v36 = vld [vmem:[#allocation12 + $0x1688] sm:$0xff]  ;;  %v10441_v60 = vcombine.high %v1721_v45, %v1725_v46 }
 0x390   :  { %7823 = vmatpush2.bf16.msra.mxu0 %v10480_v0  ;;  %v1853_v3 = vld [vmem:[#allocation12 + $0x16a8] sm:$0xff] }
 0x391   :  { %7864 = vmatpush2.bf16.msra.mxu1 %v10608_v58  ;;  %7824 = vmatprep.subr.bf16.mxu0 %v10473_v54  ;;  %v10569_v15 = vcombine.high %v1849_v36, %v1853_v3  ;;  %v1713_v2 = vld [vmem:[#allocation12 + $0x1248] sm:$0xff]  ;;  %v10440_v54 = vcombine.low %v1721_v45, %v1725_v46 }
 0x392   :  { %7865 = vmatprep.subr.bf16.mxu1 %v10601_v32  ;;  %v1717_v53 = vld [vmem:[#allocation12 + $0x1268] sm:$0xff]  ;;  %v10568_v32 = vcombine.low %v1849_v36, %v1853_v3 }
 0x393   :  { %v1841_v0 = vld [vmem:[#allocation12 + $0x1648] sm:$0xff]  ;;  %v10433_v5 = vcombine.high %v1713_v2, %v1717_v53 }
 0x394   :  { %7825 = vmatpush2.bf16.msra.mxu0 %v10472_v4  ;;  %v1845_v58 = vld [vmem:[#allocation12 + $0x1668] sm:$0xff] }
 0x395   :  { %7866 = vmatpush2.bf16.msra.mxu1 %v10600_v24  ;;  %7826 = vmatprep.subr.bf16.mxu0 %v10465_v25  ;;  %v10561_v61 = vcombine.high %v1841_v0, %v1845_v58  ;;  %v1705_v17 = vld [vmem:[#allocation12 + $0x1208] sm:$0xff]  ;;  %v10432_v25 = vcombine.low %v1713_v2, %v1717_v53 }
 0x396   :  { %7867 = vmatprep.subr.bf16.mxu1 %v10593_v12  ;;  %v1709_v34 = vld [vmem:[#allocation12 + $0x1228] sm:$0xff]  ;;  %v10560_v12 = vcombine.low %v1841_v0, %v1845_v58 }
 0x397   :  { %v1833_v4 = vld [vmem:[#allocation12 + $0x1608] sm:$0xff]  ;;  %v10425_v8 = vcombine.high %v1705_v17, %v1709_v34 }
 0x398   :  { %7827 = vmatpush2.bf16.msra.mxu0 %v10464_v18  ;;  %v1837_v24 = vld [vmem:[#allocation12 + $0x1628] sm:$0xff] }
 0x399   :  { %7868 = vmatpush2.bf16.msra.mxu1 %v10592_v33  ;;  %7828 = vmatprep.subr.bf16.mxu0 %v10457_v22  ;;  %v10553_v47 = vcombine.high %v1833_v4, %v1837_v24  ;;  %v1953_v29 = vld [vmem:[#allocation12 + $0x19c8] sm:$0xff]  ;;  %v10424_v22 = vcombine.low %v1705_v17, %v1709_v34 }
 0x39a   :  { %7869 = vmatprep.subr.bf16.mxu1 %v10585_v13  ;;  %v1957_v23 = vld [vmem:[#allocation12 + $0x19e8] sm:$0xff]  ;;  %v10552_v13 = vcombine.low %v1833_v4, %v1837_v24 }
 0x39b   :  { %v2081_v18 = vld [vmem:[#allocation12 + $0x1dc8] sm:$0xff]  ;;  %v10673_v16 = vcombine.high %v1953_v29, %v1957_v23 }
 0x39c   :  { %7829 = vmatpush2.bf16.msra.mxu0 %v10456_v39  ;;  %v2085_v33 = vld [vmem:[#allocation12 + $0x1de8] sm:$0xff]  ;;  %v10672_v39 = vcombine.low %v1953_v29, %v1957_v23 }
 0x39d   :  { %7870 = vmatpush2.bf16.msra.mxu1 %v10584_v40  ;;  %7830 = vmatprep.subr.bf16.mxu0 %v10449_v42  ;;  %v10801_v56 = vcombine.high %v2081_v18, %v2085_v33  ;;  %v1945_v57 = vld [vmem:[#allocation12 + $0x1988] sm:$0xff] }
 0x39e   :  { %7871 = vmatprep.subr.bf16.mxu1 %v10577_v44  ;;  %v1949_v38 = vld [vmem:[#allocation12 + $0x19a8] sm:$0xff]  ;;  %v10800_v44 = vcombine.low %v2081_v18, %v2085_v33 }
 0x39f   :  { %v2073_v40 = vld [vmem:[#allocation12 + $0x1d88] sm:$0xff]  ;;  %v10665_v45 = vcombine.high %v1945_v57, %v1949_v38  ;;  %v10664_v53 = vcombine.low %v1945_v57, %v1949_v38 }
 0x3a0   :  { %7831 = vmatpush2.bf16.msra.mxu0 %v10448_v14  ;;  %v2077_v42 = vld [vmem:[#allocation12 + $0x1da8] sm:$0xff] }
 0x3a1   :  { %7872 = vmatpush2.bf16.msra.mxu1 %v10576_v10  ;;  %7832 = vmatprep.subr.bf16.mxu0 %v10441_v60  ;;  %v1937_v46 = vld [vmem:[#allocation12 + $0x1948] sm:$0xff]  ;;  %v10793_v14 = vcombine.high %v2073_v40, %v2077_v42  ;;  %v10792_v58 = vcombine.low %v2073_v40, %v2077_v42 }
 0x3a2   :  { %7873 = vmatprep.subr.bf16.mxu1 %v10569_v15  ;;  %v1941_v36 = vld [vmem:[#allocation12 + $0x1968] sm:$0xff] }
 0x3a3   :  { %v2065_v10 = vld [vmem:[#allocation12 + $0x1d48] sm:$0xff] }
 0x3a4   :  { %7833 = vmatpush2.bf16.msra.mxu0 %v10440_v54  ;;  %v2069_v60 = vld [vmem:[#allocation12 + $0x1d68] sm:$0xff]  ;;  %v10657_v54 = vcombine.high %v1937_v46, %v1941_v36 }
 0x3a5   :  { %7874 = vmatpush2.bf16.msra.mxu1 %v10568_v32  ;;  %7834 = vmatprep.subr.bf16.mxu0 %v10433_v5  ;;  %v1929_v17 = vld [vmem:[#allocation12 + $0x1908] sm:$0xff]  ;;  %v10784_v23 = vcombine.low %v2065_v10, %v2069_v60 }
 0x3a6   :  { %7875 = vmatprep.subr.bf16.mxu1 %v10561_v61  ;;  %v1933_v34 = vld [vmem:[#allocation12 + $0x1928] sm:$0xff] }
 0x3a7   :  { %v2057_v24 = vld [vmem:[#allocation12 + $0x1d08] sm:$0xff]  ;;  %v10649_v18 = vcombine.high %v1929_v17, %v1933_v34  ;;  %v10648_v57 = vcombine.low %v1929_v17, %v1933_v34 }
 0x3a8   :  { %7835 = vmatpush2.bf16.msra.mxu0 %v10432_v25  ;;  %v2061_v25 = vld [vmem:[#allocation12 + $0x1d28] sm:$0xff] }
 0x3a9   :  { %7876 = vmatpush2.bf16.msra.mxu1 %v10560_v12  ;;  %7836 = vmatprep.subr.bf16.mxu0 %v10425_v8  ;;  %v10777_v33 = vcombine.high %v2057_v24, %v2061_v25  ;;  %v10776_v38 = vcombine.low %v2057_v24, %v2061_v25  ;;  %v1913_v42 = vld [vmem:[#allocation12 + $0x1888] sm:$0xff] }
 0x3aa   :  { %7877 = vmatprep.subr.bf16.mxu1 %v10553_v47  ;;  %v10656_v47 = vcombine.low %v1937_v46, %v1941_v36  ;;  %v2045_v46 = vld [vmem:[#allocation12 + $0x1ca8] sm:$0xff] }
 0x3ab   :  { %v2025_v17 = vld [vmem:[#allocation12 + $0x1c08] sm:$0xff] }
 0x3ac   :  { %7837 = vmatpush2.bf16.msra.mxu0 %v10424_v22  ;;  %v1921_v22 = vld [vmem:[#allocation12 + $0x18c8] sm:$0xff] }
 0x3ad   :  { %7878 = vmatpush2.bf16.msra.mxu1 %v10552_v13  ;;  %7888 = vmatprep.subr.bf16.mxu0 %v10673_v16  ;;  %v1925_v13 = vld [vmem:[#allocation12 + $0x18e8] sm:$0xff] }
 0x3ae   :  { %7929 = vmatprep.subr.bf16.mxu1 %v10801_v56  ;;  %v2049_v16 = vld [vmem:[#allocation12 + $0x1cc8] sm:$0xff]  ;;  %v10640_v36 = vcombine.low %v1921_v22, %v1925_v13 }
 0x3af   :  { %v7594_v3 = vpop.f32.mrf.mxu0  ;;  %7839 = vmatmul.mubr.bf16.vlgmr.msra.gmra.mxu0 %v11975_v6  ;;  %v2053_v56 = vld [vmem:[#allocation12 + $0x1ce8] sm:$0xff] }
 0x3b0   :  { %v7595_v15 = vadd.f32 %v7594_v3, %v12025_v50  ;;  %v7635_v2 = vpop.f32.mrf.mxu1  ;;  %7880 = vmatmul.mubr.bf16.vlgmr.msra.gmra.mxu1 %v11979_v26  ;;  %7889 = vmatpush1.bf16.msra.mxu0 %v10672_v39  ;;  %v10785_v50 = vcombine.high %v2065_v10, %v2069_v60  ;;  %v10641_v39 = vcombine.high %v1921_v22, %v1925_v13  ;;  %v1905_v60 = vld [vmem:[#allocation12 + $0x1848] sm:$0xff] }
 0x3b1   :  { %7920 = vmatprep.mubr.bf16.mxu0 %v11984_v43  ;;  %7930 = vmatpush1.bf16.msra.mxu1 %v10800_v44  ;;  %v7596_v0 = vpop.f32.mrf.mxu0  ;;  %v10769_v40 = vcombine.high %v2049_v16, %v2053_v56  ;;  %v1917_v44 = vld [vmem:[#allocation12 + $0x18a8] sm:$0xff]  ;;  %v10768_v3 = vcombine.low %v2049_v16, %v2053_v56 }
 0x3b2   :  { %v12035_v32 = vadd.f32 %v7635_v2, %v7595_v15  ;;  %7961 = vmatprep.mubr.bf16.mxu1 %v11989_v41  ;;  %v7597_v5 = vadd.f32 %v7596_v0, %v12029_v37  ;;  %v7637_v61 = vpop.f32.mrf.mxu1  ;;  %7890 = vmatprep.subr.bf16.mxu0 %v10665_v45  ;;  %v2041_v45 = vld [vmem:[#allocation12 + $0x1c88] sm:$0xff]  ;;  %v10632_v0 = vcombine.low %v1913_v42, %v1917_v44 }
 0x3b3   :  { %v7598_v4 = vpop.f32.mrf.mxu0  ;;  %7931 = vmatprep.subr.bf16.mxu1 %v10793_v14  ;;  %v10633_v14 = vcombine.high %v1913_v42, %v1917_v44  ;;  %v10761_v10 = vcombine.high %v2041_v45, %v2045_v46  ;;  %v1909_v15 = vld [vmem:[#allocation12 + $0x1868] sm:$0xff] }
 0x3b4   :  { %v12039_v12 = vadd.f32 %v7637_v61, %v7597_v5  ;;  %v7639_v8 = vpop.f32.mrf.mxu1  ;;  %7891 = vmatpush1.bf16.msra.mxu0 %v10664_v53  ;;  %v2033_v2 = vld [vmem:[#allocation12 + $0x1c48] sm:$0xff]  ;;  %v10624_v4 = vcombine.low %v1905_v60, %v1909_v15 }
 0x3b5   :  { %7932 = vmatpush1.bf16.msra.mxu1 %v10792_v58  ;;  %v7599_v29 = vpop.f32.mrf.mxu0  ;;  %7892 = vmatprep.subr.bf16.mxu0 %v10657_v54  ;;  %v2037_v53 = vld [vmem:[#allocation12 + $0x1c68] sm:$0xff]  ;;  %v10760_v58 = vcombine.low %v2041_v45, %v2045_v46  ;;  %v10625_v54 = vcombine.high %v1905_v60, %v1909_v15 }
 0x3b6   :  { %v7640_v37 = vpop.f32.mrf.mxu1  ;;  %7933 = vmatprep.subr.bf16.mxu1 %v10785_v50  ;;  %v10753_v5 = vcombine.high %v2033_v2, %v2037_v53  ;;  %v1897_v61 = vld [vmem:[#allocation12 + $0x1808] sm:$0xff]  ;;  %v10752_v24 = vcombine.low %v2033_v2, %v2037_v53 }
 0x3b7   :  { %v1901_v50 = vld [vmem:[#allocation12 + $0x1828] sm:$0xff] }
 0x3b8   :  { %7893 = vmatpush1.bf16.msra.mxu0 %v10656_v47  ;;  %v2029_v34 = vld [vmem:[#allocation12 + $0x1c28] sm:$0xff]  ;;  %v10617_v25 = vcombine.high %v1897_v61, %v1901_v50  ;;  %v10616_v37 = vcombine.low %v1897_v61, %v1901_v50 }
 0x3b9   :  { %7934 = vmatpush1.bf16.msra.mxu1 %v10784_v23  ;;  %7894 = vmatprep.subr.bf16.mxu0 %v10649_v18  ;;  %v10745_v8 = vcombine.high %v2025_v17, %v2029_v34  ;;  %v2017_v47 = vld [vmem:[#allocation12 + $0x1bc8] sm:$0xff] }
 0x3ba   :  { %7935 = vmatprep.subr.bf16.mxu1 %v10777_v33  ;;  %v2021_v29 = vld [vmem:[#allocation12 + $0x1be8] sm:$0xff]  ;;  %v10744_v33 = vcombine.low %v2025_v17, %v2029_v34 }
 0x3bb   :  { %v2145_v23 = vld [vmem:[#allocation12 + $0x1fc8] sm:$0xff]  ;;  %v10737_v22 = vcombine.high %v2017_v47, %v2021_v29 }
 0x3bc   :  { %7895 = vmatpush1.bf16.msra.mxu0 %v10648_v57  ;;  %v2149_v18 = vld [vmem:[#allocation12 + $0x1fe8] sm:$0xff] }
 0x3bd   :  { %7936 = vmatpush1.bf16.msra.mxu1 %v10776_v38  ;;  %7896 = vmatprep.subr.bf16.mxu0 %v10641_v39  ;;  %v10865_v13 = vcombine.high %v2145_v23, %v2149_v18  ;;  %v2009_v16 = vld [vmem:[#allocation12 + $0x1b88] sm:$0xff]  ;;  %v10736_v39 = vcombine.low %v2017_v47, %v2021_v29 }
 0x3be   :  { %7937 = vmatprep.subr.bf16.mxu1 %v10769_v40  ;;  %v2013_v56 = vld [vmem:[#allocation12 + $0x1ba8] sm:$0xff]  ;;  %v10864_v40 = vcombine.low %v2145_v23, %v2149_v18 }
 0x3bf   :  { %v2137_v57 = vld [vmem:[#allocation12 + $0x1f88] sm:$0xff]  ;;  %v10729_v42 = vcombine.high %v2009_v16, %v2013_v56 }
 0x3c0   :  { %7897 = vmatpush1.bf16.msra.mxu0 %v10640_v36  ;;  %v2141_v38 = vld [vmem:[#allocation12 + $0x1fa8] sm:$0xff] }
 0x3c1   :  { %7938 = vmatpush1.bf16.msra.mxu1 %v10768_v3  ;;  %7898 = vmatprep.subr.bf16.mxu0 %v10633_v14  ;;  %v10857_v44 = vcombine.high %v2137_v57, %v2141_v38  ;;  %v2001_v45 = vld [vmem:[#allocation12 + $0x1b48] sm:$0xff]  ;;  %v10728_v14 = vcombine.low %v2009_v16, %v2013_v56 }
 0x3c2   :  { %7939 = vmatprep.subr.bf16.mxu1 %v10761_v10  ;;  %v2005_v46 = vld [vmem:[#allocation12 + $0x1b68] sm:$0xff]  ;;  %v10856_v10 = vcombine.low %v2137_v57, %v2141_v38 }
 0x3c3   :  { %v2129_v36 = vld [vmem:[#allocation12 + $0x1f48] sm:$0xff]  ;;  %v10721_v60 = vcombine.high %v2001_v45, %v2005_v46 }
 0x3c4   :  { %7899 = vmatpush1.bf16.msra.mxu0 %v10632_v0  ;;  %v2133_v3 = vld [vmem:[#allocation12 + $0x1f68] sm:$0xff] }
 0x3c5   :  { %7940 = vmatpush1.bf16.msra.mxu1 %v10760_v58  ;;  %7900 = vmatprep.subr.bf16.mxu0 %v10625_v54  ;;  %v10849_v15 = vcombine.high %v2129_v36, %v2133_v3  ;;  %v1993_v2 = vld [vmem:[#allocation12 + $0x1b08] sm:$0xff]  ;;  %v10720_v54 = vcombine.low %v2001_v45, %v2005_v46 }
 0x3c6   :  { %7941 = vmatprep.subr.bf16.mxu1 %v10753_v5  ;;  %v1997_v53 = vld [vmem:[#allocation12 + $0x1b28] sm:$0xff]  ;;  %v10848_v5 = vcombine.low %v2129_v36, %v2133_v3 }
 0x3c7   :  { %v2121_v0 = vld [vmem:[#allocation12 + $0x1f08] sm:$0xff]  ;;  %v10713_v61 = vcombine.high %v1993_v2, %v1997_v53 }
 0x3c8   :  { %7901 = vmatpush1.bf16.msra.mxu0 %v10624_v4  ;;  %v2125_v58 = vld [vmem:[#allocation12 + $0x1f28] sm:$0xff] }
 0x3c9   :  { %7942 = vmatpush1.bf16.msra.mxu1 %v10752_v24  ;;  %7902 = vmatprep.subr.bf16.mxu0 %v10617_v25  ;;  %v10841_v50 = vcombine.high %v2121_v0, %v2125_v58  ;;  %v1985_v17 = vld [vmem:[#allocation12 + $0x1ac8] sm:$0xff]  ;;  %v10712_v25 = vcombine.low %v1993_v2, %v1997_v53 }
 0x3ca   :  { %7943 = vmatprep.subr.bf16.mxu1 %v10745_v8  ;;  %v1989_v34 = vld [vmem:[#allocation12 + $0x1ae8] sm:$0xff]  ;;  %v10840_v8 = vcombine.low %v2121_v0, %v2125_v58  ;;  %v1186_v0 = vld [vmem:[#allocation12 + $0x1d0] sm:$0xff] }
 0x3cb   :  { %v2113_v4 = vld [vmem:[#allocation12 + $0x1ec8] sm:$0xff]  ;;  %v10705_v47 = vcombine.high %v1985_v17, %v1989_v34  ;;  %v1190_v58 = vld [vmem:[#allocation12 + $0x1f0] sm:$0xff] }
 0x3cc   :  { %7903 = vmatpush1.bf16.msra.mxu0 %v10616_v37  ;;  %v2117_v24 = vld [vmem:[#allocation12 + $0x1ee8] sm:$0xff] }
 0x3cd   :  { %7944 = vmatpush1.bf16.msra.mxu1 %v10744_v33  ;;  %7904 = vmatprep.subr.bf16.mxu0 %v10737_v22  ;;  %v10833_v29 = vcombine.high %v2113_v4, %v2117_v24  ;;  %v1977_v23 = vld [vmem:[#allocation12 + $0x1a88] sm:$0xff]  ;;  %v10704_v22 = vcombine.low %v1985_v17, %v1989_v34  ;;  %v9907_v17 = vcombine.high %v1186_v0, %v1190_v58 }
 0x3ce   :  { %7945 = vmatprep.subr.bf16.mxu1 %v10865_v13  ;;  %v1981_v18 = vld [vmem:[#allocation12 + $0x1aa8] sm:$0xff]  ;;  %v10832_v13 = vcombine.low %v2113_v4, %v2117_v24  ;;  %v1178_v4 = vld [vmem:[#allocation12 + $0x190] sm:$0xff] }
 0x3cf   :  { %v2105_v37 = vld [vmem:[#allocation12 + $0x1e88] sm:$0xff]  ;;  %v10697_v16 = vcombine.high %v1977_v23, %v1981_v18  ;;  %v1182_v24 = vld [vmem:[#allocation12 + $0x1b0] sm:$0xff] }
 0x3d0   :  { %7905 = vmatpush2.bf16.msra.mxu0 %v10736_v39  ;;  %v2109_v33 = vld [vmem:[#allocation12 + $0x1ea8] sm:$0xff] }
 0x3d1   :  { %7946 = vmatpush2.bf16.msra.mxu1 %v10864_v40  ;;  %7906 = vmatprep.subr.bf16.mxu0 %v10729_v42  ;;  %v10825_v56 = vcombine.high %v2105_v37, %v2109_v33  ;;  %v1969_v57 = vld [vmem:[#allocation12 + $0x1a48] sm:$0xff]  ;;  %v10696_v42 = vcombine.low %v1977_v23, %v1981_v18  ;;  %v1310_v23 = vld [vmem:[#allocation12 + $0x5b0] sm:$0xff] }
 0x3d2   :  { %7947 = vmatprep.subr.bf16.mxu1 %v10857_v44  ;;  %v1973_v38 = vld [vmem:[#allocation12 + $0x1a68] sm:$0xff]  ;;  %v10824_v44 = vcombine.low %v2105_v37, %v2109_v33  ;;  %v9899_v33 = vcombine.high %v1178_v4, %v1182_v24 }
 0x3d3   :  { %v2097_v39 = vld [vmem:[#allocation12 + $0x1e48] sm:$0xff]  ;;  %v10689_v45 = vcombine.high %v1969_v57, %v1973_v38 }
 0x3d4   :  { %7907 = vmatpush2.bf16.msra.mxu0 %v10728_v14  ;;  %v2101_v40 = vld [vmem:[#allocation12 + $0x1e68] sm:$0xff] }
 0x3d5   :  { %7948 = vmatpush2.bf16.msra.mxu1 %v10856_v10  ;;  %7908 = vmatprep.subr.bf16.mxu0 %v10721_v60  ;;  %v10817_v46 = vcombine.high %v2097_v39, %v2101_v40  ;;  %v1961_v36 = vld [vmem:[#allocation12 + $0x1a08] sm:$0xff]  ;;  %v10688_v60 = vcombine.low %v1969_v57, %v1973_v38  ;;  %v1298_v57 = vld [vmem:[#allocation12 + $0x550] sm:$0xff] }
 0x3d6   :  { %7949 = vmatprep.subr.bf16.mxu1 %v10849_v15  ;;  %v1965_v3 = vld [vmem:[#allocation12 + $0x1a28] sm:$0xff]  ;;  %v10816_v15 = vcombine.low %v2097_v39, %v2101_v40  ;;  %v1302_v38 = vld [vmem:[#allocation12 + $0x570] sm:$0xff] }
 0x3d7   :  { %v2089_v14 = vld [vmem:[#allocation12 + $0x1e08] sm:$0xff]  ;;  %v10681_v2 = vcombine.high %v1961_v36, %v1965_v3 }
 0x3d8   :  { %7909 = vmatpush2.bf16.msra.mxu0 %v10720_v54  ;;  %v2093_v10 = vld [vmem:[#allocation12 + $0x1e28] sm:$0xff]  ;;  %v1314_v54 = vld [vmem:[#allocation12 + $0x5d0] sm:$0xff] }
 0x3d9   :  { %7950 = vmatpush2.bf16.msra.mxu1 %v10848_v5  ;;  %7910 = vmatprep.subr.bf16.mxu0 %v10713_v61  ;;  %v10809_v53 = vcombine.high %v2089_v14, %v2093_v10  ;;  %v1318_v5 = vld [vmem:[#allocation12 + $0x5f0] sm:$0xff]  ;;  %v10680_v61 = vcombine.low %v1961_v36, %v1965_v3 }
 0x3da   :  { %7951 = vmatprep.subr.bf16.mxu1 %v10841_v50  ;;  %v10808_v50 = vcombine.low %v2089_v14, %v2093_v10  ;;  %v10035_v34 = vcombine.high %v1314_v54, %v1318_v5  ;;  %v10034_v18 = vcombine.low %v1314_v54, %v1318_v5  ;;  %v10019_v10 = vcombine.high %v1298_v57, %v1302_v38 }
 0x3dc   :  { %7911 = vmatpush2.bf16.msra.mxu0 %v10712_v25  ;;  %v11233_v25 = vld [vmem:[#allocation14] sm:$0xff] }
 0x3dd   :  { %7952 = vmatpush2.bf16.msra.mxu1 %v10840_v8  ;;  %7912 = vmatprep.subr.bf16.mxu0 %v10705_v47  ;;  %v2165_v8 = vrot.slane %v11233_v25, %v11670_v9  ;;  %v9906_v47 = vcombine.low %v1186_v0, %v1190_v58  ;;  %v2169_v37 = vrot.slane %v11233_v25, %v12239_v35  ;;  %v1294_v0 = vld [vmem:[#allocation12 + $0x530] sm:$0xff] }
 0x3de   :  { %7953 = vmatprep.subr.bf16.mxu1 %v10833_v29  ;;  %v1306_v29 = vld [vmem:[#allocation12 + $0x590] sm:$0xff] }
 0x3df   :  { %v1158_v25 = vld [vmem:[#allocation12 + $0xf0] sm:$0xff] }
 0x3e0   :  { %7913 = vmatpush2.bf16.msra.mxu0 %v10704_v22  ;;  %v1170_v22 = vld [vmem:[#allocation12 + $0x150] sm:$0xff] }
 0x3e1   :  { %7954 = vmatpush2.bf16.msra.mxu1 %v10832_v13  ;;  %7914 = vmatprep.subr.bf16.mxu0 %v10697_v16  ;;  %v1174_v13 = vld [vmem:[#allocation12 + $0x170] sm:$0xff] }
 0x3e2   :  { %7955 = vmatprep.subr.bf16.mxu1 %v10825_v56  ;;  %v10027_v56 = vcombine.high %v1306_v29, %v1310_v23  ;;  %v9890_v5 = vcombine.low %v1170_v22, %v1174_v13 }
 0x3e4   :  { %7915 = vmatpush2.bf16.msra.mxu0 %v10696_v42  ;;  %v9898_v42 = vcombine.low %v1178_v4, %v1182_v24  ;;  %v1154_v24 = vld [vmem:[#allocation12 + $0xd0] sm:$0xff] }
 0x3e5   :  { %7956 = vmatpush2.bf16.msra.mxu1 %v10824_v44  ;;  %7916 = vmatprep.subr.bf16.mxu0 %v10689_v45  ;;  %v10026_v45 = vcombine.low %v1306_v29, %v1310_v23 }
 0x3e6   :  { %7957 = vmatprep.subr.bf16.mxu1 %v10817_v46  ;;  %v9891_v46 = vcombine.high %v1170_v22, %v1174_v13  ;;  %v1150_v22 = vld [vmem:[#allocation12 + $0xb0] sm:$0xff] }
 0x3e7   :  { %v1274_v13 = vld [vmem:[#allocation12 + $0x490] sm:$0xff] }
 0x3e8   :  { %7917 = vmatpush2.bf16.msra.mxu0 %v10688_v60  ;;  %v1162_v60 = vld [vmem:[#allocation12 + $0x110] sm:$0xff] }
 0x3e9   :  { %7958 = vmatpush2.bf16.msra.mxu1 %v10816_v15  ;;  %7918 = vmatprep.subr.bf16.mxu0 %v10681_v2  ;;  %v1166_v15 = vld [vmem:[#allocation12 + $0x130] sm:$0xff] }
 0x3ea   :  { %7959 = vmatprep.subr.bf16.mxu1 %v10809_v53  ;;  %v1290_v53 = vld [vmem:[#allocation12 + $0x510] sm:$0xff]  ;;  %v9882_v29 = vcombine.low %v1162_v60, %v1166_v15 }
 0x3eb   :  { %v10011_v4 = vcombine.high %v1290_v53, %v1294_v0  ;;  %v10010_v23 = vcombine.low %v1290_v53, %v1294_v0  ;;  %v1262_v53 = vld [vmem:[#allocation12 + $0x430] sm:$0xff] }
 0x3ec   :  { %7919 = vmatpush2.bf16.msra.mxu0 %v10680_v61 }
 0x3ed   :  { %7960 = vmatpush2.bf16.msra.mxu1 %v10808_v50  ;;  %7970 = vmatprep.subr.bf16.mxu0 %v9907_v17  ;;  %v10018_v50 = vcombine.low %v1298_v57, %v1302_v38  ;;  %v9883_v17 = vcombine.high %v1162_v60, %v1166_v15  ;;  %v1130_v60 = vld [vmem:[#allocation12 + $0x10] sm:$0xff] }
 0x3ee   :  { %8011 = vmatprep.subr.bf16.mxu1 %v10035_v34  ;;  %v1134_v15 = vld [vmem:[#allocation12 + $0x30] sm:$0xff] }
 0x3ef   :  { %v7676_v16 = vpop.f32.mrf.mxu0  ;;  %7921 = vmatmul.mubr.bf16.vlgmr.msra.gmra.mxu0 %v11996_v63 }
 0x3f0   :  { %v7677_v39 = vadd.f32 %v7676_v16, %v2165_v8  ;;  %v7717_v40 = vpop.f32.mrf.mxu1  ;;  %7962 = vmatmul.mubr.bf16.vlgmr.msra.gmra.mxu1 %v12000_v1  ;;  %7971 = vmatpush1.bf16.msra.mxu0 %v9906_v47  ;;  %v1282_v8 = vld [vmem:[#allocation12 + $0x4d0] sm:$0xff] }
 0x3f1   :  { %8002 = vmatprep.mubr.bf16.mxu0 %v11860_v48  ;;  %8012 = vmatpush1.bf16.msra.mxu1 %v10034_v18  ;;  %v7678_v44 = vpop.f32.mrf.mxu0  ;;  %v1286_v47 = vld [vmem:[#allocation12 + $0x4f0] sm:$0xff]  ;;  %v9875_v18 = vcombine.high %v1154_v24, %v1158_v25 }
 0x3f2   :  { %v12046_v36 = vadd.f32 %v7717_v40, %v7677_v39  ;;  %8043 = vmatprep.mubr.bf16.mxu1 %v11862_v49  ;;  %v7679_v3 = vadd.f32 %v7678_v44, %v2169_v37  ;;  %v7719_v14 = vpop.f32.mrf.mxu1  ;;  %7972 = vmatprep.subr.bf16.mxu0 %v9899_v33  ;;  %v10003_v37 = vcombine.high %v1282_v8, %v1286_v47  ;;  %v1146_v33 = vld [vmem:[#allocation12 + $0x90] sm:$0xff] }
 0x3f3   :  { %v7680_v2 = vpop.f32.mrf.mxu0  ;;  %8013 = vmatprep.subr.bf16.mxu1 %v10027_v56  ;;  %v1278_v16 = vld [vmem:[#allocation12 + $0x4b0] sm:$0xff]  ;;  %v9874_v56 = vcombine.low %v1154_v24, %v1158_v25  ;;  %v10002_v57 = vcombine.low %v1282_v8, %v1286_v47  ;;  %v9867_v38 = vcombine.high %v1146_v33, %v1150_v22  ;;  %v9850_v24 = vcombine.low %v1130_v60, %v1134_v15 }
 0x3f4   :  { %v12049_v58 = vadd.f32 %v7719_v14, %v7679_v3  ;;  %v7721_v54 = vpop.f32.mrf.mxu1  ;;  %7973 = vmatpush1.bf16.msra.mxu0 %v9898_v42  ;;  %v9995_v39 = vcombine.high %v1274_v13, %v1278_v16  ;;  %v1138_v40 = vld [vmem:[#allocation12 + $0x50] sm:$0xff]  ;;  %v9994_v3 = vcombine.low %v1274_v13, %v1278_v16 }
 0x3f5   :  { %8014 = vmatpush1.bf16.msra.mxu1 %v10026_v45  ;;  %v7681_v61 = vpop.f32.mrf.mxu0  ;;  %7974 = vmatprep.subr.bf16.mxu0 %v9891_v46  ;;  %v1142_v42 = vld [vmem:[#allocation12 + $0x70] sm:$0xff]  ;;  %v9866_v46 = vcombine.low %v1146_v33, %v1150_v22 }
 0x3f6   :  { %v7722_v34 = vpop.f32.mrf.mxu1  ;;  %8015 = vmatprep.subr.bf16.mxu1 %v10019_v10  ;;  %v1266_v44 = vld [vmem:[#allocation12 + $0x450] sm:$0xff]  ;;  %v9859_v14 = vcombine.high %v1138_v40, %v1142_v42  ;;  %v9858_v0 = vcombine.low %v1138_v40, %v1142_v42 }
 0x3f7   :  { %v1270_v45 = vld [vmem:[#allocation12 + $0x470] sm:$0xff] }
 0x3f8   :  { %7975 = vmatpush1.bf16.msra.mxu0 %v9890_v5  ;;  %v9987_v10 = vcombine.high %v1266_v44, %v1270_v45  ;;  %v1258_v2 = vld [vmem:[#allocation12 + $0x410] sm:$0xff]  ;;  %v9986_v54 = vcombine.low %v1266_v44, %v1270_v45  ;;  %v9851_v5 = vcombine.high %v1130_v60, %v1134_v15 }
 0x3f9   :  { %8016 = vmatpush1.bf16.msra.mxu1 %v10018_v50  ;;  %7976 = vmatprep.subr.bf16.mxu0 %v9883_v17  ;;  %v9979_v61 = vcombine.high %v1258_v2, %v1262_v53  ;;  %v1250_v50 = vld [vmem:[#allocation12 + $0x3d0] sm:$0xff]  ;;  %v9978_v25 = vcombine.low %v1258_v2, %v1262_v53 }
 0x3fa   :  { %8017 = vmatprep.subr.bf16.mxu1 %v10011_v4  ;;  %v1254_v17 = vld [vmem:[#allocation12 + $0x3f0] sm:$0xff] }
 0x3fb   :  { %v1378_v34 = vld [vmem:[#allocation12 + $0x7d0] sm:$0xff]  ;;  %v9971_v8 = vcombine.high %v1250_v50, %v1254_v17  ;;  %v9970_v33 = vcombine.low %v1250_v50, %v1254_v17 }
 0x3fc   :  { %7977 = vmatpush1.bf16.msra.mxu0 %v9882_v29  ;;  %v1382_v4 = vld [vmem:[#allocation12 + $0x7f0] sm:$0xff] }
 0x3fd   :  { %8018 = vmatpush1.bf16.msra.mxu1 %v10010_v23  ;;  %7978 = vmatprep.subr.bf16.mxu0 %v9875_v18  ;;  %v10099_v47 = vcombine.high %v1378_v34, %v1382_v4  ;;  %v1242_v29 = vld [vmem:[#allocation12 + $0x390] sm:$0xff]  ;;  %v10098_v22 = vcombine.low %v1378_v34, %v1382_v4 }
 0x3fe   :  { %8019 = vmatprep.subr.bf16.mxu1 %v10003_v37  ;;  %v1246_v23 = vld [vmem:[#allocation12 + $0x3b0] sm:$0xff] }
 0x3ff   :  { %v1370_v18 = vld [vmem:[#allocation12 + $0x790] sm:$0xff]  ;;  %v9963_v13 = vcombine.high %v1242_v29, %v1246_v23  ;;  %v9962_v40 = vcombine.low %v1242_v29, %v1246_v23 }
 0x400   :  { %7979 = vmatpush1.bf16.msra.mxu0 %v9874_v56  ;;  %v1374_v37 = vld [vmem:[#allocation12 + $0x7b0] sm:$0xff] }
 0x401   :  { %8020 = vmatpush1.bf16.msra.mxu1 %v10002_v57  ;;  %7980 = vmatprep.subr.bf16.mxu0 %v9867_v38  ;;  %v10091_v16 = vcombine.high %v1370_v18, %v1374_v37  ;;  %v1234_v56 = vld [vmem:[#allocation12 + $0x350] sm:$0xff]  ;;  %v10090_v42 = vcombine.low %v1370_v18, %v1374_v37 }
 0x402   :  { %8021 = vmatprep.subr.bf16.mxu1 %v9995_v39  ;;  %v1238_v57 = vld [vmem:[#allocation12 + $0x370] sm:$0xff] }
 0x403   :  { %v1362_v38 = vld [vmem:[#allocation12 + $0x750] sm:$0xff]  ;;  %v9955_v44 = vcombine.high %v1234_v56, %v1238_v57  ;;  %v9954_v60 = vcombine.low %v1234_v56, %v1238_v57 }
 0x404   :  { %7981 = vmatpush1.bf16.msra.mxu0 %v9866_v46  ;;  %v1366_v39 = vld [vmem:[#allocation12 + $0x770] sm:$0xff] }
 0x405   :  { %8022 = vmatpush1.bf16.msra.mxu1 %v9994_v3  ;;  %7982 = vmatprep.subr.bf16.mxu0 %v9859_v14  ;;  %v10083_v45 = vcombine.high %v1362_v38, %v1366_v39  ;;  %v1226_v46 = vld [vmem:[#allocation12 + $0x310] sm:$0xff]  ;;  %v10082_v15 = vcombine.low %v1362_v38, %v1366_v39 }
 0x406   :  { %8023 = vmatprep.subr.bf16.mxu1 %v9987_v10  ;;  %v1230_v3 = vld [vmem:[#allocation12 + $0x330] sm:$0xff] }
 0x407   :  { %v1354_v14 = vld [vmem:[#allocation12 + $0x710] sm:$0xff]  ;;  %v9947_v2 = vcombine.high %v1226_v46, %v1230_v3  ;;  %v9946_v50 = vcombine.low %v1226_v46, %v1230_v3 }
 0x408   :  { %7983 = vmatpush1.bf16.msra.mxu0 %v9858_v0  ;;  %v1358_v10 = vld [vmem:[#allocation12 + $0x730] sm:$0xff] }
 0x409   :  { %8024 = vmatpush1.bf16.msra.mxu1 %v9986_v54  ;;  %7984 = vmatprep.subr.bf16.mxu0 %v9851_v5  ;;  %v10075_v53 = vcombine.high %v1354_v14, %v1358_v10  ;;  %v1218_v0 = vld [vmem:[#allocation12 + $0x2d0] sm:$0xff]  ;;  %v10074_v17 = vcombine.low %v1354_v14, %v1358_v10 }
 0x40a   :  { %8025 = vmatprep.subr.bf16.mxu1 %v9979_v61  ;;  %v1222_v54 = vld [vmem:[#allocation12 + $0x2f0] sm:$0xff] }
 0x40b   :  { %v1346_v5 = vld [vmem:[#allocation12 + $0x6d0] sm:$0xff]  ;;  %v9939_v34 = vcombine.high %v1218_v0, %v1222_v54  ;;  %v9938_v29 = vcombine.low %v1218_v0, %v1222_v54 }
 0x40c   :  { %7985 = vmatpush1.bf16.msra.mxu0 %v9850_v24  ;;  %v1350_v61 = vld [vmem:[#allocation12 + $0x6f0] sm:$0xff] }
 0x40d   :  { %8026 = vmatpush1.bf16.msra.mxu1 %v9978_v25  ;;  %7986 = vmatprep.subr.bf16.mxu0 %v9971_v8  ;;  %v10067_v4 = vcombine.high %v1346_v5, %v1350_v61  ;;  %v1210_v24 = vld [vmem:[#allocation12 + $0x290] sm:$0xff]  ;;  %v10066_v23 = vcombine.low %v1346_v5, %v1350_v61 }
 0x40e   :  { %8027 = vmatprep.subr.bf16.mxu1 %v10099_v47  ;;  %v1214_v25 = vld [vmem:[#allocation12 + $0x2b0] sm:$0xff] }
 0x40f   :  { %v1338_v8 = vld [vmem:[#allocation12 + $0x690] sm:$0xff]  ;;  %v9931_v18 = vcombine.high %v1210_v24, %v1214_v25  ;;  %v9930_v56 = vcombine.low %v1210_v24, %v1214_v25 }
 0x410   :  { %7987 = vmatpush2.bf16.msra.mxu0 %v9970_v33  ;;  %v1342_v47 = vld [vmem:[#allocation12 + $0x6b0] sm:$0xff] }
 0x411   :  { %8028 = vmatpush2.bf16.msra.mxu1 %v10098_v22  ;;  %7988 = vmatprep.subr.bf16.mxu0 %v9963_v13  ;;  %v10059_v37 = vcombine.high %v1338_v8, %v1342_v47  ;;  %v1202_v33 = vld [vmem:[#allocation12 + $0x250] sm:$0xff]  ;;  %v10058_v57 = vcombine.low %v1338_v8, %v1342_v47 }
 0x412   :  { %8029 = vmatprep.subr.bf16.mxu1 %v10091_v16  ;;  %v1206_v22 = vld [vmem:[#allocation12 + $0x270] sm:$0xff] }
 0x413   :  { %v1330_v13 = vld [vmem:[#allocation12 + $0x650] sm:$0xff]  ;;  %v9923_v38 = vcombine.high %v1202_v33, %v1206_v22  ;;  %v9922_v46 = vcombine.low %v1202_v33, %v1206_v22 }
 0x414   :  { %7989 = vmatpush2.bf16.msra.mxu0 %v9962_v40  ;;  %v1334_v16 = vld [vmem:[#allocation12 + $0x670] sm:$0xff] }
 0x415   :  { %8030 = vmatpush2.bf16.msra.mxu1 %v10090_v42  ;;  %7990 = vmatprep.subr.bf16.mxu0 %v9955_v44  ;;  %v10051_v39 = vcombine.high %v1330_v13, %v1334_v16  ;;  %v1194_v40 = vld [vmem:[#allocation12 + $0x210] sm:$0xff]  ;;  %v10050_v3 = vcombine.low %v1330_v13, %v1334_v16 }
 0x416   :  { %8031 = vmatprep.subr.bf16.mxu1 %v10083_v45  ;;  %v1198_v42 = vld [vmem:[#allocation12 + $0x230] sm:$0xff] }
 0x417   :  { %v1322_v44 = vld [vmem:[#allocation12 + $0x610] sm:$0xff]  ;;  %v9915_v14 = vcombine.high %v1194_v40, %v1198_v42  ;;  %v9914_v0 = vcombine.low %v1194_v40, %v1198_v42 }
 0x418   :  { %7991 = vmatpush2.bf16.msra.mxu0 %v9954_v60  ;;  %v1326_v45 = vld [vmem:[#allocation12 + $0x630] sm:$0xff] }
 0x419   :  { %8032 = vmatpush2.bf16.msra.mxu1 %v10082_v15  ;;  %7992 = vmatprep.subr.bf16.mxu0 %v9947_v2  ;;  %v10043_v10 = vcombine.high %v1322_v44, %v1326_v45  ;;  %v1442_v60 = vld [vmem:[#allocation12 + $0x9d0] sm:$0xff]  ;;  %v10042_v54 = vcombine.low %v1322_v44, %v1326_v45 }
 0x41a   :  { %8033 = vmatprep.subr.bf16.mxu1 %v10075_v53  ;;  %v1446_v15 = vld [vmem:[#allocation12 + $0x9f0] sm:$0xff] }
 0x41b   :  { %v1570_v2 = vld [vmem:[#allocation12 + $0xdd0] sm:$0xff]  ;;  %v10163_v5 = vcombine.high %v1442_v60, %v1446_v15 }
 0x41c   :  { %7993 = vmatpush2.bf16.msra.mxu0 %v9946_v50  ;;  %v1574_v53 = vld [vmem:[#allocation12 + $0xdf0] sm:$0xff] }
 0x41d   :  { %8034 = vmatpush2.bf16.msra.mxu1 %v10074_v17  ;;  %7994 = vmatprep.subr.bf16.mxu0 %v9939_v34  ;;  %v10291_v61 = vcombine.high %v1570_v2, %v1574_v53  ;;  %v1434_v50 = vld [vmem:[#allocation12 + $0x990] sm:$0xff]  ;;  %v10162_v34 = vcombine.low %v1442_v60, %v1446_v15  ;;  %v10290_v25 = vcombine.low %v1570_v2, %v1574_v53 }
 0x41e   :  { %8035 = vmatprep.subr.bf16.mxu1 %v10067_v4  ;;  %v1438_v17 = vld [vmem:[#allocation12 + $0x9b0] sm:$0xff] }
 0x41f   :  { %v1562_v4 = vld [vmem:[#allocation12 + $0xd90] sm:$0xff]  ;;  %v10155_v8 = vcombine.high %v1434_v50, %v1438_v17  ;;  %v10154_v16 = vcombine.low %v1434_v50, %v1438_v17 }
 0x420   :  { %7995 = vmatpush2.bf16.msra.mxu0 %v9938_v29  ;;  %v1566_v24 = vld [vmem:[#allocation12 + $0xdb0] sm:$0xff] }
 0x421   :  { %8036 = vmatpush2.bf16.msra.mxu1 %v10066_v23  ;;  %7996 = vmatprep.subr.bf16.mxu0 %v9931_v18  ;;  %v1426_v47 = vld [vmem:[#allocation12 + $0x950] sm:$0xff]  ;;  %v10283_v18 = vcombine.high %v1562_v4, %v1566_v24 }
 0x422   :  { %8037 = vmatprep.subr.bf16.mxu1 %v10059_v37  ;;  %v1430_v29 = vld [vmem:[#allocation12 + $0x970] sm:$0xff] }
 0x423   :  { %v1554_v37 = vld [vmem:[#allocation12 + $0xd50] sm:$0xff]  ;;  %v10146_v15 = vcombine.low %v1426_v47, %v1430_v29 }
 0x424   :  { %7997 = vmatpush2.bf16.msra.mxu0 %v9930_v56  ;;  %v1558_v33 = vld [vmem:[#allocation12 + $0xd70] sm:$0xff] }
 0x425   :  { %8038 = vmatpush2.bf16.msra.mxu1 %v10058_v57  ;;  %7998 = vmatprep.subr.bf16.mxu0 %v9923_v38  ;;  %v10282_v57 = vcombine.low %v1562_v4, %v1566_v24  ;;  %v10147_v38 = vcombine.high %v1426_v47, %v1430_v29  ;;  %v1418_v44 = vld [vmem:[#allocation12 + $0x910] sm:$0xff]  ;;  %v10274_v53 = vcombine.low %v1554_v37, %v1558_v33 }
 0x426   :  { %8039 = vmatprep.subr.bf16.mxu1 %v10051_v39  ;;  %v1422_v45 = vld [vmem:[#allocation12 + $0x930] sm:$0xff] }
 0x427   :  { %v1538_v50 = vld [vmem:[#allocation12 + $0xcd0] sm:$0xff] }
 0x428   :  { %7999 = vmatpush2.bf16.msra.mxu0 %v9922_v46  ;;  %v1542_v17 = vld [vmem:[#allocation12 + $0xcf0] sm:$0xff] }
 0x429   :  { %8040 = vmatpush2.bf16.msra.mxu1 %v10050_v3  ;;  %8000 = vmatprep.subr.bf16.mxu0 %v9915_v14  ;;  %v1546_v3 = vld [vmem:[#allocation12 + $0xd10] sm:$0xff] }
 0x42a   :  { %8041 = vmatprep.subr.bf16.mxu1 %v10043_v10  ;;  %v1550_v14 = vld [vmem:[#allocation12 + $0xd30] sm:$0xff] }
 0x42b   :  { %v10266_v4 = vcombine.low %v1546_v3, %v1550_v14  ;;  %v1406_v47 = vld [vmem:[#allocation12 + $0x8b0] sm:$0xff] }
 0x42c   :  { %8001 = vmatpush2.bf16.msra.mxu0 %v9914_v0  ;;  %v10139_v0 = vcombine.high %v1418_v44, %v1422_v45  ;;  %v1530_v29 = vld [vmem:[#allocation12 + $0xc90] sm:$0xff] }
 0x42d   :  { %8042 = vmatpush2.bf16.msra.mxu1 %v10042_v54  ;;  %8052 = vmatprep.subr.bf16.mxu0 %v10163_v5  ;;  %v10267_v54 = vcombine.high %v1546_v3, %v1550_v14  ;;  %v1410_v5 = vld [vmem:[#allocation12 + $0x8d0] sm:$0xff] }
 0x42e   :  { %8093 = vmatprep.subr.bf16.mxu1 %v10291_v61  ;;  %v1414_v61 = vld [vmem:[#allocation12 + $0x8f0] sm:$0xff] }
 0x42f   :  { %v7758_v23 = vpop.f32.mrf.mxu0  ;;  %8003 = vmatmul.mubr.bf16.vlgmr.msra.gmra.mxu0 %v11864_v51  ;;  %v10131_v24 = vcombine.high %v1410_v5, %v1414_v61  ;;  %v1518_v3 = vld [vmem:[#allocation12 + $0xc30] sm:$0xff] }
 0x430   :  { %v7759_v22 = vadd.f32 %v7758_v23, %v12046_v36  ;;  %v7799_v13 = vpop.f32.mrf.mxu1  ;;  %8044 = vmatmul.mubr.bf16.vlgmr.msra.gmra.mxu1 %v11866_v52  ;;  %8053 = vmatpush1.bf16.msra.mxu0 %v10162_v34  ;;  %v10275_v36 = vcombine.high %v1554_v37, %v1558_v33  ;;  %v10138_v34 = vcombine.low %v1418_v44, %v1422_v45  ;;  %v1534_v23 = vld [vmem:[#allocation12 + $0xcb0] sm:$0xff] }
 0x431   :  { %8084 = vmatprep.mubr.bf16.mxu0 %v11880_v28  ;;  %8094 = vmatpush1.bf16.msra.mxu1 %v10290_v25  ;;  %v7760_v56 = vpop.f32.mrf.mxu0  ;;  %v10259_v25 = vcombine.high %v1538_v50, %v1542_v17  ;;  %v10258_v37 = vcombine.low %v1538_v50, %v1542_v17  ;;  %v1386_v44 = vld [vmem:[#allocation12 + $0x810] sm:$0xff] }
 0x432   :  { %v12055_v39 = vadd.f32 %v7799_v13, %v7759_v22  ;;  %8125 = vmatprep.mubr.bf16.mxu1 %v11882_v7  ;;  %v7761_v40 = vadd.f32 %v7760_v56, %v12049_v58  ;;  %v7801_v42 = vpop.f32.mrf.mxu1  ;;  %8054 = vmatprep.subr.bf16.mxu0 %v10155_v8  ;;  %v1402_v8 = vld [vmem:[#allocation12 + $0x890] sm:$0xff]  ;;  %v10251_v22 = vcombine.high %v1530_v29, %v1534_v23 }
 0x433   :  { %v7762_v46 = vpop.f32.mrf.mxu0  ;;  %8095 = vmatprep.subr.bf16.mxu1 %v10283_v18  ;;  %v10130_v18 = vcombine.low %v1410_v5, %v1414_v61  ;;  %v10123_v33 = vcombine.high %v1402_v8, %v1406_v47  ;;  %v1394_v13 = vld [vmem:[#allocation12 + $0x850] sm:$0xff] }
 0x434   :  { %v12059_v10 = vadd.f32 %v7801_v42, %v7761_v40  ;;  %v7803_v60 = vpop.f32.mrf.mxu1  ;;  %8055 = vmatpush1.bf16.msra.mxu0 %v10154_v16  ;;  %v1398_v16 = vld [vmem:[#allocation12 + $0x870] sm:$0xff]  ;;  %v10250_v40 = vcombine.low %v1530_v29, %v1534_v23 }
 0x435   :  { %8096 = vmatpush1.bf16.msra.mxu1 %v10282_v57  ;;  %v7763_v2 = vpop.f32.mrf.mxu0  ;;  %8056 = vmatprep.subr.bf16.mxu0 %v10147_v38  ;;  %v1522_v56 = vld [vmem:[#allocation12 + $0xc50] sm:$0xff]  ;;  %v10122_v38 = vcombine.low %v1402_v8, %v1406_v47  ;;  %v10115_v42 = vcombine.high %v1394_v13, %v1398_v16  ;;  %v10114_v14 = vcombine.low %v1394_v13, %v1398_v16 }
 0x436   :  { %v7804_v58 = vpop.f32.mrf.mxu1  ;;  %8097 = vmatprep.subr.bf16.mxu1 %v10275_v36  ;;  %v1526_v57 = vld [vmem:[#allocation12 + $0xc70] sm:$0xff] }
 0x437   :  { %v10243_v36 = vcombine.high %v1522_v56, %v1526_v57  ;;  %v1390_v45 = vld [vmem:[#allocation12 + $0x830] sm:$0xff]  ;;  %v10242_v60 = vcombine.low %v1522_v56, %v1526_v57 }
 0x438   :  { %8057 = vmatpush1.bf16.msra.mxu0 %v10146_v15  ;;  %v1514_v46 = vld [vmem:[#allocation12 + $0xc10] sm:$0xff]  ;;  %v10107_v15 = vcombine.high %v1386_v44, %v1390_v45  ;;  %v10106_v5 = vcombine.low %v1386_v44, %v1390_v45 }
 0x439   :  { %8098 = vmatpush1.bf16.msra.mxu1 %v10274_v53  ;;  %8058 = vmatprep.subr.bf16.mxu0 %v10139_v0  ;;  %v10235_v2 = vcombine.high %v1514_v46, %v1518_v3  ;;  %v1506_v53 = vld [vmem:[#allocation12 + $0xbd0] sm:$0xff]  ;;  %v10234_v61 = vcombine.low %v1514_v46, %v1518_v3 }
 0x43a   :  { %8099 = vmatprep.subr.bf16.mxu1 %v10267_v54  ;;  %v1510_v0 = vld [vmem:[#allocation12 + $0xbf0] sm:$0xff] }
 0x43b   :  { %v1634_v58 = vld [vmem:[#allocation12 + $0xfd0] sm:$0xff]  ;;  %v10227_v50 = vcombine.high %v1506_v53, %v1510_v0  ;;  %v10226_v8 = vcombine.low %v1506_v53, %v1510_v0 }
 0x43c   :  { %8059 = vmatpush1.bf16.msra.mxu0 %v10138_v34  ;;  %v1638_v54 = vld [vmem:[#allocation12 + $0xff0] sm:$0xff] }
 0x43d   :  { %8100 = vmatpush1.bf16.msra.mxu1 %v10266_v4  ;;  %8060 = vmatprep.subr.bf16.mxu0 %v10131_v24  ;;  %v10355_v17 = vcombine.high %v1634_v58, %v1638_v54  ;;  %v1498_v34 = vld [vmem:[#allocation12 + $0xb90] sm:$0xff]  ;;  %v10354_v47 = vcombine.low %v1634_v58, %v1638_v54 }
 0x43e   :  { %8101 = vmatprep.subr.bf16.mxu1 %v10259_v25  ;;  %v1502_v4 = vld [vmem:[#allocation12 + $0xbb0] sm:$0xff] }
 0x43f   :  { %v1626_v24 = vld [vmem:[#allocation12 + $0xf90] sm:$0xff]  ;;  %v10219_v29 = vcombine.high %v1498_v34, %v1502_v4  ;;  %v10218_v13 = vcombine.low %v1498_v34, %v1502_v4 }
 0x440   :  { %8061 = vmatpush1.bf16.msra.mxu0 %v10130_v18  ;;  %v1630_v25 = vld [vmem:[#allocation12 + $0xfb0] sm:$0xff] }
 0x441   :  { %8102 = vmatpush1.bf16.msra.mxu1 %v10258_v37  ;;  %8062 = vmatprep.subr.bf16.mxu0 %v10123_v33  ;;  %v10347_v23 = vcombine.high %v1626_v24, %v1630_v25  ;;  %v1490_v18 = vld [vmem:[#allocation12 + $0xb50] sm:$0xff]  ;;  %v10346_v16 = vcombine.low %v1626_v24, %v1630_v25 }
 0x442   :  { %8103 = vmatprep.subr.bf16.mxu1 %v10251_v22  ;;  %v1494_v37 = vld [vmem:[#allocation12 + $0xb70] sm:$0xff] }
 0x443   :  { %v1618_v33 = vld [vmem:[#allocation12 + $0xf50] sm:$0xff]  ;;  %v10211_v56 = vcombine.high %v1490_v18, %v1494_v37  ;;  %v10210_v44 = vcombine.low %v1490_v18, %v1494_v37 }
 0x444   :  { %8063 = vmatpush1.bf16.msra.mxu0 %v10122_v38  ;;  %v1622_v22 = vld [vmem:[#allocation12 + $0xf70] sm:$0xff] }
 0x445   :  { %8104 = vmatpush1.bf16.msra.mxu1 %v10250_v40  ;;  %8064 = vmatprep.subr.bf16.mxu0 %v10115_v42  ;;  %v10339_v57 = vcombine.high %v1618_v33, %v1622_v22  ;;  %v1482_v38 = vld [vmem:[#allocation12 + $0xb10] sm:$0xff]  ;;  %v10338_v45 = vcombine.low %v1618_v33, %v1622_v22 }
 0x446   :  { %8105 = vmatprep.subr.bf16.mxu1 %v10243_v36  ;;  %v1486_v40 = vld [vmem:[#allocation12 + $0xb30] sm:$0xff] }
 0x447   :  { %v1610_v42 = vld [vmem:[#allocation12 + $0xf10] sm:$0xff]  ;;  %v10203_v46 = vcombine.high %v1482_v38, %v1486_v40  ;;  %v10202_v53 = vcombine.low %v1482_v38, %v1486_v40 }
 0x448   :  { %8065 = vmatpush1.bf16.msra.mxu0 %v10114_v14  ;;  %v1614_v36 = vld [vmem:[#allocation12 + $0xf30] sm:$0xff] }
 0x449   :  { %8106 = vmatpush1.bf16.msra.mxu1 %v10242_v60  ;;  %8066 = vmatprep.subr.bf16.mxu0 %v10107_v15  ;;  %v10331_v3 = vcombine.high %v1610_v42, %v1614_v36  ;;  %v1474_v14 = vld [vmem:[#allocation12 + $0xad0] sm:$0xff]  ;;  %v10330_v0 = vcombine.low %v1610_v42, %v1614_v36 }
 0x44a   :  { %8107 = vmatprep.subr.bf16.mxu1 %v10235_v2  ;;  %v1478_v60 = vld [vmem:[#allocation12 + $0xaf0] sm:$0xff] }
 0x44b   :  { %v1602_v15 = vld [vmem:[#allocation12 + $0xed0] sm:$0xff]  ;;  %v10195_v58 = vcombine.high %v1474_v14, %v1478_v60  ;;  %v10194_v34 = vcombine.low %v1474_v14, %v1478_v60 }
 0x44c   :  { %8067 = vmatpush1.bf16.msra.mxu0 %v10106_v5  ;;  %v1606_v2 = vld [vmem:[#allocation12 + $0xef0] sm:$0xff] }
 0x44d   :  { %8108 = vmatpush1.bf16.msra.mxu1 %v10234_v61  ;;  %8068 = vmatprep.subr.bf16.mxu0 %v10227_v50  ;;  %v10323_v54 = vcombine.high %v1602_v15, %v1606_v2  ;;  %v1466_v5 = vld [vmem:[#allocation12 + $0xa90] sm:$0xff]  ;;  %v10322_v4 = vcombine.low %v1602_v15, %v1606_v2 }
 0x44e   :  { %8109 = vmatprep.subr.bf16.mxu1 %v10355_v17  ;;  %v1470_v61 = vld [vmem:[#allocation12 + $0xab0] sm:$0xff] }
 0x44f   :  { %v1594_v50 = vld [vmem:[#allocation12 + $0xe90] sm:$0xff]  ;;  %v10187_v24 = vcombine.high %v1466_v5, %v1470_v61  ;;  %v10186_v18 = vcombine.low %v1466_v5, %v1470_v61 }
 0x450   :  { %8069 = vmatpush2.bf16.msra.mxu0 %v10226_v8  ;;  %v1598_v17 = vld [vmem:[#allocation12 + $0xeb0] sm:$0xff] }
 0x451   :  { %8110 = vmatpush2.bf16.msra.mxu1 %v10354_v47  ;;  %8070 = vmatprep.subr.bf16.mxu0 %v10219_v29  ;;  %v10315_v25 = vcombine.high %v1594_v50, %v1598_v17  ;;  %v1458_v8 = vld [vmem:[#allocation12 + $0xa50] sm:$0xff]  ;;  %v10314_v37 = vcombine.low %v1594_v50, %v1598_v17 }
 0x452   :  { %8111 = vmatprep.subr.bf16.mxu1 %v10347_v23  ;;  %v1462_v47 = vld [vmem:[#allocation12 + $0xa70] sm:$0xff] }
 0x453   :  { %v1586_v29 = vld [vmem:[#allocation12 + $0xe50] sm:$0xff]  ;;  %v10179_v33 = vcombine.high %v1458_v8, %v1462_v47  ;;  %v10178_v38 = vcombine.low %v1458_v8, %v1462_v47 }
 0x454   :  { %8071 = vmatpush2.bf16.msra.mxu0 %v10218_v13  ;;  %v1590_v23 = vld [vmem:[#allocation12 + $0xe70] sm:$0xff] }
 0x455   :  { %8112 = vmatpush2.bf16.msra.mxu1 %v10346_v16  ;;  %8072 = vmatprep.subr.bf16.mxu0 %v10211_v56  ;;  %v10307_v22 = vcombine.high %v1586_v29, %v1590_v23  ;;  %v1450_v13 = vld [vmem:[#allocation12 + $0xa10] sm:$0xff]  ;;  %v10306_v40 = vcombine.low %v1586_v29, %v1590_v23 }
 0x456   :  { %8113 = vmatprep.subr.bf16.mxu1 %v10339_v57  ;;  %v1454_v16 = vld [vmem:[#allocation12 + $0xa30] sm:$0xff] }
 0x457   :  { %v1578_v56 = vld [vmem:[#allocation12 + $0xe10] sm:$0xff]  ;;  %v10171_v42 = vcombine.high %v1450_v13, %v1454_v16  ;;  %v10170_v14 = vcombine.low %v1450_v13, %v1454_v16 }
 0x458   :  { %8073 = vmatpush2.bf16.msra.mxu0 %v10210_v44  ;;  %v1582_v57 = vld [vmem:[#allocation12 + $0xe30] sm:$0xff] }
 0x459   :  { %8114 = vmatpush2.bf16.msra.mxu1 %v10338_v45  ;;  %8074 = vmatprep.subr.bf16.mxu0 %v10203_v46  ;;  %v10299_v36 = vcombine.high %v1578_v56, %v1582_v57  ;;  %v1698_v44 = vld [vmem:[#allocation12 + $0x11d0] sm:$0xff]  ;;  %v10298_v60 = vcombine.low %v1578_v56, %v1582_v57 }
 0x45a   :  { %8115 = vmatprep.subr.bf16.mxu1 %v10331_v3  ;;  %v1702_v45 = vld [vmem:[#allocation12 + $0x11f0] sm:$0xff] }
 0x45b   :  { %v1826_v46 = vld [vmem:[#allocation12 + $0x15d0] sm:$0xff]  ;;  %v10419_v15 = vcombine.high %v1698_v44, %v1702_v45 }
 0x45c   :  { %8075 = vmatpush2.bf16.msra.mxu0 %v10202_v53  ;;  %v1830_v3 = vld [vmem:[#allocation12 + $0x15f0] sm:$0xff] }
 0x45d   :  { %8116 = vmatpush2.bf16.msra.mxu1 %v10330_v0  ;;  %8076 = vmatprep.subr.bf16.mxu0 %v10195_v58  ;;  %v10547_v2 = vcombine.high %v1826_v46, %v1830_v3  ;;  %v1690_v53 = vld [vmem:[#allocation12 + $0x1190] sm:$0xff]  ;;  %v10418_v58 = vcombine.low %v1698_v44, %v1702_v45  ;;  %v10546_v61 = vcombine.low %v1826_v46, %v1830_v3 }
 0x45e   :  { %8117 = vmatprep.subr.bf16.mxu1 %v10323_v54  ;;  %v1694_v0 = vld [vmem:[#allocation12 + $0x11b0] sm:$0xff] }
 0x45f   :  { %v1818_v54 = vld [vmem:[#allocation12 + $0x1590] sm:$0xff]  ;;  %v10411_v50 = vcombine.high %v1690_v53, %v1694_v0  ;;  %v10410_v23 = vcombine.low %v1690_v53, %v1694_v0 }
 0x460   :  { %8077 = vmatpush2.bf16.msra.mxu0 %v10194_v34  ;;  %v1822_v5 = vld [vmem:[#allocation12 + $0x15b0] sm:$0xff] }
 0x461   :  { %8118 = vmatpush2.bf16.msra.mxu1 %v10322_v4  ;;  %8078 = vmatprep.subr.bf16.mxu0 %v10187_v24  ;;  %v1682_v17 = vld [vmem:[#allocation12 + $0x1150] sm:$0xff]  ;;  %v10539_v24 = vcombine.high %v1818_v54, %v1822_v5 }
 0x462   :  { %8119 = vmatprep.subr.bf16.mxu1 %v10315_v25  ;;  %v1686_v34 = vld [vmem:[#allocation12 + $0x1170] sm:$0xff] }
 0x463   :  { %v1810_v25 = vld [vmem:[#allocation12 + $0x1550] sm:$0xff]  ;;  %v10402_v45 = vcombine.low %v1682_v17, %v1686_v34 }
 0x464   :  { %8079 = vmatpush2.bf16.msra.mxu0 %v10186_v18  ;;  %v1814_v8 = vld [vmem:[#allocation12 + $0x1570] sm:$0xff] }
 0x465   :  { %8120 = vmatpush2.bf16.msra.mxu1 %v10314_v37  ;;  %8080 = vmatprep.subr.bf16.mxu0 %v10179_v33  ;;  %v10538_v37 = vcombine.low %v1818_v54, %v1822_v5  ;;  %v10403_v33 = vcombine.high %v1682_v17, %v1686_v34  ;;  %v1674_v56 = vld [vmem:[#allocation12 + $0x1110] sm:$0xff]  ;;  %v10530_v3 = vcombine.low %v1810_v25, %v1814_v8 }
 0x466   :  { %8121 = vmatprep.subr.bf16.mxu1 %v10307_v22  ;;  %v1678_v57 = vld [vmem:[#allocation12 + $0x1130] sm:$0xff] }
 0x467   :  { %v1794_v53 = vld [vmem:[#allocation12 + $0x14d0] sm:$0xff] }
 0x468   :  { %8081 = vmatpush2.bf16.msra.mxu0 %v10178_v38  ;;  %v1798_v0 = vld [vmem:[#allocation12 + $0x14f0] sm:$0xff] }
 0x469   :  { %8122 = vmatpush2.bf16.msra.mxu1 %v10306_v40  ;;  %8082 = vmatprep.subr.bf16.mxu0 %v10171_v42  ;;  %v1802_v40 = vld [vmem:[#allocation12 + $0x1510] sm:$0xff] }
 0x46a   :  { %8123 = vmatprep.subr.bf16.mxu1 %v10299_v36  ;;  %v1806_v42 = vld [vmem:[#allocation12 + $0x1530] sm:$0xff] }
 0x46b   :  { %v10522_v54 = vcombine.low %v1802_v40, %v1806_v42  ;;  %v1662_v17 = vld [vmem:[#allocation12 + $0x10b0] sm:$0xff] }
 0x46c   :  { %8083 = vmatpush2.bf16.msra.mxu0 %v10170_v14  ;;  %v10395_v14 = vcombine.high %v1674_v56, %v1678_v57  ;;  %v1786_v34 = vld [vmem:[#allocation12 + $0x1490] sm:$0xff] }
 0x46d   :  { %8124 = vmatpush2.bf16.msra.mxu1 %v10298_v60  ;;  %8134 = vmatprep.subr.bf16.mxu0 %v10419_v15  ;;  %v10523_v60 = vcombine.high %v1802_v40, %v1806_v42  ;;  %v1666_v15 = vld [vmem:[#allocation12 + $0x10d0] sm:$0xff] }
 0x46e   :  { %8175 = vmatprep.subr.bf16.mxu1 %v10547_v2  ;;  %v1670_v2 = vld [vmem:[#allocation12 + $0x10f0] sm:$0xff] }
 0x46f   :  { %v7840_v4 = vpop.f32.mrf.mxu0  ;;  %8085 = vmatmul.mubr.bf16.vlgmr.msra.gmra.mxu0 %v11956_v55  ;;  %v10387_v5 = vcombine.high %v1666_v15, %v1670_v2  ;;  %v1774_v40 = vld [vmem:[#allocation12 + $0x1430] sm:$0xff] }
 0x470   :  { %v7841_v47 = vadd.f32 %v7840_v4, %v12055_v39  ;;  %v7881_v29 = vpop.f32.mrf.mxu1  ;;  %8126 = vmatmul.mubr.bf16.vlgmr.msra.gmra.mxu1 %v11960_v59  ;;  %8135 = vmatpush1.bf16.msra.mxu0 %v10418_v58  ;;  %v10531_v39 = vcombine.high %v1810_v25, %v1814_v8  ;;  %v10394_v58 = vcombine.low %v1674_v56, %v1678_v57  ;;  %v1790_v4 = vld [vmem:[#allocation12 + $0x14b0] sm:$0xff] }
 0x471   :  { %8166 = vmatprep.mubr.bf16.mxu0 %v11962_v62  ;;  %8176 = vmatpush1.bf16.msra.mxu1 %v10546_v61  ;;  %v7842_v18 = vpop.f32.mrf.mxu0  ;;  %v10515_v61 = vcombine.high %v1794_v53, %v1798_v0  ;;  %v10514_v25 = vcombine.low %v1794_v53, %v1798_v0  ;;  %v1642_v56 = vld [vmem:[#allocation12 + $0x1010] sm:$0xff] }
 0x472   :  { %v12065_v22 = vadd.f32 %v7881_v29, %v7841_v47  ;;  %8207 = vmatprep.mubr.bf16.mxu1 %v11966_v27  ;;  %v7843_v13 = vadd.f32 %v7842_v18, %v12059_v10  ;;  %v7883_v16 = vpop.f32.mrf.mxu1  ;;  %8136 = vmatprep.subr.bf16.mxu0 %v10411_v50  ;;  %v1658_v50 = vld [vmem:[#allocation12 + $0x1090] sm:$0xff]  ;;  %v10507_v47 = vcombine.high %v1786_v34, %v1790_v4 }
 0x473   :  { %v7844_v38 = vpop.f32.mrf.mxu0  ;;  %8177 = vmatprep.subr.bf16.mxu1 %v10539_v24  ;;  %v10386_v24 = vcombine.low %v1666_v15, %v1670_v2  ;;  %v10379_v8 = vcombine.high %v1658_v50, %v1662_v17  ;;  %v1650_v29 = vld [vmem:[#allocation12 + $0x1050] sm:$0xff] }
 0x474   :  { %v12069_v36 = vadd.f32 %v7883_v16, %v7843_v13  ;;  %v7885_v44 = vpop.f32.mrf.mxu1  ;;  %8137 = vmatpush1.bf16.msra.mxu0 %v10410_v23  ;;  %v1654_v23 = vld [vmem:[#allocation12 + $0x1070] sm:$0xff]  ;;  %v10506_v13 = vcombine.low %v1786_v34, %v1790_v4 }
 0x475   :  { %8178 = vmatpush1.bf16.msra.mxu1 %v10538_v37  ;;  %v7845_v46 = vpop.f32.mrf.mxu0  ;;  %8138 = vmatprep.subr.bf16.mxu0 %v10403_v33  ;;  %v1778_v18 = vld [vmem:[#allocation12 + $0x1450] sm:$0xff]  ;;  %v10378_v33 = vcombine.low %v1658_v50, %v1662_v17  ;;  %v10371_v16 = vcombine.high %v1650_v29, %v1654_v23  ;;  %v10370_v42 = vcombine.low %v1650_v29, %v1654_v23 }
 0x476   :  { %v7886_v10 = vpop.f32.mrf.mxu1  ;;  %8179 = vmatprep.subr.bf16.mxu1 %v10531_v39  ;;  %v1782_v37 = vld [vmem:[#allocation12 + $0x1470] sm:$0xff] }
 0x477   :  { %v10499_v39 = vcombine.high %v1778_v18, %v1782_v37  ;;  %v1646_v57 = vld [vmem:[#allocation12 + $0x1030] sm:$0xff]  ;;  %v10498_v44 = vcombine.low %v1778_v18, %v1782_v37 }
 0x478   :  { %8139 = vmatpush1.bf16.msra.mxu0 %v10402_v45  ;;  %v1770_v38 = vld [vmem:[#allocation12 + $0x1410] sm:$0xff]  ;;  %v10363_v45 = vcombine.high %v1642_v56, %v1646_v57  ;;  %v10362_v15 = vcombine.low %v1642_v56, %v1646_v57 }
 0x479   :  { %8180 = vmatpush1.bf16.msra.mxu1 %v10530_v3  ;;  %8140 = vmatprep.subr.bf16.mxu0 %v10395_v14  ;;  %v10491_v46 = vcombine.high %v1770_v38, %v1774_v40  ;;  %v1762_v3 = vld [vmem:[#allocation12 + $0x13d0] sm:$0xff]  ;;  %v10490_v2 = vcombine.low %v1770_v38, %v1774_v40 }
 0x47a   :  { %8181 = vmatprep.subr.bf16.mxu1 %v10523_v60  ;;  %v1766_v14 = vld [vmem:[#allocation12 + $0x13f0] sm:$0xff] }
 0x47b   :  { %v1890_v10 = vld [vmem:[#allocation12 + $0x17d0] sm:$0xff]  ;;  %v10483_v53 = vcombine.high %v1762_v3, %v1766_v14  ;;  %v10482_v50 = vcombine.low %v1762_v3, %v1766_v14 }
 0x47c   :  { %8141 = vmatpush1.bf16.msra.mxu0 %v10394_v58  ;;  %v1894_v60 = vld [vmem:[#allocation12 + $0x17f0] sm:$0xff] }
 0x47d   :  { %8182 = vmatpush1.bf16.msra.mxu1 %v10522_v54  ;;  %8142 = vmatprep.subr.bf16.mxu0 %v10387_v5  ;;  %v10611_v0 = vcombine.high %v1890_v10, %v1894_v60  ;;  %v1754_v58 = vld [vmem:[#allocation12 + $0x1390] sm:$0xff]  ;;  %v10610_v17 = vcombine.low %v1890_v10, %v1894_v60 }
 0x47e   :  { %8183 = vmatprep.subr.bf16.mxu1 %v10515_v61  ;;  %v1758_v54 = vld [vmem:[#allocation12 + $0x13b0] sm:$0xff] }
 0x47f   :  { %v1882_v5 = vld [vmem:[#allocation12 + $0x1790] sm:$0xff]  ;;  %v10475_v34 = vcombine.high %v1754_v58, %v1758_v54  ;;  %v10474_v29 = vcombine.low %v1754_v58, %v1758_v54 }
 0x480   :  { %8143 = vmatpush1.bf16.msra.mxu0 %v10386_v24  ;;  %v1886_v61 = vld [vmem:[#allocation12 + $0x17b0] sm:$0xff] }
 0x481   :  { %8184 = vmatpush1.bf16.msra.mxu1 %v10514_v25  ;;  %8144 = vmatprep.subr.bf16.mxu0 %v10379_v8  ;;  %v10603_v4 = vcombine.high %v1882_v5, %v1886_v61  ;;  %v1746_v24 = vld [vmem:[#allocation12 + $0x1350] sm:$0xff]  ;;  %v10602_v23 = vcombine.low %v1882_v5, %v1886_v61 }
 0x482   :  { %8185 = vmatprep.subr.bf16.mxu1 %v10507_v47  ;;  %v1750_v25 = vld [vmem:[#allocation12 + $0x1370] sm:$0xff] }
 0x483   :  { %v1874_v8 = vld [vmem:[#allocation12 + $0x1750] sm:$0xff]  ;;  %v10467_v18 = vcombine.high %v1746_v24, %v1750_v25  ;;  %v10466_v56 = vcombine.low %v1746_v24, %v1750_v25 }
 0x484   :  { %8145 = vmatpush1.bf16.msra.mxu0 %v10378_v33  ;;  %v1878_v47 = vld [vmem:[#allocation12 + $0x1770] sm:$0xff] }
 0x485   :  { %8186 = vmatpush1.bf16.msra.mxu1 %v10506_v13  ;;  %8146 = vmatprep.subr.bf16.mxu0 %v10371_v16  ;;  %v10595_v37 = vcombine.high %v1874_v8, %v1878_v47  ;;  %v1738_v33 = vld [vmem:[#allocation12 + $0x1310] sm:$0xff]  ;;  %v10594_v57 = vcombine.low %v1874_v8, %v1878_v47 }
 0x486   :  { %8187 = vmatprep.subr.bf16.mxu1 %v10499_v39  ;;  %v1742_v13 = vld [vmem:[#allocation12 + $0x1330] sm:$0xff] }
 0x487   :  { %v1866_v16 = vld [vmem:[#allocation12 + $0x1710] sm:$0xff]  ;;  %v10459_v38 = vcombine.high %v1738_v33, %v1742_v13  ;;  %v10458_v3 = vcombine.low %v1738_v33, %v1742_v13 }
 0x488   :  { %8147 = vmatpush1.bf16.msra.mxu0 %v10370_v42  ;;  %v1870_v39 = vld [vmem:[#allocation12 + $0x1730] sm:$0xff] }
 0x489   :  { %8188 = vmatpush1.bf16.msra.mxu1 %v10498_v44  ;;  %8148 = vmatprep.subr.bf16.mxu0 %v10363_v45  ;;  %v10587_v40 = vcombine.high %v1866_v16, %v1870_v39  ;;  %v1730_v42 = vld [vmem:[#allocation12 + $0x12d0] sm:$0xff]  ;;  %v10586_v14 = vcombine.low %v1866_v16, %v1870_v39 }
 0x48a   :  { %8189 = vmatprep.subr.bf16.mxu1 %v10491_v46  ;;  %v1734_v44 = vld [vmem:[#allocation12 + $0x12f0] sm:$0xff] }
 0x48b   :  { %v1858_v45 = vld [vmem:[#allocation12 + $0x16d0] sm:$0xff]  ;;  %v10451_v10 = vcombine.high %v1730_v42, %v1734_v44  ;;  %v10450_v58 = vcombine.low %v1730_v42, %v1734_v44 }
 0x48c   :  { %8149 = vmatpush1.bf16.msra.mxu0 %v10362_v15  ;;  %v1862_v46 = vld [vmem:[#allocation12 + $0x16f0] sm:$0xff] }
 0x48d   :  { %8190 = vmatpush1.bf16.msra.mxu1 %v10490_v2  ;;  %8150 = vmatprep.subr.bf16.mxu0 %v10483_v53  ;;  %v10579_v60 = vcombine.high %v1858_v45, %v1862_v46  ;;  %v1722_v15 = vld [vmem:[#allocation12 + $0x1290] sm:$0xff]  ;;  %v10578_v54 = vcombine.low %v1858_v45, %v1862_v46 }
 0x48e   :  { %8191 = vmatprep.subr.bf16.mxu1 %v10611_v0  ;;  %v1726_v2 = vld [vmem:[#allocation12 + $0x12b0] sm:$0xff] }
 0x48f   :  { %v1850_v53 = vld [vmem:[#allocation12 + $0x1690] sm:$0xff]  ;;  %v10443_v5 = vcombine.high %v1722_v15, %v1726_v2  ;;  %v10442_v24 = vcombine.low %v1722_v15, %v1726_v2 }
 0x490   :  { %8151 = vmatpush2.bf16.msra.mxu0 %v10482_v50  ;;  %v1854_v0 = vld [vmem:[#allocation12 + $0x16b0] sm:$0xff] }
 0x491   :  { %8192 = vmatpush2.bf16.msra.mxu1 %v10610_v17  ;;  %8152 = vmatprep.subr.bf16.mxu0 %v10475_v34  ;;  %v10571_v61 = vcombine.high %v1850_v53, %v1854_v0  ;;  %v1714_v50 = vld [vmem:[#allocation12 + $0x1250] sm:$0xff]  ;;  %v10570_v25 = vcombine.low %v1850_v53, %v1854_v0 }
 0x492   :  { %8193 = vmatprep.subr.bf16.mxu1 %v10603_v4  ;;  %v1718_v17 = vld [vmem:[#allocation12 + $0x1270] sm:$0xff] }
 0x493   :  { %v1842_v34 = vld [vmem:[#allocation12 + $0x1650] sm:$0xff]  ;;  %v10435_v8 = vcombine.high %v1714_v50, %v1718_v17  ;;  %v10434_v33 = vcombine.low %v1714_v50, %v1718_v17 }
 0x494   :  { %8153 = vmatpush2.bf16.msra.mxu0 %v10474_v29  ;;  %v1846_v4 = vld [vmem:[#allocation12 + $0x1670] sm:$0xff] }
 0x495   :  { %8194 = vmatpush2.bf16.msra.mxu1 %v10602_v23  ;;  %8154 = vmatprep.subr.bf16.mxu0 %v10467_v18  ;;  %v10563_v47 = vcombine.high %v1842_v34, %v1846_v4  ;;  %v1706_v29 = vld [vmem:[#allocation12 + $0x1210] sm:$0xff]  ;;  %v10562_v13 = vcombine.low %v1842_v34, %v1846_v4 }
 0x496   :  { %8195 = vmatprep.subr.bf16.mxu1 %v10595_v37  ;;  %v1710_v23 = vld [vmem:[#allocation12 + $0x1230] sm:$0xff] }
 0x497   :  { %v1834_v18 = vld [vmem:[#allocation12 + $0x1610] sm:$0xff]  ;;  %v10427_v16 = vcombine.high %v1706_v29, %v1710_v23  ;;  %v10426_v42 = vcombine.low %v1706_v29, %v1710_v23 }
 0x498   :  { %8155 = vmatpush2.bf16.msra.mxu0 %v10466_v56  ;;  %v1838_v37 = vld [vmem:[#allocation12 + $0x1630] sm:$0xff] }
 0x499   :  { %8196 = vmatpush2.bf16.msra.mxu1 %v10594_v57  ;;  %8156 = vmatprep.subr.bf16.mxu0 %v10459_v38  ;;  %v10555_v39 = vcombine.high %v1834_v18, %v1838_v37  ;;  %v1954_v56 = vld [vmem:[#allocation12 + $0x19d0] sm:$0xff]  ;;  %v10554_v44 = vcombine.low %v1834_v18, %v1838_v37 }
 0x49a   :  { %8197 = vmatprep.subr.bf16.mxu1 %v10587_v40  ;;  %v1958_v57 = vld [vmem:[#allocation12 + $0x19f0] sm:$0xff] }
 0x49b   :  { %v2082_v38 = vld [vmem:[#allocation12 + $0x1dd0] sm:$0xff]  ;;  %v10675_v45 = vcombine.high %v1954_v56, %v1958_v57 }
 0x49c   :  { %8157 = vmatpush2.bf16.msra.mxu0 %v10458_v3  ;;  %v2086_v40 = vld [vmem:[#allocation12 + $0x1df0] sm:$0xff] }
 0x49d   :  { %8198 = vmatpush2.bf16.msra.mxu1 %v10586_v14  ;;  %8158 = vmatprep.subr.bf16.mxu0 %v10451_v10  ;;  %v10803_v46 = vcombine.high %v2082_v38, %v2086_v40  ;;  %v1946_v3 = vld [vmem:[#allocation12 + $0x1990] sm:$0xff]  ;;  %v10674_v10 = vcombine.low %v1954_v56, %v1958_v57  ;;  %v10802_v2 = vcombine.low %v2082_v38, %v2086_v40 }
 0x49e   :  { %8199 = vmatprep.subr.bf16.mxu1 %v10579_v60  ;;  %v1950_v14 = vld [vmem:[#allocation12 + $0x19b0] sm:$0xff] }
 0x49f   :  { %v2074_v60 = vld [vmem:[#allocation12 + $0x1d90] sm:$0xff]  ;;  %v10667_v53 = vcombine.high %v1946_v3, %v1950_v14  ;;  %v10666_v4 = vcombine.low %v1946_v3, %v1950_v14 }
 0x4a0   :  { %8159 = vmatpush2.bf16.msra.mxu0 %v10450_v58  ;;  %v2078_v15 = vld [vmem:[#allocation12 + $0x1db0] sm:$0xff] }
 0x4a1   :  { %8200 = vmatpush2.bf16.msra.mxu1 %v10578_v54  ;;  %8160 = vmatprep.subr.bf16.mxu0 %v10443_v5  ;;  %v1938_v0 = vld [vmem:[#allocation12 + $0x1950] sm:$0xff]  ;;  %v10795_v5 = vcombine.high %v2074_v60, %v2078_v15 }
 0x4a2   :  { %8201 = vmatprep.subr.bf16.mxu1 %v10571_v61  ;;  %v1942_v58 = vld [vmem:[#allocation12 + $0x1970] sm:$0xff] }
 0x4a3   :  { %v2066_v61 = vld [vmem:[#allocation12 + $0x1d50] sm:$0xff]  ;;  %v10658_v57 = vcombine.low %v1938_v0, %v1942_v58 }
 0x4a4   :  { %8161 = vmatpush2.bf16.msra.mxu0 %v10442_v24  ;;  %v2070_v50 = vld [vmem:[#allocation12 + $0x1d70] sm:$0xff] }
 0x4a5   :  { %8202 = vmatpush2.bf16.msra.mxu1 %v10570_v25  ;;  %8162 = vmatprep.subr.bf16.mxu0 %v10435_v8  ;;  %v10794_v25 = vcombine.low %v2074_v60, %v2078_v15  ;;  %v10659_v8 = vcombine.high %v1938_v0, %v1942_v58  ;;  %v1930_v18 = vld [vmem:[#allocation12 + $0x1910] sm:$0xff]  ;;  %v10786_v40 = vcombine.low %v2066_v61, %v2070_v50 }
 0x4a6   :  { %8203 = vmatprep.subr.bf16.mxu1 %v10563_v47  ;;  %v1934_v37 = vld [vmem:[#allocation12 + $0x1930] sm:$0xff] }
 0x4a7   :  { %v2050_v3 = vld [vmem:[#allocation12 + $0x1cd0] sm:$0xff] }
 0x4a8   :  { %8163 = vmatpush2.bf16.msra.mxu0 %v10434_v33  ;;  %v2054_v14 = vld [vmem:[#allocation12 + $0x1cf0] sm:$0xff] }
 0x4a9   :  { %8204 = vmatpush2.bf16.msra.mxu1 %v10562_v13  ;;  %8164 = vmatprep.subr.bf16.mxu0 %v10427_v16  ;;  %v2058_v13 = vld [vmem:[#allocation12 + $0x1d10] sm:$0xff] }
 0x4aa   :  { %8205 = vmatprep.subr.bf16.mxu1 %v10555_v39  ;;  %v2062_v16 = vld [vmem:[#allocation12 + $0x1d30] sm:$0xff] }
 0x4ab   :  { %v10778_v60 = vcombine.low %v2058_v13, %v2062_v16  ;;  %v1918_v0 = vld [vmem:[#allocation12 + $0x18b0] sm:$0xff] }
 0x4ac   :  { %8165 = vmatpush2.bf16.msra.mxu0 %v10426_v42  ;;  %v10651_v42 = vcombine.high %v1930_v18, %v1934_v37  ;;  %v2042_v58 = vld [vmem:[#allocation12 + $0x1c90] sm:$0xff] }
 0x4ad   :  { %8206 = vmatpush2.bf16.msra.mxu1 %v10554_v44  ;;  %8216 = vmatprep.subr.bf16.mxu0 %v10675_v45  ;;  %v10779_v44 = vcombine.high %v2058_v13, %v2062_v16  ;;  %v1922_v45 = vld [vmem:[#allocation12 + $0x18d0] sm:$0xff] }
 0x4ae   :  { %8257 = vmatprep.subr.bf16.mxu1 %v10803_v46  ;;  %v1926_v46 = vld [vmem:[#allocation12 + $0x18f0] sm:$0xff] }
 0x4af   :  { %v7922_v54 = vpop.f32.mrf.mxu0  ;;  %8167 = vmatmul.mubr.bf16.vlgmr.msra.gmra.mxu0 %v11975_v6  ;;  %v10643_v15 = vcombine.high %v1922_v45, %v1926_v46  ;;  %v2030_v13 = vld [vmem:[#allocation12 + $0x1c30] sm:$0xff] }
 0x4b0   :  { %v7923_v17 = vadd.f32 %v7922_v54, %v12065_v22  ;;  %v7963_v34 = vpop.f32.mrf.mxu1  ;;  %8208 = vmatmul.mubr.bf16.vlgmr.msra.gmra.mxu1 %v11979_v26  ;;  %8217 = vmatpush1.bf16.msra.mxu0 %v10674_v10  ;;  %v10787_v22 = vcombine.high %v2066_v61, %v2070_v50  ;;  %v10650_v10 = vcombine.low %v1930_v18, %v1934_v37  ;;  %v2046_v54 = vld [vmem:[#allocation12 + $0x1cb0] sm:$0xff] }
 0x4b1   :  { %8248 = vmatprep.mubr.bf16.mxu0 %v11984_v43  ;;  %8258 = vmatpush1.bf16.msra.mxu1 %v10802_v2  ;;  %v7924_v24 = vpop.f32.mrf.mxu0  ;;  %v10771_v2 = vcombine.high %v2050_v3, %v2054_v14  ;;  %v10770_v61 = vcombine.low %v2050_v3, %v2054_v14  ;;  %v1898_v18 = vld [vmem:[#allocation12 + $0x1810] sm:$0xff] }
 0x4b2   :  { %v12075_v47 = vadd.f32 %v7963_v34, %v7923_v17  ;;  %8289 = vmatprep.mubr.bf16.mxu1 %v11989_v41  ;;  %v7925_v29 = vadd.f32 %v7924_v24, %v12069_v36  ;;  %v7965_v23 = vpop.f32.mrf.mxu1  ;;  %8218 = vmatprep.subr.bf16.mxu0 %v10667_v53  ;;  %v1914_v53 = vld [vmem:[#allocation12 + $0x1890] sm:$0xff]  ;;  %v10763_v17 = vcombine.high %v2042_v58, %v2046_v54 }
 0x4b3   :  { %v7926_v33 = vpop.f32.mrf.mxu0  ;;  %8259 = vmatprep.subr.bf16.mxu1 %v10795_v5  ;;  %v10642_v5 = vcombine.low %v1922_v45, %v1926_v46  ;;  %v10635_v50 = vcombine.high %v1914_v53, %v1918_v0  ;;  %v1906_v34 = vld [vmem:[#allocation12 + $0x1850] sm:$0xff] }
 0x4b4   :  { %v12079_v39 = vadd.f32 %v7965_v23, %v7925_v29  ;;  %v7967_v56 = vpop.f32.mrf.mxu1  ;;  %8219 = vmatpush1.bf16.msra.mxu0 %v10666_v4  ;;  %v1910_v4 = vld [vmem:[#allocation12 + $0x1870] sm:$0xff]  ;;  %v10762_v29 = vcombine.low %v2042_v58, %v2046_v54 }
 0x4b5   :  { %8260 = vmatpush1.bf16.msra.mxu1 %v10794_v25  ;;  %v7927_v38 = vpop.f32.mrf.mxu0  ;;  %8220 = vmatprep.subr.bf16.mxu0 %v10659_v8  ;;  %v2034_v24 = vld [vmem:[#allocation12 + $0x1c50] sm:$0xff]  ;;  %v10634_v8 = vcombine.low %v1914_v53, %v1918_v0  ;;  %v10627_v23 = vcombine.high %v1906_v34, %v1910_v4  ;;  %v10626_v16 = vcombine.low %v1906_v34, %v1910_v4 }
 0x4b6   :  { %v7968_v36 = vpop.f32.mrf.mxu1  ;;  %8261 = vmatprep.subr.bf16.mxu1 %v10787_v22  ;;  %v2038_v25 = vld [vmem:[#allocation12 + $0x1c70] sm:$0xff] }
 0x4b7   :  { %v10755_v22 = vcombine.high %v2034_v24, %v2038_v25  ;;  %v1902_v37 = vld [vmem:[#allocation12 + $0x1830] sm:$0xff]  ;;  %v10754_v56 = vcombine.low %v2034_v24, %v2038_v25 }
 0x4b8   :  { %8221 = vmatpush1.bf16.msra.mxu0 %v10658_v57  ;;  %v2026_v33 = vld [vmem:[#allocation12 + $0x1c10] sm:$0xff]  ;;  %v10619_v57 = vcombine.high %v1898_v18, %v1902_v37  ;;  %v10618_v45 = vcombine.low %v1898_v18, %v1902_v37 }
 0x4b9   :  { %8262 = vmatpush1.bf16.msra.mxu1 %v10786_v40  ;;  %8222 = vmatprep.subr.bf16.mxu0 %v10651_v42  ;;  %v10747_v38 = vcombine.high %v2026_v33, %v2030_v13  ;;  %v2018_v40 = vld [vmem:[#allocation12 + $0x1bd0] sm:$0xff]  ;;  %v10746_v46 = vcombine.low %v2026_v33, %v2030_v13 }
 0x4ba   :  { %8263 = vmatprep.subr.bf16.mxu1 %v10779_v44  ;;  %v2022_v42 = vld [vmem:[#allocation12 + $0x1bf0] sm:$0xff] }
 0x4bb   :  { %v2146_v36 = vld [vmem:[#allocation12 + $0x1fd0] sm:$0xff]  ;;  %v10739_v3 = vcombine.high %v2018_v40, %v2022_v42  ;;  %v10738_v53 = vcombine.low %v2018_v40, %v2022_v42 }
 0x4bc   :  { %8223 = vmatpush1.bf16.msra.mxu0 %v10650_v10  ;;  %v2150_v44 = vld [vmem:[#allocation12 + $0x1ff0] sm:$0xff] }
 0x4bd   :  { %8264 = vmatpush1.bf16.msra.mxu1 %v10778_v60  ;;  %8224 = vmatprep.subr.bf16.mxu0 %v10643_v15  ;;  %v10867_v14 = vcombine.high %v2146_v36, %v2150_v44  ;;  %v2010_v10 = vld [vmem:[#allocation12 + $0x1b90] sm:$0xff]  ;;  %v10866_v0 = vcombine.low %v2146_v36, %v2150_v44 }
 0x4be   :  { %8265 = vmatprep.subr.bf16.mxu1 %v10771_v2  ;;  %v2014_v60 = vld [vmem:[#allocation12 + $0x1bb0] sm:$0xff] }
 0x4bf   :  { %v2138_v15 = vld [vmem:[#allocation12 + $0x1f90] sm:$0xff]  ;;  %v10731_v58 = vcombine.high %v2010_v10, %v2014_v60  ;;  %v10730_v34 = vcombine.low %v2010_v10, %v2014_v60 }
 0x4c0   :  { %8225 = vmatpush1.bf16.msra.mxu0 %v10642_v5  ;;  %v2142_v2 = vld [vmem:[#allocation12 + $0x1fb0] sm:$0xff] }
 0x4c1   :  { %8266 = vmatpush1.bf16.msra.mxu1 %v10770_v61  ;;  %8226 = vmatprep.subr.bf16.mxu0 %v10635_v50  ;;  %v10859_v54 = vcombine.high %v2138_v15, %v2142_v2  ;;  %v2002_v5 = vld [vmem:[#allocation12 + $0x1b50] sm:$0xff]  ;;  %v10858_v4 = vcombine.low %v2138_v15, %v2142_v2 }
 0x4c2   :  { %8267 = vmatprep.subr.bf16.mxu1 %v10763_v17  ;;  %v2006_v61 = vld [vmem:[#allocation12 + $0x1b70] sm:$0xff] }
 0x4c3   :  { %v2130_v50 = vld [vmem:[#allocation12 + $0x1f50] sm:$0xff]  ;;  %v10723_v24 = vcombine.high %v2002_v5, %v2006_v61  ;;  %v10722_v18 = vcombine.low %v2002_v5, %v2006_v61 }
 0x4c4   :  { %8227 = vmatpush1.bf16.msra.mxu0 %v10634_v8  ;;  %v2134_v17 = vld [vmem:[#allocation12 + $0x1f70] sm:$0xff] }
 0x4c5   :  { %8268 = vmatpush1.bf16.msra.mxu1 %v10762_v29  ;;  %8228 = vmatprep.subr.bf16.mxu0 %v10627_v23  ;;  %v10851_v25 = vcombine.high %v2130_v50, %v2134_v17  ;;  %v1994_v8 = vld [vmem:[#allocation12 + $0x1b10] sm:$0xff]  ;;  %v10850_v37 = vcombine.low %v2130_v50, %v2134_v17 }
 0x4c6   :  { %8269 = vmatprep.subr.bf16.mxu1 %v10755_v22  ;;  %v1998_v29 = vld [vmem:[#allocation12 + $0x1b30] sm:$0xff] }
 0x4c7   :  { %v2122_v23 = vld [vmem:[#allocation12 + $0x1f10] sm:$0xff]  ;;  %v10715_v33 = vcombine.high %v1994_v8, %v1998_v29  ;;  %v10714_v40 = vcombine.low %v1994_v8, %v1998_v29 }
 0x4c8   :  { %8229 = vmatpush1.bf16.msra.mxu0 %v10626_v16  ;;  %v2126_v22 = vld [vmem:[#allocation12 + $0x1f30] sm:$0xff] }
 0x4c9   :  { %8270 = vmatpush1.bf16.msra.mxu1 %v10754_v56  ;;  %8230 = vmatprep.subr.bf16.mxu0 %v10619_v57  ;;  %v10843_v13 = vcombine.high %v2122_v23, %v2126_v22  ;;  %v1986_v16 = vld [vmem:[#allocation12 + $0x1ad0] sm:$0xff]  ;;  %v10842_v42 = vcombine.low %v2122_v23, %v2126_v22 }
 0x4ca   :  { %8271 = vmatprep.subr.bf16.mxu1 %v10747_v38  ;;  %v1990_v56 = vld [vmem:[#allocation12 + $0x1af0] sm:$0xff] }
 0x4cb   :  { %v2114_v57 = vld [vmem:[#allocation12 + $0x1ed0] sm:$0xff]  ;;  %v10707_v36 = vcombine.high %v1986_v16, %v1990_v56  ;;  %v10706_v10 = vcombine.low %v1986_v16, %v1990_v56 }
 0x4cc   :  { %8231 = vmatpush1.bf16.msra.mxu0 %v10618_v45  ;;  %v2118_v38 = vld [vmem:[#allocation12 + $0x1ef0] sm:$0xff] }
 0x4cd   :  { %8272 = vmatpush1.bf16.msra.mxu1 %v10746_v46  ;;  %8232 = vmatprep.subr.bf16.mxu0 %v10739_v3  ;;  %v10835_v44 = vcombine.high %v2114_v57, %v2118_v38  ;;  %v1978_v45 = vld [vmem:[#allocation12 + $0x1a90] sm:$0xff]  ;;  %v10834_v60 = vcombine.low %v2114_v57, %v2118_v38 }
 0x4ce   :  { %8273 = vmatprep.subr.bf16.mxu1 %v10867_v14  ;;  %v1982_v46 = vld [vmem:[#allocation12 + $0x1ab0] sm:$0xff] }
 0x4cf   :  { %v2106_v3 = vld [vmem:[#allocation12 + $0x1e90] sm:$0xff]  ;;  %v10699_v15 = vcombine.high %v1978_v45, %v1982_v46  ;;  %v10698_v5 = vcombine.low %v1978_v45, %v1982_v46  ;;  %v1307_v46 = vld [vmem:[#allocation12 + $0x598] sm:$0xff] }
 0x4d0   :  { %8233 = vmatpush2.bf16.msra.mxu0 %v10738_v53  ;;  %v2110_v14 = vld [vmem:[#allocation12 + $0x1eb0] sm:$0xff] }
 0x4d1   :  { %8274 = vmatpush2.bf16.msra.mxu1 %v10866_v0  ;;  %8234 = vmatprep.subr.bf16.mxu0 %v10731_v58  ;;  %v10827_v2 = vcombine.high %v2106_v3, %v2110_v14  ;;  %v1970_v53 = vld [vmem:[#allocation12 + $0x1a50] sm:$0xff]  ;;  %v10826_v61 = vcombine.low %v2106_v3, %v2110_v14  ;;  %v1311_v3 = vld [vmem:[#allocation12 + $0x5b8] sm:$0xff] }
 0x4d2   :  { %8275 = vmatprep.subr.bf16.mxu1 %v10859_v54  ;;  %v1974_v0 = vld [vmem:[#allocation12 + $0x1a70] sm:$0xff] }
 0x4d3   :  { %v2098_v58 = vld [vmem:[#allocation12 + $0x1e50] sm:$0xff]  ;;  %v10691_v50 = vcombine.high %v1970_v53, %v1974_v0  ;;  %v10690_v8 = vcombine.low %v1970_v53, %v1974_v0  ;;  %v10029_v0 = vcombine.high %v1307_v46, %v1311_v3 }
 0x4d4   :  { %8235 = vmatpush2.bf16.msra.mxu0 %v10730_v34  ;;  %v2102_v54 = vld [vmem:[#allocation12 + $0x1e70] sm:$0xff] }
 0x4d5   :  { %8276 = vmatpush2.bf16.msra.mxu1 %v10858_v4  ;;  %8236 = vmatprep.subr.bf16.mxu0 %v10723_v24  ;;  %v10819_v17 = vcombine.high %v2098_v58, %v2102_v54  ;;  %v1962_v34 = vld [vmem:[#allocation12 + $0x1a10] sm:$0xff]  ;;  %v10818_v29 = vcombine.low %v2098_v58, %v2102_v54  ;;  %v1299_v58 = vld [vmem:[#allocation12 + $0x558] sm:$0xff] }
 0x4d6   :  { %8277 = vmatprep.subr.bf16.mxu1 %v10851_v25  ;;  %v1966_v4 = vld [vmem:[#allocation12 + $0x1a30] sm:$0xff]  ;;  %v1303_v54 = vld [vmem:[#allocation12 + $0x578] sm:$0xff] }
 0x4d7   :  { %v2090_v24 = vld [vmem:[#allocation12 + $0x1e10] sm:$0xff]  ;;  %v10683_v23 = vcombine.high %v1962_v34, %v1966_v4  ;;  %v10682_v16 = vcombine.low %v1962_v34, %v1966_v4  ;;  %v10028_v34 = vcombine.low %v1307_v46, %v1311_v3 }
 0x4d8   :  { %8237 = vmatpush2.bf16.msra.mxu0 %v10722_v18  ;;  %v2094_v25 = vld [vmem:[#allocation12 + $0x1e30] sm:$0xff]  ;;  %v1187_v18 = vld [vmem:[#allocation12 + $0x1d8] sm:$0xff] }
 0x4d9   :  { %8278 = vmatpush2.bf16.msra.mxu1 %v10850_v37  ;;  %8238 = vmatprep.subr.bf16.mxu0 %v10715_v33  ;;  %v10811_v22 = vcombine.high %v2090_v24, %v2094_v25  ;;  %v1191_v37 = vld [vmem:[#allocation12 + $0x1f8] sm:$0xff]  ;;  %v10810_v56 = vcombine.low %v2090_v24, %v2094_v25 }
 0x4da   :  { %8279 = vmatprep.subr.bf16.mxu1 %v10843_v13  ;;  %v1315_v33 = vld [vmem:[#allocation12 + $0x5d8] sm:$0xff]  ;;  %v9909_v57 = vcombine.high %v1187_v18, %v1191_v37  ;;  %v9908_v45 = vcombine.low %v1187_v18, %v1191_v37 }
 0x4db   :  { %v1319_v13 = vld [vmem:[#allocation12 + $0x5f8] sm:$0xff] }
 0x4dc   :  { %8239 = vmatpush2.bf16.msra.mxu0 %v10714_v40  ;;  %v10037_v38 = vcombine.high %v1315_v33, %v1319_v13  ;;  %v1179_v40 = vld [vmem:[#allocation12 + $0x198] sm:$0xff]  ;;  %v10036_v14 = vcombine.low %v1315_v33, %v1319_v13 }
 0x4dd   :  { %8280 = vmatpush2.bf16.msra.mxu1 %v10842_v42  ;;  %8240 = vmatprep.subr.bf16.mxu0 %v10707_v36  ;;  %v1183_v42 = vld [vmem:[#allocation12 + $0x1b8] sm:$0xff]  ;;  %v11234_v36 = vld [vmem:[#allocation14] sm:$0xff] }
 0x4de   :  { %8281 = vmatprep.subr.bf16.mxu1 %v10835_v44  ;;  %v2173_v44 = vrot.slane %v11234_v36, %v11680_v20  ;;  %v1291_v37 = vld [vmem:[#allocation12 + $0x518] sm:$0xff] }
 0x4df   :  { %v1295_v33 = vld [vmem:[#allocation12 + $0x538] sm:$0xff] }
 0x4e0   :  { %8241 = vmatpush2.bf16.msra.mxu0 %v10706_v10  ;;  %v2177_v10 = vrot.slane %v11234_v36, %v11688_v30  ;;  %v1159_v36 = vld [vmem:[#allocation12 + $0xf8] sm:$0xff]  ;;  %v10012_v3 = vcombine.low %v1291_v37, %v1295_v33 }
 0x4e1   :  { %8282 = vmatpush2.bf16.msra.mxu1 %v10834_v60  ;;  %8242 = vmatprep.subr.bf16.mxu0 %v10699_v15  ;;  %v9901_v60 = vcombine.high %v1179_v40, %v1183_v42  ;;  %v1171_v15 = vld [vmem:[#allocation12 + $0x158] sm:$0xff] }
 0x4e2   :  { %8283 = vmatprep.subr.bf16.mxu1 %v10827_v2  ;;  %v1175_v2 = vld [vmem:[#allocation12 + $0x178] sm:$0xff] }
 0x4e3   :  { %v9893_v4 = vcombine.high %v1171_v15, %v1175_v2 }
 0x4e4   :  { %8243 = vmatpush2.bf16.msra.mxu0 %v10698_v5 }
 0x4e5   :  { %8284 = vmatpush2.bf16.msra.mxu1 %v10826_v61  ;;  %8244 = vmatprep.subr.bf16.mxu0 %v10691_v50  ;;  %v9900_v50 = vcombine.low %v1179_v40, %v1183_v42  ;;  %v10013_v40 = vcombine.high %v1291_v37, %v1295_v33  ;;  %v1155_v42 = vld [vmem:[#allocation12 + $0xd8] sm:$0xff] }
 0x4e6   :  { %8285 = vmatprep.subr.bf16.mxu1 %v10819_v17  ;;  %v1263_v37 = vld [vmem:[#allocation12 + $0x438] sm:$0xff] }
 0x4e8   :  { %8245 = vmatpush2.bf16.msra.mxu0 %v10690_v8 }
 0x4e9   :  { %8286 = vmatpush2.bf16.msra.mxu1 %v10818_v29  ;;  %8246 = vmatprep.subr.bf16.mxu0 %v10683_v23  ;;  %v10021_v29 = vcombine.high %v1299_v58, %v1303_v54  ;;  %v1163_v23 = vld [vmem:[#allocation12 + $0x118] sm:$0xff] }
 0x4ea   :  { %8287 = vmatprep.subr.bf16.mxu1 %v10811_v22  ;;  %v1167_v22 = vld [vmem:[#allocation12 + $0x138] sm:$0xff] }
 0x4eb   :  { %v9884_v46 = vcombine.low %v1163_v23, %v1167_v22 }
 0x4ec   :  { %8247 = vmatpush2.bf16.msra.mxu0 %v10682_v16  ;;  %v9892_v16 = vcombine.low %v1171_v15, %v1175_v2  ;;  %v1151_v15 = vld [vmem:[#allocation12 + $0xb8] sm:$0xff] }
 0x4ed   :  { %8288 = vmatpush2.bf16.msra.mxu1 %v10810_v56  ;;  %8298 = vmatprep.subr.bf16.mxu0 %v9909_v57  ;;  %v10020_v57 = vcombine.low %v1299_v58, %v1303_v54  ;;  %v1275_v2 = vld [vmem:[#allocation12 + $0x498] sm:$0xff] }
 0x4ee   :  { %8339 = vmatprep.subr.bf16.mxu1 %v10037_v38 }
 0x4ef   :  { %v8004_v53 = vpop.f32.mrf.mxu0  ;;  %8249 = vmatmul.mubr.bf16.vlgmr.msra.gmra.mxu0 %v11996_v63 }
 0x4f0   :  { %v8005_v5 = vadd.f32 %v8004_v53, %v2173_v44  ;;  %v8045_v61 = vpop.f32.mrf.mxu1  ;;  %8290 = vmatmul.mubr.bf16.vlgmr.msra.gmra.mxu1 %v12000_v1  ;;  %8299 = vmatpush1.bf16.msra.mxu0 %v9908_v45  ;;  %v1283_v44 = vld [vmem:[#allocation12 + $0x4d8] sm:$0xff] }
 0x4f1   :  { %8330 = vmatprep.mubr.bf16.mxu0 %v11860_v48  ;;  %8340 = vmatpush1.bf16.msra.mxu1 %v10036_v14  ;;  %v8006_v17 = vpop.f32.mrf.mxu0  ;;  %v1287_v45 = vld [vmem:[#allocation12 + $0x4f8] sm:$0xff]  ;;  %v9877_v14 = vcombine.high %v1155_v42, %v1159_v36 }
 0x4f2   :  { %v12086_v24 = vadd.f32 %v8045_v61, %v8005_v5  ;;  %8371 = vmatprep.mubr.bf16.mxu1 %v11862_v49  ;;  %v8007_v25 = vadd.f32 %v8006_v17, %v2177_v10  ;;  %v8047_v8 = vpop.f32.mrf.mxu1  ;;  %8300 = vmatprep.subr.bf16.mxu0 %v9901_v60  ;;  %v9885_v49 = vcombine.high %v1163_v23, %v1167_v22  ;;  %v1147_v60 = vld [vmem:[#allocation12 + $0x98] sm:$0xff] }
 0x4f3   :  { %v8008_v18 = vpop.f32.mrf.mxu0  ;;  %8341 = vmatprep.subr.bf16.mxu1 %v10029_v0  ;;  %v10005_v10 = vcombine.high %v1283_v44, %v1287_v45  ;;  %v1279_v53 = vld [vmem:[#allocation12 + $0x4b8] sm:$0xff]  ;;  %v9876_v0 = vcombine.low %v1155_v42, %v1159_v36  ;;  %v10004_v58 = vcombine.low %v1283_v44, %v1287_v45  ;;  %v9869_v54 = vcombine.high %v1147_v60, %v1151_v15 }
 0x4f4   :  { %v12089_v13 = vadd.f32 %v8047_v8, %v8007_v25  ;;  %v8049_v48 = vpop.f32.mrf.mxu1  ;;  %8301 = vmatpush1.bf16.msra.mxu0 %v9900_v50  ;;  %v9997_v5 = vcombine.high %v1275_v2, %v1279_v53  ;;  %v1139_v61 = vld [vmem:[#allocation12 + $0x58] sm:$0xff]  ;;  %v9996_v25 = vcombine.low %v1275_v2, %v1279_v53 }
 0x4f5   :  { %8342 = vmatpush1.bf16.msra.mxu1 %v10028_v34  ;;  %v8009_v56 = vpop.f32.mrf.mxu0  ;;  %8302 = vmatprep.subr.bf16.mxu0 %v9893_v4  ;;  %v1143_v50 = vld [vmem:[#allocation12 + $0x78] sm:$0xff]  ;;  %v9868_v4 = vcombine.low %v1147_v60, %v1151_v15 }
 0x4f6   :  { %v8050_v38 = vpop.f32.mrf.mxu1  ;;  %8343 = vmatprep.subr.bf16.mxu1 %v10021_v29  ;;  %v1267_v17 = vld [vmem:[#allocation12 + $0x458] sm:$0xff]  ;;  %v9861_v8 = vcombine.high %v1139_v61, %v1143_v50  ;;  %v9860_v33 = vcombine.low %v1139_v61, %v1143_v50 }
 0x4f7   :  { %v1271_v34 = vld [vmem:[#allocation12 + $0x478] sm:$0xff] }
 0x4f8   :  { %8303 = vmatpush1.bf16.msra.mxu0 %v9892_v16  ;;  %v9989_v29 = vcombine.high %v1267_v17, %v1271_v34  ;;  %v1131_v23 = vld [vmem:[#allocation12 + $0x18] sm:$0xff]  ;;  %v9988_v48 = vcombine.low %v1267_v17, %v1271_v34 }
 0x4f9   :  { %8344 = vmatpush1.bf16.msra.mxu1 %v10020_v57  ;;  %8304 = vmatprep.subr.bf16.mxu0 %v9885_v49  ;;  %v1135_v22 = vld [vmem:[#allocation12 + $0x38] sm:$0xff] }
 0x4fa   :  { %8345 = vmatprep.subr.bf16.mxu1 %v10013_v40  ;;  %v1259_v18 = vld [vmem:[#allocation12 + $0x418] sm:$0xff]  ;;  %v9853_v16 = vcombine.high %v1131_v23, %v1135_v22  ;;  %v9852_v42 = vcombine.low %v1131_v23, %v1135_v22 }
 0x4fb   :  { %v9981_v56 = vcombine.high %v1259_v18, %v1263_v37  ;;  %v1251_v57 = vld [vmem:[#allocation12 + $0x3d8] sm:$0xff]  ;;  %v9980_v36 = vcombine.low %v1259_v18, %v1263_v37 }
 0x4fc   :  { %8305 = vmatpush1.bf16.msra.mxu0 %v9884_v46  ;;  %v1255_v49 = vld [vmem:[#allocation12 + $0x3f8] sm:$0xff] }
 0x4fd   :  { %8346 = vmatpush1.bf16.msra.mxu1 %v10012_v3  ;;  %8306 = vmatprep.subr.bf16.mxu0 %v9877_v14  ;;  %v1379_v38 = vld [vmem:[#allocation12 + $0x7d8] sm:$0xff]  ;;  %v9973_v44 = vcombine.high %v1251_v57, %v1255_v49  ;;  %v9972_v60 = vcombine.low %v1251_v57, %v1255_v49 }
 0x4fe   :  { %8347 = vmatprep.subr.bf16.mxu1 %v10005_v10  ;;  %v1383_v40 = vld [vmem:[#allocation12 + $0x7f8] sm:$0xff] }
 0x4ff   :  { %v10101_v45 = vcombine.high %v1379_v38, %v1383_v40  ;;  %v1243_v46 = vld [vmem:[#allocation12 + $0x398] sm:$0xff]  ;;  %v10100_v15 = vcombine.low %v1379_v38, %v1383_v40 }
 0x500   :  { %8307 = vmatpush1.bf16.msra.mxu0 %v9876_v0  ;;  %v1247_v3 = vld [vmem:[#allocation12 + $0x3b8] sm:$0xff] }
 0x501   :  { %8348 = vmatpush1.bf16.msra.mxu1 %v10004_v58  ;;  %8308 = vmatprep.subr.bf16.mxu0 %v9869_v54  ;;  %v1371_v14 = vld [vmem:[#allocation12 + $0x798] sm:$0xff]  ;;  %v9965_v2 = vcombine.high %v1243_v46, %v1247_v3  ;;  %v9964_v61 = vcombine.low %v1243_v46, %v1247_v3 }
 0x502   :  { %8349 = vmatprep.subr.bf16.mxu1 %v9997_v5  ;;  %v1375_v10 = vld [vmem:[#allocation12 + $0x7b8] sm:$0xff] }
 0x503   :  { %v10093_v53 = vcombine.high %v1371_v14, %v1375_v10  ;;  %v1235_v0 = vld [vmem:[#allocation12 + $0x358] sm:$0xff]  ;;  %v10092_v50 = vcombine.low %v1371_v14, %v1375_v10 }
 0x504   :  { %8309 = vmatpush1.bf16.msra.mxu0 %v9868_v4  ;;  %v1239_v58 = vld [vmem:[#allocation12 + $0x378] sm:$0xff] }
 0x505   :  { %8350 = vmatpush1.bf16.msra.mxu1 %v9996_v25  ;;  %8310 = vmatprep.subr.bf16.mxu0 %v9861_v8  ;;  %v1363_v54 = vld [vmem:[#allocation12 + $0x758] sm:$0xff]  ;;  %v9957_v17 = vcombine.high %v1235_v0, %v1239_v58  ;;  %v9956_v23 = vcombine.low %v1235_v0, %v1239_v58 }
 0x506   :  { %8351 = vmatprep.subr.bf16.mxu1 %v9989_v29  ;;  %v1367_v5 = vld [vmem:[#allocation12 + $0x778] sm:$0xff] }
 0x507   :  { %v10085_v34 = vcombine.high %v1363_v54, %v1367_v5  ;;  %v1227_v4 = vld [vmem:[#allocation12 + $0x318] sm:$0xff]  ;;  %v10084_v22 = vcombine.low %v1363_v54, %v1367_v5 }
 0x508   :  { %8311 = vmatpush1.bf16.msra.mxu0 %v9860_v33  ;;  %v1231_v25 = vld [vmem:[#allocation12 + $0x338] sm:$0xff] }
 0x509   :  { %8352 = vmatpush1.bf16.msra.mxu1 %v9988_v48  ;;  %8312 = vmatprep.subr.bf16.mxu0 %v9853_v16  ;;  %v1355_v8 = vld [vmem:[#allocation12 + $0x718] sm:$0xff]  ;;  %v9949_v18 = vcombine.high %v1227_v4, %v1231_v25  ;;  %v9948_v57 = vcombine.low %v1227_v4, %v1231_v25 }
 0x50a   :  { %8353 = vmatprep.subr.bf16.mxu1 %v9981_v56  ;;  %v1359_v29 = vld [vmem:[#allocation12 + $0x738] sm:$0xff] }
 0x50b   :  { %v10077_v37 = vcombine.high %v1355_v8, %v1359_v29  ;;  %v1219_v33 = vld [vmem:[#allocation12 + $0x2d8] sm:$0xff]  ;;  %v10076_v49 = vcombine.low %v1355_v8, %v1359_v29 }
 0x50c   :  { %8313 = vmatpush1.bf16.msra.mxu0 %v9852_v42  ;;  %v1223_v48 = vld [vmem:[#allocation12 + $0x2f8] sm:$0xff] }
 0x50d   :  { %8354 = vmatpush1.bf16.msra.mxu1 %v9980_v36  ;;  %8314 = vmatprep.subr.bf16.mxu0 %v9973_v44  ;;  %v1347_v16 = vld [vmem:[#allocation12 + $0x6d8] sm:$0xff]  ;;  %v9941_v38 = vcombine.high %v1219_v33, %v1223_v48  ;;  %v9940_v46 = vcombine.low %v1219_v33, %v1223_v48 }
 0x50e   :  { %8355 = vmatprep.subr.bf16.mxu1 %v10101_v45  ;;  %v1351_v56 = vld [vmem:[#allocation12 + $0x6f8] sm:$0xff] }
 0x50f   :  { %v10069_v40 = vcombine.high %v1347_v16, %v1351_v56  ;;  %v1211_v42 = vld [vmem:[#allocation12 + $0x298] sm:$0xff]  ;;  %v10068_v3 = vcombine.low %v1347_v16, %v1351_v56 }
 0x510   :  { %8315 = vmatpush2.bf16.msra.mxu0 %v9972_v60  ;;  %v1215_v36 = vld [vmem:[#allocation12 + $0x2b8] sm:$0xff] }
 0x511   :  { %8356 = vmatpush2.bf16.msra.mxu1 %v10100_v15  ;;  %8316 = vmatprep.subr.bf16.mxu0 %v9965_v2  ;;  %v1339_v44 = vld [vmem:[#allocation12 + $0x698] sm:$0xff]  ;;  %v9933_v14 = vcombine.high %v1211_v42, %v1215_v36  ;;  %v9932_v0 = vcombine.low %v1211_v42, %v1215_v36 }
 0x512   :  { %8357 = vmatprep.subr.bf16.mxu1 %v10093_v53  ;;  %v1343_v45 = vld [vmem:[#allocation12 + $0x6b8] sm:$0xff] }
 0x513   :  { %v10061_v10 = vcombine.high %v1339_v44, %v1343_v45  ;;  %v1203_v60 = vld [vmem:[#allocation12 + $0x258] sm:$0xff]  ;;  %v10060_v58 = vcombine.low %v1339_v44, %v1343_v45 }
 0x514   :  { %8317 = vmatpush2.bf16.msra.mxu0 %v9964_v61  ;;  %v1207_v15 = vld [vmem:[#allocation12 + $0x278] sm:$0xff] }
 0x515   :  { %8358 = vmatpush2.bf16.msra.mxu1 %v10092_v50  ;;  %8318 = vmatprep.subr.bf16.mxu0 %v9957_v17  ;;  %v1331_v2 = vld [vmem:[#allocation12 + $0x658] sm:$0xff]  ;;  %v9925_v54 = vcombine.high %v1203_v60, %v1207_v15  ;;  %v9924_v4 = vcombine.low %v1203_v60, %v1207_v15 }
 0x516   :  { %8359 = vmatprep.subr.bf16.mxu1 %v10085_v34  ;;  %v1335_v53 = vld [vmem:[#allocation12 + $0x678] sm:$0xff] }
 0x517   :  { %v10053_v5 = vcombine.high %v1331_v2, %v1335_v53  ;;  %v1195_v61 = vld [vmem:[#allocation12 + $0x218] sm:$0xff]  ;;  %v10052_v25 = vcombine.low %v1331_v2, %v1335_v53 }
 0x518   :  { %8319 = vmatpush2.bf16.msra.mxu0 %v9956_v23  ;;  %v1199_v50 = vld [vmem:[#allocation12 + $0x238] sm:$0xff] }
 0x519   :  { %8360 = vmatpush2.bf16.msra.mxu1 %v10084_v22  ;;  %8320 = vmatprep.subr.bf16.mxu0 %v9949_v18  ;;  %v1323_v17 = vld [vmem:[#allocation12 + $0x618] sm:$0xff]  ;;  %v9917_v8 = vcombine.high %v1195_v61, %v1199_v50  ;;  %v9916_v33 = vcombine.low %v1195_v61, %v1199_v50 }
 0x51a   :  { %8361 = vmatprep.subr.bf16.mxu1 %v10077_v37  ;;  %v1327_v34 = vld [vmem:[#allocation12 + $0x638] sm:$0xff] }
 0x51b   :  { %v10045_v29 = vcombine.high %v1323_v17, %v1327_v34  ;;  %v1443_v23 = vld [vmem:[#allocation12 + $0x9d8] sm:$0xff]  ;;  %v10044_v48 = vcombine.low %v1323_v17, %v1327_v34 }
 0x51c   :  { %8321 = vmatpush2.bf16.msra.mxu0 %v9948_v57  ;;  %v1447_v22 = vld [vmem:[#allocation12 + $0x9f8] sm:$0xff] }
 0x51d   :  { %8362 = vmatpush2.bf16.msra.mxu1 %v10076_v49  ;;  %8322 = vmatprep.subr.bf16.mxu0 %v9941_v38  ;;  %v1571_v18 = vld [vmem:[#allocation12 + $0xdd8] sm:$0xff]  ;;  %v10165_v16 = vcombine.high %v1443_v23, %v1447_v22  ;;  %v10164_v38 = vcombine.low %v1443_v23, %v1447_v22 }
 0x51e   :  { %8363 = vmatprep.subr.bf16.mxu1 %v10069_v40  ;;  %v1575_v37 = vld [vmem:[#allocation12 + $0xdf8] sm:$0xff] }
 0x51f   :  { %v10293_v56 = vcombine.high %v1571_v18, %v1575_v37  ;;  %v1435_v57 = vld [vmem:[#allocation12 + $0x998] sm:$0xff]  ;;  %v10292_v36 = vcombine.low %v1571_v18, %v1575_v37 }
 0x520   :  { %8323 = vmatpush2.bf16.msra.mxu0 %v9940_v46  ;;  %v1439_v49 = vld [vmem:[#allocation12 + $0x9b8] sm:$0xff] }
 0x521   :  { %8364 = vmatpush2.bf16.msra.mxu1 %v10068_v3  ;;  %8324 = vmatprep.subr.bf16.mxu0 %v9933_v14  ;;  %v1563_v40 = vld [vmem:[#allocation12 + $0xd98] sm:$0xff]  ;;  %v10157_v44 = vcombine.high %v1435_v57, %v1439_v49  ;;  %v10156_v53 = vcombine.low %v1435_v57, %v1439_v49 }
 0x522   :  { %8365 = vmatprep.subr.bf16.mxu1 %v10061_v10  ;;  %v1567_v42 = vld [vmem:[#allocation12 + $0xdb8] sm:$0xff] }
 0x523   :  { %v1427_v45 = vld [vmem:[#allocation12 + $0x958] sm:$0xff]  ;;  %v10285_v14 = vcombine.high %v1563_v40, %v1567_v42 }
 0x524   :  { %8325 = vmatpush2.bf16.msra.mxu0 %v9932_v0  ;;  %v1431_v46 = vld [vmem:[#allocation12 + $0x978] sm:$0xff] }
 0x525   :  { %8366 = vmatpush2.bf16.msra.mxu1 %v10060_v58  ;;  %8326 = vmatprep.subr.bf16.mxu0 %v9925_v54  ;;  %v1555_v10 = vld [vmem:[#allocation12 + $0xd58] sm:$0xff]  ;;  %v10284_v58 = vcombine.low %v1563_v40, %v1567_v42  ;;  %v10149_v54 = vcombine.high %v1427_v45, %v1431_v46 }
 0x526   :  { %8367 = vmatprep.subr.bf16.mxu1 %v10053_v5  ;;  %v1559_v60 = vld [vmem:[#allocation12 + $0xd78] sm:$0xff] }
 0x527   :  { %v1419_v50 = vld [vmem:[#allocation12 + $0x918] sm:$0xff] }
 0x528   :  { %8327 = vmatpush2.bf16.msra.mxu0 %v9924_v4  ;;  %v1423_v17 = vld [vmem:[#allocation12 + $0x938] sm:$0xff] }
 0x529   :  { %8368 = vmatpush2.bf16.msra.mxu1 %v10052_v25  ;;  %8328 = vmatprep.subr.bf16.mxu0 %v9917_v8  ;;  %v1547_v34 = vld [vmem:[#allocation12 + $0xd18] sm:$0xff]  ;;  %v10148_v8 = vcombine.low %v1427_v45, %v1431_v46  ;;  %v10141_v23 = vcombine.high %v1419_v50, %v1423_v17 }
 0x52a   :  { %8369 = vmatprep.subr.bf16.mxu1 %v10045_v29  ;;  %v1551_v4 = vld [vmem:[#allocation12 + $0xd38] sm:$0xff] }
 0x52b   :  { %v10269_v22 = vcombine.high %v1547_v34, %v1551_v4  ;;  %v1411_v18 = vld [vmem:[#allocation12 + $0x8d8] sm:$0xff] }
 0x52c   :  { %8329 = vmatpush2.bf16.msra.mxu0 %v9916_v33  ;;  %v1415_v37 = vld [vmem:[#allocation12 + $0x8f8] sm:$0xff] }
 0x52d   :  { %8370 = vmatpush2.bf16.msra.mxu1 %v10044_v48  ;;  %8380 = vmatprep.subr.bf16.mxu0 %v10165_v16  ;;  %v1539_v33 = vld [vmem:[#allocation12 + $0xcd8] sm:$0xff]  ;;  %v10140_v16 = vcombine.low %v1419_v50, %v1423_v17  ;;  %v10133_v57 = vcombine.high %v1411_v18, %v1415_v37 }
 0x52e   :  { %8421 = vmatprep.subr.bf16.mxu1 %v10293_v56  ;;  %v1543_v48 = vld [vmem:[#allocation12 + $0xcf8] sm:$0xff]  ;;  %v10268_v56 = vcombine.low %v1547_v34, %v1551_v4 }
 0x52f   :  { %v8086_v3 = vpop.f32.mrf.mxu0  ;;  %8331 = vmatmul.mubr.bf16.vlgmr.msra.gmra.mxu0 %v11864_v51  ;;  %v10261_v49 = vcombine.high %v1539_v33, %v1543_v48  ;;  %v1407_v40 = vld [vmem:[#allocation12 + $0x8b8] sm:$0xff]  ;;  %v10260_v45 = vcombine.low %v1539_v33, %v1543_v48 }
 0x530   :  { %v8087_v15 = vadd.f32 %v8086_v3, %v12086_v24  ;;  %v8127_v2 = vpop.f32.mrf.mxu1  ;;  %8372 = vmatmul.mubr.bf16.vlgmr.msra.gmra.mxu1 %v11866_v52  ;;  %8381 = vmatpush1.bf16.msra.mxu0 %v10164_v38  ;;  %v10277_v24 = vcombine.high %v1555_v10, %v1559_v60  ;;  %v1403_v38 = vld [vmem:[#allocation12 + $0x898] sm:$0xff] }
 0x531   :  { %8412 = vmatprep.mubr.bf16.mxu0 %v11880_v28  ;;  %8422 = vmatpush1.bf16.msra.mxu1 %v10292_v36  ;;  %v8088_v0 = vpop.f32.mrf.mxu0  ;;  %v1531_v42 = vld [vmem:[#allocation12 + $0xc98] sm:$0xff]  ;;  %v10125_v46 = vcombine.high %v1403_v38, %v1407_v40 }
 0x532   :  { %v12095_v5 = vadd.f32 %v8127_v2, %v8087_v15  ;;  %8453 = vmatprep.mubr.bf16.mxu1 %v11882_v7  ;;  %v8089_v51 = vadd.f32 %v8088_v0, %v12089_v13  ;;  %v8129_v61 = vpop.f32.mrf.mxu1  ;;  %8382 = vmatprep.subr.bf16.mxu0 %v10157_v44  ;;  %v10276_v7 = vcombine.low %v1555_v10, %v1559_v60  ;;  %v1535_v36 = vld [vmem:[#allocation12 + $0xcb8] sm:$0xff] }
 0x533   :  { %v8090_v52 = vpop.f32.mrf.mxu0  ;;  %8423 = vmatprep.subr.bf16.mxu1 %v10285_v14  ;;  %v10132_v44 = vcombine.low %v1411_v18, %v1415_v37  ;;  %v10253_v3 = vcombine.high %v1531_v42, %v1535_v36  ;;  %v1395_v14 = vld [vmem:[#allocation12 + $0x858] sm:$0xff]  ;;  %v10124_v2 = vcombine.low %v1403_v38, %v1407_v40 }
 0x534   :  { %v12099_v28 = vadd.f32 %v8129_v61, %v8089_v51  ;;  %v8131_v25 = vpop.f32.mrf.mxu1  ;;  %8383 = vmatpush1.bf16.msra.mxu0 %v10156_v53  ;;  %v1399_v10 = vld [vmem:[#allocation12 + $0x878] sm:$0xff]  ;;  %v10252_v53 = vcombine.low %v1531_v42, %v1535_v36 }
 0x535   :  { %8424 = vmatpush1.bf16.msra.mxu1 %v10284_v58  ;;  %v8091_v29 = vpop.f32.mrf.mxu0  ;;  %8384 = vmatprep.subr.bf16.mxu0 %v10149_v54  ;;  %v1523_v60 = vld [vmem:[#allocation12 + $0xc58] sm:$0xff]  ;;  %v10117_v0 = vcombine.high %v1395_v14, %v1399_v10  ;;  %v10116_v50 = vcombine.low %v1395_v14, %v1399_v10 }
 0x536   :  { %v8132_v13 = vpop.f32.mrf.mxu1  ;;  %8425 = vmatprep.subr.bf16.mxu1 %v10277_v24  ;;  %v1527_v15 = vld [vmem:[#allocation12 + $0xc78] sm:$0xff] }
 0x537   :  { %v10245_v58 = vcombine.high %v1523_v60, %v1527_v15  ;;  %v1387_v54 = vld [vmem:[#allocation12 + $0x818] sm:$0xff]  ;;  %v10244_v17 = vcombine.low %v1523_v60, %v1527_v15 }
 0x538   :  { %8385 = vmatpush1.bf16.msra.mxu0 %v10148_v8  ;;  %v1391_v51 = vld [vmem:[#allocation12 + $0x838] sm:$0xff] }
 0x539   :  { %8426 = vmatpush1.bf16.msra.mxu1 %v10276_v7  ;;  %8386 = vmatprep.subr.bf16.mxu0 %v10141_v23  ;;  %v1515_v61 = vld [vmem:[#allocation12 + $0xc18] sm:$0xff]  ;;  %v10109_v52 = vcombine.high %v1387_v54, %v1391_v51  ;;  %v10108_v7 = vcombine.low %v1387_v54, %v1391_v51 }
 0x53a   :  { %8427 = vmatprep.subr.bf16.mxu1 %v10269_v22  ;;  %v1519_v24 = vld [vmem:[#allocation12 + $0xc38] sm:$0xff] }
 0x53b   :  { %v10237_v34 = vcombine.high %v1515_v61, %v1519_v24  ;;  %v1507_v4 = vld [vmem:[#allocation12 + $0xbd8] sm:$0xff]  ;;  %v10236_v23 = vcombine.low %v1515_v61, %v1519_v24 }
 0x53c   :  { %8387 = vmatpush1.bf16.msra.mxu0 %v10140_v16  ;;  %v1511_v25 = vld [vmem:[#allocation12 + $0xbf8] sm:$0xff] }
 0x53d   :  { %8428 = vmatpush1.bf16.msra.mxu1 %v10268_v56  ;;  %8388 = vmatprep.subr.bf16.mxu0 %v10133_v57  ;;  %v1635_v8 = vld [vmem:[#allocation12 + $0xfd8] sm:$0xff]  ;;  %v10229_v13 = vcombine.high %v1507_v4, %v1511_v25  ;;  %v10228_v16 = vcombine.low %v1507_v4, %v1511_v25 }
 0x53e   :  { %8429 = vmatprep.subr.bf16.mxu1 %v10261_v49  ;;  %v1639_v29 = vld [vmem:[#allocation12 + $0xff8] sm:$0xff] }
 0x53f   :  { %v10357_v22 = vcombine.high %v1635_v8, %v1639_v29  ;;  %v1499_v18 = vld [vmem:[#allocation12 + $0xb98] sm:$0xff]  ;;  %v10356_v56 = vcombine.low %v1635_v8, %v1639_v29 }
 0x540   :  { %8389 = vmatpush1.bf16.msra.mxu0 %v10132_v44  ;;  %v1503_v37 = vld [vmem:[#allocation12 + $0xbb8] sm:$0xff] }
 0x541   :  { %8430 = vmatpush1.bf16.msra.mxu1 %v10260_v45  ;;  %8390 = vmatprep.subr.bf16.mxu0 %v10125_v46  ;;  %v1627_v33 = vld [vmem:[#allocation12 + $0xf98] sm:$0xff]  ;;  %v10221_v57 = vcombine.high %v1499_v18, %v1503_v37  ;;  %v10220_v44 = vcombine.low %v1499_v18, %v1503_v37 }
 0x542   :  { %8431 = vmatprep.subr.bf16.mxu1 %v10253_v3  ;;  %v1631_v48 = vld [vmem:[#allocation12 + $0xfb8] sm:$0xff] }
 0x543   :  { %v10349_v49 = vcombine.high %v1627_v33, %v1631_v48  ;;  %v1491_v38 = vld [vmem:[#allocation12 + $0xb58] sm:$0xff]  ;;  %v10348_v45 = vcombine.low %v1627_v33, %v1631_v48 }
 0x544   :  { %8391 = vmatpush1.bf16.msra.mxu0 %v10124_v2  ;;  %v1495_v40 = vld [vmem:[#allocation12 + $0xb78] sm:$0xff] }
 0x545   :  { %8432 = vmatpush1.bf16.msra.mxu1 %v10252_v53  ;;  %8392 = vmatprep.subr.bf16.mxu0 %v10117_v0  ;;  %v1619_v42 = vld [vmem:[#allocation12 + $0xf58] sm:$0xff]  ;;  %v10213_v46 = vcombine.high %v1491_v38, %v1495_v40  ;;  %v10212_v2 = vcombine.low %v1491_v38, %v1495_v40 }
 0x546   :  { %8433 = vmatprep.subr.bf16.mxu1 %v10245_v58  ;;  %v1623_v36 = vld [vmem:[#allocation12 + $0xf78] sm:$0xff] }
 0x547   :  { %v10341_v3 = vcombine.high %v1619_v42, %v1623_v36  ;;  %v1483_v14 = vld [vmem:[#allocation12 + $0xb18] sm:$0xff]  ;;  %v10340_v53 = vcombine.low %v1619_v42, %v1623_v36 }
 0x548   :  { %8393 = vmatpush1.bf16.msra.mxu0 %v10116_v50  ;;  %v1487_v10 = vld [vmem:[#allocation12 + $0xb38] sm:$0xff] }
 0x549   :  { %8434 = vmatpush1.bf16.msra.mxu1 %v10244_v17  ;;  %8394 = vmatprep.subr.bf16.mxu0 %v10109_v52  ;;  %v1611_v60 = vld [vmem:[#allocation12 + $0xf18] sm:$0xff]  ;;  %v10205_v0 = vcombine.high %v1483_v14, %v1487_v10  ;;  %v10204_v50 = vcombine.low %v1483_v14, %v1487_v10 }
 0x54a   :  { %8435 = vmatprep.subr.bf16.mxu1 %v10237_v34  ;;  %v1615_v15 = vld [vmem:[#allocation12 + $0xf38] sm:$0xff] }
 0x54b   :  { %v10333_v58 = vcombine.high %v1611_v60, %v1615_v15  ;;  %v1475_v54 = vld [vmem:[#allocation12 + $0xad8] sm:$0xff]  ;;  %v10332_v17 = vcombine.low %v1611_v60, %v1615_v15 }
 0x54c   :  { %8395 = vmatpush1.bf16.msra.mxu0 %v10108_v7  ;;  %v1479_v51 = vld [vmem:[#allocation12 + $0xaf8] sm:$0xff] }
 0x54d   :  { %8436 = vmatpush1.bf16.msra.mxu1 %v10236_v23  ;;  %8396 = vmatprep.subr.bf16.mxu0 %v10229_v13  ;;  %v1603_v61 = vld [vmem:[#allocation12 + $0xed8] sm:$0xff]  ;;  %v10197_v52 = vcombine.high %v1475_v54, %v1479_v51  ;;  %v10196_v7 = vcombine.low %v1475_v54, %v1479_v51 }
 0x54e   :  { %8437 = vmatprep.subr.bf16.mxu1 %v10357_v22  ;;  %v1607_v24 = vld [vmem:[#allocation12 + $0xef8] sm:$0xff] }
 0x54f   :  { %v10325_v34 = vcombine.high %v1603_v61, %v1607_v24  ;;  %v1467_v4 = vld [vmem:[#allocation12 + $0xa98] sm:$0xff]  ;;  %v10324_v23 = vcombine.low %v1603_v61, %v1607_v24 }
 0x550   :  { %8397 = vmatpush2.bf16.msra.mxu0 %v10228_v16  ;;  %v1471_v25 = vld [vmem:[#allocation12 + $0xab8] sm:$0xff] }
 0x551   :  { %8438 = vmatpush2.bf16.msra.mxu1 %v10356_v56  ;;  %8398 = vmatprep.subr.bf16.mxu0 %v10221_v57  ;;  %v1595_v8 = vld [vmem:[#allocation12 + $0xe98] sm:$0xff]  ;;  %v10189_v13 = vcombine.high %v1467_v4, %v1471_v25  ;;  %v10188_v16 = vcombine.low %v1467_v4, %v1471_v25 }
 0x552   :  { %8439 = vmatprep.subr.bf16.mxu1 %v10349_v49  ;;  %v1599_v29 = vld [vmem:[#allocation12 + $0xeb8] sm:$0xff] }
 0x553   :  { %v10317_v22 = vcombine.high %v1595_v8, %v1599_v29  ;;  %v1459_v18 = vld [vmem:[#allocation12 + $0xa58] sm:$0xff]  ;;  %v10316_v56 = vcombine.low %v1595_v8, %v1599_v29 }
 0x554   :  { %8399 = vmatpush2.bf16.msra.mxu0 %v10220_v44  ;;  %v1463_v37 = vld [vmem:[#allocation12 + $0xa78] sm:$0xff] }
 0x555   :  { %8440 = vmatpush2.bf16.msra.mxu1 %v10348_v45  ;;  %8400 = vmatprep.subr.bf16.mxu0 %v10213_v46  ;;  %v1587_v33 = vld [vmem:[#allocation12 + $0xe58] sm:$0xff]  ;;  %v10181_v57 = vcombine.high %v1459_v18, %v1463_v37  ;;  %v10180_v44 = vcombine.low %v1459_v18, %v1463_v37 }
 0x556   :  { %8441 = vmatprep.subr.bf16.mxu1 %v10341_v3  ;;  %v1591_v48 = vld [vmem:[#allocation12 + $0xe78] sm:$0xff] }
 0x557   :  { %v10309_v49 = vcombine.high %v1587_v33, %v1591_v48  ;;  %v1451_v38 = vld [vmem:[#allocation12 + $0xa18] sm:$0xff]  ;;  %v10308_v45 = vcombine.low %v1587_v33, %v1591_v48 }
 0x558   :  { %8401 = vmatpush2.bf16.msra.mxu0 %v10212_v2  ;;  %v1455_v40 = vld [vmem:[#allocation12 + $0xa38] sm:$0xff] }
 0x559   :  { %8442 = vmatpush2.bf16.msra.mxu1 %v10340_v53  ;;  %8402 = vmatprep.subr.bf16.mxu0 %v10205_v0  ;;  %v1579_v42 = vld [vmem:[#allocation12 + $0xe18] sm:$0xff]  ;;  %v10173_v46 = vcombine.high %v1451_v38, %v1455_v40  ;;  %v10172_v2 = vcombine.low %v1451_v38, %v1455_v40 }
 0x55a   :  { %8443 = vmatprep.subr.bf16.mxu1 %v10333_v58  ;;  %v1583_v36 = vld [vmem:[#allocation12 + $0xe38] sm:$0xff] }
 0x55b   :  { %v10301_v3 = vcombine.high %v1579_v42, %v1583_v36  ;;  %v1699_v14 = vld [vmem:[#allocation12 + $0x11d8] sm:$0xff]  ;;  %v10300_v53 = vcombine.low %v1579_v42, %v1583_v36 }
 0x55c   :  { %8403 = vmatpush2.bf16.msra.mxu0 %v10204_v50  ;;  %v1703_v10 = vld [vmem:[#allocation12 + $0x11f8] sm:$0xff] }
 0x55d   :  { %8444 = vmatpush2.bf16.msra.mxu1 %v10332_v17  ;;  %8404 = vmatprep.subr.bf16.mxu0 %v10197_v52  ;;  %v1827_v60 = vld [vmem:[#allocation12 + $0x15d8] sm:$0xff]  ;;  %v10421_v0 = vcombine.high %v1699_v14, %v1703_v10  ;;  %v10420_v61 = vcombine.low %v1699_v14, %v1703_v10 }
 0x55e   :  { %8445 = vmatprep.subr.bf16.mxu1 %v10325_v34  ;;  %v1831_v15 = vld [vmem:[#allocation12 + $0x15f8] sm:$0xff] }
 0x55f   :  { %v10549_v58 = vcombine.high %v1827_v60, %v1831_v15  ;;  %v1691_v54 = vld [vmem:[#allocation12 + $0x1198] sm:$0xff]  ;;  %v10548_v17 = vcombine.low %v1827_v60, %v1831_v15 }
 0x560   :  { %8405 = vmatpush2.bf16.msra.mxu0 %v10196_v7  ;;  %v1695_v51 = vld [vmem:[#allocation12 + $0x11b8] sm:$0xff] }
 0x561   :  { %8446 = vmatpush2.bf16.msra.mxu1 %v10324_v23  ;;  %8406 = vmatprep.subr.bf16.mxu0 %v10189_v13  ;;  %v1819_v24 = vld [vmem:[#allocation12 + $0x1598] sm:$0xff]  ;;  %v10413_v52 = vcombine.high %v1691_v54, %v1695_v51 }
 0x562   :  { %8447 = vmatprep.subr.bf16.mxu1 %v10317_v22  ;;  %v1823_v50 = vld [vmem:[#allocation12 + $0x15b8] sm:$0xff]  ;;  %v10412_v22 = vcombine.low %v1691_v54, %v1695_v51 }
 0x563   :  { %v1683_v34 = vld [vmem:[#allocation12 + $0x1158] sm:$0xff]  ;;  %v10541_v8 = vcombine.high %v1819_v24, %v1823_v50  ;;  %v10540_v37 = vcombine.low %v1819_v24, %v1823_v50 }
 0x564   :  { %8407 = vmatpush2.bf16.msra.mxu0 %v10188_v16  ;;  %v1687_v4 = vld [vmem:[#allocation12 + $0x1178] sm:$0xff] }
 0x565   :  { %8448 = vmatpush2.bf16.msra.mxu1 %v10316_v56  ;;  %8408 = vmatprep.subr.bf16.mxu0 %v10181_v57  ;;  %v1811_v29 = vld [vmem:[#allocation12 + $0x1558] sm:$0xff]  ;;  %v10405_v33 = vcombine.high %v1683_v34, %v1687_v4  ;;  %v10404_v42 = vcombine.low %v1683_v34, %v1687_v4 }
 0x566   :  { %8449 = vmatprep.subr.bf16.mxu1 %v10309_v49  ;;  %v1815_v7 = vld [vmem:[#allocation12 + $0x1578] sm:$0xff] }
 0x567   :  { %v1675_v56 = vld [vmem:[#allocation12 + $0x1118] sm:$0xff] }
 0x568   :  { %8409 = vmatpush2.bf16.msra.mxu0 %v10180_v44  ;;  %v1679_v57 = vld [vmem:[#allocation12 + $0x1138] sm:$0xff] }
 0x569   :  { %8450 = vmatpush2.bf16.msra.mxu1 %v10308_v45  ;;  %8410 = vmatprep.subr.bf16.mxu0 %v10173_v46  ;;  %v1803_v49 = vld [vmem:[#allocation12 + $0x1518] sm:$0xff]  ;;  %v10397_v44 = vcombine.high %v1675_v56, %v1679_v57  ;;  %v10396_v60 = vcombine.low %v1675_v56, %v1679_v57 }
 0x56a   :  { %8451 = vmatprep.subr.bf16.mxu1 %v10301_v3  ;;  %v1807_v38 = vld [vmem:[#allocation12 + $0x1538] sm:$0xff] }
 0x56b   :  { %v10525_v45 = vcombine.high %v1803_v49, %v1807_v38  ;;  %v1667_v46 = vld [vmem:[#allocation12 + $0x10d8] sm:$0xff]  ;;  %v10524_v15 = vcombine.low %v1803_v49, %v1807_v38 }
 0x56c   :  { %8411 = vmatpush2.bf16.msra.mxu0 %v10172_v2  ;;  %v1671_v3 = vld [vmem:[#allocation12 + $0x10f8] sm:$0xff] }
 0x56d   :  { %8452 = vmatpush2.bf16.msra.mxu1 %v10300_v53  ;;  %8462 = vmatprep.subr.bf16.mxu0 %v10421_v0  ;;  %v1795_v14 = vld [vmem:[#allocation12 + $0x14d8] sm:$0xff]  ;;  %v10389_v2 = vcombine.high %v1667_v46, %v1671_v3 }
 0x56e   :  { %8503 = vmatprep.subr.bf16.mxu1 %v10549_v58  ;;  %v1799_v10 = vld [vmem:[#allocation12 + $0x14f8] sm:$0xff] }
 0x56f   :  { %v8168_v25 = vpop.f32.mrf.mxu0  ;;  %8413 = vmatmul.mubr.bf16.vlgmr.msra.gmra.mxu0 %v11956_v55  ;;  %v10517_v53 = vcombine.high %v1795_v14, %v1799_v10  ;;  %v1659_v0 = vld [vmem:[#allocation12 + $0x1098] sm:$0xff]  ;;  %v10516_v24 = vcombine.low %v1795_v14, %v1799_v10 }
 0x570   :  { %v8169_v23 = vadd.f32 %v8168_v25, %v12095_v5  ;;  %v8209_v13 = vpop.f32.mrf.mxu1  ;;  %8454 = vmatmul.mubr.bf16.vlgmr.msra.gmra.mxu1 %v11960_v59  ;;  %8463 = vmatpush1.bf16.msra.mxu0 %v10420_v61  ;;  %v10533_v5 = vcombine.high %v1811_v29, %v1815_v7  ;;  %v1663_v58 = vld [vmem:[#allocation12 + $0x10b8] sm:$0xff]  ;;  %v10388_v61 = vcombine.low %v1667_v46, %v1671_v3 }
 0x571   :  { %8494 = vmatprep.mubr.bf16.mxu0 %v11962_v62  ;;  %8504 = vmatpush1.bf16.msra.mxu1 %v10548_v17  ;;  %v8170_v18 = vpop.f32.mrf.mxu0  ;;  %v1787_v54 = vld [vmem:[#allocation12 + $0x1498] sm:$0xff]  ;;  %v10381_v50 = vcombine.high %v1659_v0, %v1663_v58 }
 0x572   :  { %v12105_v48 = vadd.f32 %v8209_v13, %v8169_v23  ;;  %8535 = vmatprep.mubr.bf16.mxu1 %v11966_v27  ;;  %v8171_v55 = vadd.f32 %v8170_v18, %v12099_v28  ;;  %v8211_v16 = vpop.f32.mrf.mxu1  ;;  %8464 = vmatprep.subr.bf16.mxu0 %v10413_v52  ;;  %v10532_v27 = vcombine.low %v1811_v29, %v1815_v7  ;;  %v1791_v51 = vld [vmem:[#allocation12 + $0x14b8] sm:$0xff] }
 0x573   :  { %v8172_v59 = vpop.f32.mrf.mxu0  ;;  %8505 = vmatprep.subr.bf16.mxu1 %v10541_v8  ;;  %v10509_v17 = vcombine.high %v1787_v54, %v1791_v51  ;;  %v1651_v52 = vld [vmem:[#allocation12 + $0x1058] sm:$0xff]  ;;  %v10380_v8 = vcombine.low %v1659_v0, %v1663_v58  ;;  %v10508_v29 = vcombine.low %v1787_v54, %v1791_v51 }
 0x574   :  { %v12109_v62 = vadd.f32 %v8211_v16, %v8171_v55  ;;  %v8213_v40 = vpop.f32.mrf.mxu1  ;;  %8465 = vmatpush1.bf16.msra.mxu0 %v10412_v22  ;;  %v1655_v34 = vld [vmem:[#allocation12 + $0x1078] sm:$0xff] }
 0x575   :  { %8506 = vmatpush1.bf16.msra.mxu1 %v10540_v37  ;;  %v8173_v36 = vpop.f32.mrf.mxu0  ;;  %8466 = vmatprep.subr.bf16.mxu0 %v10405_v33  ;;  %v1779_v4 = vld [vmem:[#allocation12 + $0x1458] sm:$0xff]  ;;  %v10373_v7 = vcombine.high %v1651_v52, %v1655_v34  ;;  %v10372_v33 = vcombine.low %v1651_v52, %v1655_v34 }
 0x576   :  { %v8214_v28 = vpop.f32.mrf.mxu1  ;;  %8507 = vmatprep.subr.bf16.mxu1 %v10533_v5  ;;  %v1783_v25 = vld [vmem:[#allocation12 + $0x1478] sm:$0xff] }
 0x577   :  { %v10501_v23 = vcombine.high %v1779_v4, %v1783_v25  ;;  %v1643_v13 = vld [vmem:[#allocation12 + $0x1018] sm:$0xff]  ;;  %v10500_v55 = vcombine.low %v1779_v4, %v1783_v25 }
 0x578   :  { %8467 = vmatpush1.bf16.msra.mxu0 %v10404_v42  ;;  %v1647_v22 = vld [vmem:[#allocation12 + $0x1038] sm:$0xff] }
 0x579   :  { %8508 = vmatpush1.bf16.msra.mxu1 %v10532_v27  ;;  %8468 = vmatprep.subr.bf16.mxu0 %v10397_v44  ;;  %v1771_v18 = vld [vmem:[#allocation12 + $0x1418] sm:$0xff]  ;;  %v10365_v16 = vcombine.high %v1643_v13, %v1647_v22  ;;  %v10364_v38 = vcombine.low %v1643_v13, %v1647_v22 }
 0x57a   :  { %8509 = vmatprep.subr.bf16.mxu1 %v10525_v45  ;;  %v1775_v37 = vld [vmem:[#allocation12 + $0x1438] sm:$0xff] }
 0x57b   :  { %v10493_v5 = vcombine.high %v1771_v18, %v1775_v37  ;;  %v1763_v56 = vld [vmem:[#allocation12 + $0x13d8] sm:$0xff]  ;;  %v10492_v40 = vcombine.low %v1771_v18, %v1775_v37 }
 0x57c   :  { %8469 = vmatpush1.bf16.msra.mxu0 %v10396_v60  ;;  %v1767_v57 = vld [vmem:[#allocation12 + $0x13f8] sm:$0xff] }
 0x57d   :  { %8510 = vmatpush1.bf16.msra.mxu1 %v10524_v15  ;;  %8470 = vmatprep.subr.bf16.mxu0 %v10389_v2  ;;  %v1891_v59 = vld [vmem:[#allocation12 + $0x17d8] sm:$0xff]  ;;  %v10485_v42 = vcombine.high %v1763_v56, %v1767_v57  ;;  %v10484_v46 = vcombine.low %v1763_v56, %v1767_v57 }
 0x57e   :  { %8511 = vmatprep.subr.bf16.mxu1 %v10517_v53  ;;  %v1895_v49 = vld [vmem:[#allocation12 + $0x17f8] sm:$0xff] }
 0x57f   :  { %v10613_v36 = vcombine.high %v1891_v59, %v1895_v49  ;;  %v1755_v27 = vld [vmem:[#allocation12 + $0x1398] sm:$0xff]  ;;  %v10612_v3 = vcombine.low %v1891_v59, %v1895_v49 }
 0x580   :  { %8471 = vmatpush1.bf16.msra.mxu0 %v10388_v61  ;;  %v1759_v44 = vld [vmem:[#allocation12 + $0x13b8] sm:$0xff] }
 0x581   :  { %8512 = vmatpush1.bf16.msra.mxu1 %v10516_v24  ;;  %8472 = vmatprep.subr.bf16.mxu0 %v10381_v50  ;;  %v1883_v28 = vld [vmem:[#allocation12 + $0x1798] sm:$0xff]  ;;  %v10477_v14 = vcombine.high %v1755_v27, %v1759_v44  ;;  %v10476_v0 = vcombine.low %v1755_v27, %v1759_v44 }
 0x582   :  { %8513 = vmatprep.subr.bf16.mxu1 %v10509_v17  ;;  %v1887_v45 = vld [vmem:[#allocation12 + $0x17b8] sm:$0xff] }
 0x583   :  { %v10605_v10 = vcombine.high %v1883_v28, %v1887_v45  ;;  %v1747_v60 = vld [vmem:[#allocation12 + $0x1358] sm:$0xff]  ;;  %v10604_v58 = vcombine.low %v1883_v28, %v1887_v45 }
 0x584   :  { %8473 = vmatpush1.bf16.msra.mxu0 %v10380_v8  ;;  %v1751_v15 = vld [vmem:[#allocation12 + $0x1378] sm:$0xff] }
 0x585   :  { %8514 = vmatpush1.bf16.msra.mxu1 %v10508_v29  ;;  %8474 = vmatprep.subr.bf16.mxu0 %v10373_v7  ;;  %v1875_v2 = vld [vmem:[#allocation12 + $0x1758] sm:$0xff]  ;;  %v10469_v54 = vcombine.high %v1747_v60, %v1751_v15  ;;  %v10468_v52 = vcombine.low %v1747_v60, %v1751_v15 }
 0x586   :  { %8515 = vmatprep.subr.bf16.mxu1 %v10501_v23  ;;  %v1879_v53 = vld [vmem:[#allocation12 + $0x1778] sm:$0xff] }
 0x587   :  { %v10597_v51 = vcombine.high %v1875_v2, %v1879_v53  ;;  %v1739_v61 = vld [vmem:[#allocation12 + $0x1318] sm:$0xff]  ;;  %v10596_v34 = vcombine.low %v1875_v2, %v1879_v53 }
 0x588   :  { %8475 = vmatpush1.bf16.msra.mxu0 %v10372_v33  ;;  %v1743_v24 = vld [vmem:[#allocation12 + $0x1338] sm:$0xff] }
 0x589   :  { %8516 = vmatpush1.bf16.msra.mxu1 %v10500_v55  ;;  %8476 = vmatprep.subr.bf16.mxu0 %v10365_v16  ;;  %v1867_v50 = vld [vmem:[#allocation12 + $0x1718] sm:$0xff]  ;;  %v10461_v4 = vcombine.high %v1739_v61, %v1743_v24  ;;  %v10460_v13 = vcombine.low %v1739_v61, %v1743_v24 }
 0x58a   :  { %8517 = vmatprep.subr.bf16.mxu1 %v10493_v5  ;;  %v1871_v17 = vld [vmem:[#allocation12 + $0x1738] sm:$0xff] }
 0x58b   :  { %v10589_v25 = vcombine.high %v1867_v50, %v1871_v17  ;;  %v1731_v8 = vld [vmem:[#allocation12 + $0x12d8] sm:$0xff]  ;;  %v10588_v22 = vcombine.low %v1867_v50, %v1871_v17 }
 0x58c   :  { %8477 = vmatpush1.bf16.msra.mxu0 %v10364_v38  ;;  %v1735_v29 = vld [vmem:[#allocation12 + $0x12f8] sm:$0xff] }
 0x58d   :  { %8518 = vmatpush1.bf16.msra.mxu1 %v10492_v40  ;;  %8478 = vmatprep.subr.bf16.mxu0 %v10485_v42  ;;  %v1859_v7 = vld [vmem:[#allocation12 + $0x16d8] sm:$0xff]  ;;  %v10453_v18 = vcombine.high %v1731_v8, %v1735_v29  ;;  %v10452_v56 = vcombine.low %v1731_v8, %v1735_v29 }
 0x58e   :  { %8519 = vmatprep.subr.bf16.mxu1 %v10613_v36  ;;  %v1863_v23 = vld [vmem:[#allocation12 + $0x16f8] sm:$0xff] }
 0x58f   :  { %v10581_v37 = vcombine.high %v1859_v7, %v1863_v23  ;;  %v1723_v33 = vld [vmem:[#allocation12 + $0x1298] sm:$0xff]  ;;  %v10580_v57 = vcombine.low %v1859_v7, %v1863_v23 }
 0x590   :  { %8479 = vmatpush2.bf16.msra.mxu0 %v10484_v46  ;;  %v1727_v55 = vld [vmem:[#allocation12 + $0x12b8] sm:$0xff] }
 0x591   :  { %8520 = vmatpush2.bf16.msra.mxu1 %v10612_v3  ;;  %8480 = vmatprep.subr.bf16.mxu0 %v10477_v14  ;;  %v1851_v16 = vld [vmem:[#allocation12 + $0x1698] sm:$0xff]  ;;  %v10445_v59 = vcombine.high %v1723_v33, %v1727_v55  ;;  %v10444_v27 = vcombine.low %v1723_v33, %v1727_v55 }
 0x592   :  { %8521 = vmatprep.subr.bf16.mxu1 %v10605_v10  ;;  %v1855_v5 = vld [vmem:[#allocation12 + $0x16b8] sm:$0xff] }
 0x593   :  { %v10573_v49 = vcombine.high %v1851_v16, %v1855_v5  ;;  %v1715_v38 = vld [vmem:[#allocation12 + $0x1258] sm:$0xff]  ;;  %v10572_v44 = vcombine.low %v1851_v16, %v1855_v5 }
 0x594   :  { %8481 = vmatpush2.bf16.msra.mxu0 %v10476_v0  ;;  %v1719_v40 = vld [vmem:[#allocation12 + $0x1278] sm:$0xff] }
 0x595   :  { %8522 = vmatpush2.bf16.msra.mxu1 %v10604_v58  ;;  %8482 = vmatprep.subr.bf16.mxu0 %v10469_v54  ;;  %v1843_v42 = vld [vmem:[#allocation12 + $0x1658] sm:$0xff]  ;;  %v10437_v28 = vcombine.high %v1715_v38, %v1719_v40  ;;  %v10436_v60 = vcombine.low %v1715_v38, %v1719_v40 }
 0x596   :  { %8523 = vmatprep.subr.bf16.mxu1 %v10597_v51  ;;  %v1847_v36 = vld [vmem:[#allocation12 + $0x1678] sm:$0xff] }
 0x597   :  { %v10565_v45 = vcombine.high %v1843_v42, %v1847_v36  ;;  %v1707_v46 = vld [vmem:[#allocation12 + $0x1218] sm:$0xff]  ;;  %v10564_v15 = vcombine.low %v1843_v42, %v1847_v36 }
 0x598   :  { %8483 = vmatpush2.bf16.msra.mxu0 %v10468_v52  ;;  %v1711_v3 = vld [vmem:[#allocation12 + $0x1238] sm:$0xff] }
 0x599   :  { %8524 = vmatpush2.bf16.msra.mxu1 %v10596_v34  ;;  %8484 = vmatprep.subr.bf16.mxu0 %v10461_v4  ;;  %v1835_v14 = vld [vmem:[#allocation12 + $0x1618] sm:$0xff]  ;;  %v10429_v2 = vcombine.high %v1707_v46, %v1711_v3  ;;  %v10428_v61 = vcombine.low %v1707_v46, %v1711_v3 }
 0x59a   :  { %8525 = vmatprep.subr.bf16.mxu1 %v10589_v25  ;;  %v1839_v10 = vld [vmem:[#allocation12 + $0x1638] sm:$0xff] }
 0x59b   :  { %v10557_v53 = vcombine.high %v1835_v14, %v1839_v10  ;;  %v1955_v0 = vld [vmem:[#allocation12 + $0x19d8] sm:$0xff]  ;;  %v10556_v24 = vcombine.low %v1835_v14, %v1839_v10 }
 0x59c   :  { %8485 = vmatpush2.bf16.msra.mxu0 %v10460_v13  ;;  %v1959_v58 = vld [vmem:[#allocation12 + $0x19f8] sm:$0xff] }
 0x59d   :  { %8526 = vmatpush2.bf16.msra.mxu1 %v10588_v22  ;;  %8486 = vmatprep.subr.bf16.mxu0 %v10453_v18  ;;  %v2083_v54 = vld [vmem:[#allocation12 + $0x1dd8] sm:$0xff]  ;;  %v10677_v50 = vcombine.high %v1955_v0, %v1959_v58  ;;  %v10676_v4 = vcombine.low %v1955_v0, %v1959_v58 }
 0x59e   :  { %8527 = vmatprep.subr.bf16.mxu1 %v10581_v37  ;;  %v2087_v51 = vld [vmem:[#allocation12 + $0x1df8] sm:$0xff] }
 0x59f   :  { %v10805_v17 = vcombine.high %v2083_v54, %v2087_v51  ;;  %v1947_v52 = vld [vmem:[#allocation12 + $0x1998] sm:$0xff]  ;;  %v10804_v29 = vcombine.low %v2083_v54, %v2087_v51 }
 0x5a0   :  { %8487 = vmatpush2.bf16.msra.mxu0 %v10452_v56  ;;  %v1951_v34 = vld [vmem:[#allocation12 + $0x19b8] sm:$0xff] }
 0x5a1   :  { %8528 = vmatpush2.bf16.msra.mxu1 %v10580_v57  ;;  %8488 = vmatprep.subr.bf16.mxu0 %v10445_v59  ;;  %v2075_v25 = vld [vmem:[#allocation12 + $0x1d98] sm:$0xff]  ;;  %v10669_v7 = vcombine.high %v1947_v52, %v1951_v34  ;;  %v10668_v5 = vcombine.low %v1947_v52, %v1951_v34 }
 0x5a2   :  { %8529 = vmatprep.subr.bf16.mxu1 %v10573_v49  ;;  %v2079_v8 = vld [vmem:[#allocation12 + $0x1db8] sm:$0xff] }
 0x5a3   :  { %v1939_v23 = vld [vmem:[#allocation12 + $0x1958] sm:$0xff]  ;;  %v10797_v18 = vcombine.high %v2075_v25, %v2079_v8  ;;  %v10796_v57 = vcombine.low %v2075_v25, %v2079_v8 }
 0x5a4   :  { %8489 = vmatpush2.bf16.msra.mxu0 %v10444_v27  ;;  %v1943_v13 = vld [vmem:[#allocation12 + $0x1978] sm:$0xff] }
 0x5a5   :  { %8530 = vmatpush2.bf16.msra.mxu1 %v10572_v44  ;;  %8490 = vmatprep.subr.bf16.mxu0 %v10437_v28  ;;  %v2067_v37 = vld [vmem:[#allocation12 + $0x1d58] sm:$0xff]  ;;  %v10661_v59 = vcombine.high %v1939_v23, %v1943_v13  ;;  %v10660_v28 = vcombine.low %v1939_v23, %v1943_v13 }
 0x5a6   :  { %8531 = vmatprep.subr.bf16.mxu1 %v10565_v45  ;;  %v2071_v33 = vld [vmem:[#allocation12 + $0x1d78] sm:$0xff] }
 0x5a7   :  { %v1931_v40 = vld [vmem:[#allocation12 + $0x1918] sm:$0xff] }
 0x5a8   :  { %8491 = vmatpush2.bf16.msra.mxu0 %v10436_v60  ;;  %v1935_v42 = vld [vmem:[#allocation12 + $0x1938] sm:$0xff] }
 0x5a9   :  { %8532 = vmatpush2.bf16.msra.mxu1 %v10564_v15  ;;  %8492 = vmatprep.subr.bf16.mxu0 %v10429_v2  ;;  %v2059_v36 = vld [vmem:[#allocation12 + $0x1d18] sm:$0xff]  ;;  %v10653_v46 = vcombine.high %v1931_v40, %v1935_v42  ;;  %v10652_v2 = vcombine.low %v1931_v40, %v1935_v42 }
 0x5aa   :  { %8533 = vmatprep.subr.bf16.mxu1 %v10557_v53  ;;  %v2063_v27 = vld [vmem:[#allocation12 + $0x1d38] sm:$0xff] }
 0x5ab   :  { %v10781_v3 = vcombine.high %v2059_v36, %v2063_v27  ;;  %v1923_v14 = vld [vmem:[#allocation12 + $0x18d8] sm:$0xff]  ;;  %v10780_v53 = vcombine.low %v2059_v36, %v2063_v27 }
 0x5ac   :  { %8493 = vmatpush2.bf16.msra.mxu0 %v10428_v61  ;;  %v1927_v10 = vld [vmem:[#allocation12 + $0x18f8] sm:$0xff] }
 0x5ad   :  { %8534 = vmatpush2.bf16.msra.mxu1 %v10556_v24  ;;  %8544 = vmatprep.subr.bf16.mxu0 %v10677_v50  ;;  %v2051_v60 = vld [vmem:[#allocation12 + $0x1cd8] sm:$0xff]  ;;  %v10645_v0 = vcombine.high %v1923_v14, %v1927_v10  ;;  %v10644_v50 = vcombine.low %v1923_v14, %v1927_v10 }
 0x5ae   :  { %8585 = vmatprep.subr.bf16.mxu1 %v10805_v17  ;;  %v2055_v15 = vld [vmem:[#allocation12 + $0x1cf8] sm:$0xff] }
 0x5af   :  { %v8250_v22 = vpop.f32.mrf.mxu0  ;;  %8495 = vmatmul.mubr.bf16.vlgmr.msra.gmra.mxu0 %v11975_v6  ;;  %v10773_v58 = vcombine.high %v2051_v60, %v2055_v15  ;;  %v1915_v54 = vld [vmem:[#allocation12 + $0x1898] sm:$0xff]  ;;  %v10772_v17 = vcombine.low %v2051_v60, %v2055_v15 }
 0x5b0   :  { %v8251_v55 = vadd.f32 %v8250_v22, %v12105_v48  ;;  %v8291_v16 = vpop.f32.mrf.mxu1  ;;  %8536 = vmatmul.mubr.bf16.vlgmr.msra.gmra.mxu1 %v11979_v26  ;;  %8545 = vmatpush1.bf16.msra.mxu0 %v10676_v4  ;;  %v10789_v48 = vcombine.high %v2067_v37, %v2071_v33  ;;  %v1919_v51 = vld [vmem:[#allocation12 + $0x18b8] sm:$0xff] }
 0x5b1   :  { %8576 = vmatprep.mubr.bf16.mxu0 %v11984_v43  ;;  %8586 = vmatpush1.bf16.msra.mxu1 %v10804_v29  ;;  %v8252_v56 = vpop.f32.mrf.mxu0  ;;  %v2043_v61 = vld [vmem:[#allocation12 + $0x1c98] sm:$0xff]  ;;  %v10637_v52 = vcombine.high %v1915_v54, %v1919_v51 }
 0x5b2   :  { %v12115_v49 = vadd.f32 %v8291_v16, %v8251_v55  ;;  %8617 = vmatprep.mubr.bf16.mxu1 %v11989_v41  ;;  %v8253_v6 = vadd.f32 %v8252_v56, %v12109_v62  ;;  %v8293_v38 = vpop.f32.mrf.mxu1  ;;  %8546 = vmatprep.subr.bf16.mxu0 %v10669_v7  ;;  %v10788_v41 = vcombine.low %v2067_v37, %v2071_v33  ;;  %v2047_v24 = vld [vmem:[#allocation12 + $0x1cb8] sm:$0xff] }
 0x5b3   :  { %v8254_v26 = vpop.f32.mrf.mxu0  ;;  %8587 = vmatprep.subr.bf16.mxu1 %v10797_v18  ;;  %v10765_v34 = vcombine.high %v2043_v61, %v2047_v24  ;;  %v1907_v4 = vld [vmem:[#allocation12 + $0x1858] sm:$0xff]  ;;  %v10636_v7 = vcombine.low %v1915_v54, %v1919_v51  ;;  %v10764_v23 = vcombine.low %v2043_v61, %v2047_v24 }
 0x5b4   :  { %v12119_v43 = vadd.f32 %v8293_v38, %v8253_v6  ;;  %v8295_v44 = vpop.f32.mrf.mxu1  ;;  %8547 = vmatpush1.bf16.msra.mxu0 %v10668_v5  ;;  %v1911_v25 = vld [vmem:[#allocation12 + $0x1878] sm:$0xff] }
 0x5b5   :  { %8588 = vmatpush1.bf16.msra.mxu1 %v10796_v57  ;;  %v8255_v45 = vpop.f32.mrf.mxu0  ;;  %8548 = vmatprep.subr.bf16.mxu0 %v10661_v59  ;;  %v2035_v8 = vld [vmem:[#allocation12 + $0x1c58] sm:$0xff]  ;;  %v10629_v13 = vcombine.high %v1907_v4, %v1911_v25  ;;  %v10628_v16 = vcombine.low %v1907_v4, %v1911_v25 }
 0x5b6   :  { %v8296_v62 = vpop.f32.mrf.mxu1  ;;  %8589 = vmatprep.subr.bf16.mxu1 %v10789_v48  ;;  %v2039_v29 = vld [vmem:[#allocation12 + $0x1c78] sm:$0xff] }
 0x5b7   :  { %v10757_v22 = vcombine.high %v2035_v8, %v2039_v29  ;;  %v1899_v18 = vld [vmem:[#allocation12 + $0x1818] sm:$0xff]  ;;  %v10756_v5 = vcombine.low %v2035_v8, %v2039_v29 }
 0x5b8   :  { %8549 = vmatpush1.bf16.msra.mxu0 %v10660_v28  ;;  %v1903_v37 = vld [vmem:[#allocation12 + $0x1838] sm:$0xff] }
 0x5b9   :  { %8590 = vmatpush1.bf16.msra.mxu1 %v10788_v41  ;;  %8550 = vmatprep.subr.bf16.mxu0 %v10653_v46  ;;  %v2027_v33 = vld [vmem:[#allocation12 + $0x1c18] sm:$0xff]  ;;  %v10621_v56 = vcombine.high %v1899_v18, %v1903_v37  ;;  %v10620_v40 = vcombine.low %v1899_v18, %v1903_v37 }
 0x5ba   :  { %8591 = vmatprep.subr.bf16.mxu1 %v10781_v3  ;;  %v2031_v55 = vld [vmem:[#allocation12 + $0x1c38] sm:$0xff] }
 0x5bb   :  { %v10749_v57 = vcombine.high %v2027_v33, %v2031_v55  ;;  %v2019_v59 = vld [vmem:[#allocation12 + $0x1bd8] sm:$0xff]  ;;  %v10748_v42 = vcombine.low %v2027_v33, %v2031_v55 }
 0x5bc   :  { %8551 = vmatpush1.bf16.msra.mxu0 %v10652_v2  ;;  %v2023_v6 = vld [vmem:[#allocation12 + $0x1bf8] sm:$0xff] }
 0x5bd   :  { %8592 = vmatpush1.bf16.msra.mxu1 %v10780_v53  ;;  %8552 = vmatprep.subr.bf16.mxu0 %v10645_v0  ;;  %v2147_v38 = vld [vmem:[#allocation12 + $0x1fd8] sm:$0xff]  ;;  %v10741_v26 = vcombine.high %v2019_v59, %v2023_v6  ;;  %v10740_v41 = vcombine.low %v2019_v59, %v2023_v6 }
 0x5be   :  { %8593 = vmatprep.subr.bf16.mxu1 %v10773_v58  ;;  %v2151_v48 = vld [vmem:[#allocation12 + $0x1ff8] sm:$0xff] }
 0x5bf   :  { %v10869_v36 = vcombine.high %v2147_v38, %v2151_v48  ;;  %v2011_v27 = vld [vmem:[#allocation12 + $0x1b98] sm:$0xff]  ;;  %v10868_v46 = vcombine.low %v2147_v38, %v2151_v48 }
 0x5c0   :  { %8553 = vmatpush1.bf16.msra.mxu0 %v10644_v50  ;;  %v2015_v44 = vld [vmem:[#allocation12 + $0x1bb8] sm:$0xff] }
 0x5c1   :  { %8594 = vmatpush1.bf16.msra.mxu1 %v10772_v17  ;;  %8554 = vmatprep.subr.bf16.mxu0 %v10637_v52  ;;  %v2139_v28 = vld [vmem:[#allocation12 + $0x1f98] sm:$0xff]  ;;  %v10733_v62 = vcombine.high %v2011_v27, %v2015_v44  ;;  %v10732_v2 = vcombine.low %v2011_v27, %v2015_v44 }
 0x5c2   :  { %8595 = vmatprep.subr.bf16.mxu1 %v10765_v34  ;;  %v2143_v45 = vld [vmem:[#allocation12 + $0x1fb8] sm:$0xff] }
 0x5c3   :  { %v10861_v3 = vcombine.high %v2139_v28, %v2143_v45  ;;  %v2003_v14 = vld [vmem:[#allocation12 + $0x1b58] sm:$0xff]  ;;  %v10860_v53 = vcombine.low %v2139_v28, %v2143_v45 }
 0x5c4   :  { %8555 = vmatpush1.bf16.msra.mxu0 %v10636_v7  ;;  %v2007_v10 = vld [vmem:[#allocation12 + $0x1b78] sm:$0xff] }
 0x5c5   :  { %8596 = vmatpush1.bf16.msra.mxu1 %v10764_v23  ;;  %8556 = vmatprep.subr.bf16.mxu0 %v10629_v13  ;;  %v2131_v60 = vld [vmem:[#allocation12 + $0x1f58] sm:$0xff]  ;;  %v10725_v0 = vcombine.high %v2003_v14, %v2007_v10  ;;  %v10724_v50 = vcombine.low %v2003_v14, %v2007_v10 }
 0x5c6   :  { %8597 = vmatprep.subr.bf16.mxu1 %v10757_v22  ;;  %v2135_v15 = vld [vmem:[#allocation12 + $0x1f78] sm:$0xff] }
 0x5c7   :  { %v10853_v58 = vcombine.high %v2131_v60, %v2135_v15  ;;  %v1995_v54 = vld [vmem:[#allocation12 + $0x1b18] sm:$0xff]  ;;  %v10852_v17 = vcombine.low %v2131_v60, %v2135_v15  ;;  %v11235_v60 = vld [vmem:[#allocation14] sm:$0xff] }
 0x5c8   :  { %8557 = vmatpush1.bf16.msra.mxu0 %v10628_v16  ;;  %v1999_v51 = vld [vmem:[#allocation12 + $0x1b38] sm:$0xff]  ;;  %v2181_v15 = vrot.slane %v11235_v60, %v11682_v21 }
 0x5c9   :  { %8598 = vmatpush1.bf16.msra.mxu1 %v10756_v5  ;;  %8558 = vmatprep.subr.bf16.mxu0 %v10621_v56  ;;  %v2123_v61 = vld [vmem:[#allocation12 + $0x1f18] sm:$0xff]  ;;  %v10717_v52 = vcombine.high %v1995_v54, %v1999_v51  ;;  %v10716_v7 = vcombine.low %v1995_v54, %v1999_v51 }
 0x5ca   :  { %8599 = vmatprep.subr.bf16.mxu1 %v10749_v57  ;;  %v2127_v24 = vld [vmem:[#allocation12 + $0x1f38] sm:$0xff] }
 0x5cb   :  { %v10845_v34 = vcombine.high %v2123_v61, %v2127_v24  ;;  %v1987_v4 = vld [vmem:[#allocation12 + $0x1ad8] sm:$0xff]  ;;  %v10844_v23 = vcombine.low %v2123_v61, %v2127_v24 }
 0x5cc   :  { %8559 = vmatpush1.bf16.msra.mxu0 %v10620_v40  ;;  %v1991_v25 = vld [vmem:[#allocation12 + $0x1af8] sm:$0xff] }
 0x5cd   :  { %8600 = vmatpush1.bf16.msra.mxu1 %v10748_v42  ;;  %8560 = vmatprep.subr.bf16.mxu0 %v10741_v26  ;;  %v2115_v8 = vld [vmem:[#allocation12 + $0x1ed8] sm:$0xff]  ;;  %v10709_v13 = vcombine.high %v1987_v4, %v1991_v25  ;;  %v10708_v16 = vcombine.low %v1987_v4, %v1991_v25 }
 0x5ce   :  { %8601 = vmatprep.subr.bf16.mxu1 %v10869_v36  ;;  %v2119_v29 = vld [vmem:[#allocation12 + $0x1ef8] sm:$0xff] }
 0x5cf   :  { %v10837_v22 = vcombine.high %v2115_v8, %v2119_v29  ;;  %v1979_v18 = vld [vmem:[#allocation12 + $0x1a98] sm:$0xff]  ;;  %v10836_v5 = vcombine.low %v2115_v8, %v2119_v29 }
 0x5d0   :  { %8561 = vmatpush2.bf16.msra.mxu0 %v10740_v41  ;;  %v1983_v37 = vld [vmem:[#allocation12 + $0x1ab8] sm:$0xff] }
 0x5d1   :  { %8602 = vmatpush2.bf16.msra.mxu1 %v10868_v46  ;;  %8562 = vmatprep.subr.bf16.mxu0 %v10733_v62  ;;  %v2107_v33 = vld [vmem:[#allocation12 + $0x1e98] sm:$0xff]  ;;  %v10701_v56 = vcombine.high %v1979_v18, %v1983_v37  ;;  %v10700_v40 = vcombine.low %v1979_v18, %v1983_v37 }
 0x5d2   :  { %8603 = vmatprep.subr.bf16.mxu1 %v10861_v3  ;;  %v2111_v55 = vld [vmem:[#allocation12 + $0x1eb8] sm:$0xff] }
 0x5d3   :  { %v10829_v57 = vcombine.high %v2107_v33, %v2111_v55  ;;  %v1971_v59 = vld [vmem:[#allocation12 + $0x1a58] sm:$0xff]  ;;  %v10828_v42 = vcombine.low %v2107_v33, %v2111_v55  ;;  %v11035_v55 = vld [vmem:[#allocation18 + $0x70] ss:$8 sps:$4 sm:$0xff]  }
 0x5d4   :  { %8563 = vmatpush2.bf16.msra.mxu0 %v10732_v2  ;;  %v1975_v6 = vld [vmem:[#allocation12 + $0x1a78] sm:$0xff]  ;;  %v2185_v2 = vrot.slane %v11235_v60, %v11690_v31 }
 0x5d5   :  { %8604 = vmatpush2.bf16.msra.mxu1 %v10860_v53  ;;  %8564 = vmatprep.subr.bf16.mxu0 %v10725_v0  ;;  %v2099_v38 = vld [vmem:[#allocation12 + $0x1e58] sm:$0xff]  ;;  %v10693_v26 = vcombine.high %v1971_v59, %v1975_v6  ;;  %v10692_v41 = vcombine.low %v1971_v59, %v1975_v6 }
 0x5d6   :  { %8605 = vmatprep.subr.bf16.mxu1 %v10853_v58  ;;  %v2103_v48 = vld [vmem:[#allocation12 + $0x1e78] sm:$0xff] }
 0x5d7   :  { %v10821_v36 = vcombine.high %v2099_v38, %v2103_v48  ;;  %v1963_v27 = vld [vmem:[#allocation12 + $0x1a18] sm:$0xff]  ;;  %v10820_v46 = vcombine.low %v2099_v38, %v2103_v48  ;;  %v11049_v48 = vld [vmem:[#allocation18 + $0x54] ss:$8 sps:$4 sm:$0xff]  }
 0x5d8   :  { %8565 = vmatpush2.bf16.msra.mxu0 %v10724_v50  ;;  %v1967_v44 = vld [vmem:[#allocation12 + $0x1a38] sm:$0xff] }
 0x5d9   :  { %8606 = vmatpush2.bf16.msra.mxu1 %v10852_v17  ;;  %8566 = vmatprep.subr.bf16.mxu0 %v10717_v52  ;;  %v2091_v28 = vld [vmem:[#allocation12 + $0x1e18] sm:$0xff]  ;;  %v10685_v62 = vcombine.high %v1963_v27, %v1967_v44  ;;  %v10684_v14 = vcombine.low %v1963_v27, %v1967_v44 }
 0x5da   :  { %8607 = vmatprep.subr.bf16.mxu1 %v10845_v34  ;;  %v2095_v45 = vld [vmem:[#allocation12 + $0x1e38] sm:$0xff] }
 0x5db   :  { %v10813_v3 = vcombine.high %v2091_v28, %v2095_v45  ;;  %v10812_v10 = vcombine.low %v2091_v28, %v2095_v45  ;;  %v11046_v59 = vld [vmem:[#allocation18 + $0x164] ss:$8 sps:$4 sm:$0xff]   ;;  %v11041_v6 = vld [vmem:[#allocation18 + $0x60] ss:$8 sps:$4 sm:$0xff]   ;;  %v11061_v45 = vld [vmem:[#allocation18 + $0x34] ss:$8 sps:$4 sm:$0xff]  }
 0x5dc   :  { %8567 = vmatpush2.bf16.msra.mxu0 %v10716_v7  ;;  %v11044_v38 = vld [vmem:[#allocation18 + $0x160] ss:$8 sps:$4 sm:$0xff]   ;;  %v11058_v27 = vld [vmem:[#allocation18 + $0x144] ss:$8 sps:$4 sm:$0xff]  }
 0x5dd   :  { %8608 = vmatpush2.bf16.msra.mxu1 %v10844_v23  ;;  %8568 = vmatprep.subr.bf16.mxu0 %v10709_v13  ;;  %v11053_v44 = vld [vmem:[#allocation18 + $0x40] ss:$8 sps:$4 sm:$0xff]  }
 0x5de   :  { %8609 = vmatprep.subr.bf16.mxu1 %v10837_v22  ;;  %v11056_v28 = vld [vmem:[#allocation18 + $0x140] ss:$8 sps:$4 sm:$0xff]  }
 0x5df   :  { %v11068_v60 = vld [vmem:[#allocation18 + $0x120] ss:$8 sps:$4 sm:$0xff]  }
 0x5e0   :  { %8569 = vmatpush2.bf16.msra.mxu0 %v10708_v16  ;;  %v11037_v16 = vld [vmem:[#allocation18 + $0x74] ss:$8 sps:$4 sm:$0xff]  }
 0x5e1   :  { %8610 = vmatpush2.bf16.msra.mxu1 %v10836_v5  ;;  %8570 = vmatprep.subr.bf16.mxu0 %v10701_v56  ;;  %v11038_v5 = vld [vmem:[#allocation18 + $0x170] ss:$8 sps:$4 sm:$0xff]   ;;  %v11040_v56 = vld [vmem:[#allocation18 + $0x174] ss:$8 sps:$4 sm:$0xff]  }
 0x5e2   :  { %8611 = vmatprep.subr.bf16.mxu1 %v10829_v57  ;;  %v11043_v57 = vld [vmem:[#allocation18 + $0x64] ss:$8 sps:$4 sm:$0xff]  }
 0x5e4   :  { %8571 = vmatpush2.bf16.msra.mxu0 %v10700_v40  ;;  %v11052_v40 = vld [vmem:[#allocation18 + $0x154] ss:$8 sps:$4 sm:$0xff]  }
 0x5e5   :  { %8612 = vmatpush2.bf16.msra.mxu1 %v10828_v42  ;;  %8572 = vmatprep.subr.bf16.mxu0 %v10693_v26  ;;  %v11047_v42 = vld [vmem:[#allocation18 + $0x50] ss:$8 sps:$4 sm:$0xff]  }
 0x5e6   :  { %8613 = vmatprep.subr.bf16.mxu1 %v10821_v36  ;;  %v11050_v26 = vld [vmem:[#allocation18 + $0x150] ss:$8 sps:$4 sm:$0xff]   ;;  %v11055_v36 = vld [vmem:[#allocation18 + $0x44] ss:$8 sps:$4 sm:$0xff]  }
 0x5e8   :  { %8573 = vmatpush2.bf16.msra.mxu0 %v10692_v41  ;;  %v11064_v41 = vld [vmem:[#allocation18 + $0x134] ss:$8 sps:$4 sm:$0xff]  }
 0x5e9   :  { %8614 = vmatpush2.bf16.msra.mxu1 %v10820_v46  ;;  %8574 = vmatprep.subr.bf16.mxu0 %v10685_v62  ;;  %v11059_v46 = vld [vmem:[#allocation18 + $0x30] ss:$8 sps:$4 sm:$0xff]  }
 0x5ea   :  { %8615 = vmatprep.subr.bf16.mxu1 %v10813_v3  ;;  %v11062_v62 = vld [vmem:[#allocation18 + $0x130] ss:$8 sps:$4 sm:$0xff]   ;;  %v11067_v3 = vld [vmem:[#allocation18 + $0x24] ss:$8 sps:$4 sm:$0xff]  }
 0x5ec   :  { %8575 = vmatpush2.bf16.msra.mxu0 %v10684_v14  ;;  %v11070_v14 = vld [vmem:[#allocation18 + $0x124] ss:$8 sps:$4 sm:$0xff]  }
 0x5ed   :  { %8616 = vmatpush2.bf16.msra.mxu1 %v10812_v10  ;;  %9570 = vmatprep.subr.bf16.mxu0 %v11037_v16  ;;  %v11065_v10 = vld [vmem:[#allocation18 + $0x20] ss:$8 sps:$4 sm:$0xff]  }
 0x5ee   :  { %9611 = vmatprep.subr.bf16.mxu1 %v11040_v56 }
 0x5ef   :  { %v8332_v53 = vpop.f32.mrf.mxu0  ;;  %8577 = vmatmul.mubr.bf16.vlgmr.msra.gmra.mxu0 %v11996_v63 }
 0x5f0   :  { %v8333_v0 = vadd.f32 %v8332_v53, %v2181_v15  ;;  %v8373_v58 = vpop.f32.mrf.mxu1  ;;  %8618 = vmatmul.mubr.bf16.vlgmr.msra.gmra.mxu1 %v12000_v1  ;;  %9571 = vmatpush1.bf16.msra.mxu0 %v11035_v55  ;;  %v11073_v15 = vld [vmem:[#allocation18 + $0x14] ss:$8 sps:$4 sm:$0xff]   ;;  %v11071_v53 = vld [vmem:[#allocation18 + $0x10] ss:$8 sps:$4 sm:$0xff]  }
 0x5f1   :  { %v8334_v54 = vpop.f32.mrf.mxu0  ;;  %9612 = vmatpush1.bf16.msra.mxu1 %v11038_v5  ;;  %9572 = vmatprep.subr.bf16.mxu0 %v11043_v57 }
 0x5f2   :  { %v8374_v51 = vadd.f32 %v8373_v58, %v8333_v0  ;;  %v8335_v61 = vadd.f32 %v8334_v54, %v2185_v2  ;;  %v8375_v24 = vpop.f32.mrf.mxu1  ;;  %9613 = vmatprep.subr.bf16.mxu1 %v11046_v59  ;;  %v11076_v2 = vld [vmem:[#allocation18 + $0x114] ss:$8 sps:$4 sm:$0xff]   ;;  %v11074_v0 = vld [vmem:[#allocation18 + $0x110] ss:$8 sps:$4 sm:$0xff]   ;;  %v11079_v58 = vld [vmem:[#allocation18 + $0x4] ss:$8 sps:$4 sm:$0xff]  }
 0x5f3   :  { %v8336_v50 = vpop.f32.mrf.mxu0  ;;  %v11082_v54 = vld [vmem:[#allocation18 + $0x104] ss:$8 sps:$4 sm:$0xff]   ;;  %v12161_v59 = vmax.f32 %v12119_v43, 0.0 }
 0x5f4   :  { %v8376_v17 = vadd.f32 %v8375_v24, %v8335_v61  ;;  %v8377_v52 = vpop.f32.mrf.mxu1  ;;  %9573 = vmatpush1.bf16.msra.mxu0 %v11041_v6  ;;  %v11080_v61 = vld [vmem:[#allocation18 + $0x100] ss:$8 sps:$4 sm:$0xff]  }
 0x5f5   :  { %v8337_v34 = vpop.f32.mrf.mxu0  ;;  %9614 = vmatpush1.bf16.msra.mxu1 %v11044_v38  ;;  %9574 = vmatprep.subr.bf16.mxu0 %v11049_v48 }
 0x5f6   :  { %v8378_v4 = vpop.f32.mrf.mxu1  ;;  %9615 = vmatprep.subr.bf16.mxu1 %v11052_v40 }
 0x5f8   :  { %9575 = vmatpush1.bf16.msra.mxu0 %v11047_v42 }
 0x5f9   :  { %9616 = vmatpush1.bf16.msra.mxu1 %v11050_v26  ;;  %9576 = vmatprep.subr.bf16.mxu0 %v11055_v36 }
 0x5fa   :  { %9617 = vmatprep.subr.bf16.mxu1 %v11058_v27 }
 0x5fc   :  { %9577 = vmatpush1.bf16.msra.mxu0 %v11053_v44 }
 0x5fd   :  { %9618 = vmatpush1.bf16.msra.mxu1 %v11056_v28  ;;  %9578 = vmatprep.subr.bf16.mxu0 %v11061_v45 }
 0x5fe   :  { %9619 = vmatprep.subr.bf16.mxu1 %v11064_v41 }
 0x600   :  { %9579 = vmatpush1.bf16.msra.mxu0 %v11059_v46 }
 0x601   :  { %9620 = vmatpush1.bf16.msra.mxu1 %v11062_v62  ;;  %9580 = vmatprep.subr.bf16.mxu0 %v11067_v3 }
 0x602   :  { %9621 = vmatprep.subr.bf16.mxu1 %v11070_v14 }
 0x604   :  { %9581 = vmatpush1.bf16.msra.mxu0 %v11065_v10 }
 0x605   :  { %9622 = vmatpush1.bf16.msra.mxu1 %v11068_v60  ;;  %9582 = vmatprep.subr.bf16.mxu0 %v11073_v15 }
 0x606   :  { %9623 = vmatprep.subr.bf16.mxu1 %v11076_v2 }
 0x608   :  { %9583 = vmatpush1.bf16.msra.mxu0 %v11071_v53 }
 0x609   :  { %9624 = vmatpush1.bf16.msra.mxu1 %v11074_v0  ;;  %9584 = vmatprep.subr.bf16.mxu0 %v11079_v58 }
 0x60a   :  { %9625 = vmatprep.subr.bf16.mxu1 %v11082_v54 }
 0x60d   :  { %9626 = vmatpush1.bf16.msra.mxu1 %v11080_v61  ;;  %v11085_v61 = vld [vmem:[#allocation18 + $0xf4] ss:$8 sps:$4 sm:$0xff]  }
 0x62f   :  { %v8414_v25 = vpop.f32.mrf.mxu0 }
 0x630   :  { %v8415_v8 = vadd.f32 %v8414_v25, %v8374_v51  ;;  %v8455_v29 = vpop.f32.mrf.mxu1  ;;  %v11077_v51 = vld [vmem:[#allocation18] ss:$8 sps:$4 sm:$0xff]  }
 0x631   :  { %v8416_v7 = vpop.f32.mrf.mxu0  ;;  %9585 = vmatpush1.bf16.msra.mxu0 %v11077_v51  ;;  %v11083_v51 = vld [vmem:[#allocation18 + $0xf0] ss:$8 sps:$4 sm:$0xff]  }
 0x632   :  { %v12125_v23 = vadd.f32 %v8455_v29, %v8415_v8  ;;  %v8417_v63 = vadd.f32 %v8416_v7, %v8376_v17  ;;  %v8457_v13 = vpop.f32.mrf.mxu1  ;;  %v12130_v29 = vmax.f32 %v12039_v12, 0.0  ;;  %v12133_v7 = vmax.f32 %v12035_v32, 0.0  ;;  %9586 = vmatprep.subr.bf16.mxu0 %v11085_v61 }
 0x633   :  { %v8418_v22 = vpop.f32.mrf.mxu0  ;;  %v12147_v12 = vmax.f32 %v12079_v39, 0.0 }
 0x634   :  { %v12127_v18 = vadd.f32 %v8457_v13, %v8417_v63  ;;  %v8459_v1 = vpop.f32.mrf.mxu1  ;;  %v12136_v63 = vmax.f32 %v12075_v47, 0.0  ;;  %v8644_v13 = vmul.f32 %v12130_v29, %v12130_v29  ;;  %v8643_v22 = vmul.f32 %v12133_v7, %v12133_v7 }
 0x635   :  { %v8419_v37 = vpop.f32.mrf.mxu0  ;;  %v8634_v1 = vadd.f32 %v12130_v29, %v12133_v7  ;;  %v12151_v47 = vmax.f32 %v12115_v49, 0.0  ;;  %v8646_v5 = vmul.f32 %v12147_v12, %v12147_v12  ;;  %9587 = vmatpush2.bf16.msra.mxu0 %v11083_v51 }
 0x636   :  { %v8460_v33 = vpop.f32.mrf.mxu1  ;;  %v8645_v37 = vmul.f32 %v12136_v63, %v12136_v63  ;;  %v8651_v32 = vadd.f32 %v8644_v13, %v8643_v22  ;;  %v11095_v13 = vld [vmem:[#allocation18 + $0xd0] ss:$8 sps:$4 sm:$0xff]  }
 0x637   :  { %v8635_v33 = vadd.f32 %v8634_v1, %v12136_v63  ;;  %v8647_v39 = vmul.f32 %v12151_v47, %v12151_v47  ;;  %v11098_v22 = vld [vmem:[#allocation18 + $0x1d0] ss:$8 sps:$4 sm:$0xff]   ;;  %v11103_v1 = vld [vmem:[#allocation18 + $0xc4] ss:$8 sps:$4 sm:$0xff]  }
 0x638   :  { %v8652_v16 = vadd.f32 %v8651_v32, %v8645_v37  ;;  %v11106_v37 = vld [vmem:[#allocation18 + $0x1c4] ss:$8 sps:$4 sm:$0xff]   ;;  %v11101_v32 = vld [vmem:[#allocation18 + $0xc0] ss:$8 sps:$4 sm:$0xff]  }
 0x639   :  { %v8636_v57 = vadd.f32 %v8635_v33, %v12147_v12  ;;  %v11104_v33 = vld [vmem:[#allocation18 + $0x1c0] ss:$8 sps:$4 sm:$0xff]  }
 0x63a   :  { %v8653_v49 = vadd.f32 %v8652_v16, %v8646_v5  ;;  %v11112_v16 = vld [vmem:[#allocation18 + $0x1b4] ss:$8 sps:$4 sm:$0xff]   ;;  %v11107_v5 = vld [vmem:[#allocation18 + $0xb0] ss:$8 sps:$4 sm:$0xff]  }
 0x63b   :  { %v8637_v48 = vadd.f32 %v8636_v57, %v12151_v47  ;;  %v11115_v57 = vld [vmem:[#allocation18 + $0xa4] ss:$8 sps:$4 sm:$0xff]  }
 0x63c   :  { %v8654_v28 = vadd.f32 %v8653_v49, %v8647_v39  ;;  %v11118_v39 = vld [vmem:[#allocation18 + $0x1a4] ss:$8 sps:$4 sm:$0xff]   ;;  %v11121_v49 = vld [vmem:[#allocation18 + $0x94] ss:$8 sps:$4 sm:$0xff]  }
 0x63d   :  { %v8638_v62 = vadd.f32 %v8637_v48, %v12161_v59  ;;  %v11124_v48 = vld [vmem:[#allocation18 + $0x194] ss:$8 sps:$4 sm:$0xff]  }
 0x66f   :  { %v8496_v24 = vpop.f32.mrf.mxu0 }
 0x670   :  { %v8537_v50 = vpop.f32.mrf.mxu1  ;;  %v8497_v55 = vadd.f32 %v8496_v24, %v12125_v23  ;;  %v11086_v24 = vld [vmem:[#allocation18 + $0x1f0] ss:$8 sps:$4 sm:$0xff]  }
 0x671   :  { %v8498_v17 = vpop.f32.mrf.mxu0 }
 0x672   :  { %v8539_v52 = vpop.f32.mrf.mxu1  ;;  %v8499_v56 = vadd.f32 %v8498_v17, %v12127_v18  ;;  %v8538_v6 = vadd.f32 %v8537_v50, %v8497_v55  ;;  %v8648_v18 = vmul.f32 %v12161_v59, %v12161_v59  ;;  %v11088_v50 = vld [vmem:[#allocation18 + $0x1f4] ss:$8 sps:$4 sm:$0xff]   ;;  %v11089_v17 = vld [vmem:[#allocation18 + $0xe0] ss:$8 sps:$4 sm:$0xff]  }
 0x673   :  { %v8500_v34 = vpop.f32.mrf.mxu0  ;;  %9627 = vmatprep.subr.bf16.mxu1 %v11088_v50  ;;  %v11109_v55 = vld [vmem:[#allocation18 + $0xb4] ss:$8 sps:$4 sm:$0xff]  }
 0x674   :  { %v8541_v4 = vpop.f32.mrf.mxu1  ;;  %v8540_v23 = vadd.f32 %v8539_v52, %v8499_v56  ;;  %v8655_v2 = vadd.f32 %v8654_v28, %v8648_v18  ;;  %9628 = vmatpush2.bf16.msra.mxu1 %v11086_v24  ;;  %v11091_v52 = vld [vmem:[#allocation18 + $0xe4] ss:$8 sps:$4 sm:$0xff]   ;;  %v11092_v34 = vld [vmem:[#allocation18 + $0x1e0] ss:$8 sps:$4 sm:$0xff]   ;;  %v11110_v56 = vld [vmem:[#allocation18 + $0x1b0] ss:$8 sps:$4 sm:$0xff]  }
 0x675   :  { %v8501_v25 = vpop.f32.mrf.mxu0  ;;  %v11094_v4 = vld [vmem:[#allocation18 + $0x1e4] ss:$8 sps:$4 sm:$0xff]   ;;  %9588 = vmatprep.subr.bf16.mxu0 %v11091_v52  ;;  %v11125_v18 = vld [vmem:[#allocation18 + $0x80] ss:$8 sps:$4 sm:$0xff]  }
 0x676   :  { %v8542_v8 = vpop.f32.mrf.mxu1  ;;  %v11097_v25 = vld [vmem:[#allocation18 + $0xd4] ss:$8 sps:$4 sm:$0xff]   ;;  %9629 = vmatprep.subr.bf16.mxu1 %v11094_v4  ;;  %9589 = vmatpush2.bf16.msra.mxu0 %v11089_v17 }
 0x677   :  { %v11100_v8 = vld [vmem:[#allocation18 + $0x1d4] ss:$8 sps:$4 sm:$0xff]   ;;  %9590 = vmatprep.subr.bf16.mxu0 %v11097_v25 }
 0x678   :  { %9630 = vmatpush2.bf16.msra.mxu1 %v11092_v34 }
 0x679   :  { %9631 = vmatprep.subr.bf16.mxu1 %v11100_v8 }
 0x67a   :  { %9591 = vmatpush2.bf16.msra.mxu0 %v11095_v13 }
 0x67b   :  { %9592 = vmatprep.subr.bf16.mxu0 %v11103_v1 }
 0x67c   :  { %9632 = vmatpush2.bf16.msra.mxu1 %v11098_v22 }
 0x67d   :  { %9633 = vmatprep.subr.bf16.mxu1 %v11106_v37 }
 0x67e   :  { %9593 = vmatpush2.bf16.msra.mxu0 %v11101_v32 }
 0x67f   :  { %9594 = vmatprep.subr.bf16.mxu0 %v11109_v55 }
 0x680   :  { %9634 = vmatpush2.bf16.msra.mxu1 %v11104_v33 }
 0x681   :  { %9635 = vmatprep.subr.bf16.mxu1 %v11112_v16 }
 0x682   :  { %9595 = vmatpush2.bf16.msra.mxu0 %v11107_v5 }
 0x683   :  { %9596 = vmatprep.subr.bf16.mxu0 %v11115_v57 }
 0x684   :  { %9636 = vmatpush2.bf16.msra.mxu1 %v11110_v56 }
 0x685   :  { %9637 = vmatprep.subr.bf16.mxu1 %v11118_v39 }
 0x6af   :  { %v8578_v38 = vpop.f32.mrf.mxu0 }
 0x6b0   :  { %v8579_v40 = vadd.f32 %v8578_v38, %v8538_v6  ;;  %v8619_v42 = vpop.f32.mrf.mxu1  ;;  %v11113_v6 = vld [vmem:[#allocation18 + $0xa0] ss:$8 sps:$4 sm:$0xff]  }
 0x6b1   :  { %v8580_v26 = vpop.f32.mrf.mxu0  ;;  %v11116_v38 = vld [vmem:[#allocation18 + $0x1a0] ss:$8 sps:$4 sm:$0xff]   ;;  %9597 = vmatpush2.bf16.msra.mxu0 %v11113_v6 }
 0x6b2   :  { %v8620_v36 = vadd.f32 %v8619_v42, %v8579_v40  ;;  %v8581_v27 = vadd.f32 %v8580_v26, %v8540_v23  ;;  %v8621_v44 = vpop.f32.mrf.mxu1  ;;  %v11119_v23 = vld [vmem:[#allocation18 + $0x90] ss:$8 sps:$4 sm:$0xff]   ;;  %9638 = vmatpush2.bf16.msra.mxu1 %v11116_v38  ;;  %9598 = vmatprep.subr.bf16.mxu0 %v11121_v49  ;;  %v11127_v42 = vld [vmem:[#allocation18 + $0x84] ss:$8 sps:$4 sm:$0xff]  }
 0x6b3   :  { %v8582_v45 = vpop.f32.mrf.mxu0  ;;  %v11122_v40 = vld [vmem:[#allocation18 + $0x190] ss:$8 sps:$4 sm:$0xff]   ;;  %9639 = vmatprep.subr.bf16.mxu1 %v11124_v48  ;;  %v11130_v26 = vld [vmem:[#allocation18 + $0x184] ss:$8 sps:$4 sm:$0xff]  }
 0x6b4   :  { %v12166_v41 = vmax.f32 %v8620_v36, 0.0  ;;  %v8622_v43 = vadd.f32 %v8621_v44, %v8581_v27  ;;  %v8623_v46 = vpop.f32.mrf.mxu1  ;;  %v11128_v36 = vld [vmem:[#allocation18 + $0x180] ss:$8 sps:$4 sm:$0xff]   ;;  %v11133_v27 = vld [vmem:[#allocation18 + $0x274] ss:$8 sps:$4 sm:$0xff]  }
 0x6b5   :  { %v8583_v3 = vpop.f32.mrf.mxu0  ;;  %9599 = vmatpush2.bf16.msra.mxu0 %v11119_v23  ;;  %v11136_v44 = vld [vmem:[#allocation18 + $0x374] ss:$8 sps:$4 sm:$0xff]  }
 0x6b6   :  { %v12169_v14 = vmax.f32 %v8622_v43, 0.0  ;;  %v8624_v10 = vpop.f32.mrf.mxu1  ;;  %v8639_v60 = vadd.f32 %v8638_v62, %v12166_v41  ;;  %v8649_v15 = vmul.f32 %v12166_v41, %v12166_v41  ;;  %9640 = vmatpush2.bf16.msra.mxu1 %v11122_v40  ;;  %9600 = vmatprep.subr.bf16.mxu0 %v11127_v42 }
 0x6b7   :  { %9641 = vmatprep.subr.bf16.mxu1 %v11130_v26 }
 0x6b8   :  { %v8640_v53 = vadd.f32 %v8639_v60, %v12169_v14  ;;  %v8650_v0 = vmul.f32 %v12169_v14, %v12169_v14  ;;  %v8656_v58 = vadd.f32 %v8655_v2, %v8649_v15  ;;  %v8682_v60 = vld [vmem:[#allocation15] sm:$0xff]  ;;  %v8732_v15 = vld [vmem:[#allocation17] sm:$0xff] }
 0x6b9   :  { %9601 = vmatpush2.bf16.msra.mxu0 %v11125_v18  ;;  %v8691_v2 = vrot.slane %v8682_v60, %v11672_v11  ;;  %v8737_v51 = vrot.slane %v8732_v15, %v12240_v19  ;;  %v8695_v61 = vrot.slane %v8682_v60, %v11670_v9  ;;  %v8745_v24 = vrot.slane %v8732_v15, %v11670_v9 }
 0x6ba   :  { %8641 = vadd.xlane.f32.xlu1 %v8640_v53  ;;  %v8657_v54 = vadd.f32 %v8656_v58, %v8650_v0  ;;  %9642 = vmatpush2.bf16.msra.mxu1 %v11128_v36  ;;  %v8741_v53 = vrot.slane %v8732_v15, %v11672_v11  ;;  %v8699_v0 = vrot.slane %v8682_v60, %v12239_v35 }
 0x6bb   :  { %9652 = vmatprep.subr.bf16.mxu0 %v11133_v27  ;;  %9693 = vmatprep.subr.bf16.mxu1 %v11136_v44  ;;  %v8749_v58 = vrot.slane %v8732_v15, %v12239_v35  ;;  %v8707_v50 = vrot.slane %v8682_v60, %v11688_v30  ;;  %v8757_v17 = vrot.slane %v8732_v15, %v11688_v30  ;;  %v11131_v27 = vld [vmem:[#allocation18 + $0x270] ss:$8 sps:$4 sm:$0xff]  }
 0x6bc   :  { %v8715_v52 = vrot.slane %v8682_v60, %v11690_v31  ;;  %v8765_v34 = vrot.slane %v8732_v15, %v11690_v31  ;;  %v8703_v4 = vrot.slane %v8682_v60, %v11680_v20  ;;  %v8753_v35 = vrot.slane %v8732_v15, %v11680_v20  ;;  %v11134_v44 = vld [vmem:[#allocation18 + $0x370] ss:$8 sps:$4 sm:$0xff]  }
 0x6bd   :  { %v8711_v25 = vrot.slane %v8682_v60, %v11682_v21  ;;  %v8761_v8 = vrot.slane %v8732_v15, %v11682_v21  ;;  %v11145_v15 = vld [vmem:[#allocation18 + $0x254] ss:$8 sps:$4 sm:$0xff]  }
 0x6be   :  { %8658 = vadd.xlane.f32.xlu1 %v8657_v54  ;;  %v8687_v54 = vrot.slane %v8682_v60, %v12240_v19  ;;  %v11140_v60 = vld [vmem:[#allocation18 + $0x360] ss:$8 sps:$4 sm:$0xff]  }
 0x743   :  { %v8642_v28 = vpop.xlane.xlu1 %8641 }
 0x744   :  { %v8660_v45 = vmul.f32 0.0009765625, %v8642_v28 }
 0x746   :  { %v8662_v46 = vmul.f32 %v8660_v45, %v8660_v45  ;;  %v8667_v13 = vsub.f32 %v12130_v29, %v8660_v45  ;;  %v8669_v9 = vsub.f32 %v12147_v12, %v8660_v45  ;;  %v8666_v22 = vsub.f32 %v12133_v7, %v8660_v45 }
 0x747   :  { %v8659_v43 = vpop.xlane.xlu1 %8658  ;;  %v8668_v30 = vsub.f32 %v12136_v63, %v8660_v45  ;;  %v8671_v37 = vsub.f32 %v12161_v59, %v8660_v45  ;;  %v8673_v31 = vsub.f32 %v12169_v14, %v8660_v45  ;;  %v8670_v32 = vsub.f32 %v12151_v47, %v8660_v45 }
 0x748   :  { %v8661_v62 = vmul.f32 0.0009765625, %v8659_v43  ;;  %v8672_v20 = vsub.f32 %v12166_v41, %v8660_v45  ;;  %v11139_v43 = vld [vmem:[#allocation18 + $0x264] ss:$8 sps:$4 sm:$0xff]  }
 0x74a   :  { %v8663_v3 = vsub.f32 %v8661_v62, %v8662_v46  ;;  %v11142_v46 = vld [vmem:[#allocation18 + $0x364] ss:$8 sps:$4 sm:$0xff]  }
 0x74c   :  { %v8664_v10 = vadd.f32 1e-05, %v8663_v3 }
 0x74e   :  { %11229 = vrsqrt.f32 %v8664_v10  ;;  %v11137_v10 = vld [vmem:[#allocation18 + $0x260] ss:$8 sps:$4 sm:$0xff]  }
 0x75b   :  { %v11230_v1 = vpop.eup %11229 }
 0x75c   :  { %v8675_v33 = vmul.f32 %v11230_v1, %v8667_v13  ;;  %v8677_v55 = vmul.f32 %v11230_v1, %v8669_v9  ;;  %v8674_v21 = vmul.f32 %v11230_v1, %v8666_v22  ;;  %v8676_v16 = vmul.f32 %v11230_v1, %v8668_v30  ;;  %v11172_v13 = vld [vmem:[#allocation18 + $0x314] ss:$8 sps:$4 sm:$0xff]   ;;  %v11167_v9 = vld [vmem:[#allocation18 + $0x210] ss:$8 sps:$4 sm:$0xff]   ;;  %v11175_v30 = vld [vmem:[#allocation18 + $0x204] ss:$8 sps:$4 sm:$0xff]  }
 0x75d   :  { %v8679_v29 = vmul.f32 %v11230_v1, %v8671_v37  ;;  %v8681_v5 = vmul.f32 %v11230_v1, %v8673_v31  ;;  %v8678_v12 = vmul.f32 %v11230_v1, %v8670_v32  ;;  %v8680_v56 = vmul.f32 %v11230_v1, %v8672_v20  ;;  %v11170_v22 = vld [vmem:[#allocation18 + $0x310] ss:$8 sps:$4 sm:$0xff]   ;;  %v11178_v1 = vld [vmem:[#allocation18 + $0x304] ss:$8 sps:$4 sm:$0xff]   ;;  %v11173_v37 = vld [vmem:[#allocation18 + $0x200] ss:$8 sps:$4 sm:$0xff]  }
 0x75e   :  { %v8725_v7 = vmul.f32 %v8691_v2, %v8675_v33  ;;  %v8727_v57 = vmul.f32 %v8699_v0, %v8677_v55  ;;  %v8724_v63 = vmul.f32 %v8687_v54, %v8674_v21  ;;  %v8726_v39 = vmul.f32 %v8695_v61, %v8676_v16  ;;  %v11148_v2 = vld [vmem:[#allocation18 + $0x354] ss:$8 sps:$4 sm:$0xff]   ;;  %v11146_v0 = vld [vmem:[#allocation18 + $0x350] ss:$8 sps:$4 sm:$0xff]   ;;  %v11154_v54 = vld [vmem:[#allocation18 + $0x344] ss:$8 sps:$4 sm:$0xff]  }
 0x75f   :  { %v8729_v6 = vmul.f32 %v8707_v50, %v8679_v29  ;;  %v8731_v59 = vmul.f32 %v8715_v52, %v8681_v5  ;;  %v8728_v38 = vmul.f32 %v8703_v4, %v8678_v12  ;;  %v8730_v14 = vmul.f32 %v8711_v25, %v8680_v56  ;;  %v11152_v61 = vld [vmem:[#allocation18 + $0x340] ss:$8 sps:$4 sm:$0xff]   ;;  %v11160_v50 = vld [vmem:[#allocation18 + $0x334] ss:$8 sps:$4 sm:$0xff]   ;;  %v11158_v52 = vld [vmem:[#allocation18 + $0x330] ss:$8 sps:$4 sm:$0xff]  }
 0x760   :  { %v8775_v49 = vadd.f32 %v8741_v53, %v8725_v7  ;;  %v8777_v47 = vadd.f32 %v8749_v58, %v8727_v57  ;;  %v8774_v48 = vadd.f32 %v8737_v51, %v8724_v63  ;;  %v8776_v41 = vadd.f32 %v8745_v24, %v8726_v39  ;;  %v11143_v53 = vld [vmem:[#allocation18 + $0x250] ss:$8 sps:$4 sm:$0xff]   ;;  %v11151_v58 = vld [vmem:[#allocation18 + $0x244] ss:$8 sps:$4 sm:$0xff]   ;;  %v11149_v51 = vld [vmem:[#allocation18 + $0x240] ss:$8 sps:$4 sm:$0xff]  }
 0x761   :  { %v8779_v23 = vadd.f32 %v8757_v17, %v8729_v6  ;;  %v8781_v40 = vadd.f32 %v8765_v34, %v8731_v59  ;;  %v12201_v42 = vadd.f32 %v8753_v35, %v8728_v38  ;;  %v12203_v26 = vadd.f32 %v8761_v8, %v8730_v14  ;;  %v11157_v24 = vld [vmem:[#allocation18 + $0x234] ss:$8 sps:$4 sm:$0xff]   ;;  %v11155_v17 = vld [vmem:[#allocation18 + $0x230] ss:$8 sps:$4 sm:$0xff]   ;;  %v11163_v34 = vld [vmem:[#allocation18 + $0x224] ss:$8 sps:$4 sm:$0xff]  }
 0x762   :  { %v8783_v18 = vpack.c.bf16 %v8775_v49, %v8775_v49  ;;  %v8785_v36 = vpack.c.bf16 %v8777_v47, %v8777_v47  ;;  %v8782_v28 = vpack.c.bf16 %v8774_v48, %v8774_v48  ;;  %v8784_v45 = vpack.c.bf16 %v8776_v41, %v8776_v41  ;;  %v11166_v4 = vld [vmem:[#allocation18 + $0x324] ss:$8 sps:$4 sm:$0xff]   ;;  %v11161_v35 = vld [vmem:[#allocation18 + $0x220] ss:$8 sps:$4 sm:$0xff]   ;;  %v11169_v8 = vld [vmem:[#allocation18 + $0x214] ss:$8 sps:$4 sm:$0xff]  }
 0x763   :  { %v8787_v62 = vpack.c.bf16 %v8779_v23, %v8779_v23  ;;  %v8789_v3 = vpack.c.bf16 %v8781_v40, %v8781_v40  ;;  %v11164_v25 = vld [vmem:[#allocation18 + $0x320] ss:$8 sps:$4 sm:$0xff]   ;;  %v11181_v32 = vld [vmem:[#allocation18 + $0x2f4] ss:$8 sps:$4 sm:$0xff]   ;;  %v11179_v33 = vld [vmem:[#allocation18 + $0x2f0] ss:$8 sps:$4 sm:$0xff]  }
 0x764   :  { %9602 = vmatprep.mubr.bf16.mxu0 %v8783_v18  ;;  %9643 = vmatprep.mubr.bf16.mxu1 %v8785_v36  ;;  %v11176_v31 = vld [vmem:[#allocation18 + $0x300] ss:$8 sps:$4 sm:$0xff]   ;;  %v11184_v20 = vld [vmem:[#allocation18 + $0x3f4] ss:$8 sps:$4 sm:$0xff]   ;;  %v11182_v55 = vld [vmem:[#allocation18 + $0x3f0] ss:$8 sps:$4 sm:$0xff]  }
 0x765   :  { %9603 = vmatmul.mubr.bf16.vlgmr.msra.gmra.mxu0 %v8782_v28  ;;  %9644 = vmatmul.mubr.bf16.vlgmr.msra.gmra.mxu1 %v8784_v45  ;;  %v11187_v21 = vld [vmem:[#allocation18 + $0x2e4] ss:$8 sps:$4 sm:$0xff]   ;;  %v11185_v29 = vld [vmem:[#allocation18 + $0x2e0] ss:$8 sps:$4 sm:$0xff]   ;;  %v11193_v12 = vld [vmem:[#allocation18 + $0x2d4] ss:$8 sps:$4 sm:$0xff]  }
 0x766   :  { %9653 = vmatpush1.bf16.msra.mxu0 %v11131_v27  ;;  %9694 = vmatpush1.bf16.msra.mxu1 %v11134_v44  ;;  %v11190_v16 = vld [vmem:[#allocation18 + $0x3e4] ss:$8 sps:$4 sm:$0xff]   ;;  %v11188_v5 = vld [vmem:[#allocation18 + $0x3e0] ss:$8 sps:$4 sm:$0xff]   ;;  %v11196_v56 = vld [vmem:[#allocation18 + $0x3d4] ss:$8 sps:$4 sm:$0xff]  }
 0x767   :  { %9684 = vmatprep.mubr.bf16.mxu0 %v8787_v62  ;;  %9725 = vmatprep.mubr.bf16.mxu1 %v8789_v3  ;;  %v11191_v7 = vld [vmem:[#allocation18 + $0x2d0] ss:$8 sps:$4 sm:$0xff]   ;;  %v11199_v63 = vld [vmem:[#allocation18 + $0x2c4] ss:$8 sps:$4 sm:$0xff]   ;;  %v11197_v6 = vld [vmem:[#allocation18 + $0x2c0] ss:$8 sps:$4 sm:$0xff]   ;;  %v8786_v62 = vpack.c.bf16 %v12201_v42, %v12201_v42  ;;  %v8788_v3 = vpack.c.bf16 %v12203_v26, %v12203_v26 }
 0x768   :  { %9654 = vmatprep.subr.bf16.mxu0 %v11139_v43  ;;  %9695 = vmatprep.subr.bf16.mxu1 %v11142_v46  ;;  %v11194_v57 = vld [vmem:[#allocation18 + $0x3d0] ss:$8 sps:$4 sm:$0xff]   ;;  %v11202_v39 = vld [vmem:[#allocation18 + $0x3c4] ss:$8 sps:$4 sm:$0xff]   ;;  %v11200_v59 = vld [vmem:[#allocation18 + $0x3c0] ss:$8 sps:$4 sm:$0xff]  }
 0x769   :  { %v11205_v38 = vld [vmem:[#allocation18 + $0x2b4] ss:$8 sps:$4 sm:$0xff]   ;;  %v11203_v49 = vld [vmem:[#allocation18 + $0x2b0] ss:$8 sps:$4 sm:$0xff]   ;;  %v11211_v48 = vld [vmem:[#allocation18 + $0x2a4] ss:$8 sps:$4 sm:$0xff]  }
 0x76a   :  { %9655 = vmatpush1.bf16.msra.mxu0 %v11137_v10  ;;  %9696 = vmatpush1.bf16.msra.mxu1 %v11140_v60  ;;  %v11208_v14 = vld [vmem:[#allocation18 + $0x3b4] ss:$8 sps:$4 sm:$0xff]   ;;  %v11206_v47 = vld [vmem:[#allocation18 + $0x3b0] ss:$8 sps:$4 sm:$0xff]   ;;  %v11214_v41 = vld [vmem:[#allocation18 + $0x3a4] ss:$8 sps:$4 sm:$0xff]  }
 0x76b   :  { %9656 = vmatprep.subr.bf16.mxu0 %v11145_v15  ;;  %9697 = vmatprep.subr.bf16.mxu1 %v11148_v2  ;;  %v11209_v23 = vld [vmem:[#allocation18 + $0x2a0] ss:$8 sps:$4 sm:$0xff]   ;;  %v11217_v18 = vld [vmem:[#allocation18 + $0x294] ss:$8 sps:$4 sm:$0xff]   ;;  %v11215_v27 = vld [vmem:[#allocation18 + $0x290] ss:$8 sps:$4 sm:$0xff]  }
 0x76c   :  { %v11212_v40 = vld [vmem:[#allocation18 + $0x3a0] ss:$8 sps:$4 sm:$0xff]   ;;  %v11220_v36 = vld [vmem:[#allocation18 + $0x394] ss:$8 sps:$4 sm:$0xff]   ;;  %v11218_v44 = vld [vmem:[#allocation18 + $0x390] ss:$8 sps:$4 sm:$0xff]  }
 0x76d   :  { %v11223_v28 = vld [vmem:[#allocation18 + $0x284] ss:$8 sps:$4 sm:$0xff]   ;;  %v11221_v43 = vld [vmem:[#allocation18 + $0x280] ss:$8 sps:$4 sm:$0xff]  }
 0x76e   :  { %9657 = vmatpush1.bf16.msra.mxu0 %v11143_v53  ;;  %9698 = vmatpush1.bf16.msra.mxu1 %v11146_v0  ;;  %v11226_v45 = vld [vmem:[#allocation18 + $0x384] ss:$8 sps:$4 sm:$0xff]   ;;  %v11224_v46 = vld [vmem:[#allocation18 + $0x380] ss:$8 sps:$4 sm:$0xff]  }
 0x76f   :  { %9658 = vmatprep.subr.bf16.mxu0 %v11151_v58  ;;  %9699 = vmatprep.subr.bf16.mxu1 %v11154_v54 }
 0x772   :  { %9659 = vmatpush1.bf16.msra.mxu0 %v11149_v51  ;;  %9700 = vmatpush1.bf16.msra.mxu1 %v11152_v61  ;;  %v8918_v51 = vld [vmem:[#allocation20] sm:$0x3] }
 0x773   :  { %9660 = vmatprep.subr.bf16.mxu0 %v11157_v24  ;;  %9701 = vmatprep.subr.bf16.mxu1 %v11160_v50  ;;  %v8923_v61 = vrot.slane %v8918_v51, %v12240_v19  ;;  %v8927_v24 = vrot.slane %v8918_v51, %v11672_v11 }
 0x776   :  { %9661 = vmatpush1.bf16.msra.mxu0 %v11155_v17  ;;  %9702 = vmatpush1.bf16.msra.mxu1 %v11158_v52 }
 0x777   :  { %9662 = vmatprep.subr.bf16.mxu0 %v11163_v34  ;;  %9703 = vmatprep.subr.bf16.mxu1 %v11166_v4 }
 0x77a   :  { %9663 = vmatpush1.bf16.msra.mxu0 %v11161_v35  ;;  %9704 = vmatpush1.bf16.msra.mxu1 %v11164_v25 }
 0x77b   :  { %9664 = vmatprep.subr.bf16.mxu0 %v11169_v8  ;;  %9705 = vmatprep.subr.bf16.mxu1 %v11172_v13 }
 0x77e   :  { %9665 = vmatpush1.bf16.msra.mxu0 %v11167_v9  ;;  %9706 = vmatpush1.bf16.msra.mxu1 %v11170_v22 }
 0x77f   :  { %9666 = vmatprep.subr.bf16.mxu0 %v11175_v30  ;;  %9707 = vmatprep.subr.bf16.mxu1 %v11178_v1  ;;  %v9750_v30 = vld [vmem:[#allocation21] sm:$0x3] }
 0x782   :  { %9667 = vmatpush1.bf16.msra.mxu0 %v11173_v37  ;;  %9708 = vmatpush1.bf16.msra.mxu1 %v11176_v31  ;;  %v9759_v31 = vrot.slane %v9750_v30, %v11672_v11 }
 0x783   :  { %9668 = vmatprep.subr.bf16.mxu0 %v11181_v32  ;;  %9709 = vmatprep.subr.bf16.mxu1 %v11184_v20 }
 0x786   :  { %9669 = vmatpush2.bf16.msra.mxu0 %v11179_v33  ;;  %9710 = vmatpush2.bf16.msra.mxu1 %v11182_v55  ;;  %v9755_v55 = vrot.slane %v9750_v30, %v12240_v19 }
 0x787   :  { %9670 = vmatprep.subr.bf16.mxu0 %v11187_v21  ;;  %9711 = vmatprep.subr.bf16.mxu1 %v11190_v16 }
 0x78a   :  { %9671 = vmatpush2.bf16.msra.mxu0 %v11185_v29  ;;  %9712 = vmatpush2.bf16.msra.mxu1 %v11188_v5 }
 0x78b   :  { %9672 = vmatprep.subr.bf16.mxu0 %v11193_v12  ;;  %9713 = vmatprep.subr.bf16.mxu1 %v11196_v56 }
 0x78e   :  { %9673 = vmatpush2.bf16.msra.mxu0 %v11191_v7  ;;  %9714 = vmatpush2.bf16.msra.mxu1 %v11194_v57 }
 0x78f   :  { %9674 = vmatprep.subr.bf16.mxu0 %v11199_v63  ;;  %9715 = vmatprep.subr.bf16.mxu1 %v11202_v39 }
 0x792   :  { %9675 = vmatpush2.bf16.msra.mxu0 %v11197_v6  ;;  %9716 = vmatpush2.bf16.msra.mxu1 %v11200_v59 }
 0x793   :  { %9676 = vmatprep.subr.bf16.mxu0 %v11205_v38  ;;  %9717 = vmatprep.subr.bf16.mxu1 %v11208_v14  ;;  %v10998_v14 = vld [vmem:[#allocation2] ss:$0 sm:$0xff] }
 0x796   :  { %9677 = vmatpush2.bf16.msra.mxu0 %v11203_v49  ;;  %9718 = vmatpush2.bf16.msra.mxu1 %v11206_v47 }
 0x797   :  { %9678 = vmatprep.subr.bf16.mxu0 %v11211_v48  ;;  %9719 = vmatprep.subr.bf16.mxu1 %v11214_v41  ;;  %v10999_v41 = vld [vmem:[#allocation3] ss:$0 sm:$0xff] }
 0x79a   :  { %9679 = vmatpush2.bf16.msra.mxu0 %v11209_v23  ;;  %9720 = vmatpush2.bf16.msra.mxu1 %v11212_v40 }
 0x79b   :  { %9680 = vmatprep.subr.bf16.mxu0 %v11217_v18  ;;  %9721 = vmatprep.subr.bf16.mxu1 %v11220_v36 }
 0x79e   :  { %9681 = vmatpush2.bf16.msra.mxu0 %v11215_v27  ;;  %9722 = vmatpush2.bf16.msra.mxu1 %v11218_v44 }
 0x79f   :  { %9682 = vmatprep.subr.bf16.mxu0 %v11223_v28  ;;  %9723 = vmatprep.subr.bf16.mxu1 %v11226_v45 }
 0x7a2   :  { %9683 = vmatpush2.bf16.msra.mxu0 %v11221_v43  ;;  %9724 = vmatpush2.bf16.msra.mxu1 %v11224_v46 }
 0x7a5   :  { %9685 = vmatmul.mubr.bf16.vlgmr.msra.gmra.mxu0 %v8786_v62  ;;  %9726 = vmatmul.mubr.bf16.vlgmr.msra.gmra.mxu1 %v8788_v3 }
 0x825   :  { %v9604_v10 = vpop.f32.mrf.mxu0  ;;  %v9645_v60 = vpop.f32.mrf.mxu1 }
 0x826   :  { %v9605_v50 = vadd.f32 %v9604_v10, %v8923_v61 }
 0x827   :  { %v9606_v15 = vpop.f32.mrf.mxu0  ;;  %v9647_v2 = vpop.f32.mrf.mxu1 }
 0x828   :  { %v9607_v42 = vadd.f32 %v9606_v15, %v8927_v24  ;;  %v9646_v17 = vadd.f32 %v9645_v60, %v9605_v50 }
 0x829   :  { %v9608_v53 = vpop.f32.mrf.mxu0  ;;  %v9649_v0 = vpop.f32.mrf.mxu1 }
 0x82a   :  { %v9648_v34 = vadd.f32 %v9647_v2, %v9607_v42 }
 0x82b   :  { %v9609_v58 = vpop.f32.mrf.mxu0  ;;  %v9650_v54 = vpop.f32.mrf.mxu1 }
 0x865   :  { %v9686_v52 = vpop.f32.mrf.mxu0  ;;  %v9727_v26 = vpop.f32.mrf.mxu1 }
 0x866   :  { %v9687_v4 = vadd.f32 %v9686_v52, %v9646_v17 }
 0x867   :  { %v9688_v35 = vpop.f32.mrf.mxu0  ;;  %v9729_v25 = vpop.f32.mrf.mxu1 }
 0x868   :  { %v9728_v8 = vadd.f32 %v9727_v26, %v9687_v4  ;;  %v9689_v13 = vadd.f32 %v9688_v35, %v9648_v34 }
 0x869   :  { %v9690_v9 = vpop.f32.mrf.mxu0  ;;  %v9731_v22 = vpop.f32.mrf.mxu1 }
 0x86a   :  { %v9734_v1 = vmax.f32 %v9728_v8, 0.0  ;;  %v9730_v37 = vadd.f32 %v9729_v25, %v9689_v13 }
 0x86b   :  { %v9691_v32 = vpop.f32.mrf.mxu0  ;;  %v9732_v20 = vpop.f32.mrf.mxu1 }
 0x86c   :  { %v9735_v33 = vmax.f32 %v9730_v37, 0.0  ;;  %v9739_v16 = vmul.f32 %v9734_v1, %v9734_v1  ;;  %v9762_v56 = vmul.f32 %v9755_v55, %v9734_v1 }
 0x86e   :  { %v9736_v21 = vadd.f32 %v9735_v33, %v9734_v1  ;;  %v9740_v29 = vmul.f32 %v9735_v33, %v9735_v33  ;;  %v9763_v5 = vmul.f32 %v9759_v31, %v9735_v33 }
 0x870   :  { %9737 = vadd.xlane.f32.xlu0 %v9736_v21  ;;  %v9741_v12 = vadd.f32 %v9740_v29, %v9739_v16  ;;  %v9764_v7 = vadd.f32 %v9763_v5, %v9762_v56 }
 0x872   :  { %9742 = vadd.xlane.f32.xlu1 %v9741_v12 }
 0x874   :  { %9765 = vadd.xlane.f32.xlu0 %v9764_v7 }
 0x8f9   :  { %v9738_v57 = vpop.xlane.xlu0 %9737 }
 0x8fa   :  { %v9744_v63 = vmul.f32 0.00390625, %v9738_v57 }
 0x8fb   :  { %v9743_v39 = vpop.xlane.xlu1 %9742 }
 0x8fc   :  { %v9746_v6 = vmul.f32 %v9744_v63, %v9744_v63  ;;  %v9745_v11 = vmul.f32 0.00390625, %v9743_v39  ;;  %v9774_v19 = vmul.f32 %v10998_v14, %v9744_v63 }
 0x8fd   :  { %v9766_v49 = vpop.xlane.xlu0 %9765 }
 0x8fe   :  { %v9747_v59 = vsub.f32 %v9745_v11, %v9746_v6  ;;  %v9775_v47 = vsub.f32 %v9766_v49, %v9774_v19 }
 0x900   :  { %v9748_v38 = vadd.f32 1e-05, %v9747_v59 }
 0x902   :  { %11231 = vrsqrt.f32 %v9748_v38 }
 0x90f   :  { %v11232_v48 = vpop.eup %11231 }
 0x910   :  { %v9776_v23 = vmul.f32 %v11232_v48, %v9775_v47 }
 0x912   :  { %v9784_v40 = vadd.f32 %v10999_v41, %v9776_v23 }
 0x914   :  { %9786 = vst.msk [vmem:[%s12229_s14] sm:$0xff] %vm9785_vm2, %v9784_v40 }
 0x915   :  { %9791 = vsyncpa [#allocation5], 1 }
 0x916   :  { %9792 = vsyncpa [#allocation7], 1 }
 0x917   :  { %9793 = vsyncpa [#allocation10], 1 }
 0x918   :  { %9794 = vsyncpa [#allocation13], 1 }
 0x919   :  { %9795 = vsyncpa [#allocation16], 1 }
 0x91a   :  { %9796 = vsyncpa [#allocation19], 1 }
 0x91b   :  { %9797 = vsyncpa [#allocation22], 1 }

</bundles_post_ra>
